<compile_context>
chip_gen: v5e
topology: v5e:2x2
jax: 0.10.0
libtpu: 0.0.40
codegen_flags: <defaults>
</compile_context>

<pallas_src>
import functools

import jax
import jax.numpy as jnp
import numpy as np
from jax.experimental import pallas as pl
from jax.experimental.pallas import tpu as pltpu


_VMEM_CAP = None


def _vmem_capacity_bytes():
    """Physical per-core VMEM (cached); conservative fallback if query fails."""
    global _VMEM_CAP
    if _VMEM_CAP is None:
        try:
            _VMEM_CAP = int(pltpu.get_tpu_info().vmem_capacity_bytes)
        except Exception:
            _VMEM_CAP = 64 << 20  # v7x physical size: safe lower bound everywhere
    return _VMEM_CAP


# ----------------------------------------------------------------------------
# Pallas kernel: one decoder timestep (for one batch block) per grid iteration.
# ----------------------------------------------------------------------------
def _decoder_step_kernel(
    num_pixels,    # python int (closed over): real P before lane padding
    bst_ref,       # SMEM (T,) int32  — batch_size_t per step (scalar prefetch)
    att1_ref,      # (Bb, Pp, A) bf16  precomputed encoder_att(enc) + b_ea
    enc_ref,       # (Bb, Pp, D) bf16  encoder_out (sorted, pixel-padded)
    h0_ref,        # (Bb, N) f32       init_h(mean(enc))
    c0_ref,        # (Bb, N) f32       init_c(mean(enc))
    emb_ref,       # (1, Bb, E) f32    embedding of token at step t
    w_h_ref,       # (N, A+D+4N) bf16  [w_da | w_fb | w_hh]
    b_h_ref,       # (1, A+D+4N) f32   [b_da | b_fb | b_ih+b_hh]
    w_x_ref,       # (E+D, 4N) bf16    [w_ih_e ; w_ih_a]
    w_fa_ref,      # (1, A) f32        full_att weight (bias dropped: shift-inv.)
    h_out_ref,     # out (1, Bb, N) f32   new hidden state (fc applied in wrapper)
    alpha_ref,     # out (1, Bb, Pp) f32
    h_scr,         # scratch (Bb, N) f32
    c_scr,         # scratch (Bb, N) f32
):
    bi = pl.program_id(0)          # batch block (parallel)
    t = pl.program_id(1)           # time step (sequential)

    # init_hidden_state was computed in the wrapper; load it at t == 0.
    @pl.when(t == 0)
    def _():
        h_scr[...] = h0_ref[...]
        c_scr[...] = c0_ref[...]

    h = h_scr[...]                 # (Bb, N) f32
    c = c_scr[...]                 # (Bb, N) f32
    Bb, Pp, A = att1_ref.shape
    D = enc_ref.shape[-1]
    N = h.shape[-1]

    # ---- fused h projection: [decoder_att | f_beta | lstm_hh] (bf16 MXU) ----
    hproj = jnp.dot(h.astype(jnp.bfloat16), w_h_ref[...],
                    preferred_element_type=jnp.float32) + b_h_ref[...]
    att2 = hproj[:, :A]                              # decoder_att(h) + b_da
    gate = jax.nn.sigmoid(hproj[:, A:A + D])         # sigmoid(f_beta(h))
    hh_gates = hproj[:, A + D:]                      # h @ w_hh + (b_ih + b_hh)
    # TODO(synk): on v6e/v7x the sigmoid/tanh blocks could run in bf16 (bf16 EUP).

    # ---- SoftAttention -------------------------------------------------------
    e = jnp.maximum(att1_ref[...].astype(jnp.float32) + att2[:, None, :], 0.0)
    att = jnp.sum(e * w_fa_ref[...], axis=-1)        # (Bb, Pp); full_att bias
    #                                                #  omitted (softmax shift-inv.)
    if num_pixels != Pp:                             # only when lane padding exists
        pix = jax.lax.broadcasted_iota(jnp.int32, (Bb, Pp), 1)
        att = jnp.where(pix < num_pixels, att, -1e30)
    att = att - jnp.max(att, axis=1, keepdims=True)
    exp_att = jnp.exp(att)
    alpha = exp_att * pl.reciprocal(
        jnp.sum(exp_att, axis=1, keepdims=True), approx=True)        # (Bb, Pp)

    # attention-weighted encoding on the VPU (sublane reduce over Pp); frees MXU.
    awe = jnp.sum(enc_ref[...].astype(jnp.float32) * alpha[:, :, None], axis=1)
    awe = gate * awe                                                  # (Bb, D)

    # ---- LSTMCell (torch gate order: i, f, g, o), bf16 MXU / f32 accumulate --
    x = jnp.concatenate([emb_ref[0], awe], axis=1).astype(jnp.bfloat16)  # (Bb, E+D)
    gates = jnp.dot(x, w_x_ref[...], preferred_element_type=jnp.float32) + hh_gates
    i_g = jax.nn.sigmoid(gates[:, 0 * N:1 * N])
    f_g = jax.nn.sigmoid(gates[:, 1 * N:2 * N])
    g_g = jnp.tanh(gates[:, 2 * N:3 * N])
    o_g = jax.nn.sigmoid(gates[:, 3 * N:4 * N])
    c_new = f_g * c + i_g * g_g
    h_new = o_g * jnp.tanh(c_new)

    # ---- outputs: fc + valid-row masking happen in the wrapper ---------------
    h_out_ref[0] = h_new
    alpha_ref[0] = alpha

    # ---- shrinking batch: global rows [0, batch_size_t) are active -----------
    bst_t = bst_ref[t]
    row = bi * Bb + jax.lax.broadcasted_iota(jnp.int32, (Bb, 1), 0)
    valid = row < bst_t
    h_scr[...] = jnp.where(valid, h_new, h)
    c_scr[...] = jnp.where(valid, c_new, c)


# ----------------------------------------------------------------------------
# Jitted glue: sorting, embedding lookup, hoisted precompute, pallas_call, fc.
# ----------------------------------------------------------------------------
def _forward_impl(params, encoder_out, encoded_captions, caption_lengths, *,
                  T, single_buffer):
    B = encoder_out.shape[0]
    D = encoder_out.shape[-1]
    enc = encoder_out.reshape(B, -1, D)                  # (B, P, D)
    P = enc.shape[1]
    N = params["w_hh"].shape[0]
    A = params["w_da"].shape[1]
    E = params["w_ih_e"].shape[0]
    V = params["w_fc"].shape[1]

    cap_len = caption_lengths[:, 0]
    sort_ind = jnp.argsort(-cap_len)                     # descending
    cap_len_sorted = cap_len[sort_ind]
    enc_sorted = enc[sort_ind]
    caps_sorted = encoded_captions[sort_ind]
    decode_lengths = (cap_len_sorted - 1).astype(jnp.int32)

    # Per-timestep active batch size (lengths sorted descending) -> SMEM.
    bst = jnp.sum(
        decode_lengths[None, :] > jnp.arange(T, dtype=jnp.int32)[:, None],
        axis=1,
    ).astype(jnp.int32)                                  # (T,)

    # ---- padding: batch to sublane multiple (8), pixels to lane multiple (128)
    B_pad = max(8, ((B + 7) // 8) * 8)
    P_pad = max(128, ((P + 127) // 128) * 128)
    enc_b = jnp.pad(enc_sorted, ((0, B_pad - B), (0, 0), (0, 0))) if B_pad > B else enc_sorted

    # ---- hoisted time-invariant work (fused under jit; ran eagerly before) ---
    att1 = jnp.einsum("bpd,da->bpa", enc_b, params["w_ea"]) + params["b_ea"]
    mean_enc = jnp.mean(enc_b, axis=1)
    h0 = mean_enc @ params["w_init_h"] + params["b_init_h"]
    c0 = mean_enc @ params["w_init_c"] + params["b_init_c"]

    pad_p = P_pad - P
    enc_p = (jnp.pad(enc_b, ((0, 0), (0, pad_p), (0, 0))) if pad_p else enc_b
             ).astype(jnp.bfloat16)
    att1_p = (jnp.pad(att1, ((0, 0), (0, pad_p), (0, 0))) if pad_p else att1
              ).astype(jnp.bfloat16)
    # TODO(synk): at production sizes (D=2048, Pp=256, B=32) enc_p is still large;
    # on v7x additionally tile/stream the Pp axis with manual DMA if needed.

    # ---- fused weights (MXU operands bf16, biases f32) -----------------------
    w_h = jnp.concatenate([params["w_da"], params["w_fb"], params["w_hh"]],
                          axis=1).astype(jnp.bfloat16)
    b_h = jnp.concatenate([params["b_da"], params["b_fb"], params["b_lstm"]], axis=1)
    w_x = jnp.concatenate([params["w_ih_e"], params["w_ih_a"]],
                          axis=0).astype(jnp.bfloat16)
    w_fa = params["w_fa"]

    embeddings = params["embedding"][caps_sorted]        # (B, L, E)
    emb_tbf = jnp.transpose(embeddings[:, :T, :], (1, 0, 2))   # (T, B, E)
    if B_pad > B:
        emb_tbf = jnp.pad(emb_tbf, ((0, 0), (0, B_pad - B), (0, 0)))

    # ---- batch blocks: "parallel" axis shards across TensorCores -------------
    n_blk = 2 if (B_pad >= 16 and B_pad % 16 == 0) else 1
    B_blk = B_pad // n_blk

    # TODO(synk): verify via Mosaic dump / DMA counters that the t-invariant index
    # maps skip the per-step refetch; otherwise move the big constants to
    # memory_space=pl.ANY + one-shot make_async_copy under pl.when(t == 0).
    def const_spec(shape, index_map):
        if single_buffer:
            return pl.BlockSpec(shape, index_map,
                                pipeline_mode=pl.Buffered(buffer_count=1))
        return pl.BlockSpec(shape, index_map)

    in_specs = [
        const_spec((B_blk, P_pad, A), lambda bi, t, bst_r: (bi, 0, 0)),  # att1_p
        const_spec((B_blk, P_pad, D), lambda bi, t, bst_r: (bi, 0, 0)),  # enc_p
        const_spec((B_blk, N), lambda bi, t, bst_r: (bi, 0)),            # h0
        const_spec((B_blk, N), lambda bi, t, bst_r: (bi, 0)),            # c0
        pl.BlockSpec((1, B_blk, E), lambda bi, t, bst_r: (t, bi, 0)),    # emb (per-t)
        const_spec(w_h.shape, lambda bi, t, bst_r: (0, 0)),
        const_spec(b_h.shape, lambda bi, t, bst_r: (0, 0)),
        const_spec(w_x.shape, lambda bi, t, bst_r: (0, 0)),
        const_spec(w_fa.shape, lambda bi, t, bst_r: (0, 0)),
    ]
    out_specs = [
        pl.BlockSpec((1, B_blk, N), lambda bi, t, bst_r: (t, bi, 0)),      # h_all
        pl.BlockSpec((1, B_blk, P_pad), lambda bi, t, bst_r: (t, bi, 0)),  # alphas
    ]

    # ---- per-chip VMEM budget (cap at ~85% of physical VMEM) -----------------
    const_bytes = (B_blk * P_pad * A * 2 + B_blk * P_pad * D * 2
                   + 2 * B_blk * N * 4
                   + w_h.size * 2 + b_h.size * 4 + w_x.size * 2 + w_fa.size * 4)
    stream_bytes = B_blk * E * 4 + B_blk * N * 4 + B_blk * P_pad * 4
    temps_bytes = 2 * B_blk * P_pad * max(A, D) * 4      # f32 up-casts of bf16 tiles
    scratch_bytes = 2 * B_blk * N * 4
    need = (const_bytes * (1 if single_buffer else 2) + 2 * stream_bytes
            + temps_bytes + scratch_bytes + (8 << 20))
    vmem_limit = int(min(max(need, 16 << 20), int(0.85 * _vmem_capacity_bytes())))

    h_all, alphas_t = pl.pallas_call(
        functools.partial(_decoder_step_kernel, P),
        out_shape=(
            jax.ShapeDtypeStruct((T, B_pad, N), jnp.float32),
            jax.ShapeDtypeStruct((T, B_pad, P_pad), jnp.float32),
        ),
        grid_spec=pltpu.PrefetchScalarGridSpec(
            num_scalar_prefetch=1,
            grid=(n_blk, T),
            in_specs=in_specs,
            out_specs=out_specs,
            scratch_shapes=[
                pltpu.VMEM((B_blk, N), jnp.float32),   # h
                pltpu.VMEM((B_blk, N), jnp.float32),   # c
            ],
        ),
        compiler_params=pltpu.CompilerParams(
            dimension_semantics=("parallel", "arbitrary"),
            vmem_limit_bytes=vmem_limit,
        ),
    )(bst, att1_p, enc_p, h0, c0, emb_tbf, w_h, b_h, w_x, w_fa)

    # ---- hoisted fc: one large (T*B, N) @ (N, V) matmul + valid-row mask -----
    # TODO(synk): nn.Dropout(p=0.5) before fc is identity in inference mode.
    preds_t = jnp.einsum("tbn,nv->tbv", h_all[:, :B, :], params["w_fc"]) + params["b_fc"]
    valid = jnp.arange(T, dtype=jnp.int32)[None, :] < decode_lengths[:, None]  # (B, T)
    predictions = jnp.where(valid[:, :, None], jnp.transpose(preds_t, (1, 0, 2)), 0.0)
    alphas = jnp.where(valid[:, :, None],
                       jnp.transpose(alphas_t[:, :B, :P], (1, 0, 2)), 0.0)
    return predictions, caps_sorted, decode_lengths, alphas, sort_ind


_forward_jit = jax.jit(_forward_impl, static_argnames=("T", "single_buffer"))


def decoder_with_attention_forward(params, encoder_out, encoded_captions, caption_lengths):
    # One host sync to make T static; everything else runs fused under jit.
    T = int(jnp.max(caption_lengths[:, 0])) - 1
    try:
        return _forward_jit(params, encoder_out, encoded_captions, caption_lengths,
                            T=T, single_buffer=True)
    except Exception:
        # Fallback if Buffered(1) single-buffering is rejected by this JAX build.
        return _forward_jit(params, encoder_out, encoded_captions, caption_lengths,
                            T=T, single_buffer=False)


# ----------------------------------------------------------------------------
# Pure-JAX reference (mirrors the PyTorch forward semantics) for verification.
# ----------------------------------------------------------------------------
def reference_forward(params, enc, emb, dl, T):
    B, P, D = enc.shape
    N = params["w_hh"].shape[0]
    mean_enc = enc.mean(axis=1)
    h = mean_enc @ params["w_init_h"] + params["b_init_h"]
    c = mean_enc @ params["w_init_c"] + params["b_init_c"]
    preds_all, alphas_all = [], []
    for t in range(T):
        att1 = jnp.einsum("bpd,da->bpa", enc, params["w_ea"]) + params["b_ea"]
        att2 = h @ params["w_da"] + params["b_da"]
        e = jnp.maximum(att1 + att2[:, None, :], 0.0)
        att = jnp.sum(e * params["w_fa"], axis=-1) + params["b_fa"]
        att = att - att.max(axis=1, keepdims=True)
        ea = jnp.exp(att)
        alpha = ea / ea.sum(axis=1, keepdims=True)
        awe = jnp.sum(enc * alpha[:, :, None], axis=1)
        gate = jax.nn.sigmoid(h @ params["w_fb"] + params["b_fb"])
        awe = gate * awe
        emb_t = emb[:, t, :]
        gates = (emb_t @ params["w_ih_e"] + awe @ params["w_ih_a"]
                 + h @ params["w_hh"] + params["b_lstm"])
        i_g = jax.nn.sigmoid(gates[:, :N])
        f_g = jax.nn.sigmoid(gates[:, N:2 * N])
        g_g = jnp.tanh(gates[:, 2 * N:3 * N])
        o_g = jax.nn.sigmoid(gates[:, 3 * N:])
        c_new = f_g * c + i_g * g_g
        h_new = o_g * jnp.tanh(c_new)
        pr = h_new @ params["w_fc"] + params["b_fc"]
        valid = (dl > t)[:, None]
        h = jnp.where(valid, h_new, h)
        c = jnp.where(valid, c_new, c)
        preds_all.append(jnp.where(valid, pr, 0.0))
        alphas_all.append(jnp.where(valid, alpha, 0.0))
    return jnp.stack(preds_all, axis=1), jnp.stack(alphas_all, axis=1)


# ----------------------------------------------------------------------------
# Deterministic parameter init (synthetic; shapes follow the nn.Module).
# ----------------------------------------------------------------------------
def init_params(key, *, enc_d, dec_d, att_d, emb_d, vocab):
    ks = jax.random.split(key, 24)
    s = 0.05
    r = lambda k, shape: jax.random.normal(k, shape, jnp.float32) * s
    return dict(
        embedding=jax.random.uniform(ks[0], (vocab, emb_d), jnp.float32, -0.1, 0.1),
        w_init_h=r(ks[1], (enc_d, dec_d)),  b_init_h=r(ks[2], (1, dec_d)),
        w_init_c=r(ks[3], (enc_d, dec_d)),  b_init_c=r(ks[4], (1, dec_d)),
        w_ea=r(ks[5], (enc_d, att_d)),      b_ea=r(ks[6], (1, att_d)),
        w_da=r(ks[7], (dec_d, att_d)),      b_da=r(ks[8], (1, att_d)),
        w_fa=r(ks[9], (1, att_d)),          b_fa=r(ks[10], (1, 1)),
        w_fb=r(ks[11], (dec_d, enc_d)),     b_fb=r(ks[12], (1, enc_d)),
        w_ih_e=r(ks[13], (emb_d, 4 * dec_d)),
        w_ih_a=r(ks[14], (enc_d, 4 * dec_d)),
        w_hh=r(ks[15], (dec_d, 4 * dec_d)),
        b_lstm=r(ks[16], (1, 4 * dec_d)),   # b_ih + b_hh combined
        w_fc=jax.random.uniform(ks[17], (dec_d, vocab), jnp.float32, -0.1, 0.1),
        b_fc=jnp.zeros((1, vocab), jnp.float32),
    )


if __name__ == "__main__":
    B, Hs, Ws = 4, 4, 4                     # batch, spatial (num_pixels = 16)
    ENC_D, DEC_D, ATT_D, EMB_D, VOCAB = 128, 128, 128, 128, 256
    L = 10                                  # max caption length

    key = jax.random.PRNGKey(0)
    k_enc, k_cap, k_par = jax.random.split(key, 3)

    encoder_out = jax.random.normal(k_enc, (B, Hs, Ws, ENC_D), jnp.float32)
    encoded_captions = jax.random.randint(k_cap, (B, L), 0, VOCAB, dtype=jnp.int32)
    caption_lengths = jnp.array([[7], [10], [5], [8]], dtype=jnp.int32)

    params = init_params(k_par, enc_d=ENC_D, dec_d=DEC_D, att_d=ATT_D,
                         emb_d=EMB_D, vocab=VOCAB)

    predictions, caps_sorted, decode_lengths, alphas, sort_ind = (
        decoder_with_attention_forward(params, encoder_out, encoded_captions,
                                       caption_lengths)
    )
    jax.block_until_ready(predictions)
    jax.block_until_ready(alphas)

    # ---- verification against a pure-JAX f32 reference ----------------------
    enc_sorted = encoder_out.reshape(B, -1, ENC_D)[sort_ind]
    emb_sorted = params["embedding"][caps_sorted]
    T = int(jnp.max(decode_lengths))
    ref_p, ref_a = reference_forward(params, enc_sorted, emb_sorted,
                                     decode_lengths, T)
    assert predictions.shape == (B, T, VOCAB)
    assert alphas.shape == (B, T, Hs * Ws)
    # bf16 MXU operands + approx softmax reciprocal -> slightly looser tolerance
    # for the logits; alphas remain tight.
    np.testing.assert_allclose(np.asarray(predictions), np.asarray(ref_p),
                               rtol=2e-2, atol=2e-2)
    np.testing.assert_allclose(np.asarray(alphas), np.asarray(ref_a),
                               rtol=1e-2, atol=1e-2)

    print("KERNEL_OK")
</pallas_src>

<mosaic_0001>
module attributes {stable_mosaic.version = 11 : i64} {
  func.func @_decoder_step_kernel(%arg0: i32, %arg1: i32, %arg2: memref<9xi32, #tpu.memory_space<smem>>, %arg3: memref<8x128x128xbf16, #tpu.memory_space<vmem>>, %arg4: memref<8x128x128xbf16, #tpu.memory_space<vmem>>, %arg5: memref<8x128xf32, #tpu.memory_space<vmem>>, %arg6: memref<8x128xf32, #tpu.memory_space<vmem>>, %arg7: memref<1x8x128xf32, #tpu.memory_space<vmem>>, %arg8: memref<128x768xbf16, #tpu.memory_space<vmem>>, %arg9: memref<1x768xf32, #tpu.memory_space<vmem>>, %arg10: memref<256x512xbf16, #tpu.memory_space<vmem>>, %arg11: memref<1x128xf32, #tpu.memory_space<vmem>>, %arg12: memref<1x8x128xf32, #tpu.memory_space<vmem>>, %arg13: memref<1x8x128xf32, #tpu.memory_space<vmem>>, %arg14: memref<8x128xf32, #tpu.memory_space<vmem>>, %arg15: memref<8x128xf32, #tpu.memory_space<vmem>>) attributes {dimension_semantics = [#tpu.dimension_semantics<parallel>, #tpu.dimension_semantics<arbitrary>], iteration_bounds = array<i64: 1, 9>, scalar_prefetch = 1 : i64, scratch_operands = 2 : i64, tpu.core_type = #tpu.core_type<tc>, window_params = [{pipeline_mode = #tpu.pipeline_mode<synchronous>, transform_indices = @transform_0, window_bounds = array<i64: 8, 128, 128>}, {pipeline_mode = #tpu.pipeline_mode<synchronous>, transform_indices = @transform_1, window_bounds = array<i64: 8, 128, 128>}, {pipeline_mode = #tpu.pipeline_mode<synchronous>, transform_indices = @transform_2, window_bounds = array<i64: 8, 128>}, {pipeline_mode = #tpu.pipeline_mode<synchronous>, transform_indices = @transform_3, window_bounds = array<i64: 8, 128>}, {transform_indices = @transform_4, window_bounds = array<i64: 1, 8, 128>}, {pipeline_mode = #tpu.pipeline_mode<synchronous>, transform_indices = @transform_5, window_bounds = array<i64: 128, 768>}, {pipeline_mode = #tpu.pipeline_mode<synchronous>, transform_indices = @transform_6, window_bounds = array<i64: 1, 768>}, {pipeline_mode = #tpu.pipeline_mode<synchronous>, transform_indices = @transform_7, window_bounds = array<i64: 256, 512>}, {pipeline_mode = #tpu.pipeline_mode<synchronous>, transform_indices = @transform_8, window_bounds = array<i64: 1, 128>}, {transform_indices = @transform_9, window_bounds = array<i64: 1, 8, 128>}, {transform_indices = @transform_10, window_bounds = array<i64: 1, 8, 128>}]} {
    %c0_i32 = arith.constant 0 : i32
    %0 = arith.cmpi eq, %arg1, %c0_i32 : i32
    %1 = arith.extui %0 : i1 to i32
    %c0_i32_0 = arith.constant 0 : i32
    %2 = arith.cmpi ne, %1, %c0_i32_0 : i32
    scf.if %2 {
      %c0_42 = arith.constant 0 : index
      %c0_43 = arith.constant 0 : index
      %107 = vector.load %arg5[%c0_42, %c0_43] : memref<8x128xf32, #tpu.memory_space<vmem>>, vector<8x128xf32>
      %c0_44 = arith.constant 0 : index
      %c0_45 = arith.constant 0 : index
      %108 = vector.load %arg14[%c0_44, %c0_45] : memref<8x128xf32, #tpu.memory_space<vmem>>, vector<8x128xf32>
      tpu.vector_store %arg14[%c0_44, %c0_45], %107 {strides = array<i32>} : memref<8x128xf32, #tpu.memory_space<vmem>>, vector<8x128xf32>,
      %c0_46 = arith.constant 0 : index
      %c0_47 = arith.constant 0 : index
      %109 = vector.load %arg6[%c0_46, %c0_47] : memref<8x128xf32, #tpu.memory_space<vmem>>, vector<8x128xf32>
      %c0_48 = arith.constant 0 : index
      %c0_49 = arith.constant 0 : index
      %110 = vector.load %arg15[%c0_48, %c0_49] : memref<8x128xf32, #tpu.memory_space<vmem>>, vector<8x128xf32>
      tpu.vector_store %arg15[%c0_48, %c0_49], %109 {strides = array<i32>} : memref<8x128xf32, #tpu.memory_space<vmem>>, vector<8x128xf32>,
    } else {
    }
    %c0 = arith.constant 0 : index
    %c0_1 = arith.constant 0 : index
    %3 = vector.load %arg14[%c0, %c0_1] : memref<8x128xf32, #tpu.memory_space<vmem>>, vector<8x128xf32>
    %c0_2 = arith.constant 0 : index
    %c0_3 = arith.constant 0 : index
    %4 = vector.load %arg15[%c0_2, %c0_3] : memref<8x128xf32, #tpu.memory_space<vmem>>, vector<8x128xf32>
    %5 = arith.truncf %3 : vector<8x128xf32> to vector<8x128xbf16>
    %c0_4 = arith.constant 0 : index
    %c0_5 = arith.constant 0 : index
    %6 = vector.load %arg8[%c0_4, %c0_5] : memref<128x768xbf16, #tpu.memory_space<vmem>>, vector<128x768xbf16>
    %cst = arith.constant dense<0.000000e+00> : vector<8x768xf32>
    %7 = tpu.matmul %5, %6, %cst {dimension_numbers = #tpu.dot_dimension_numbers<[1], [0], [0], [1], [0, 0, 1, 1], [], []>} : vector<8x128xbf16>, vector<128x768xbf16>, vector<8x768xf32> -> vector<8x768xf32>
    %c0_6 = arith.constant 0 : index
    %c0_7 = arith.constant 0 : index
    %8 = vector.load %arg9[%c0_6, %c0_7] : memref<1x768xf32, #tpu.memory_space<vmem>>, vector<1x768xf32>
    %9 = vector.broadcast %8 : vector<1x768xf32> to vector<8x768xf32>
    %10 = arith.addf %7, %9 : vector<8x768xf32>
    %11 = vector.extract_strided_slice %10 {offsets = [0, 0], sizes = [8, 128], strides = [1, 1]} : vector<8x768xf32> to vector<8x128xf32>
    %12 = vector.extract_strided_slice %10 {offsets = [0, 128], sizes = [8, 128], strides = [1, 1]} : vector<8x768xf32> to vector<8x128xf32>
    %13 = arith.negf %12 : vector<8x128xf32>
    %14 = math.exp %13 : vector<8x128xf32>
    %cst_8 = arith.constant 1.000000e+00 : f32
    %15 = vector.broadcast %cst_8 : f32 to vector<8x128xf32>
    %16 = arith.addf %15, %14 : vector<8x128xf32>
    %17 = arith.divf %15, %16 : vector<8x128xf32>
    %18 = vector.extract_strided_slice %10 {offsets = [0, 256], sizes = [8, 512], strides = [1, 1]} : vector<8x768xf32> to vector<8x512xf32>
    %c0_9 = arith.constant 0 : index
    %c0_10 = arith.constant 0 : index
    %c0_11 = arith.constant 0 : index
    %19 = vector.load %arg3[%c0_9, %c0_10, %c0_11] : memref<8x128x128xbf16, #tpu.memory_space<vmem>>, vector<8x128x128xbf16>
    %20 = arith.extf %19 : vector<8x128x128xbf16> to vector<8x128x128xf32>
    %21 = vector.shape_cast %11 : vector<8x128xf32> to vector<8x1x128xf32>
    %22 = vector.broadcast %21 : vector<8x1x128xf32> to vector<8x128x128xf32>
    %23 = arith.addf %20, %22 : vector<8x128x128xf32>
    %cst_12 = arith.constant 0.000000e+00 : f32
    %24 = vector.broadcast %cst_12 : f32 to vector<8x128x128xf32>
    %25 = arith.maximumf %23, %24 : vector<8x128x128xf32>
    %c0_13 = arith.constant 0 : index
    %c0_14 = arith.constant 0 : index
    %26 = vector.load %arg11[%c0_13, %c0_14] : memref<1x128xf32, #tpu.memory_space<vmem>>, vector<1x128xf32>
    %27 = vector.shape_cast %26 : vector<1x128xf32> to vector<1x1x128xf32>
    %28 = vector.broadcast %27 : vector<1x1x128xf32> to vector<8x128x128xf32>
    %29 = arith.mulf %25, %28 : vector<8x128x128xf32>
    %cst_15 = arith.constant dense<0.000000e+00> : vector<8x128xf32>
    %30 = vector.multi_reduction <add>, %29, %cst_15 [2] : vector<8x128x128xf32> to vector<8x128xf32>
    %31 = tpu.iota {dimensions = array<i32: 1>} : vector<8x128xi32>
    %c16_i32 = arith.constant 16 : i32
    %32 = vector.broadcast %c16_i32 : i32 to vector<8x128xi32>
    %33 = arith.cmpi slt, %31, %32 : vector<8x128xi32>
    %cst_16 = arith.constant -1.000000e+30 : f32
    %34 = vector.broadcast %cst_16 : f32 to vector<8x128xf32>
    %35 = arith.select %33, %30, %34 : vector<8x128xi1>, vector<8x128xf32>
    %cst_17 = arith.constant dense<0xFF800000> : vector<8xf32>
    %36 = vector.multi_reduction <maximumf>, %35, %cst_17 [1] : vector<8x128xf32> to vector<8xf32>
    %37 = vector.shape_cast %36 : vector<8xf32> to vector<8x1xf32>
    %38 = vector.broadcast %37 : vector<8x1xf32> to vector<8x128xf32>
    %39 = arith.subf %35, %38 : vector<8x128xf32>
    %40 = math.exp %39 : vector<8x128xf32>
    %cst_18 = arith.constant dense<0.000000e+00> : vector<8xf32>
    %41 = vector.multi_reduction <add>, %40, %cst_18 [1] : vector<8x128xf32> to vector<8xf32>
    %42 = vector.shape_cast %41 : vector<8xf32> to vector<8x1xf32>
    %43 = tpu.reciprocal %42 {approx = true} : vector<8x1xf32> -> vector<8x1xf32>
    %44 = vector.broadcast %43 : vector<8x1xf32> to vector<8x128xf32>
    %45 = arith.mulf %40, %44 : vector<8x128xf32>
    %c0_19 = arith.constant 0 : index
    %c0_20 = arith.constant 0 : index
    %c0_21 = arith.constant 0 : index
    %46 = vector.load %arg4[%c0_19, %c0_20, %c0_21] : memref<8x128x128xbf16, #tpu.memory_space<vmem>>, vector<8x128x128xbf16>
    %47 = arith.extf %46 : vector<8x128x128xbf16> to vector<8x128x128xf32>
    %48 = vector.shape_cast %45 : vector<8x128xf32> to vector<8x128x1xf32>
    %49 = vector.broadcast %48 : vector<8x128x1xf32> to vector<8x128x128xf32>
    %50 = arith.mulf %47, %49 : vector<8x128x128xf32>
    %cst_22 = arith.constant dense<0.000000e+00> : vector<8x128xf32>
    %51 = vector.multi_reduction <add>, %50, %cst_22 [1] : vector<8x128x128xf32> to vector<8x128xf32>
    %52 = arith.mulf %17, %51 : vector<8x128xf32>
    %c0_23 = arith.constant 0 : index
    %c0_24 = arith.constant 0 : index
    %c0_25 = arith.constant 0 : index
    %53 = vector.load %arg7[%c0_23, %c0_24, %c0_25] : memref<1x8x128xf32, #tpu.memory_space<vmem>>, vector<1x8x128xf32>
    %54 = vector.shape_cast %53 : vector<1x8x128xf32> to vector<8x128xf32>
    %55 = tpu.concatenate %54, %52 in 1 : vector<8x128xf32>, vector<8x128xf32> -> vector<8x256xf32>
    %56 = arith.truncf %55 : vector<8x256xf32> to vector<8x256xbf16>
    %c0_26 = arith.constant 0 : index
    %c0_27 = arith.constant 0 : index
    %57 = vector.load %arg10[%c0_26, %c0_27] : memref<256x512xbf16, #tpu.memory_space<vmem>>, vector<256x512xbf16>
    %cst_28 = arith.constant dense<0.000000e+00> : vector<8x512xf32>
    %58 = tpu.matmul %56, %57, %cst_28 {dimension_numbers = #tpu.dot_dimension_numbers<[1], [0], [0], [1], [0, 0, 1, 1], [], []>} : vector<8x256xbf16>, vector<256x512xbf16>, vector<8x512xf32> -> vector<8x512xf32>
    %59 = arith.addf %58, %18 : vector<8x512xf32>
    %60 = vector.extract_strided_slice %59 {offsets = [0, 0], sizes = [8, 128], strides = [1, 1]} : vector<8x512xf32> to vector<8x128xf32>
    %61 = arith.negf %60 : vector<8x128xf32>
    %62 = math.exp %61 : vector<8x128xf32>
    %cst_29 = arith.constant 1.000000e+00 : f32
    %63 = vector.broadcast %cst_29 : f32 to vector<8x128xf32>
    %64 = arith.addf %63, %62 : vector<8x128xf32>
    %65 = arith.divf %63, %64 : vector<8x128xf32>
    %66 = vector.extract_strided_slice %59 {offsets = [0, 128], sizes = [8, 128], strides = [1, 1]} : vector<8x512xf32> to vector<8x128xf32>
    %67 = arith.negf %66 : vector<8x128xf32>
    %68 = math.exp %67 : vector<8x128xf32>
    %cst_30 = arith.constant 1.000000e+00 : f32
    %69 = vector.broadcast %cst_30 : f32 to vector<8x128xf32>
    %70 = arith.addf %69, %68 : vector<8x128xf32>
    %71 = arith.divf %69, %70 : vector<8x128xf32>
    %72 = vector.extract_strided_slice %59 {offsets = [0, 256], sizes = [8, 128], strides = [1, 1]} : vector<8x512xf32> to vector<8x128xf32>
    %73 = math.tanh %72 : vector<8x128xf32>
    %74 = vector.extract_strided_slice %59 {offsets = [0, 384], sizes = [8, 128], strides = [1, 1]} : vector<8x512xf32> to vector<8x128xf32>
    %75 = arith.negf %74 : vector<8x128xf32>
    %76 = math.exp %75 : vector<8x128xf32>
    %cst_31 = arith.constant 1.000000e+00 : f32
    %77 = vector.broadcast %cst_31 : f32 to vector<8x128xf32>
    %78 = arith.addf %77, %76 : vector<8x128xf32>
    %79 = arith.divf %77, %78 : vector<8x128xf32>
    %80 = arith.mulf %71, %4 : vector<8x128xf32>
    %81 = arith.mulf %65, %73 : vector<8x128xf32>
    %82 = arith.addf %80, %81 : vector<8x128xf32>
    %83 = math.tanh %82 : vector<8x128xf32>
    %84 = arith.mulf %79, %83 : vector<8x128xf32>
    %c0_32 = arith.constant 0 : index
    %c0_33 = arith.constant 0 : index
    %c0_34 = arith.constant 0 : index
    %85 = vector.load %arg12[%c0_32, %c0_33, %c0_34] : memref<1x8x128xf32, #tpu.memory_space<vmem>>, vector<1x8x128xf32>
    %86 = vector.shape_cast %85 : vector<1x8x128xf32> to vector<8x128xf32>
    %87 = vector.shape_cast %84 : vector<8x128xf32> to vector<1x8x128xf32>
    tpu.vector_store %arg12[%c0_32, %c0_33, %c0_34], %87 {strides = array<i32>} : memref<1x8x128xf32, #tpu.memory_space<vmem>>, vector<1x8x128xf32>,
    %c0_35 = arith.constant 0 : index
    %c0_36 = arith.constant 0 : index
    %c0_37 = arith.constant 0 : index
    %88 = vector.load %arg13[%c0_35, %c0_36, %c0_37] : memref<1x8x128xf32, #tpu.memory_space<vmem>>, vector<1x8x128xf32>
    %89 = vector.shape_cast %88 : vector<1x8x128xf32> to vector<8x128xf32>
    %90 = vector.shape_cast %45 : vector<8x128xf32> to vector<1x8x128xf32>
    tpu.vector_store %arg13[%c0_35, %c0_36, %c0_37], %90 {strides = array<i32>} : memref<1x8x128xf32, #tpu.memory_space<vmem>>, vector<1x8x128xf32>,
    %91 = arith.index_cast %arg1 : i32 to index
    %92 = memref.load %arg2[%91] : memref<9xi32, #tpu.memory_space<smem>>
    %c8_i32 = arith.constant 8 : i32
    %93 = arith.muli %arg0, %c8_i32 : i32
    %94 = tpu.iota {dimensions = array<i32: 0>} : vector<8x1xi32>
    %95 = vector.broadcast %93 : i32 to vector<8x1xi32>
    %96 = arith.addi %95, %94 : vector<8x1xi32>
    %97 = vector.broadcast %92 : i32 to vector<8x1xi32>
    %98 = arith.cmpi slt, %96, %97 : vector<8x1xi32>
    %99 = vector.shape_cast %98 : vector<8x1xi1> to vector<8x1xi1>
    %100 = vector.broadcast %99 : vector<8x1xi1> to vector<8x128xi1>
    %101 = arith.select %100, %84, %3 : vector<8x128xi1>, vector<8x128xf32>
    %c0_38 = arith.constant 0 : index
    %c0_39 = arith.constant 0 : index
    %102 = vector.load %arg14[%c0_38, %c0_39] : memref<8x128xf32, #tpu.memory_space<vmem>>, vector<8x128xf32>
    tpu.vector_store %arg14[%c0_38, %c0_39], %101 {strides = array<i32>} : memref<8x128xf32, #tpu.memory_space<vmem>>, vector<8x128xf32>,
    %103 = vector.shape_cast %98 : vector<8x1xi1> to vector<8x1xi1>
    %104 = vector.broadcast %103 : vector<8x1xi1> to vector<8x128xi1>
    %105 = arith.select %104, %82, %4 : vector<8x128xi1>, vector<8x128xf32>
    %c0_40 = arith.constant 0 : index
    %c0_41 = arith.constant 0 : index
    %106 = vector.load %arg15[%c0_40, %c0_41] : memref<8x128xf32, #tpu.memory_space<vmem>>, vector<8x128xf32>
    tpu.vector_store %arg15[%c0_40, %c0_41], %105 {strides = array<i32>} : memref<8x128xf32, #tpu.memory_space<vmem>>, vector<8x128xf32>,
    return
  }
  func.func @transform_0(%arg0: i32, %arg1: i32, %arg2: memref<9xi32, #tpu.memory_space<smem>>) -> (i32, i32, i32) {
    %c0_i32 = arith.constant 0 : i32
    %c0_i32_0 = arith.constant 0 : i32
    %c0_i32_1 = arith.constant 0 : i32
    return %arg0, %c0_i32, %c0_i32_0 : i32, i32, i32
  }
  func.func @transform_1(%arg0: i32, %arg1: i32, %arg2: memref<9xi32, #tpu.memory_space<smem>>) -> (i32, i32, i32) {
    %c0_i32 = arith.constant 0 : i32
    %c0_i32_0 = arith.constant 0 : i32
    %c0_i32_1 = arith.constant 0 : i32
    return %arg0, %c0_i32, %c0_i32_0 : i32, i32, i32
  }
  func.func @transform_2(%arg0: i32, %arg1: i32, %arg2: memref<9xi32, #tpu.memory_space<smem>>) -> (i32, i32) {
    %c0_i32 = arith.constant 0 : i32
    %c0_i32_0 = arith.constant 0 : i32
    return %arg0, %c0_i32 : i32, i32
  }
  func.func @transform_3(%arg0: i32, %arg1: i32, %arg2: memref<9xi32, #tpu.memory_space<smem>>) -> (i32, i32) {
    %c0_i32 = arith.constant 0 : i32
    %c0_i32_0 = arith.constant 0 : i32
    return %arg0, %c0_i32 : i32, i32
  }
  func.func @transform_4(%arg0: i32, %arg1: i32, %arg2: memref<9xi32, #tpu.memory_space<smem>>) -> (i32, i32, i32) {
    %c0_i32 = arith.constant 0 : i32
    %c0_i32_0 = arith.constant 0 : i32
    return %arg1, %arg0, %c0_i32 : i32, i32, i32
  }
  func.func @transform_5(%arg0: i32, %arg1: i32, %arg2: memref<9xi32, #tpu.memory_space<smem>>) -> (i32, i32) {
    %c0_i32 = arith.constant 0 : i32
    %c0_i32_0 = arith.constant 0 : i32
    %c0_i32_1 = arith.constant 0 : i32
    return %c0_i32, %c0_i32_0 : i32, i32
  }
  func.func @transform_6(%arg0: i32, %arg1: i32, %arg2: memref<9xi32, #tpu.memory_space<smem>>) -> (i32, i32) {
    %c0_i32 = arith.constant 0 : i32
    %c0_i32_0 = arith.constant 0 : i32
    %c0_i32_1 = arith.constant 0 : i32
    return %c0_i32, %c0_i32_0 : i32, i32
  }
  func.func @transform_7(%arg0: i32, %arg1: i32, %arg2: memref<9xi32, #tpu.memory_space<smem>>) -> (i32, i32) {
    %c0_i32 = arith.constant 0 : i32
    %c0_i32_0 = arith.constant 0 : i32
    %c0_i32_1 = arith.constant 0 : i32
    return %c0_i32, %c0_i32_0 : i32, i32
  }
  func.func @transform_8(%arg0: i32, %arg1: i32, %arg2: memref<9xi32, #tpu.memory_space<smem>>) -> (i32, i32) {
    %c0_i32 = arith.constant 0 : i32
    %c0_i32_0 = arith.constant 0 : i32
    %c0_i32_1 = arith.constant 0 : i32
    return %c0_i32, %c0_i32_0 : i32, i32
  }
  func.func @transform_9(%arg0: i32, %arg1: i32, %arg2: memref<9xi32, #tpu.memory_space<smem>>) -> (i32, i32, i32) {
    %c0_i32 = arith.constant 0 : i32
    %c0_i32_0 = arith.constant 0 : i32
    return %arg1, %arg0, %c0_i32 : i32, i32, i32
  }
  func.func @transform_10(%arg0: i32, %arg1: i32, %arg2: memref<9xi32, #tpu.memory_space<smem>>) -> (i32, i32, i32) {
    %c0_i32 = arith.constant 0 : i32
    %c0_i32_0 = arith.constant 0 : i32
    return %arg1, %arg0, %c0_i32 : i32, i32, i32
  }
}

module attributes {stable_mosaic.version = 11 : i64} {
  func.func @_decoder_step_kernel(%arg0: i32, %arg1: i32, %arg2: memref<9xi32, #tpu.memory_space<smem>>, %arg3: memref<8x128x128xbf16, #tpu.memory_space<vmem>>, %arg4: memref<8x128x128xbf16, #tpu.memory_space<vmem>>, %arg5: memref<8x128xf32, #tpu.memory_space<vmem>>, %arg6: memref<8x128xf32, #tpu.memory_space<vmem>>, %arg7: memref<1x8x128xf32, #tpu.memory_space<vmem>>, %arg8: memref<128x768xbf16, #tpu.memory_space<vmem>>, %arg9: memref<1x768xf32, #tpu.memory_space<vmem>>, %arg10: memref<256x512xbf16, #tpu.memory_space<vmem>>, %arg11: memref<1x128xf32, #tpu.memory_space<vmem>>, %arg12: memref<1x8x128xf32, #tpu.memory_space<vmem>>, %arg13: memref<1x8x128xf32, #tpu.memory_space<vmem>>, %arg14: memref<8x128xf32, #tpu.memory_space<vmem>>, %arg15: memref<8x128xf32, #tpu.memory_space<vmem>>) attributes {dimension_semantics = [#tpu.dimension_semantics<parallel>, #tpu.dimension_semantics<arbitrary>], iteration_bounds = array<i64: 1, 9>, scalar_prefetch = 1 : i64, scratch_operands = 2 : i64, tpu.core_type = #tpu.core_type<tc>, window_params = [{transform_indices = @transform_0, window_bounds = array<i64: 8, 128, 128>}, {transform_indices = @transform_1, window_bounds = array<i64: 8, 128, 128>}, {transform_indices = @transform_2, window_bounds = array<i64: 8, 128>}, {transform_indices = @transform_3, window_bounds = array<i64: 8, 128>}, {transform_indices = @transform_4, window_bounds = array<i64: 1, 8, 128>}, {pipeline_mode = #tpu.pipeline_mode<synchronous>, transform_indices = @transform_5, window_bounds = array<i64: 128, 768>}, {pipeline_mode = #tpu.pipeline_mode<synchronous>, transform_indices = @transform_6, window_bounds = array<i64: 1, 768>}, {pipeline_mode = #tpu.pipeline_mode<synchronous>, transform_indices = @transform_7, window_bounds = array<i64: 256, 512>}, {pipeline_mode = #tpu.pipeline_mode<synchronous>, transform_indices = @transform_8, window_bounds = array<i64: 1, 128>}, {transform_indices = @transform_9, window_bounds = array<i64: 1, 8, 128>}, {transform_indices = @transform_10, window_bounds = array<i64: 1, 8, 128>}]} {
    %c0_i32 = arith.constant 0 : i32
    %0 = arith.cmpi eq, %arg1, %c0_i32 : i32
    %1 = arith.extui %0 : i1 to i32
    %c0_i32_0 = arith.constant 0 : i32
    %2 = arith.cmpi ne, %1, %c0_i32_0 : i32
    scf.if %2 {
      %c0_42 = arith.constant 0 : index
      %c0_43 = arith.constant 0 : index
      %107 = vector.load %arg5[%c0_42, %c0_43] : memref<8x128xf32, #tpu.memory_space<vmem>>, vector<8x128xf32>
      %c0_44 = arith.constant 0 : index
      %c0_45 = arith.constant 0 : index
      %108 = vector.load %arg14[%c0_44, %c0_45] : memref<8x128xf32, #tpu.memory_space<vmem>>, vector<8x128xf32>
      tpu.vector_store %arg14[%c0_44, %c0_45], %107 {strides = array<i32>} : memref<8x128xf32, #tpu.memory_space<vmem>>, vector<8x128xf32>,
      %c0_46 = arith.constant 0 : index
      %c0_47 = arith.constant 0 : index
      %109 = vector.load %arg6[%c0_46, %c0_47] : memref<8x128xf32, #tpu.memory_space<vmem>>, vector<8x128xf32>
      %c0_48 = arith.constant 0 : index
      %c0_49 = arith.constant 0 : index
      %110 = vector.load %arg15[%c0_48, %c0_49] : memref<8x128xf32, #tpu.memory_space<vmem>>, vector<8x128xf32>
      tpu.vector_store %arg15[%c0_48, %c0_49], %109 {strides = array<i32>} : memref<8x128xf32, #tpu.memory_space<vmem>>, vector<8x128xf32>,
    } else {
    }
    %c0 = arith.constant 0 : index
    %c0_1 = arith.constant 0 : index
    %3 = vector.load %arg14[%c0, %c0_1] : memref<8x128xf32, #tpu.memory_space<vmem>>, vector<8x128xf32>
    %c0_2 = arith.constant 0 : index
    %c0_3 = arith.constant 0 : index
    %4 = vector.load %arg15[%c0_2, %c0_3] : memref<8x128xf32, #tpu.memory_space<vmem>>, vector<8x128xf32>
    %5 = arith.truncf %3 : vector<8x128xf32> to vector<8x128xbf16>
    %c0_4 = arith.constant 0 : index
    %c0_5 = arith.constant 0 : index
    %6 = vector.load %arg8[%c0_4, %c0_5] : memref<128x768xbf16, #tpu.memory_space<vmem>>, vector<128x768xbf16>
    %cst = arith.constant dense<0.000000e+00> : vector<8x768xf32>
    %7 = tpu.matmul %5, %6, %cst {dimension_numbers = #tpu.dot_dimension_numbers<[1], [0], [0], [1], [0, 0, 1, 1], [], []>} : vector<8x128xbf16>, vector<128x768xbf16>, vector<8x768xf32> -> vector<8x768xf32>
    %c0_6 = arith.constant 0 : index
    %c0_7 = arith.constant 0 : index
    %8 = vector.load %arg9[%c0_6, %c0_7] : memref<1x768xf32, #tpu.memory_space<vmem>>, vector<1x768xf32>
    %9 = vector.broadcast %8 : vector<1x768xf32> to vector<8x768xf32>
    %10 = arith.addf %7, %9 : vector<8x768xf32>
    %11 = vector.extract_strided_slice %10 {offsets = [0, 0], sizes = [8, 128], strides = [1, 1]} : vector<8x768xf32> to vector<8x128xf32>
    %12 = vector.extract_strided_slice %10 {offsets = [0, 128], sizes = [8, 128], strides = [1, 1]} : vector<8x768xf32> to vector<8x128xf32>
    %13 = arith.negf %12 : vector<8x128xf32>
    %14 = math.exp %13 : vector<8x128xf32>
    %cst_8 = arith.constant 1.000000e+00 : f32
    %15 = vector.broadcast %cst_8 : f32 to vector<8x128xf32>
    %16 = arith.addf %15, %14 : vector<8x128xf32>
    %17 = arith.divf %15, %16 : vector<8x128xf32>
    %18 = vector.extract_strided_slice %10 {offsets = [0, 256], sizes = [8, 512], strides = [1, 1]} : vector<8x768xf32> to vector<8x512xf32>
    %c0_9 = arith.constant 0 : index
    %c0_10 = arith.constant 0 : index
    %c0_11 = arith.constant 0 : index
    %19 = vector.load %arg3[%c0_9, %c0_10, %c0_11] : memref<8x128x128xbf16, #tpu.memory_space<vmem>>, vector<8x128x128xbf16>
    %20 = arith.extf %19 : vector<8x128x128xbf16> to vector<8x128x128xf32>
    %21 = vector.shape_cast %11 : vector<8x128xf32> to vector<8x1x128xf32>
    %22 = vector.broadcast %21 : vector<8x1x128xf32> to vector<8x128x128xf32>
    %23 = arith.addf %20, %22 : vector<8x128x128xf32>
    %cst_12 = arith.constant 0.000000e+00 : f32
    %24 = vector.broadcast %cst_12 : f32 to vector<8x128x128xf32>
    %25 = arith.maximumf %23, %24 : vector<8x128x128xf32>
    %c0_13 = arith.constant 0 : index
    %c0_14 = arith.constant 0 : index
    %26 = vector.load %arg11[%c0_13, %c0_14] : memref<1x128xf32, #tpu.memory_space<vmem>>, vector<1x128xf32>
    %27 = vector.shape_cast %26 : vector<1x128xf32> to vector<1x1x128xf32>
    %28 = vector.broadcast %27 : vector<1x1x128xf32> to vector<8x128x128xf32>
    %29 = arith.mulf %25, %28 : vector<8x128x128xf32>
    %cst_15 = arith.constant dense<0.000000e+00> : vector<8x128xf32>
    %30 = vector.multi_reduction <add>, %29, %cst_15 [2] : vector<8x128x128xf32> to vector<8x128xf32>
    %31 = tpu.iota {dimensions = array<i32: 1>} : vector<8x128xi32>
    %c16_i32 = arith.constant 16 : i32
    %32 = vector.broadcast %c16_i32 : i32 to vector<8x128xi32>
    %33 = arith.cmpi slt, %31, %32 : vector<8x128xi32>
    %cst_16 = arith.constant -1.000000e+30 : f32
    %34 = vector.broadcast %cst_16 : f32 to vector<8x128xf32>
    %35 = arith.select %33, %30, %34 : vector<8x128xi1>, vector<8x128xf32>
    %cst_17 = arith.constant dense<0xFF800000> : vector<8xf32>
    %36 = vector.multi_reduction <maximumf>, %35, %cst_17 [1] : vector<8x128xf32> to vector<8xf32>
    %37 = vector.shape_cast %36 : vector<8xf32> to vector<8x1xf32>
    %38 = vector.broadcast %37 : vector<8x1xf32> to vector<8x128xf32>
    %39 = arith.subf %35, %38 : vector<8x128xf32>
    %40 = math.exp %39 : vector<8x128xf32>
    %cst_18 = arith.constant dense<0.000000e+00> : vector<8xf32>
    %41 = vector.multi_reduction <add>, %40, %cst_18 [1] : vector<8x128xf32> to vector<8xf32>
    %42 = vector.shape_cast %41 : vector<8xf32> to vector<8x1xf32>
    %43 = tpu.reciprocal %42 {approx = true} : vector<8x1xf32> -> vector<8x1xf32>
    %44 = vector.broadcast %43 : vector<8x1xf32> to vector<8x128xf32>
    %45 = arith.mulf %40, %44 : vector<8x128xf32>
    %c0_19 = arith.constant 0 : index
    %c0_20 = arith.constant 0 : index
    %c0_21 = arith.constant 0 : index
    %46 = vector.load %arg4[%c0_19, %c0_20, %c0_21] : memref<8x128x128xbf16, #tpu.memory_space<vmem>>, vector<8x128x128xbf16>
    %47 = arith.extf %46 : vector<8x128x128xbf16> to vector<8x128x128xf32>
    %48 = vector.shape_cast %45 : vector<8x128xf32> to vector<8x128x1xf32>
    %49 = vector.broadcast %48 : vector<8x128x1xf32> to vector<8x128x128xf32>
    %50 = arith.mulf %47, %49 : vector<8x128x128xf32>
    %cst_22 = arith.constant dense<0.000000e+00> : vector<8x128xf32>
    %51 = vector.multi_reduction <add>, %50, %cst_22 [1] : vector<8x128x128xf32> to vector<8x128xf32>
    %52 = arith.mulf %17, %51 : vector<8x128xf32>
    %c0_23 = arith.constant 0 : index
    %c0_24 = arith.constant 0 : index
    %c0_25 = arith.constant 0 : index
    %53 = vector.load %arg7[%c0_23, %c0_24, %c0_25] : memref<1x8x128xf32, #tpu.memory_space<vmem>>, vector<1x8x128xf32>
    %54 = vector.shape_cast %53 : vector<1x8x128xf32> to vector<8x128xf32>
    %55 = tpu.concatenate %54, %52 in 1 : vector<8x128xf32>, vector<8x128xf32> -> vector<8x256xf32>
    %56 = arith.truncf %55 : vector<8x256xf32> to vector<8x256xbf16>
    %c0_26 = arith.constant 0 : index
    %c0_27 = arith.constant 0 : index
    %57 = vector.load %arg10[%c0_26, %c0_27] : memref<256x512xbf16, #tpu.memory_space<vmem>>, vector<256x512xbf16>
    %cst_28 = arith.constant dense<0.000000e+00> : vector<8x512xf32>
    %58 = tpu.matmul %56, %57, %cst_28 {dimension_numbers = #tpu.dot_dimension_numbers<[1], [0], [0], [1], [0, 0, 1, 1], [], []>} : vector<8x256xbf16>, vector<256x512xbf16>, vector<8x512xf32> -> vector<8x512xf32>
    %59 = arith.addf %58, %18 : vector<8x512xf32>
    %60 = vector.extract_strided_slice %59 {offsets = [0, 0], sizes = [8, 128], strides = [1, 1]} : vector<8x512xf32> to vector<8x128xf32>
    %61 = arith.negf %60 : vector<8x128xf32>
    %62 = math.exp %61 : vector<8x128xf32>
    %cst_29 = arith.constant 1.000000e+00 : f32
    %63 = vector.broadcast %cst_29 : f32 to vector<8x128xf32>
    %64 = arith.addf %63, %62 : vector<8x128xf32>
    %65 = arith.divf %63, %64 : vector<8x128xf32>
    %66 = vector.extract_strided_slice %59 {offsets = [0, 128], sizes = [8, 128], strides = [1, 1]} : vector<8x512xf32> to vector<8x128xf32>
    %67 = arith.negf %66 : vector<8x128xf32>
    %68 = math.exp %67 : vector<8x128xf32>
    %cst_30 = arith.constant 1.000000e+00 : f32
    %69 = vector.broadcast %cst_30 : f32 to vector<8x128xf32>
    %70 = arith.addf %69, %68 : vector<8x128xf32>
    %71 = arith.divf %69, %70 : vector<8x128xf32>
    %72 = vector.extract_strided_slice %59 {offsets = [0, 256], sizes = [8, 128], strides = [1, 1]} : vector<8x512xf32> to vector<8x128xf32>
    %73 = math.tanh %72 : vector<8x128xf32>
    %74 = vector.extract_strided_slice %59 {offsets = [0, 384], sizes = [8, 128], strides = [1, 1]} : vector<8x512xf32> to vector<8x128xf32>
    %75 = arith.negf %74 : vector<8x128xf32>
    %76 = math.exp %75 : vector<8x128xf32>
    %cst_31 = arith.constant 1.000000e+00 : f32
    %77 = vector.broadcast %cst_31 : f32 to vector<8x128xf32>
    %78 = arith.addf %77, %76 : vector<8x128xf32>
    %79 = arith.divf %77, %78 : vector<8x128xf32>
    %80 = arith.mulf %71, %4 : vector<8x128xf32>
    %81 = arith.mulf %65, %73 : vector<8x128xf32>
    %82 = arith.addf %80, %81 : vector<8x128xf32>
    %83 = math.tanh %82 : vector<8x128xf32>
    %84 = arith.mulf %79, %83 : vector<8x128xf32>
    %c0_32 = arith.constant 0 : index
    %c0_33 = arith.constant 0 : index
    %c0_34 = arith.constant 0 : index
    %85 = vector.load %arg12[%c0_32, %c0_33, %c0_34] : memref<1x8x128xf32, #tpu.memory_space<vmem>>, vector<1x8x128xf32>
    %86 = vector.shape_cast %85 : vector<1x8x128xf32> to vector<8x128xf32>
    %87 = vector.shape_cast %84 : vector<8x128xf32> to vector<1x8x128xf32>
    tpu.vector_store %arg12[%c0_32, %c0_33, %c0_34], %87 {strides = array<i32>} : memref<1x8x128xf32, #tpu.memory_space<vmem>>, vector<1x8x128xf32>,
    %c0_35 = arith.constant 0 : index
    %c0_36 = arith.constant 0 : index
    %c0_37 = arith.constant 0 : index
    %88 = vector.load %arg13[%c0_35, %c0_36, %c0_37] : memref<1x8x128xf32, #tpu.memory_space<vmem>>, vector<1x8x128xf32>
    %89 = vector.shape_cast %88 : vector<1x8x128xf32> to vector<8x128xf32>
    %90 = vector.shape_cast %45 : vector<8x128xf32> to vector<1x8x128xf32>
    tpu.vector_store %arg13[%c0_35, %c0_36, %c0_37], %90 {strides = array<i32>} : memref<1x8x128xf32, #tpu.memory_space<vmem>>, vector<1x8x128xf32>,
    %91 = arith.index_cast %arg1 : i32 to index
    %92 = memref.load %arg2[%91] : memref<9xi32, #tpu.memory_space<smem>>
    %c8_i32 = arith.constant 8 : i32
    %93 = arith.muli %arg0, %c8_i32 : i32
    %94 = tpu.iota {dimensions = array<i32: 0>} : vector<8x1xi32>
    %95 = vector.broadcast %93 : i32 to vector<8x1xi32>
    %96 = arith.addi %95, %94 : vector<8x1xi32>
    %97 = vector.broadcast %92 : i32 to vector<8x1xi32>
    %98 = arith.cmpi slt, %96, %97 : vector<8x1xi32>
    %99 = vector.shape_cast %98 : vector<8x1xi1> to vector<8x1xi1>
    %100 = vector.broadcast %99 : vector<8x1xi1> to vector<8x128xi1>
    %101 = arith.select %100, %84, %3 : vector<8x128xi1>, vector<8x128xf32>
    %c0_38 = arith.constant 0 : index
    %c0_39 = arith.constant 0 : index
    %102 = vector.load %arg14[%c0_38, %c0_39] : memref<8x128xf32, #tpu.memory_space<vmem>>, vector<8x128xf32>
    tpu.vector_store %arg14[%c0_38, %c0_39], %101 {strides = array<i32>} : memref<8x128xf32, #tpu.memory_space<vmem>>, vector<8x128xf32>,
    %103 = vector.shape_cast %98 : vector<8x1xi1> to vector<8x1xi1>
    %104 = vector.broadcast %103 : vector<8x1xi1> to vector<8x128xi1>
    %105 = arith.select %104, %82, %4 : vector<8x128xi1>, vector<8x128xf32>
    %c0_40 = arith.constant 0 : index
    %c0_41 = arith.constant 0 : index
    %106 = vector.load %arg15[%c0_40, %c0_41] : memref<8x128xf32, #tpu.memory_space<vmem>>, vector<8x128xf32>
    tpu.vector_store %arg15[%c0_40, %c0_41], %105 {strides = array<i32>} : memref<8x128xf32, #tpu.memory_space<vmem>>, vector<8x128xf32>,
    return
  }
  func.func @transform_0(%arg0: i32, %arg1: i32, %arg2: memref<9xi32, #tpu.memory_space<smem>>) -> (i32, i32, i32) {
    %c0_i32 = arith.constant 0 : i32
    %c0_i32_0 = arith.constant 0 : i32
    %c0_i32_1 = arith.constant 0 : i32
    return %arg0, %c0_i32, %c0_i32_0 : i32, i32, i32
  }
  func.func @transform_1(%arg0: i32, %arg1: i32, %arg2: memref<9xi32, #tpu.memory_space<smem>>) -> (i32, i32, i32) {
    %c0_i32 = arith.constant 0 : i32
    %c0_i32_0 = arith.constant 0 : i32
    %c0_i32_1 = arith.constant 0 : i32
    return %arg0, %c0_i32, %c0_i32_0 : i32, i32, i32
  }
  func.func @transform_2(%arg0: i32, %arg1: i32, %arg2: memref<9xi32, #tpu.memory_space<smem>>) -> (i32, i32) {
    %c0_i32 = arith.constant 0 : i32
    %c0_i32_0 = arith.constant 0 : i32
    return %arg0, %c0_i32 : i32, i32
  }
  func.func @transform_3(%arg0: i32, %arg1: i32, %arg2: memref<9xi32, #tpu.memory_space<smem>>) -> (i32, i32) {
    %c0_i32 = arith.constant 0 : i32
    %c0_i32_0 = arith.constant 0 : i32
    return %arg0, %c0_i32 : i32, i32
  }
  func.func @transform_4(%arg0: i32, %arg1: i32, %arg2: memref<9xi32, #tpu.memory_space<smem>>) -> (i32, i32, i32) {
    %c0_i32 = arith.constant 0 : i32
    %c0_i32_0 = arith.constant 0 : i32
    return %arg1, %arg0, %c0_i32 : i32, i32, i32
  }
  func.func @transform_5(%arg0: i32, %arg1: i32, %arg2: memref<9xi32, #tpu.memory_space<smem>>) -> (i32, i32) {
    %c0_i32 = arith.constant 0 : i32
    %c0_i32_0 = arith.constant 0 : i32
    %c0_i32_1 = arith.constant 0 : i32
    return %c0_i32, %c0_i32_0 : i32, i32
  }
  func.func @transform_6(%arg0: i32, %arg1: i32, %arg2: memref<9xi32, #tpu.memory_space<smem>>) -> (i32, i32) {
    %c0_i32 = arith.constant 0 : i32
    %c0_i32_0 = arith.constant 0 : i32
    %c0_i32_1 = arith.constant 0 : i32
    return %c0_i32, %c0_i32_0 : i32, i32
  }
  func.func @transform_7(%arg0: i32, %arg1: i32, %arg2: memref<9xi32, #tpu.memory_space<smem>>) -> (i32, i32) {
    %c0_i32 = arith.constant 0 : i32
    %c0_i32_0 = arith.constant 0 : i32
    %c0_i32_1 = arith.constant 0 : i32
    return %c0_i32, %c0_i32_0 : i32, i32
  }
  func.func @transform_8(%arg0: i32, %arg1: i32, %arg2: memref<9xi32, #tpu.memory_space<smem>>) -> (i32, i32) {
    %c0_i32 = arith.constant 0 : i32
    %c0_i32_0 = arith.constant 0 : i32
    %c0_i32_1 = arith.constant 0 : i32
    return %c0_i32, %c0_i32_0 : i32, i32
  }
  func.func @transform_9(%arg0: i32, %arg1: i32, %arg2: memref<9xi32, #tpu.memory_space<smem>>) -> (i32, i32, i32) {
    %c0_i32 = arith.constant 0 : i32
    %c0_i32_0 = arith.constant 0 : i32
    return %arg1, %arg0, %c0_i32 : i32, i32, i32
  }
  func.func @transform_10(%arg0: i32, %arg1: i32, %arg2: memref<9xi32, #tpu.memory_space<smem>>) -> (i32, i32, i32) {
    %c0_i32 = arith.constant 0 : i32
    %c0_i32_0 = arith.constant 0 : i32
    return %arg1, %arg0, %c0_i32 : i32, i32, i32
  }
}

</mosaic_0001>

<bundles_post_ra>
// kernel: _forward_impl.1
= control target key start
LH: loop header
LB: loop body
LE: loop exit
PB: predicated region body
PF: predicated region fallthrough
CT: control target
= control target key end

     0   :  { %s5776_s20 = smov [#allocation5]   ;;  %s8279_s0 = inlined_call_operand.vmem [shape: s32[9], index: 0, kind: input, shape index: {}]   ;;  %s8280_s1 = inlined_call_operand.vmem [shape: bf16[8,128,128], index: 1, kind: input, shape index: {}]   ;;  %s8281_s2 = inlined_call_operand.vmem [shape: bf16[8,128,128], index: 2, kind: input, shape index: {}]   ;;  %s8282_s3 = inlined_call_operand.vmem [shape: f32[8,128], index: 3, kind: input, shape index: {}]   ;;  %s8283_s4 = inlined_call_operand.vmem [shape: f32[8,128], index: 4, kind: input, shape index: {}]   ;;  %s8284_s5 = inlined_call_operand.vmem [shape: f32[9,8,128], index: 5, kind: input, shape index: {}]   ;;  %s8285_s6 = inlined_call_operand.vmem [shape: bf16[128,768], index: 6, kind: input, shape index: {}]   ;;  %s8286_s7 = inlined_call_operand.vmem [shape: f32[1,768], index: 7, kind: input, shape index: {}]   ;;  %s8287_s8 = inlined_call_operand.vmem [shape: bf16[256,512], index: 8, kind: input, shape index: {}]   ;;  %s8288_s9 = inlined_call_operand.vmem [shape: f32[1,128], index: 9, kind: input, shape index: {}]   ;;  %s8289_s10 = inlined_call_operand.vmem [shape: f32[9,8,128], index: 10, kind: output, shape index: {0}]   ;;  %s8290_s11 = inlined_call_operand.vmem [shape: f32[9,8,128], index: 11, kind: output, shape index: {1}]  }
   0x1   :  { %s18_s19 = sshll.u32 %s8279_s0, 4  ;;  %s19_s19 = int_to_ptr.vmem [resolvable:$true] %s18_s19 }
   0x2   :  { %21 = dma.vmem_to_smem %s19_s19, 16, %s5776_s20, [#allocation4] }
   0x3   :  { %5762 = dma.done.wait [#allocation4], 16 }
   0x4   :  { %5763 = vsyncadd [#allocation4], 4294967280 }
   0x5   :  { %24 = sfence }
   0x6   :  { %s5840_s21 = smov 0   ;;  %s5842_s22 = smov 0  }
   0x7   :  { %s5844_s23 = smov 0  }
   0x8 LB: > { %s39_s0 = sadd.s32 1, %s5770_s22  ;;  %p4365_p0 = scmp.ge.s32.totalorder %s5774_s23, 1  ;;  %s5774_s23 = sphi %s5844_s23, %s30_s23   ;;  %s5770_s22 = sphi %s5842_s22, %s8372_s22   ;;  %s5766_s21 = sphi %s5840_s21, %s8371_s21  }
   0x9   : > { %p40_p1 = scmp.ge.s32.totalorder %s39_s0, 9  ;;  %p386_p2 = scmp.lt.s32.totalorder %s5774_s23, 10 }
   0xb   : > { %s8374_s0 = smov (%p40_p1, %s39_s0), 0  ;;  %p387_p3 = pnand %p4365_p0, %p386_p2 }
   0xd   : > { %390 = sbr.rel (%p387_p3) target bundleno = 1987 (0x7c3), region = 56 }
  0x12   : > { %p477_p4 = scmp.lt.s32.totalorder %s5766_s21, 8  ;;  %p4369_p5 = scmp.ne.s32.totalorder %s5766_s21, 0 }
  0x14   : > { %s478_s24 = scalar_select %p477_p4, %s5766_s21, 8 }
  0x15   : > { %501 = sbr.rel (%p4369_p5) target bundleno = 29 (0x1d), region = 60 }
  0x16   : > { %s5862_s25 = sshll.u32 %s478_s24, 3 }
  0x17   : > { %s483_s28 = scalar_lea.vmem %s8284_s5, %s5862_s25  ;;  %s490_s12 = scalar_lea.vmem %s8289_s10, %s5862_s25 }
  0x18   : > { %s497_s15 = scalar_lea.vmem %s8290_s11, %s5862_s25 }
  0x1a   : > { %v502_v0 = vld [vmem:[%s8282_s3] sm:$0xff] }
  0x1b   : > { %v504_v1 = vld [vmem:[%s8283_s4] sm:$0xff]  ;;  %503 = vst [vmem:[#allocation2] sm:$0xff] %v502_v0 }
  0x1c   : > { %505 = vst [vmem:[#allocation3] sm:$0xff] %v504_v1 }
  0x1d PF: > { %v4540_v2 = vld [vmem:[%s8285_s6 + $0x150] sm:$0xf]  ;;  %v4869_v3 = vld [vmem:[%s8285_s6 + $0x164] sm:$0xf0]  ;;  %v4516_v4 = vld [vmem:[%s8285_s6 + $0x120] sm:$0xf] }
  0x1e   : > { %v4541_v5 = vor.u32 %v4869_v3, %v4540_v2  ;;  %v4863_v6 = vld [vmem:[%s8285_s6 + $0x134] sm:$0xf0]  ;;  %v4492_v8 = vld [vmem:[%s8285_s6 + $0xf0] sm:$0xf]  ;;  %v4857_v9 = vld [vmem:[%s8285_s6 + $0x104] sm:$0xf0] }
  0x1f   : > { %v4517_v7 = vor.u32 %v4863_v6, %v4516_v4  ;;  %v4493_v10 = vor.u32 %v4857_v9, %v4492_v8  ;;  %v4468_v11 = vld [vmem:[%s8285_s6 + $0xc0] sm:$0xf]  ;;  %v4851_v12 = vld [vmem:[%s8285_s6 + $0xd4] sm:$0xf0]  ;;  %v4444_v14 = vld [vmem:[%s8285_s6 + $0x90] sm:$0xf] }
  0x20   : > { %811 = vmatpush.bf16.msra.mxu0 %v4541_v5  ;;  %v4469_v13 = vor.u32 %v4851_v12, %v4468_v11  ;;  %v4845_v15 = vld [vmem:[%s8285_s6 + $0xa4] sm:$0xf0]  ;;  %v4420_v17 = vld [vmem:[%s8285_s6 + $0x60] sm:$0xf]  ;;  %v4839_v18 = vld [vmem:[%s8285_s6 + $0x74] sm:$0xf0] }
  0x21   : > { %v4445_v16 = vor.u32 %v4845_v15, %v4444_v14  ;;  %v4421_v19 = vor.u32 %v4839_v18, %v4420_v17  ;;  %v4396_v20 = vld [vmem:[%s8285_s6 + $0x30] sm:$0xf]  ;;  %v4833_v21 = vld [vmem:[%s8285_s6 + $0x44] sm:$0xf0]  ;;  %v4372_v23 = vld [vmem:[%s8285_s6] sm:$0xf] }
  0x22   : > { %v4397_v22 = vor.u32 %v4833_v21, %v4396_v20  ;;  %v4827_v24 = vld [vmem:[%s8285_s6 + $0x14] sm:$0xf0]  ;;  %v506_v26 = vld [vmem:[#allocation2] sm:$0xff]  ;;  %v5449_v30 = vld [vmem:[%s8280_s1 + $0x10] sm:$0xff]   ;;  %vm1966_vm0 = vcmask 130112   ;;  %vm1970_vm1 = vcmask 195712  }
  0x23   : > { %v4373_v25 = vor.u32 %v4827_v24, %v4372_v23  ;;  %v5931_v27 = vpack.c.bf16 %v506_v26, %v506_v26  ;;  %v557_v28 = vld [vmem:[%s8286_s7] sm:$0x3f]  ;;  %v5448_v32 = vld [vmem:[%s8280_s1 + $0x8] sm:$0xff]   ;;  %v4946_v35 = vunpack.c.l.bf16 %v5449_v30  ;;  %v4947_v41 = vunpack.c.h.bf16 %v5449_v30  ;;  %v5450_v57 = vld [vmem:[%s8280_s1 + $0x18] sm:$0xff]   ;;  %s8247_s26 = sld [smem:[#allocation5 + %s5766_s21]] }
  0x24   : > { %812 = vmatpush.bf16.msra.mxu0 %v4517_v7  ;;  %v559_v29 = vperm.slane %v557_v28, 0  ;;  %v4937_v33 = vld [vmem:[%s8280_s1] sm:$0xff]   ;;  %v4942_v36 = vunpack.c.l.bf16 %v5448_v32  ;;  %v4943_v44 = vunpack.c.h.bf16 %v5448_v32  ;;  %v4951_v62 = vunpack.c.h.bf16 %v5450_v57  ;;  %v5452_v6 = vld [vmem:[%s8280_s1 + $0x28] sm:$0xff]   ;;  %v5453_v20 = vld [vmem:[%s8280_s1 + $0x30] sm:$0xff]  }
  0x25   : > { %8301 = vst [vmem:[#allocation7_spill] sm:$0xff] %v5931_v27  ;;  %v4938_v37 = vunpack.c.l.bf16 %v4937_v33  ;;  %v5955_v40 = vld [vmem:[%s8288_s9] ss:$0 sm:$0xff]  ;;  %v4939_v45 = vunpack.c.h.bf16 %v4937_v33  ;;  %v4950_v63 = vunpack.c.l.bf16 %v5450_v57  ;;  %v4959_v8 = vunpack.c.h.bf16 %v5452_v6 }
  0x26   : > { %v5451_v56 = vld [vmem:[%s8280_s1 + $0x20] sm:$0xff]   ;;  %v4958_v11 = vunpack.c.l.bf16 %v5452_v6  ;;  %v4962_v26 = vunpack.c.l.bf16 %v5453_v20  ;;  %vm1974_vm2 = vcmask 261312   ;;  %vm1978_vm3 = vcmask 326912  }
  0x27   : > { %v4954_v59 = vunpack.c.l.bf16 %v5451_v56  ;;  %v4955_v12 = vunpack.c.h.bf16 %v5451_v56  ;;  %vm1982_vm4 = vcmask 392512   ;;  %vm1986_vm5 = vcmask 458112  }
  0x28   : > { %813 = vmatpush.bf16.msra.mxu0 %v4493_v10  ;;  %vm1990_vm6 = vcmask 523712   ;;  %vm1994_vm7 = vcmask 589312   ;;  %vm8297_vm8 = vcmask 654912   ;;  %vm8296_vm9 = vcmask 720512  }
  0x29   : > { %vm8298_vm10 = vcmask 786112   ;;  %vm2010_vm11 = vcmask 851712   ;;  %vm2014_vm12 = vcmask 917312   ;;  %vm2018_vm13 = vcmask 982912  }
  0x2a   : > { %vm2022_vm14 = vcmask 1048512   ;;  %vm2241_vm15 = vcmask 1041409  }
  0x2c   : > { %814 = vmatpush.bf16.msra.mxu0 %v4469_v13 }
  0x30   : > { %815 = vmatpush.bf16.msra.mxu0 %v4445_v16 }
  0x34   : > { %816 = vmatpush.bf16.msra.mxu0 %v4421_v19  ;;  %v5454_v19 = vld [vmem:[%s8280_s1 + $0x38] sm:$0xff]  }
  0x38   : > { %817 = vmatpush.bf16.msra.mxu0 %v4397_v22  ;;  %v4966_v22 = vunpack.c.l.bf16 %v5454_v19 }
  0x3c   : > { %818 = vmatpush.bf16.msra.mxu0 %v4373_v25  ;;  %v4963_v25 = vunpack.c.h.bf16 %v5453_v20 }
  0x3f   : > { %819 = vmatmul.bf16.vlgmr.msra.gmra.mxu0 %v5931_v27 }
  0xbc   : > { %v820_v31 = vpop.f32.mrf.mxu0 }
  0xbd   : > { %v5946_v34 = vadd.f32 %v820_v31, %v559_v29 }
  0xbf   : > { %v5949_v38 = vperm.slane %v5946_v34, 0  ;;  %v1165_v28 = vrot.slane %v5946_v34, 1 }
  0xc1   : > { %v1192_v39 = vadd.f32 %v4946_v35, %v5949_v38  ;;  %v1190_v42 = vadd.f32 %v4942_v36, %v5949_v38  ;;  %v1188_v43 = vadd.f32 %v4938_v37, %v5949_v38  ;;  %v1193_v51 = vadd.f32 %v4947_v41, %v5949_v38  ;;  %v5455_v36 = vld [vmem:[%s8280_s1 + $0x40] sm:$0xff]  }
  0xc2   : > { %v1191_v54 = vadd.f32 %v4943_v44, %v5949_v38  ;;  %v1189_v55 = vadd.f32 %v4939_v45, %v5949_v38  ;;  %v1196_v1 = vadd.f32 %v4954_v59, %v5949_v38  ;;  %v1195_v4 = vadd.f32 %v4951_v62, %v5949_v38 }
  0xc3   : > { %v1320_v47 = vmax.f32 %v1192_v39, 0.0  ;;  %v1318_v48 = vmax.f32 %v1190_v42, 0.0  ;;  %v1316_v49 = vmax.f32 %v1188_v43, 0.0  ;;  %v1321_v58 = vmax.f32 %v1193_v51, 0.0 }
  0xc4   : > { %v822_v46 = vpop.f32.mrf.mxu0  ;;  %v1319_v60 = vmax.f32 %v1191_v54, 0.0  ;;  %v1317_v61 = vmax.f32 %v1189_v55, 0.0  ;;  %v1194_v5 = vadd.f32 %v4950_v63, %v5949_v38  ;;  %v1324_v7 = vmax.f32 %v1196_v1, 0.0  ;;  %v5458_v1 = vld [vmem:[%s8280_s1 + $0x58] sm:$0xff]  }
  0xc5   : > { %v1452_v50 = vmul.f32 %v5955_v40, %v1320_v47  ;;  %v1450_v52 = vmul.f32 %v5955_v40, %v1318_v48  ;;  %v1448_v53 = vmul.f32 %v5955_v40, %v1316_v49  ;;  %v1453_v0 = vmul.f32 %v5955_v40, %v1321_v58 }
  0xc6   : > { %v1451_v2 = vmul.f32 %v5955_v40, %v1319_v60  ;;  %v1449_v3 = vmul.f32 %v5955_v40, %v1317_v61  ;;  %v1323_v9 = vmax.f32 %v1195_v4, 0.0  ;;  %v1322_v10 = vmax.f32 %v1194_v5, 0.0 }
  0xc7   : > { %1584 = vadd.xlane.f32.xlu2 %v1452_v50  ;;  %1580 = vadd.xlane.f32.xlu1 %v1450_v52  ;;  %v1456_v13 = vmul.f32 %v5955_v40, %v1324_v7  ;;  %v1199_v14 = vadd.f32 %v4959_v8, %v5949_v38  ;;  %v1198_v17 = vadd.f32 %v4958_v11, %v5949_v38  ;;  %v6002_v37 = vperm.slane %v1165_v28, 0  ;;  %v5457_v52 = vld [vmem:[%s8280_s1 + $0x50] sm:$0xff]  }
  0xc8   : > { %1576 = vadd.xlane.f32.xlu0 %v1448_v53  ;;  %v1455_v15 = vmul.f32 %v5955_v40, %v1323_v9  ;;  %v1454_v16 = vmul.f32 %v5955_v40, %v1322_v10  ;;  %v1197_v18 = vadd.f32 %v4955_v12, %v5949_v38  ;;  %v1202_v30 = vadd.f32 %v4966_v22, %v5949_v38  ;;  %v5456_v53 = vld [vmem:[%s8280_s1 + $0x48] sm:$0xff]  }
  0xc9   : > { %v1327_v21 = vmax.f32 %v1199_v14, 0.0  ;;  %v1326_v23 = vmax.f32 %v1198_v17, 0.0  ;;  %v1201_v33 = vadd.f32 %v4963_v25, %v5949_v38  ;;  %v1200_v35 = vadd.f32 %v4962_v26, %v5949_v38  ;;  %v5460_v14 = vld [vmem:[%s8280_s1 + $0x68] sm:$0xff]  }
  0xca   : > { %v1325_v24 = vmax.f32 %v1197_v18, 0.0  ;;  %v1330_v39 = vmax.f32 %v1202_v30, 0.0  ;;  %v4971_v41 = vunpack.c.h.bf16 %v5455_v36  ;;  %v4967_v44 = vunpack.c.h.bf16 %v5454_v19 }
  0xcb   : > { %v1459_v29 = vmul.f32 %v5955_v40, %v1327_v21  ;;  %v1458_v31 = vmul.f32 %v5955_v40, %v1326_v23  ;;  %v1329_v42 = vmax.f32 %v1201_v33, 0.0  ;;  %v1328_v43 = vmax.f32 %v1200_v35, 0.0 }
  0xcc   : > { %v1457_v32 = vmul.f32 %v5955_v40, %v1325_v24  ;;  %v4970_v45 = vunpack.c.l.bf16 %v5455_v36  ;;  %v1462_v46 = vmul.f32 %v5955_v40, %v1330_v39  ;;  %v1205_v47 = vadd.f32 %v4971_v41, %v6002_v37 }
  0xcd   : > { %v1461_v48 = vmul.f32 %v5955_v40, %v1329_v42  ;;  %v1460_v49 = vmul.f32 %v5955_v40, %v1328_v43  ;;  %v1203_v50 = vadd.f32 %v4967_v44, %v5949_v38  ;;  %v4978_v55 = vunpack.c.l.bf16 %v5457_v52 }
  0xce   : > { %v1204_v51 = vadd.f32 %v4970_v45, %v6002_v37  ;;  %v1333_v54 = vmax.f32 %v1205_v47, 0.0  ;;  %v4974_v58 = vunpack.c.l.bf16 %v5456_v53  ;;  %v4975_v59 = vunpack.c.h.bf16 %v5456_v53  ;;  %v5463_v47 = vld [vmem:[%s8280_s1 + $0x80] sm:$0xff]  }
  0xcf   : > { %1586 = vadd.xlane.f32.xlu2 %v1453_v0  ;;  %1582 = vadd.xlane.f32.xlu1 %v1451_v2  ;;  %v1331_v56 = vmax.f32 %v1203_v50, 0.0  ;;  %v1208_v60 = vadd.f32 %v4978_v55, %v6002_v37  ;;  %v4979_v6 = vunpack.c.h.bf16 %v5457_v52  ;;  %v4982_v7 = vunpack.c.l.bf16 %v5458_v1 }
  0xd0   : > { %1578 = vadd.xlane.f32.xlu0 %v1449_v3  ;;  %v1332_v57 = vmax.f32 %v1204_v51, 0.0  ;;  %v1465_v38 = vmul.f32 %v5955_v40, %v1333_v54  ;;  %v1206_v63 = vadd.f32 %v4974_v58, %v6002_v37  ;;  %v1207_v0 = vadd.f32 %v4975_v59, %v6002_v37 }
  0xd1   : > { %v1463_v61 = vmul.f32 %v5955_v40, %v1331_v56  ;;  %v1336_v2 = vmax.f32 %v1208_v60, 0.0  ;;  %v4983_v3 = vunpack.c.h.bf16 %v5458_v1  ;;  %v1209_v12 = vadd.f32 %v4979_v6, %v6002_v37 }
  0xd2   : > { %v1464_v62 = vmul.f32 %v5955_v40, %v1332_v57  ;;  %v1334_v4 = vmax.f32 %v1206_v63, 0.0  ;;  %v1335_v5 = vmax.f32 %v1207_v0, 0.0  ;;  %v4990_v17 = vunpack.c.l.bf16 %v5460_v14 }
  0xd3   : > { %v1468_v8 = vmul.f32 %v5955_v40, %v1336_v2  ;;  %v1211_v9 = vadd.f32 %v4983_v3, %v6002_v37  ;;  %v1337_v18 = vmax.f32 %v1209_v12, 0.0  ;;  %v4991_v35 = vunpack.c.h.bf16 %v5460_v14 }
  0xd4   : > { %v1466_v10 = vmul.f32 %v5955_v40, %v1334_v4  ;;  %v1467_v11 = vmul.f32 %v5955_v40, %v1335_v5  ;;  %v1214_v23 = vadd.f32 %v4990_v17, %v6002_v37  ;;  %v1166_v39 = vrot.slane %v5946_v34, 2 }
  0xd5   : > { %v1469_v24 = vmul.f32 %v5955_v40, %v1337_v18  ;;  %v1215_v45 = vadd.f32 %v4991_v35, %v6002_v37  ;;  %v5002_v51 = vunpack.c.l.bf16 %v5463_v47  ;;  %v5003_v2 = vunpack.c.h.bf16 %v5463_v47 }
  0xd6   : > { %v1342_v30 = vmax.f32 %v1214_v23, 0.0  ;;  %v5467_v23 = vld [vmem:[%s8280_s1 + $0xa0] sm:$0xff]  }
  0xd7   : > { %1592 = vadd.xlane.f32.xlu2 %v1456_v13  ;;  %1590 = vadd.xlane.f32.xlu1 %v1455_v15  ;;  %v1210_v13 = vadd.f32 %v4982_v7, %v6002_v37  ;;  %v5459_v15 = vld [vmem:[%s8280_s1 + $0x60] sm:$0xff]   ;;  %v1343_v52 = vmax.f32 %v1215_v45, 0.0 }
  0xd8   : > { %1588 = vadd.xlane.f32.xlu0 %v1454_v16  ;;  %v1339_v16 = vmax.f32 %v1211_v9, 0.0  ;;  %v4986_v20 = vunpack.c.l.bf16 %v5459_v15  ;;  %v4987_v21 = vunpack.c.h.bf16 %v5459_v15  ;;  %v1474_v41 = vmul.f32 %v5955_v40, %v1342_v30  ;;  %v5466_v9 = vld [vmem:[%s8280_s1 + $0x98] sm:$0xff]  }
  0xd9   : > { %v1338_v19 = vmax.f32 %v1210_v13, 0.0  ;;  %v1475_v58 = vmul.f32 %v5955_v40, %v1343_v52  ;;  %v5014_v12 = vunpack.c.l.bf16 %v5466_v9  ;;  %v5018_v30 = vunpack.c.l.bf16 %v5467_v23 }
  0xda   : > { %v1471_v22 = vmul.f32 %v5955_v40, %v1339_v16  ;;  %v1212_v26 = vadd.f32 %v4986_v20, %v6002_v37  ;;  %v1213_v28 = vadd.f32 %v4987_v21, %v6002_v37 }
  0xdb   : > { %v1470_v25 = vmul.f32 %v5955_v40, %v1338_v19 }
  0xdc   : > { %v1341_v33 = vmax.f32 %v1213_v28, 0.0 }
  0xde   : > { %v1473_v44 = vmul.f32 %v5955_v40, %v1341_v33 }
  0xdf   : > { %1598 = vadd.xlane.f32.xlu2 %v1459_v29  ;;  %1596 = vadd.xlane.f32.xlu1 %v1458_v31  ;;  %v5461_v29 = vld [vmem:[%s8280_s1 + $0x70] sm:$0xff]  }
  0xe0   : > { %1594 = vadd.xlane.f32.xlu0 %v1457_v32  ;;  %v4995_v31 = vunpack.c.h.bf16 %v5461_v29  ;;  %v1340_v32 = vmax.f32 %v1212_v26, 0.0  ;;  %v4994_v36 = vunpack.c.l.bf16 %v5461_v29  ;;  %v5015_v29 = vunpack.c.h.bf16 %v5466_v9 }
  0xe2   : > { %v1217_v42 = vadd.f32 %v4995_v31, %v6002_v37  ;;  %v1472_v43 = vmul.f32 %v5955_v40, %v1340_v32 }
  0xe4   : > { %v1345_v50 = vmax.f32 %v1217_v42, 0.0  ;;  %v5468_v42 = vld [vmem:[%s8280_s1 + $0xa8] sm:$0xff]  }
  0xe5   : > { %v5022_v47 = vunpack.c.l.bf16 %v5468_v42 }
  0xe6   : > { %v1477_v56 = vmul.f32 %v5955_v40, %v1345_v50 }
  0xe7   : > { %1604 = vadd.xlane.f32.xlu2 %v1462_v46  ;;  %1602 = vadd.xlane.f32.xlu1 %v1461_v48  ;;  %v1216_v46 = vadd.f32 %v4994_v36, %v6002_v37  ;;  %v5462_v48 = vld [vmem:[%s8280_s1 + $0x78] sm:$0xff]  }
  0xe8   : > { %1600 = vadd.xlane.f32.xlu0 %v1460_v49  ;;  %v6059_v49 = vperm.slane %v1166_v39, 0  ;;  %v4998_v54 = vunpack.c.l.bf16 %v5462_v48  ;;  %v4999_v55 = vunpack.c.h.bf16 %v5462_v48  ;;  %v5023_v48 = vunpack.c.h.bf16 %v5468_v42  ;;  %v5475_v42 = vld [vmem:[%s8280_s1 + $0xe0] sm:$0xff]  }
  0xe9   : > { %v1344_v53 = vmax.f32 %v1216_v46, 0.0 }
  0xea   : > { %v1220_v57 = vadd.f32 %v5002_v51, %v6059_v49  ;;  %v1219_v60 = vadd.f32 %v4999_v55, %v6002_v37  ;;  %v1221_v7 = vadd.f32 %v5003_v2, %v6059_v49  ;;  %v1226_v18 = vadd.f32 %v5014_v12, %v6059_v49 }
  0xeb   : > { %v1476_v59 = vmul.f32 %v5955_v40, %v1344_v53  ;;  %v1227_v36 = vadd.f32 %v5015_v29, %v6059_v49  ;;  %v1228_v39 = vadd.f32 %v5018_v30, %v6059_v49  ;;  %v1231_v55 = vadd.f32 %v5023_v48, %v6059_v49 }
  0xec   : > { %v1347_v1 = vmax.f32 %v1219_v60, 0.0  ;;  %v1349_v13 = vmax.f32 %v1221_v7, 0.0 }
  0xed   : > { %v1355_v45 = vmax.f32 %v1227_v36, 0.0  ;;  %v1356_v46 = vmax.f32 %v1228_v39, 0.0 }
  0xee   : > { %v1481_v19 = vmul.f32 %v5955_v40, %v1349_v13 }
  0xef   : > { %1610 = vadd.xlane.f32.xlu2 %v1465_v38  ;;  %1608 = vadd.xlane.f32.xlu1 %v1464_v62  ;;  %v1218_v38 = vadd.f32 %v4998_v54, %v6002_v37  ;;  %v1348_v62 = vmax.f32 %v1220_v57, 0.0  ;;  %v1479_v37 = vmul.f32 %v5955_v40, %v1347_v1  ;;  %v1487_v52 = vmul.f32 %v5955_v40, %v1355_v45 }
  0xf0   : > { %1606 = vadd.xlane.f32.xlu0 %v1463_v61  ;;  %v5464_v61 = vld [vmem:[%s8280_s1 + $0x88] sm:$0xff]   ;;  %v1488_v53 = vmul.f32 %v5955_v40, %v1356_v46  ;;  %v1230_v54 = vadd.f32 %v5022_v47, %v6059_v49  ;;  %v5050_v45 = vunpack.c.l.bf16 %v5475_v42 }
  0xf1   : > { %v5007_v63 = vunpack.c.h.bf16 %v5464_v61  ;;  %v1346_v0 = vmax.f32 %v1218_v38, 0.0  ;;  %v5006_v3 = vunpack.c.l.bf16 %v5464_v61  ;;  %v1480_v4 = vmul.f32 %v5955_v40, %v1348_v62 }
  0xf2   : > { %v1359_v38 = vmax.f32 %v1231_v55, 0.0  ;;  %v1167_v62 = vrot.slane %v5946_v34, 3 }
  0xf3   : > { %v1223_v5 = vadd.f32 %v5007_v63, %v6059_v49  ;;  %v1478_v6 = vmul.f32 %v5955_v40, %v1346_v0 }
  0xf4   : > { %v1491_v2 = vmul.f32 %v5955_v40, %v1359_v38  ;;  %v5476_v38 = vld [vmem:[%s8280_s1 + $0xe8] sm:$0xff]  }
  0xf7   : > { %1616 = vadd.xlane.f32.xlu2 %v1468_v8  ;;  %1614 = vadd.xlane.f32.xlu1 %v1467_v11  ;;  %v1222_v8 = vadd.f32 %v5006_v3, %v6059_v49  ;;  %v1351_v11 = vmax.f32 %v1223_v5, 0.0  ;;  %v5472_v5 = vld [vmem:[%s8280_s1 + $0xc8] sm:$0xff]  }
  0xf8   : > { %1612 = vadd.xlane.f32.xlu0 %v1466_v10  ;;  %v5465_v10 = vld [vmem:[%s8280_s1 + $0x90] sm:$0xff]  }
  0xf9   : > { %v1350_v14 = vmax.f32 %v1222_v8, 0.0  ;;  %v5010_v15 = vunpack.c.l.bf16 %v5465_v10  ;;  %v5011_v16 = vunpack.c.h.bf16 %v5465_v10  ;;  %v1483_v17 = vmul.f32 %v5955_v40, %v1351_v11 }
  0xfa   : > { %v5038_v8 = vunpack.c.l.bf16 %v5472_v5 }
  0xfb   : > { %v1482_v20 = vmul.f32 %v5955_v40, %v1350_v14  ;;  %v1224_v21 = vadd.f32 %v5010_v15, %v6059_v49 }
  0xfd   : > { %v1352_v26 = vmax.f32 %v1224_v21, 0.0  ;;  %v5473_v21 = vld [vmem:[%s8280_s1 + $0xd0] sm:$0xff]  }
  0xfe   : > { %v5042_v29 = vunpack.c.l.bf16 %v5473_v21 }
  0xff   : > { %1622 = vadd.xlane.f32.xlu2 %v1471_v22  ;;  %1620 = vadd.xlane.f32.xlu1 %v1470_v25  ;;  %v1225_v22 = vadd.f32 %v5011_v16, %v6059_v49  ;;  %v5019_v25 = vunpack.c.h.bf16 %v5467_v23  ;;  %v1484_v33 = vmul.f32 %v5955_v40, %v1352_v26  ;;  %v5043_v23 = vunpack.c.h.bf16 %v5473_v21 }
 0x100   : > { %1618 = vadd.xlane.f32.xlu0 %v1469_v24  ;;  %v1354_v24 = vmax.f32 %v1226_v18, 0.0 }
 0x101   : > { %v1353_v28 = vmax.f32 %v1225_v22, 0.0  ;;  %v1229_v32 = vadd.f32 %v5019_v25, %v6059_v49 }
 0x102   : > { %v1486_v31 = vmul.f32 %v5955_v40, %v1354_v24 }
 0x103   : > { %v1485_v35 = vmul.f32 %v5955_v40, %v1353_v28  ;;  %v5039_v28 = vunpack.c.h.bf16 %v5472_v5 }
 0x107   : > { %1628 = vadd.xlane.f32.xlu2 %v1474_v41  ;;  %1626 = vadd.xlane.f32.xlu1 %v1473_v44  ;;  %v5469_v41 = vld [vmem:[%s8280_s1 + $0xb0] sm:$0xff]  }
 0x108   : > { %1624 = vadd.xlane.f32.xlu0 %v1472_v43  ;;  %v1357_v43 = vmax.f32 %v1229_v32, 0.0  ;;  %v5026_v44 = vunpack.c.l.bf16 %v5469_v41  ;;  %v5027_v60 = vunpack.c.h.bf16 %v5469_v41 }
 0x10a   : > { %v1489_v50 = vmul.f32 %v5955_v40, %v1357_v43  ;;  %v1232_v51 = vadd.f32 %v5026_v44, %v6059_v49  ;;  %v1233_v3 = vadd.f32 %v5027_v60, %v6059_v49  ;;  %v5474_v43 = vld [vmem:[%s8280_s1 + $0xd8] sm:$0xff]  }
 0x10c   : > { %v1360_v57 = vmax.f32 %v1232_v51, 0.0  ;;  %v1361_v10 = vmax.f32 %v1233_v3, 0.0  ;;  %v5047_v51 = vunpack.c.h.bf16 %v5474_v43 }
 0x10e   : > { %v1492_v63 = vmul.f32 %v5955_v40, %v1360_v57 }
 0x10f   : > { %1634 = vadd.xlane.f32.xlu2 %v1477_v56  ;;  %1632 = vadd.xlane.f32.xlu1 %v1476_v59  ;;  %v5470_v56 = vld [vmem:[%s8280_s1 + $0xb8] sm:$0xff]   ;;  %v1358_v59 = vmax.f32 %v1230_v54, 0.0 }
 0x110   : > { %1630 = vadd.xlane.f32.xlu0 %v1475_v58  ;;  %v5031_v58 = vunpack.c.h.bf16 %v5470_v56  ;;  %v5030_v61 = vunpack.c.l.bf16 %v5470_v56 }
 0x111   : > { %v1490_v1 = vmul.f32 %v5955_v40, %v1358_v59 }
 0x112   : > { %v1235_v0 = vadd.f32 %v5031_v58, %v6059_v49 }
 0x114   : > { %v1363_v7 = vmax.f32 %v1235_v0, 0.0 }
 0x116   : > { %v1495_v15 = vmul.f32 %v5955_v40, %v1363_v7 }
 0x117   : > { %1640 = vadd.xlane.f32.xlu2 %v1480_v4  ;;  %1638 = vadd.xlane.f32.xlu1 %v1479_v37  ;;  %v1234_v4 = vadd.f32 %v5030_v61, %v6059_v49  ;;  %v6125_v37 = vperm.slane %v1167_v62, 0  ;;  %v5055_v61 = vunpack.c.h.bf16 %v5476_v38 }
 0x118   : > { %1636 = vadd.xlane.f32.xlu0 %v1478_v6  ;;  %v5471_v6 = vld [vmem:[%s8280_s1 + $0xc0] sm:$0xff]  }
 0x119   : > { %v1362_v11 = vmax.f32 %v1234_v4, 0.0  ;;  %v5034_v49 = vunpack.c.l.bf16 %v5471_v6  ;;  %v5035_v12 = vunpack.c.h.bf16 %v5471_v6  ;;  %v1238_v16 = vadd.f32 %v5038_v8, %v6125_v37 }
 0x11a   : > { %v1239_v39 = vadd.f32 %v5039_v28, %v6125_v37  ;;  %v1240_v41 = vadd.f32 %v5042_v29, %v6125_v37  ;;  %v1244_v55 = vadd.f32 %v5050_v45, %v6125_v37  ;;  %v1243_v59 = vadd.f32 %v5047_v51, %v6125_v37 }
 0x11b   : > { %v1494_v18 = vmul.f32 %v5955_v40, %v1362_v11  ;;  %v1366_v22 = vmax.f32 %v1238_v16, 0.0  ;;  %v1247_v6 = vadd.f32 %v5055_v61, %v6125_v37 }
 0x11c   : > { %v1367_v47 = vmax.f32 %v1239_v39, 0.0  ;;  %v1368_v48 = vmax.f32 %v1240_v41, 0.0  ;;  %v1372_v60 = vmax.f32 %v1244_v55, 0.0  ;;  %v1371_v0 = vmax.f32 %v1243_v59, 0.0 }
 0x11d   : > { %v1498_v32 = vmul.f32 %v5955_v40, %v1366_v22 }
 0x11e   : > { %v1499_v56 = vmul.f32 %v5955_v40, %v1367_v47  ;;  %v1500_v57 = vmul.f32 %v5955_v40, %v1368_v48  ;;  %v1504_v5 = vmul.f32 %v5955_v40, %v1372_v60  ;;  %v1503_v8 = vmul.f32 %v5955_v40, %v1371_v0  ;;  %v5480_v60 = vld [vmem:[%s8280_s1 + $0x108] sm:$0xff]  }
 0x11f   : > { %1646 = vadd.xlane.f32.xlu2 %v1483_v17  ;;  %1644 = vadd.xlane.f32.xlu1 %v1482_v20  ;;  %v1493_v17 = vmul.f32 %v5955_v40, %v1361_v10  ;;  %v1237_v20 = vadd.f32 %v5035_v12, %v6125_v37  ;;  %v5477_v12 = vld [vmem:[%s8280_s1 + $0xf0] sm:$0xff]  }
 0x120   : > { %1642 = vadd.xlane.f32.xlu0 %v1481_v19  ;;  %v1236_v19 = vadd.f32 %v5034_v49, %v6125_v37  ;;  %v5478_v49 = vld [vmem:[%s8280_s1 + $0xf8] sm:$0xff]   ;;  %v5059_v21 = vunpack.c.h.bf16 %v5477_v12 }
 0x121   : > { %v1365_v26 = vmax.f32 %v1237_v20, 0.0  ;;  %v5062_v16 = vunpack.c.l.bf16 %v5478_v49  ;;  %v5058_v20 = vunpack.c.l.bf16 %v5477_v12  ;;  %v5063_v47 = vunpack.c.h.bf16 %v5478_v49 }
 0x122   : > { %v1364_v25 = vmax.f32 %v1236_v19, 0.0 }
 0x123   : > { %v1497_v36 = vmul.f32 %v5955_v40, %v1365_v26  ;;  %v1250_v28 = vadd.f32 %v5062_v16, %v6125_v37  ;;  %v5482_v16 = vld [vmem:[%s8280_s1 + $0x118] sm:$0xff]  }
 0x125   : > { %v1378_v41 = vmax.f32 %v1250_v28, 0.0  ;;  %v5078_v28 = vunpack.c.l.bf16 %v5482_v16 }
 0x127   : > { %1652 = vadd.xlane.f32.xlu2 %v1486_v31  ;;  %1650 = vadd.xlane.f32.xlu1 %v1485_v35  ;;  %v1496_v35 = vmul.f32 %v5955_v40, %v1364_v25  ;;  %v1168_v25 = vrot.slane %v5946_v34, 4 }
 0x128   : > { %1648 = vadd.xlane.f32.xlu0 %v1484_v33  ;;  %v1241_v33 = vadd.f32 %v5043_v23, %v6125_v37 }
 0x129   : > { %v6209_v39 = vperm.slane %v1168_v25, 0 }
 0x12a   : > { %v1369_v44 = vmax.f32 %v1241_v33, 0.0  ;;  %v1248_v33 = vadd.f32 %v5058_v20, %v6125_v37 }
 0x12c   : > { %v1501_v54 = vmul.f32 %v5955_v40, %v1369_v44  ;;  %v1376_v44 = vmax.f32 %v1248_v33, 0.0 }
 0x12f   : > { %1658 = vadd.xlane.f32.xlu2 %v1489_v50  ;;  %1656 = vadd.xlane.f32.xlu1 %v1488_v53  ;;  %v5046_v50 = vunpack.c.l.bf16 %v5474_v43 }
 0x130   : > { %1654 = vadd.xlane.f32.xlu0 %v1487_v52 }
 0x131   : > { %v1242_v58 = vadd.f32 %v5046_v50, %v6125_v37 }
 0x137   : > { %1664 = vadd.xlane.f32.xlu2 %v1492_v63  ;;  %1662 = vadd.xlane.f32.xlu1 %v1491_v2  ;;  %v1370_v63 = vmax.f32 %v1242_v58, 0.0  ;;  %v5054_v2 = vunpack.c.l.bf16 %v5476_v38  ;;  %v1251_v58 = vadd.f32 %v5063_v47, %v6125_v37  ;;  %v5481_v38 = vld [vmem:[%s8280_s1 + $0x110] sm:$0xff]   ;;  %v5483_v47 = vld [vmem:[%s8280_s1 + $0x120] sm:$0xff]  }
 0x138   : > { %1660 = vadd.xlane.f32.xlu0 %v1490_v1  ;;  %v5051_v1 = vunpack.c.h.bf16 %v5475_v42 }
 0x139   : > { %v1502_v7 = vmul.f32 %v5955_v40, %v1370_v63  ;;  %v1246_v11 = vadd.f32 %v5054_v2, %v6125_v37  ;;  %v5074_v63 = vunpack.c.l.bf16 %v5481_v38 }
 0x13a   : > { %v6127_v9 = vpop.xlane.xlu2 %1584  ;;  %v6129_v13 = vpop.xlane.xlu1 %1580  ;;  %v1245_v10 = vadd.f32 %v5051_v1, %v6125_v37  ;;  %v1379_v1 = vmax.f32 %v1251_v58, 0.0  ;;  %v5082_v58 = vunpack.c.l.bf16 %v5483_v47 }
 0x13b   : > { %v6131_v14 = vpop.xlane.xlu0 %1576  ;;  %v1374_v19 = vmax.f32 %v1246_v11, 0.0 }
 0x13c   : > { %v1511_v11 = vmul.f32 %v5955_v40, %v1379_v1 }
 0x13f   : > { %1670 = vadd.xlane.f32.xlu2 %v1495_v15  ;;  %1668 = vadd.xlane.f32.xlu1 %v1494_v18  ;;  %v1375_v15 = vmax.f32 %v1247_v6, 0.0  ;;  %v1373_v18 = vmax.f32 %v1245_v10, 0.0  ;;  %v1256_v10 = vadd.f32 %v5074_v63, %v6209_v39 }
 0x140   : > { %1666 = vadd.xlane.f32.xlu0 %v1493_v17 }
 0x141   : > { %v1507_v26 = vmul.f32 %v5955_v40, %v1375_v15  ;;  %v1505_v29 = vmul.f32 %v5955_v40, %v1373_v18  ;;  %v1384_v18 = vmax.f32 %v1256_v10, 0.0 }
 0x142   : > { %v6142_v24 = vpop.xlane.xlu2 %1586  ;;  %v6144_v30 = vpop.xlane.xlu1 %1582 }
 0x143   : > { %v6146_v31 = vpop.xlane.xlu0 %1578  ;;  %v1516_v33 = vmul.f32 %v5955_v40, %v1384_v18 }
 0x147   : > { %1676 = vadd.xlane.f32.xlu2 %v1498_v32  ;;  %1674 = vadd.xlane.f32.xlu1 %v1497_v36  ;;  %v1506_v32 = vmul.f32 %v5955_v40, %v1374_v19  ;;  %v5479_v36 = vld [vmem:[%s8280_s1 + $0x100] sm:$0xff]   ;;  %v5079_v19 = vunpack.c.h.bf16 %v5482_v16 }
 0x148   : > { %1672 = vadd.xlane.f32.xlu0 %v1496_v35  ;;  %v1249_v35 = vadd.f32 %v5059_v21, %v6125_v37  ;;  %v5067_v42 = vunpack.c.h.bf16 %v5479_v36  ;;  %v5066_v48 = vunpack.c.l.bf16 %v5479_v36  ;;  %v5070_v37 = vunpack.c.l.bf16 %v5480_v60 }
 0x14a   : > { %v6160_v46 = vpop.xlane.xlu2 %1592  ;;  %v6162_v52 = vpop.xlane.xlu1 %1590  ;;  %v1377_v45 = vmax.f32 %v1249_v35, 0.0  ;;  %v1253_v55 = vadd.f32 %v5067_v42, %v6209_v39  ;;  %v1252_v59 = vadd.f32 %v5066_v48, %v6209_v39  ;;  %v1254_v12 = vadd.f32 %v5070_v37, %v6209_v39 }
 0x14b   : > { %8302 = vst [vmem:[#allocation8_spill] sm:$0xff] %v6160_v46  ;;  %v6164_v53 = vpop.xlane.xlu0 %1588  ;;  %v1259_v35 = vadd.f32 %v5079_v19, %v6209_v39  ;;  %v1260_v37 = vadd.f32 %v5082_v58, %v6209_v39 }
 0x14c   : > { %v1381_v61 = vmax.f32 %v1253_v55, 0.0  ;;  %v1380_v2 = vmax.f32 %v1252_v59, 0.0  ;;  %v1382_v21 = vmax.f32 %v1254_v12, 0.0  ;;  %v5083_v59 = vunpack.c.h.bf16 %v5483_v47 }
 0x14d   : > { %v1387_v48 = vmax.f32 %v1259_v35, 0.0  ;;  %v1388_v12 = vmax.f32 %v1260_v37, 0.0 }
 0x14e   : > { %v1512_v49 = vmul.f32 %v5955_v40, %v1380_v2  ;;  %v1514_v36 = vmul.f32 %v5955_v40, %v1382_v21 }
 0x14f   : > { %1682 = vadd.xlane.f32.xlu2 %v1501_v54  ;;  %1680 = vadd.xlane.f32.xlu1 %v1500_v57  ;;  %v1510_v54 = vmul.f32 %v5955_v40, %v1378_v41  ;;  %v1509_v57 = vmul.f32 %v5955_v40, %v1377_v45  ;;  %v5484_v45 = vld [vmem:[%s8280_s1 + $0x128] sm:$0xff]  }
 0x150   : > { %1678 = vadd.xlane.f32.xlu0 %v1499_v56  ;;  %v1508_v56 = vmul.f32 %v5955_v40, %v1376_v44  ;;  %v1258_v44 = vadd.f32 %v5078_v28, %v6209_v39  ;;  %v5087_v16 = vunpack.c.h.bf16 %v5484_v45 }
 0x152   : > { %v6175_v62 = vpop.xlane.xlu2 %1598  ;;  %v6177_v3 = vpop.xlane.xlu1 %1596 }
 0x153   : > { %8303 = vst [vmem:[#allocation9_spill] sm:$0xff] %v6175_v62  ;;  %v6179_v4 = vpop.xlane.xlu0 %1594 }
 0x154   : > { %8304 = vst [vmem:[#allocation10_spill] sm:$0xff] %v6177_v3 }
 0x155   : > { %8305 = vst [vmem:[#allocation11_spill] sm:$0xff] %v6179_v4 }
 0x157   : > { %1688 = vadd.xlane.f32.xlu2 %v1504_v5  ;;  %1686 = vadd.xlane.f32.xlu1 %v1503_v8  ;;  %v5071_v5 = vunpack.c.h.bf16 %v5480_v60  ;;  %v1513_v8 = vmul.f32 %v5955_v40, %v1381_v61  ;;  %v1519_v61 = vmul.f32 %v5955_v40, %v1387_v48 }
 0x158   : > { %1684 = vadd.xlane.f32.xlu0 %v1502_v7 }
 0x159   : > { %v1255_v15 = vadd.f32 %v5071_v5, %v6209_v39  ;;  %v1261_v5 = vadd.f32 %v5083_v59, %v6209_v39 }
 0x15a   : > { %v6193_v17 = vpop.xlane.xlu2 %1604  ;;  %v6195_v22 = vpop.xlane.xlu1 %1602 }
 0x15b   : > { %8306 = vst [vmem:[#allocation12_spill] sm:$0xff] %v6193_v17  ;;  %v6197_v23 = vpop.xlane.xlu0 %1600  ;;  %v1383_v25 = vmax.f32 %v1255_v15, 0.0  ;;  %v1389_v15 = vmax.f32 %v1261_v5, 0.0 }
 0x15c   : > { %8307 = vst [vmem:[#allocation13_spill] sm:$0xff] %v6195_v22 }
 0x15d   : > { %8308 = vst [vmem:[#allocation14_spill] sm:$0xff] %v6197_v23  ;;  %v1515_v41 = vmul.f32 %v5955_v40, %v1383_v25  ;;  %v1169_v25 = vrot.slane %v5946_v34, 5  ;;  %v1521_v35 = vmul.f32 %v5955_v40, %v1389_v15 }
 0x15f   : > { %1694 = vadd.xlane.f32.xlu2 %v1507_v26  ;;  %1692 = vadd.xlane.f32.xlu1 %v1506_v32  ;;  %v5075_v26 = vunpack.c.h.bf16 %v5481_v38 }
 0x160   : > { %1690 = vadd.xlane.f32.xlu0 %v1505_v29 }
 0x161   : > { %v1257_v42 = vadd.f32 %v5075_v26, %v6209_v39 }
 0x162   : > { %v6211_v43 = vpop.xlane.xlu2 %1610  ;;  %v6215_v51 = vpop.xlane.xlu1 %1608 }
 0x163   : > { %v6213_v50 = vpop.xlane.xlu0 %1606 }
 0x164   : > { %8309 = vst [vmem:[#allocation15_spill] sm:$0xff] %v6213_v50 }
 0x167   : > { %1700 = vadd.xlane.f32.xlu2 %v1510_v54  ;;  %1698 = vadd.xlane.f32.xlu1 %v1509_v57  ;;  %v5086_v54 = vunpack.c.l.bf16 %v5484_v45  ;;  %v1386_v57 = vmax.f32 %v1258_v44, 0.0  ;;  %v5486_v44 = vld [vmem:[%s8280_s1 + $0x138] sm:$0xff]   ;;  %v6296_v45 = vperm.slane %v1169_v25, 0 }
 0x168   : > { %1696 = vadd.xlane.f32.xlu0 %v1508_v56  ;;  %v1385_v56 = vmax.f32 %v1257_v42, 0.0  ;;  %v5487_v42 = vld [vmem:[%s8280_s1 + $0x140] sm:$0xff]   ;;  %v5094_v58 = vunpack.c.l.bf16 %v5486_v44  ;;  %v5095_v59 = vunpack.c.h.bf16 %v5486_v44 }
 0x169   : > { %v1262_v63 = vadd.f32 %v5086_v54, %v6209_v39  ;;  %v1518_v2 = vmul.f32 %v5955_v40, %v1386_v57  ;;  %v5098_v48 = vunpack.c.l.bf16 %v5487_v42 }
 0x16a   : > { %v6229_v0 = vpop.xlane.xlu2 %1616  ;;  %v6233_v7 = vpop.xlane.xlu1 %1614  ;;  %v1517_v1 = vmul.f32 %v5955_v40, %v1385_v56 }
 0x16b   : > { %v6231_v6 = vpop.xlane.xlu0 %1612  ;;  %v1390_v10 = vmax.f32 %v1262_v63, 0.0 }
 0x16d   : > { %v1522_v26 = vmul.f32 %v5955_v40, %v1390_v10  ;;  %v1267_v10 = vadd.f32 %v5095_v59, %v6209_v39 }
 0x16f   : > { %1706 = vadd.xlane.f32.xlu2 %v1513_v8  ;;  %1704 = vadd.xlane.f32.xlu1 %v1512_v49  ;;  %v5485_v8 = vld [vmem:[%s8280_s1 + $0x130] sm:$0xff]   ;;  %v1395_v25 = vmax.f32 %v1267_v10, 0.0 }
 0x170   : > { %1702 = vadd.xlane.f32.xlu0 %v1511_v11  ;;  %v5091_v11 = vunpack.c.h.bf16 %v5485_v8  ;;  %v5090_v18 = vunpack.c.l.bf16 %v5485_v8  ;;  %v1266_v8 = vadd.f32 %v5094_v58, %v6209_v39 }
 0x171   : > { %v1527_v44 = vmul.f32 %v5955_v40, %v1395_v25 }
 0x172   : > { %v6244_v20 = vpop.xlane.xlu2 %1622  ;;  %v6248_v32 = vpop.xlane.xlu1 %1620  ;;  %v1265_v28 = vadd.f32 %v5091_v11, %v6209_v39  ;;  %v5488_v11 = vld [vmem:[%s8280_s1 + $0x148] sm:$0xff]  }
 0x173   : > { %8310 = vst [vmem:[#allocation16_spill] sm:$0xff] %v6244_v20  ;;  %v6246_v29 = vpop.xlane.xlu0 %1618  ;;  %v5103_v15 = vunpack.c.h.bf16 %v5488_v11 }
 0x174   : > { %v1393_v47 = vmax.f32 %v1265_v28, 0.0  ;;  %v5102_v28 = vunpack.c.l.bf16 %v5488_v11 }
 0x177   : > { %1712 = vadd.xlane.f32.xlu2 %v1516_v33  ;;  %1710 = vadd.xlane.f32.xlu1 %v1515_v41  ;;  %v1520_v33 = vmul.f32 %v5955_v40, %v1388_v12  ;;  %v1264_v41 = vadd.f32 %v5090_v18, %v6209_v39  ;;  %v1394_v18 = vmax.f32 %v1266_v8, 0.0 }
 0x178   : > { %1708 = vadd.xlane.f32.xlu0 %v1514_v36  ;;  %v1263_v36 = vadd.f32 %v5087_v16, %v6209_v39 }
 0x179   : > { %v1392_v57 = vmax.f32 %v1264_v41, 0.0  ;;  %v1526_v41 = vmul.f32 %v5955_v40, %v1394_v18 }
 0x17a   : > { %v6262_v55 = vpop.xlane.xlu2 %1628  ;;  %v6266_v60 = vpop.xlane.xlu1 %1626  ;;  %v1391_v56 = vmax.f32 %v1263_v36, 0.0  ;;  %v1271_v36 = vadd.f32 %v5103_v15, %v6296_v45 }
 0x17b   : > { %8311 = vst [vmem:[#allocation17_spill] sm:$0xff] %v6262_v55  ;;  %v6264_v38 = vpop.xlane.xlu0 %1624  ;;  %v1524_v5 = vmul.f32 %v5955_v40, %v1392_v57 }
 0x17c   : > { %8312 = vst [vmem:[#allocation18_spill] sm:$0xff] %v6264_v38  ;;  %v1523_v37 = vmul.f32 %v5955_v40, %v1391_v56  ;;  %v5489_v56 = vld [vmem:[%s8280_s1 + $0x150] sm:$0xff]   ;;  %v1399_v57 = vmax.f32 %v1271_v36, 0.0 }
 0x17d   : > { %8313 = vst [vmem:[#allocation19_spill] sm:$0xff] %v6266_v60 }
 0x17e   : > { %v1531_v11 = vmul.f32 %v5955_v40, %v1399_v57 }
 0x17f   : > { %1718 = vadd.xlane.f32.xlu2 %v1519_v61  ;;  %1716 = vadd.xlane.f32.xlu1 %v1518_v2  ;;  %v1268_v2 = vadd.f32 %v5098_v48, %v6296_v45  ;;  %v1270_v48 = vadd.f32 %v5102_v28, %v6296_v45  ;;  %v5491_v28 = vld [vmem:[%s8280_s1 + $0x160] sm:$0xff]  }
 0x180   : > { %1714 = vadd.xlane.f32.xlu0 %v1517_v1  ;;  %v1525_v1 = vmul.f32 %v5955_v40, %v1393_v47  ;;  %v5115_v36 = vunpack.c.h.bf16 %v5491_v28 }
 0x181   : > { %v1396_v12 = vmax.f32 %v1268_v2, 0.0  ;;  %v1398_v2 = vmax.f32 %v1270_v48, 0.0 }
 0x182   : > { %v6277_v49 = vpop.xlane.xlu2 %1634  ;;  %v6281_v21 = vpop.xlane.xlu1 %1632 }
 0x183   : > { %8314 = vst [vmem:[#allocation20_spill] sm:$0xff] %v6277_v49  ;;  %v6279_v19 = vpop.xlane.xlu0 %1630  ;;  %v1528_v39 = vmul.f32 %v5955_v40, %v1396_v12  ;;  %v1530_v18 = vmul.f32 %v5955_v40, %v1398_v2  ;;  %v1277_v2 = vadd.f32 %v5115_v36, %v6296_v45 }
 0x184   : > { %8315 = vst [vmem:[#allocation21_spill] sm:$0xff] %v6279_v19 }
 0x185   : > { %8316 = vst [vmem:[#allocation22_spill] sm:$0xff] %v6281_v21 }
 0x187   : > { %1724 = vadd.xlane.f32.xlu2 %v1522_v26  ;;  %1722 = vadd.xlane.f32.xlu1 %v1521_v35  ;;  %v5099_v26 = vunpack.c.h.bf16 %v5487_v42  ;;  %v5490_v42 = vld [vmem:[%s8280_s1 + $0x158] sm:$0xff]  }
 0x188   : > { %1720 = vadd.xlane.f32.xlu0 %v1520_v33  ;;  %v5110_v58 = vunpack.c.l.bf16 %v5490_v42  ;;  %v5111_v48 = vunpack.c.h.bf16 %v5490_v42 }
 0x189   : > { %v1269_v47 = vadd.f32 %v5099_v26, %v6296_v45 }
 0x18a   : > { %v6298_v54 = vpop.xlane.xlu2 %1640  ;;  %v6302_v63 = vpop.xlane.xlu1 %1638  ;;  %v1274_v12 = vadd.f32 %v5110_v58, %v6296_v45  ;;  %v6355_v58 = vld [vmem:[%s8288_s9] ss:$0 sm:$0xff]  ;;  %v1275_v42 = vadd.f32 %v5111_v48, %v6296_v45 }
 0x18b   : > { %v6300_v61 = vpop.xlane.xlu0 %1636  ;;  %8318 = vst [vmem:[#allocation24_spill] sm:$0xff] %v6302_v63 }
 0x18c   : > { %8317 = vst [vmem:[#allocation23_spill] sm:$0xff] %v6300_v61 }
 0x18f   : > { %1730 = vadd.xlane.f32.xlu2 %v1525_v1  ;;  %1728 = vadd.xlane.f32.xlu1 %v1524_v5  ;;  %v1397_v1 = vmax.f32 %v1269_v47, 0.0  ;;  %v5107_v5 = vunpack.c.h.bf16 %v5489_v56 }
 0x190   : > { %1726 = vadd.xlane.f32.xlu0 %v1523_v37  ;;  %v5106_v37 = vunpack.c.l.bf16 %v5489_v56  ;;  %v5114_v56 = vunpack.c.l.bf16 %v5491_v28  ;;  %v1403_v28 = vmax.f32 %v1275_v42, 0.0  ;;  %v5494_v42 = vld [vmem:[%s8280_s1 + $0x178] sm:$0xff]  }
 0x191   : > { %v1529_v15 = vmul.f32 %v5955_v40, %v1397_v1  ;;  %v1273_v26 = vadd.f32 %v5107_v5, %v6296_v45  ;;  %v5126_v17 = vunpack.c.l.bf16 %v5494_v42 }
 0x192   : > { %v6313_v16 = vpop.xlane.xlu2 %1646  ;;  %v6317_v35 = vpop.xlane.xlu1 %1644  ;;  %v1272_v25 = vadd.f32 %v5106_v37, %v6296_v45  ;;  %v1535_v27 = vmul.f32 %v6355_v58, %v1403_v28 }
 0x193   : > { %v6315_v33 = vpop.xlane.xlu0 %1642  ;;  %v1401_v47 = vmax.f32 %v1273_v26, 0.0 }
 0x195   : > { %v1533_v5 = vmul.f32 %v6355_v58, %v1401_v47 }
 0x197   : > { %1736 = vadd.xlane.f32.xlu2 %v1528_v39  ;;  %1734 = vadd.xlane.f32.xlu1 %v1527_v44  ;;  %v1402_v39 = vmax.f32 %v1274_v12, 0.0  ;;  %v1400_v44 = vmax.f32 %v1272_v25, 0.0  ;;  %v5493_v12 = vld [vmem:[%s8280_s1 + $0x170] sm:$0xff]  }
 0x198   : > { %1732 = vadd.xlane.f32.xlu0 %v1526_v41  ;;  %v5122_v25 = vunpack.c.l.bf16 %v5493_v12  ;;  %v5123_v28 = vunpack.c.h.bf16 %v5493_v12  ;;  %v5495_v12 = vld [vmem:[%s8280_s1 + $0x180] sm:$0xff]  }
 0x199   : > { %v1534_v1 = vmul.f32 %v6355_v58, %v1402_v39  ;;  %v1532_v37 = vmul.f32 %v6355_v58, %v1400_v44 }
 0x19a   : > { %v6331_v59 = vpop.xlane.xlu2 %1652  ;;  %v6335_v10 = vpop.xlane.xlu1 %1650 }
 0x19b   : > { %8319 = vst [vmem:[#allocation25_spill] sm:$0xff] %v6331_v59  ;;  %v6333_v8 = vpop.xlane.xlu0 %1648 }
 0x19f   : > { %1742 = vadd.xlane.f32.xlu2 %v1531_v11  ;;  %1740 = vadd.xlane.f32.xlu1 %v1530_v18  ;;  %v1276_v11 = vadd.f32 %v5114_v56, %v6296_v45  ;;  %v1405_v18 = vmax.f32 %v1277_v2, 0.0 }
 0x1a0   : > { %1738 = vadd.xlane.f32.xlu0 %v1529_v15  ;;  %v5492_v15 = vld [vmem:[%s8280_s1 + $0x168] sm:$0xff]  }
 0x1a1   : > { %v1404_v39 = vmax.f32 %v1276_v11, 0.0  ;;  %v5118_v36 = vunpack.c.l.bf16 %v5492_v15  ;;  %v5119_v44 = vunpack.c.h.bf16 %v5492_v15  ;;  %v1537_v56 = vmul.f32 %v6355_v58, %v1405_v18 }
 0x1a2   : > { %v6346_v41 = vpop.xlane.xlu2 %1658  ;;  %v6350_v57 = vpop.xlane.xlu1 %1656  ;;  %v5127_v15 = vunpack.c.h.bf16 %v5494_v42 }
 0x1a3   : > { %8320 = vst [vmem:[#allocation26_spill] sm:$0xff] %v6346_v41  ;;  %v6348_v40 = vpop.xlane.xlu0 %1654  ;;  %v1278_v2 = vadd.f32 %v5118_v36, %v6296_v45 }
 0x1a4   : > { %8321 = vst [vmem:[#allocation27_spill] sm:$0xff] %v6350_v57 }
 0x1a7   : > { %1748 = vadd.xlane.f32.xlu2 %v1534_v1  ;;  %1746 = vadd.xlane.f32.xlu1 %v1533_v5  ;;  %v1280_v1 = vadd.f32 %v5122_v25, %v6296_v45  ;;  %v1279_v5 = vadd.f32 %v5119_v44, %v6296_v45  ;;  %v1406_v25 = vmax.f32 %v1278_v2, 0.0  ;;  %v1170_v44 = vrot.slane %v5946_v34, 6 }
 0x1a8   : > { %1744 = vadd.xlane.f32.xlu0 %v1532_v37  ;;  %v1536_v37 = vmul.f32 %v6355_v58, %v1404_v39  ;;  %v1282_v2 = vadd.f32 %v5126_v17, %v6296_v45 }
 0x1a9   : > { %v1408_v11 = vmax.f32 %v1280_v1, 0.0  ;;  %v1407_v50 = vmax.f32 %v1279_v5, 0.0  ;;  %v5496_v5 = vld [vmem:[%s8280_s1 + $0x188] sm:$0xff]   ;;  %v6403_v42 = vperm.slane %v1170_v44, 0  ;;  %v5497_v44 = vld [vmem:[%s8280_s1 + $0x190] sm:$0xff]  }
 0x1aa   : > { %v6369_v26 = vpop.xlane.xlu2 %1664  ;;  %v6373_v48 = vpop.xlane.xlu1 %1662  ;;  %v1410_v17 = vmax.f32 %v1282_v2, 0.0  ;;  %v5138_v62 = vunpack.c.l.bf16 %v5497_v44 }
 0x1ab   : > { %8322 = vst [vmem:[#allocation28_spill] sm:$0xff] %v6369_v26  ;;  %v6371_v47 = vpop.xlane.xlu0 %1660  ;;  %v1540_v63 = vmul.f32 %v6355_v58, %v1408_v11  ;;  %v1539_v1 = vmul.f32 %v6355_v58, %v1407_v50  ;;  %v5134_v50 = vunpack.c.l.bf16 %v5496_v5 }
 0x1ac   : > { %8323 = vst [vmem:[#allocation29_spill] sm:$0xff] %v6371_v47 }
 0x1ad   : > { %8324 = vst [vmem:[#allocation30_spill] sm:$0xff] %v6373_v48 }
 0x1af   : > { %1754 = vadd.xlane.f32.xlu2 %v1537_v56  ;;  %1752 = vadd.xlane.f32.xlu1 %v1536_v37  ;;  %v1283_v56 = vadd.f32 %v5127_v15, %v6296_v45  ;;  %v1281_v37 = vadd.f32 %v5123_v28, %v6296_v45  ;;  %v5130_v15 = vunpack.c.l.bf16 %v5495_v12  ;;  %v5131_v45 = vunpack.c.h.bf16 %v5495_v12 }
 0x1b0   : > { %1750 = vadd.xlane.f32.xlu0 %v1535_v27  ;;  %v1538_v27 = vmul.f32 %v6355_v58, %v1406_v25  ;;  %v8293_v25 = vlaneseq  ;;  %v5135_v12 = vunpack.c.h.bf16 %v5496_v5 }
 0x1b1   : > { %v1411_v11 = vmax.f32 %v1283_v56, 0.0  ;;  %v1284_v26 = vadd.f32 %v5130_v15, %v6403_v42 }
 0x1b2   : > { %v6384_v18 = vpop.xlane.xlu2 %1670  ;;  %v6388_v36 = vpop.xlane.xlu1 %1668  ;;  %v6412_v56 = vand.u32 127, %v8293_v25  ;;  %v1287_v5 = vadd.f32 %v5135_v12, %v6403_v42  ;;  %v1288_v12 = vadd.f32 %v5138_v62, %v6403_v42 }
 0x1b3   : > { %8325 = vst [vmem:[#allocation31_spill] sm:$0xff] %v6384_v18  ;;  %v6386_v39 = vpop.xlane.xlu0 %1666  ;;  %v1409_v18 = vmax.f32 %v1281_v37, 0.0  ;;  %v1543_v49 = vmul.f32 %v6355_v58, %v1411_v11  ;;  %v1285_v37 = vadd.f32 %v5131_v45, %v6403_v42  ;;  %v5139_v11 = vunpack.c.h.bf16 %v5497_v44  ;;  %v5498_v44 = vld [vmem:[%s8280_s1 + $0x198] sm:$0xff]  }
 0x1b4   : > { %8326 = vst [vmem:[#allocation32_spill] sm:$0xff] %v6386_v39  ;;  %v6418_v2 = vadd.s32 4294967288, %v6412_v56  ;;  %v1412_v15 = vmax.f32 %v1284_v26, 0.0  ;;  %v6426_v21 = vadd.s32 4294967272, %v6412_v56  ;;  %v1416_v48 = vmax.f32 %v1288_v12, 0.0 }
 0x1b5   : > { %8327 = vst [vmem:[#allocation33_spill] sm:$0xff] %v6388_v36  ;;  %v1289_v26 = vadd.f32 %v5139_v11, %v6403_v42  ;;  %v6444_v11 = vadd.s32 4294967264, %v6412_v56  ;;  %v5143_v19 = vunpack.c.h.bf16 %v5498_v44  ;;  %v6450_v55 = vadd.s32 4294967248, %v6412_v56 }
 0x1b6   : > { %v6465_v12 = vadd.s32 4294967240, %v6412_v56  ;;  %v6504_v60 = vadd.s32 4294967200, %v6412_v56 }
 0x1b7   : > { %1760 = vadd.xlane.f32.xlu2 %v1540_v63  ;;  %1758 = vadd.xlane.f32.xlu1 %v1539_v1  ;;  %v1286_v63 = vadd.f32 %v5134_v50, %v6403_v42  ;;  %v1542_v1 = vmul.f32 %v6355_v58, %v1410_v17  ;;  %v6423_v17 = vadd.s32 4294967280, %v6412_v56 }
 0x1b8   : > { %1756 = vadd.xlane.f32.xlu0 %v1538_v27  ;;  %v1541_v27 = vmul.f32 %v6355_v58, %v1409_v18  ;;  %v1413_v18 = vmax.f32 %v1285_v37, 0.0 }
 0x1b9   : > { %v1414_v50 = vmax.f32 %v1286_v63, 0.0 }
 0x1ba   : > { %v1677_v28 = vpop.xlane.xlu2 %1676  ;;  %v1675_v61 = vpop.xlane.xlu1 %1674  ;;  %v1545_v37 = vmul.f32 %v6355_v58, %v1413_v18 }
 0x1bb   : > { %v1673_v36 = vpop.xlane.xlu0 %1672  ;;  %v2087_v25 = vperm.slane %v1675_v61, %v6418_v2  ;;  %v1544_v61 = vmul.f32 %v6355_v58, %v1412_v15  ;;  %v1546_v63 = vmul.f32 %v6355_v58, %v1414_v50  ;;  %v1415_v15 = vmax.f32 %v1287_v5, 0.0 }
 0x1bc   : > { %v2086_v22 = vperm.slane %v1673_v36, %v6412_v56  ;;  %v2089_v36 = vperm.slane %v1677_v28, %v6423_v17  ;;  %v5499_v28 = vld [vmem:[%s8280_s1 + $0x1a0] sm:$0xff]   ;;  %v1417_v50 = vmax.f32 %v1289_v26, 0.0  ;;  %v6453_v5 = vadd.s32 4294967256, %v6412_v56 }
 0x1bd   : > { %v5146_v62 = vunpack.c.l.bf16 %v5499_v28  ;;  %v1547_v26 = vmul.f32 %v6355_v58, %v1415_v15  ;;  %v1548_v15 = vmul.f32 %v6355_v58, %v1416_v48 }
 0x1bf   : > { %1766 = vadd.xlane.f32.xlu2 %v1543_v49  ;;  %1764 = vadd.xlane.f32.xlu1 %v1542_v1 }
 0x1c0   : > { %1762 = vadd.xlane.f32.xlu0 %v1541_v27  ;;  %v2088_v27 = vsel %vm1966_vm0, %v2087_v25, %v2086_v22  ;;  %v5142_v22 = vunpack.c.l.bf16 %v5498_v44  ;;  %v1292_v44 = vadd.f32 %v5146_v62, %v6403_v42 }
 0x1c1   : > { %v2090_v25 = vsel %vm1970_vm1, %v2089_v36, %v2088_v27 }
 0x1c2   : > { %v1683_v39 = vpop.xlane.xlu2 %1682  ;;  %v1681_v45 = vpop.xlane.xlu1 %1680  ;;  %v1290_v36 = vadd.f32 %v5142_v22, %v6403_v42  ;;  %v1291_v22 = vadd.f32 %v5143_v19, %v6403_v42  ;;  %v1420_v41 = vmax.f32 %v1292_v44, 0.0 }
 0x1c3   : > { %v1679_v49 = vpop.xlane.xlu0 %1678  ;;  %v2093_v18 = vperm.slane %v1681_v45, %v6444_v11 }
 0x1c4   : > { %v2091_v1 = vperm.slane %v1679_v49, %v6426_v21  ;;  %v1418_v19 = vmax.f32 %v1290_v36, 0.0  ;;  %v1419_v47 = vmax.f32 %v1291_v22, 0.0  ;;  %v6487_v36 = vadd.s32 4294967216, %v6412_v56 }
 0x1c6   : > { %v2092_v49 = vsel %vm1974_vm2, %v2091_v1, %v2090_v25  ;;  %v1549_v1 = vmul.f32 %v6355_v58, %v1417_v50  ;;  %v2095_v25 = vperm.slane %v1683_v39, %v6453_v5  ;;  %v6474_v39 = vadd.s32 4294967224, %v6412_v56 }
 0x1c7   : > { %1772 = vadd.xlane.f32.xlu2 %v1546_v63  ;;  %1770 = vadd.xlane.f32.xlu1 %v1545_v37  ;;  %v2094_v45 = vsel %vm1978_vm3, %v2093_v18, %v2092_v49  ;;  %v5500_v37 = vld [vmem:[%s8280_s1 + $0x1a8] sm:$0xff]   ;;  %v5147_v18 = vunpack.c.h.bf16 %v5499_v28  ;;  %v6477_v28 = vadd.s32 4294967232, %v6412_v56 }
 0x1c8   : > { %1768 = vadd.xlane.f32.xlu0 %v1544_v61  ;;  %v2096_v50 = vsel %vm1982_vm4, %v2095_v25, %v2094_v45  ;;  %v5151_v49 = vunpack.c.h.bf16 %v5500_v37  ;;  %v5150_v3 = vunpack.c.l.bf16 %v5500_v37  ;;  %v5501_v37 = vld [vmem:[%s8280_s1 + $0x1b0] sm:$0xff]  }
 0x1ca   : > { %v1689_v23 = vpop.xlane.xlu2 %1688  ;;  %v1687_v61 = vpop.xlane.xlu1 %1686  ;;  %v1295_v44 = vadd.f32 %v5151_v49, %v6403_v42  ;;  %v1294_v22 = vadd.f32 %v5150_v3, %v6403_v42 }
 0x1cb   : > { %v1685_v63 = vpop.xlane.xlu0 %1684  ;;  %v2099_v62 = vperm.slane %v1687_v61, %v6465_v12  ;;  %v2101_v25 = vperm.slane %v1689_v23, %v6477_v28  ;;  %v5154_v23 = vunpack.c.l.bf16 %v5501_v37 }
 0x1cc   : > { %v2097_v27 = vperm.slane %v1685_v63, %v6450_v55 }
 0x1ce   : > { %v2098_v63 = vsel %vm1986_vm5, %v2097_v27, %v2096_v50  ;;  %v1293_v27 = vadd.f32 %v5147_v18, %v6403_v42  ;;  %v1550_v50 = vmul.f32 %v6355_v58, %v1418_v19  ;;  %v1551_v18 = vmul.f32 %v6355_v58, %v1419_v47 }
 0x1cf   : > { %1778 = vadd.xlane.f32.xlu2 %v1549_v1  ;;  %1776 = vadd.xlane.f32.xlu1 %v1548_v15  ;;  %v2100_v61 = vsel %vm1990_vm6, %v2099_v62, %v2098_v63  ;;  %v1552_v15 = vmul.f32 %v6355_v58, %v1420_v41  ;;  %v5502_v62 = vld [vmem:[%s8280_s1 + $0x1b8] sm:$0xff]   ;;  %v1422_v19 = vmax.f32 %v1294_v22, 0.0  ;;  %v6501_v47 = vadd.s32 4294967208, %v6412_v56 }
 0x1d0   : > { %1774 = vadd.xlane.f32.xlu0 %v1547_v26  ;;  %v2102_v49 = vsel %vm1994_vm7, %v2101_v25, %v2100_v61  ;;  %v1421_v3 = vmax.f32 %v1293_v27, 0.0  ;;  %v5158_v46 = vunpack.c.l.bf16 %v5502_v62  ;;  %v5155_v25 = vunpack.c.h.bf16 %v5501_v37 }
 0x1d1   : > { %v1296_v27 = vadd.f32 %v5154_v23, %v6403_v42 }
 0x1d2   : > { %v1695_v48 = vpop.xlane.xlu2 %1694  ;;  %v1693_v1 = vpop.xlane.xlu1 %1692  ;;  %v1297_v4 = vadd.f32 %v5155_v25, %v6403_v42  ;;  %v6531_v25 = vadd.s32 4294967176, %v6412_v56 }
 0x1d3   : > { %v1691_v45 = vpop.xlane.xlu0 %1690  ;;  %v2105_v63 = vperm.slane %v1693_v1, %v6487_v36  ;;  %v1171_v1 = vrot.slane %v5946_v34, 7  ;;  %v2107_v22 = vperm.slane %v1695_v48, %v6501_v47  ;;  %v1554_v34 = vmul.f32 %v6355_v58, %v1422_v19  ;;  %v5503_v48 = vld [vmem:[%s8280_s1 + $0x1c0] sm:$0xff]  }
 0x1d4   : > { %v2103_v26 = vperm.slane %v1691_v45, %v6474_v39  ;;  %v1423_v45 = vmax.f32 %v1295_v44, 0.0  ;;  %v6510_v44 = vadd.s32 4294967192, %v6412_v56  ;;  %v6528_v19 = vadd.s32 4294967184, %v6412_v56  ;;  %8328 = vst [vmem:[#allocation34_spill] sm:$0xff] %v6531_v25 }
 0x1d6   : > { %v2104_v41 = vsel %vm8297_vm8, %v2103_v26, %v2102_v49  ;;  %v1553_v49 = vmul.f32 %v6355_v58, %v1421_v3  ;;  %v1555_v37 = vmul.f32 %v6355_v58, %v1423_v45  ;;  %v1424_v45 = vmax.f32 %v1296_v27, 0.0 }
 0x1d7   : > { %1784 = vadd.xlane.f32.xlu2 %v1552_v15  ;;  %1782 = vadd.xlane.f32.xlu1 %v1551_v18  ;;  %v2106_v15 = vsel %vm8296_vm9, %v2105_v63, %v2104_v41  ;;  %v1298_v63 = vadd.f32 %v5158_v46, %v6403_v42  ;;  %v5159_v46 = vunpack.c.h.bf16 %v5502_v62 }
 0x1d8   : > { %1780 = vadd.xlane.f32.xlu0 %v1550_v50  ;;  %v2108_v41 = vsel %vm8298_vm10, %v2107_v22, %v2106_v15 }
 0x1d9   : > { %v1426_v15 = vmax.f32 %v1298_v63, 0.0  ;;  %v1299_v27 = vadd.f32 %v5159_v46, %v6403_v42 }
 0x1da   : > { %v1701_v61 = vpop.xlane.xlu2 %1700  ;;  %v1699_v50 = vpop.xlane.xlu1 %1698 }
 0x1db   : > { %v1697_v26 = vpop.xlane.xlu0 %1696  ;;  %v2111_v23 = vperm.slane %v1699_v50, %v6510_v44  ;;  %v5163_v50 = vunpack.c.h.bf16 %v5503_v48 }
 0x1dc   : > { %v2109_v18 = vperm.slane %v1697_v26, %v6504_v60  ;;  %v6525_v26 = vperm.slane %v1171_v1, 0  ;;  %v2113_v1 = vperm.slane %v1701_v61, %v6528_v19 }
 0x1de   : > { %v2110_v3 = vsel %vm2010_vm11, %v2109_v18, %v2108_v41  ;;  %v1425_v18 = vmax.f32 %v1297_v4, 0.0  ;;  %v1558_v41 = vmul.f32 %v6355_v58, %v1426_v15  ;;  %v1301_v38 = vadd.f32 %v5163_v50, %v6525_v26  ;;  %v5504_v4 = vld [vmem:[%s8280_s1 + $0x1c8] sm:$0xff]  }
 0x1df   : > { %1790 = vadd.xlane.f32.xlu2 %v1555_v37  ;;  %1788 = vadd.xlane.f32.xlu1 %v1554_v34  ;;  %v2112_v22 = vsel %vm2014_vm12, %v2111_v23, %v2110_v3  ;;  %v5162_v37 = vunpack.c.l.bf16 %v5503_v48  ;;  %v1556_v23 = vmul.f32 %v6355_v58, %v1424_v45  ;;  %v5505_v3 = vld [vmem:[%s8280_s1 + $0x1d0] sm:$0xff]   ;;  %v5166_v46 = vunpack.c.l.bf16 %v5504_v4 }
 0x1e0   : > { %1786 = vadd.xlane.f32.xlu0 %v1553_v49  ;;  %v2114_v63 = vsel %vm2018_vm13, %v2113_v1, %v2112_v22  ;;  %v1557_v48 = vmul.f32 %v6355_v58, %v1425_v18  ;;  %v1427_v15 = vmax.f32 %v1299_v27, 0.0  ;;  %v1429_v50 = vmax.f32 %v1301_v38, 0.0 }
 0x1e1   : > { %v1300_v42 = vadd.f32 %v5162_v37, %v6525_v26  ;;  %v5170_v22 = vunpack.c.l.bf16 %v5505_v3  ;;  %v5167_v18 = vunpack.c.h.bf16 %v5504_v4 }
 0x1e2   : > { %v1707_v57 = vpop.xlane.xlu2 %1706  ;;  %v1705_v34 = vpop.xlane.xlu1 %1704 }
 0x1e3   : > { %v1703_v49 = vpop.xlane.xlu0 %1702  ;;  %v2118_v1 = vperm.slane %v1707_v57, %v6418_v2  ;;  %v1304_v38 = vadd.f32 %v5170_v22, %v6525_v26  ;;  %v1303_v4 = vadd.f32 %v5167_v18, %v6525_v26 }
 0x1e4   : > { %v2115_v62 = vperm.slane %v1703_v49, %v6531_v25  ;;  %v2117_v49 = vperm.slane %v1705_v34, %v6412_v56  ;;  %v1302_v25 = vadd.f32 %v5166_v46, %v6525_v26 }
 0x1e6   : > { %v6544_v61 = vsel %vm2022_vm14, %v2115_v62, %v2114_v63  ;;  %v1428_v62 = vmax.f32 %v1300_v42, 0.0  ;;  %v2119_v27 = vsel %vm1966_vm0, %v2118_v1, %v2117_v49  ;;  %v1430_v46 = vmax.f32 %v1302_v25, 0.0 }
 0x1e7   : > { %8329 = vst [vmem:[#allocation35_spill] sm:$0xff] %v6544_v61  ;;  %1796 = vadd.xlane.f32.xlu2 %v1558_v41  ;;  %1794 = vadd.xlane.f32.xlu1 %v1557_v48  ;;  %v1559_v41 = vmul.f32 %v6355_v58, %v1427_v15  ;;  %v5506_v48 = vld [vmem:[%s8280_s1 + $0x1d8] sm:$0xff]   ;;  %v1432_v15 = vmax.f32 %v1304_v38, 0.0  ;;  %v5507_v38 = vld [vmem:[%s8280_s1 + $0x1e0] sm:$0xff]  }
 0x1e8   : > { %1792 = vadd.xlane.f32.xlu0 %v1556_v23  ;;  %v1561_v23 = vmul.f32 %v6355_v58, %v1429_v50  ;;  %v1560_v34 = vmul.f32 %v6355_v58, %v1428_v62  ;;  %v5171_v50 = vunpack.c.h.bf16 %v5505_v3  ;;  %v5175_v22 = vunpack.c.h.bf16 %v5506_v48 }
 0x1e9   : > { %v5174_v62 = vunpack.c.l.bf16 %v5506_v48  ;;  %v1564_v25 = vmul.f32 %v6355_v58, %v1432_v15  ;;  %v5178_v48 = vunpack.c.l.bf16 %v5507_v38 }
 0x1ea   : > { %v1713_v45 = vpop.xlane.xlu2 %1712  ;;  %v1711_v37 = vpop.xlane.xlu1 %1710  ;;  %v1305_v3 = vadd.f32 %v5171_v50, %v6525_v26 }
 0x1eb   : > { %v1709_v63 = vpop.xlane.xlu0 %1708  ;;  %v2122_v57 = vperm.slane %v1711_v37, %v6426_v21  ;;  %v2124_v18 = vperm.slane %v1713_v45, %v6444_v11 }
 0x1ec   : > { %v2120_v61 = vperm.slane %v1709_v63, %v6423_v17  ;;  %v1431_v63 = vmax.f32 %v1303_v4, 0.0  ;;  %v5508_v4 = vld [vmem:[%s8280_s1 + $0x1e8] sm:$0xff]  }
 0x1ed   : > { %v5182_v15 = vunpack.c.l.bf16 %v5508_v4 }
 0x1ee   : > { %v2121_v42 = vsel %vm1970_vm1, %v2120_v61, %v2119_v27  ;;  %v1562_v61 = vmul.f32 %v6355_v58, %v1430_v46 }
 0x1ef   : > { %1802 = vadd.xlane.f32.xlu2 %v1561_v23  ;;  %1800 = vadd.xlane.f32.xlu1 %v1560_v34  ;;  %v2123_v1 = vsel %vm1974_vm2, %v2122_v57, %v2121_v42  ;;  %v1307_v23 = vadd.f32 %v5175_v22, %v6525_v26  ;;  %v1563_v57 = vmul.f32 %v6355_v58, %v1431_v63  ;;  %v1433_v42 = vmax.f32 %v1305_v3, 0.0 }
 0x1f0   : > { %1798 = vadd.xlane.f32.xlu0 %v1559_v41  ;;  %v2125_v41 = vsel %vm1978_vm3, %v2124_v18, %v2123_v1  ;;  %v1306_v34 = vadd.f32 %v5174_v62, %v6525_v26  ;;  %v1310_v3 = vadd.f32 %v5182_v15, %v6525_v26 }
 0x1f1   : > { %v1435_v46 = vmax.f32 %v1307_v23, 0.0 }
 0x1f2   : > { %v1719_v49 = vpop.xlane.xlu2 %1718  ;;  %v1717_v20 = vpop.xlane.xlu1 %1716  ;;  %v1434_v22 = vmax.f32 %v1306_v34, 0.0  ;;  %v1438_v34 = vmax.f32 %v1310_v3, 0.0 }
 0x1f3   : > { %v1715_v37 = vpop.xlane.xlu0 %1714  ;;  %v2128_v27 = vperm.slane %v1717_v20, %v6450_v55  ;;  %v5179_v20 = vunpack.c.h.bf16 %v5507_v38  ;;  %v2130_v1 = vperm.slane %v1719_v49, %v6465_v12 }
 0x1f4   : > { %v2126_v59 = vperm.slane %v1715_v37, %v6453_v5  ;;  %v1308_v37 = vadd.f32 %v5178_v48, %v6525_v26  ;;  %v1566_v49 = vmul.f32 %v6355_v58, %v1434_v22  ;;  %v5183_v48 = vunpack.c.h.bf16 %v5508_v4 }
 0x1f6   : > { %v2127_v45 = vsel %vm1982_vm4, %v2126_v59, %v2125_v41  ;;  %v1565_v41 = vmul.f32 %v6355_v58, %v1433_v42  ;;  %v1311_v4 = vadd.f32 %v5183_v48, %v6525_v26 }
 0x1f7   : > { %1808 = vadd.xlane.f32.xlu2 %v1564_v25  ;;  %1806 = vadd.xlane.f32.xlu1 %v1563_v57  ;;  %v2129_v50 = vsel %vm1986_vm5, %v2128_v27, %v2127_v45  ;;  %v1567_v25 = vmul.f32 %v6355_v58, %v1435_v46  ;;  %v1309_v45 = vadd.f32 %v5179_v20, %v6525_v26  ;;  %v5509_v27 = vld [vmem:[%s8280_s1 + $0x1f0] sm:$0xff]   ;;  %v1436_v57 = vmax.f32 %v1308_v37, 0.0 }
 0x1f8   : > { %1804 = vadd.xlane.f32.xlu0 %v1562_v61  ;;  %v2131_v61 = vsel %vm1990_vm6, %v2130_v1, %v2129_v50  ;;  %v5187_v42 = vunpack.c.h.bf16 %v5509_v27  ;;  %v5186_v1 = vunpack.c.l.bf16 %v5509_v27  ;;  %v1570_v37 = vmul.f32 %v6355_v58, %v1438_v34 }
 0x1f9   : > { %v1437_v50 = vmax.f32 %v1309_v45, 0.0  ;;  %v1439_v34 = vmax.f32 %v1311_v4, 0.0 }
 0x1fa   : > { %v1725_v59 = vpop.xlane.xlu2 %1724  ;;  %v1723_v62 = vpop.xlane.xlu1 %1722 }
 0x1fb   : > { %v1721_v63 = vpop.xlane.xlu0 %1720  ;;  %v2134_v38 = vperm.slane %v1723_v62, %v6474_v39  ;;  %v2136_v22 = vperm.slane %v1725_v59, %v6487_v36  ;;  %v1569_v59 = vmul.f32 %v6355_v58, %v1437_v50 }
 0x1fc   : > { %v2132_v18 = vperm.slane %v1721_v63, %v6477_v28 }
 0x1fe   : > { %v2133_v23 = vsel %vm1994_vm7, %v2132_v18, %v2131_v61  ;;  %v1568_v18 = vmul.f32 %v6355_v58, %v1436_v57 }
 0x1ff   : > { %1814 = vadd.xlane.f32.xlu2 %v1567_v25  ;;  %1812 = vadd.xlane.f32.xlu1 %v1566_v49  ;;  %v2135_v46 = vsel %vm8297_vm8, %v2134_v38, %v2133_v23  ;;  %v1312_v23 = vadd.f32 %v5186_v1, %v6525_v26  ;;  %v5510_v38 = vld [vmem:[%s8280_s1 + $0x1f8] sm:$0xff]  }
 0x200   : > { %1810 = vadd.xlane.f32.xlu0 %v1565_v41  ;;  %v2137_v61 = vsel %vm8296_vm9, %v2136_v22, %v2135_v46  ;;  %v1313_v41 = vadd.f32 %v5187_v42, %v6525_v26  ;;  %v5190_v45 = vunpack.c.l.bf16 %v5510_v38  ;;  %v5191_v42 = vunpack.c.h.bf16 %v5510_v38 }
 0x201   : > { %v1440_v48 = vmax.f32 %v1312_v23, 0.0 }
 0x202   : > { %v1731_v15 = vpop.xlane.xlu2 %1730  ;;  %v1729_v20 = vpop.xlane.xlu1 %1728  ;;  %v1441_v49 = vmax.f32 %v1313_v41, 0.0 }
 0x203   : > { %v1727_v63 = vpop.xlane.xlu0 %1726  ;;  %v2140_v3 = vperm.slane %v1729_v20, %v6504_v60  ;;  %v2142_v46 = vperm.slane %v1731_v15, %v6510_v44  ;;  %v1315_v15 = vadd.f32 %v5191_v42, %v6525_v26 }
 0x204   : > { %v2138_v62 = vperm.slane %v1727_v63, %v6501_v47  ;;  %v1573_v20 = vmul.f32 %v6355_v58, %v1441_v49 }
 0x206   : > { %v2139_v25 = vsel %vm8298_vm10, %v2138_v62, %v2137_v61  ;;  %v1314_v62 = vadd.f32 %v5190_v45, %v6525_v26  ;;  %v1571_v61 = vmul.f32 %v6355_v58, %v1439_v34 }
 0x207   : > { %1820 = vadd.xlane.f32.xlu2 %v1570_v37  ;;  %1818 = vadd.xlane.f32.xlu1 %v1569_v59  ;;  %v2141_v27 = vsel %vm2010_vm11, %v2140_v3, %v2139_v25  ;;  %v1572_v37 = vmul.f32 %v6355_v58, %v1440_v48  ;;  %v1443_v25 = vmax.f32 %v1315_v15, 0.0 }
 0x208   : > { %1816 = vadd.xlane.f32.xlu0 %v1568_v18  ;;  %v2143_v63 = vsel %vm2014_vm12, %v2142_v46, %v2141_v27  ;;  %v1442_v41 = vmax.f32 %v1314_v62, 0.0 }
 0x209   : > { %v1575_v27 = vmul.f32 %v6355_v58, %v1443_v25 }
 0x20a   : > { %v1737_v57 = vpop.xlane.xlu2 %1736  ;;  %v6617_v22 = vpop.xlane.xlu1 %1734  ;;  %v1574_v45 = vmul.f32 %v6355_v58, %v1442_v41 }
 0x20b   : > { %v1733_v50 = vpop.xlane.xlu0 %1732  ;;  %v2148_v38 = vperm.slane %v1737_v57, %v6412_v56 }
 0x20c   : > { %v2144_v1 = vperm.slane %v1733_v50, %v6528_v19 }
 0x20e   : > { %v6624_v18 = vsel %vm2018_vm13, %v2144_v1, %v2143_v63 }
 0x20f   : > { %1826 = vadd.xlane.f32.xlu2 %v1573_v20  ;;  %1824 = vadd.xlane.f32.xlu1 %v1572_v37 }
 0x210   : > { %1822 = vadd.xlane.f32.xlu0 %v1571_v61 }
 0x212   : > { %v1743_v4 = vpop.xlane.xlu2 %1742  ;;  %v1741_v59 = vpop.xlane.xlu1 %1740 }
 0x213   : > { %v1739_v3 = vpop.xlane.xlu0 %1738  ;;  %v2151_v49 = vperm.slane %v1741_v59, %v6423_v17  ;;  %v2153_v42 = vperm.slane %v1743_v4, %v6426_v21 }
 0x214   : > { %v2149_v23 = vperm.slane %v1739_v3, %v6418_v2 }
 0x216   : > { %v2150_v26 = vsel %vm1966_vm0, %v2149_v23, %v2148_v38 }
 0x217   : > { %1830 = vadd.xlane.f32.xlu1 %v1575_v27  ;;  %v2152_v34 = vsel %vm1970_vm1, %v2151_v49, %v2150_v26 }
 0x218   : > { %1828 = vadd.xlane.f32.xlu0 %v1574_v45  ;;  %v2154_v57 = vsel %vm1974_vm2, %v2153_v42, %v2152_v34 }
 0x21a   : > { %v1749_v48 = vpop.xlane.xlu2 %1748  ;;  %v1747_v50 = vpop.xlane.xlu1 %1746 }
 0x21b   : > { %v1745_v46 = vpop.xlane.xlu0 %1744  ;;  %v2157_v20 = vperm.slane %v1747_v50, %v6453_v5  ;;  %v2159_v61 = vperm.slane %v1749_v48, %v6450_v55 }
 0x21c   : > { %v2155_v1 = vperm.slane %v1745_v46, %v6444_v11 }
 0x21e   : > { %v2156_v63 = vsel %vm1978_vm3, %v2155_v1, %v2154_v57 }
 0x21f   : > { %v2158_v58 = vsel %vm1982_vm4, %v2157_v20, %v2156_v63 }
 0x220   : > { %v2160_v4 = vsel %vm1986_vm5, %v2159_v61, %v2158_v58 }
 0x222   : > { %v1755_v62 = vpop.xlane.xlu2 %1754  ;;  %v1753_v15 = vpop.xlane.xlu1 %1752 }
 0x223   : > { %v1751_v37 = vpop.xlane.xlu0 %1750  ;;  %v2163_v3 = vperm.slane %v1753_v15, %v6477_v28  ;;  %v2165_v38 = vperm.slane %v1755_v62, %v6474_v39  ;;  %v1965_v15 = vperm.slane %v6146_v31, %v6418_v2 }
 0x224   : > { %v2161_v41 = vperm.slane %v1751_v37, %v6465_v12 }
 0x226   : > { %v2162_v25 = vsel %vm1990_vm6, %v2161_v41, %v2160_v4  ;;  %v2056_v41 = vperm.slane %v6315_v33, %v6418_v2  ;;  %v1963_v4 = vperm.slane %v6131_v14, %v6412_v56  ;;  %v2058_v33 = vperm.slane %v6317_v35, %v6423_v17 }
 0x227   : > { %v2164_v59 = vsel %vm1994_vm7, %v2163_v3, %v2162_v25  ;;  %v2025_v25 = vperm.slane %v6211_v43, %v6418_v2  ;;  %v2024_v3 = vperm.slane %v6215_v51, %v6412_v56  ;;  %v1969_v43 = vperm.slane %v6129_v13, %v6423_v17 }
 0x228   : > { %v2166_v26 = vsel %vm8297_vm8, %v2165_v38, %v2164_v59  ;;  %v2027_v59 = vperm.slane %v6231_v6, %v6423_v17  ;;  %v1967_v31 = vsel %vm1966_vm0, %v1965_v15, %v1963_v4  ;;  %v2029_v6 = vperm.slane %v6233_v7, %v6426_v21 }
 0x229   : > { %v1977_v13 = vperm.slane %v6127_v9, %v6444_v11 }
 0x22a   : > { %v1761_v23 = vpop.xlane.xlu2 %1760  ;;  %v1759_v45 = vpop.xlane.xlu1 %1758 }
 0x22b   : > { %v1757_v49 = vpop.xlane.xlu0 %1756  ;;  %v2169_v48 = vperm.slane %v1759_v45, %v6501_v47  ;;  %v2171_v50 = vperm.slane %v1761_v23, %v6504_v60  ;;  %v2055_v23 = vperm.slane %v6298_v54, %v6412_v56  ;;  %v2026_v45 = vsel %vm1966_vm0, %v2025_v25, %v2024_v3 }
 0x22c   : > { %v2167_v27 = vperm.slane %v1757_v49, %v6487_v36  ;;  %v1971_v54 = vsel %vm1970_vm1, %v1969_v43, %v1967_v31  ;;  %v1989_v31 = vperm.slane %v6162_v52, %v6465_v12 }
 0x22d   : > { %v2057_v51 = vsel %vm1966_vm0, %v2056_v41, %v2055_v23 }
 0x22e   : > { %v2168_v34 = vsel %vm8296_vm9, %v2167_v27, %v2166_v26  ;;  %v2028_v27 = vsel %vm1970_vm1, %v2027_v59, %v2026_v45  ;;  %v1973_v26 = vperm.slane %v6144_v30, %v6426_v21  ;;  %v2059_v35 = vsel %vm1970_vm1, %v2058_v33, %v2057_v51 }
 0x22f   : > { %v2170_v42 = vsel %vm8298_vm10, %v2169_v48, %v2168_v34  ;;  %v2062_v34 = vperm.slane %v6333_v8, %v6444_v11  ;;  %v2060_v48 = vperm.slane %v6313_v16, %v6426_v21  ;;  %v2033_v30 = vperm.slane %v6246_v29, %v6453_v5 }
 0x230   : > { %v2172_v20 = vsel %vm2010_vm11, %v2171_v50, %v2170_v42  ;;  %v1975_v7 = vsel %vm1974_vm2, %v1973_v26, %v1971_v54  ;;  %v2031_v42 = vperm.slane %v6229_v0, %v6444_v11  ;;  %v2030_v50 = vsel %vm1974_vm2, %v2029_v6, %v2028_v27  ;;  %v8333_v54 = vld [vmem:[#allocation27_spill] sm:$0xff] }
 0x231   : > { %v2064_v8 = vperm.slane %v6335_v10, %v6453_v5  ;;  %v1979_v41 = vsel %vm1978_vm3, %v1977_v13, %v1975_v7  ;;  %v1985_v29 = vperm.slane %v6164_v53, %v6450_v55  ;;  %v2035_v10 = vperm.slane %v6248_v32, %v6450_v55  ;;  %v8334_v7 = vld [vmem:[#allocation11_spill] sm:$0xff] }
 0x232   : > { %v6654_v46 = vpop.xlane.xlu2 %1766  ;;  %v6657_v57 = vpop.xlane.xlu1 %1764  ;;  %v2032_v4 = vsel %vm1978_vm3, %v2031_v42, %v2030_v50  ;;  %v2068_v59 = vperm.slane %v6348_v40, %v6465_v12  ;;  %v8332_v40 = vld [vmem:[#allocation18_spill] sm:$0xff]  ;;  %v2070_v52 = vperm.slane %v8333_v54, %v6477_v28  ;;  %v1997_v42 = vperm.slane %v8334_v7, %v6474_v39  ;;  %v8345_v7 = vld [vmem:[#allocation9_spill] sm:$0xff] }
 0x233   : > { %v1763_v1 = vpop.xlane.xlu0 %1762  ;;  %v2039_v6 = vperm.slane %v8332_v40, %v6477_v28 }
 0x234   : > { %v2173_v63 = vperm.slane %v1763_v1, %v6510_v44  ;;  %v2061_v1 = vsel %vm1974_vm2, %v2060_v48, %v2059_v35 }
 0x236   : > { %v6662_v58 = vsel %vm2014_vm12, %v2173_v63, %v2172_v20  ;;  %v2063_v20 = vsel %vm1978_vm3, %v2062_v34, %v2061_v1 }
 0x237   : > { %v2065_v3 = vsel %vm1982_vm4, %v2064_v8, %v2063_v20 }
 0x23a   : > { %v1773_v62 = vpop.xlane.xlu2 %1772  ;;  %v1771_v37 = vpop.xlane.xlu1 %1770 }
 0x23b   : > { %v1769_v61 = vpop.xlane.xlu0 %1768  ;;  %v2180_v63 = vperm.slane %v1771_v37, %v6418_v2  ;;  %v2034_v37 = vsel %vm1982_vm4, %v2033_v30, %v2032_v4  ;;  %v2182_v25 = vperm.slane %v1773_v62, %v6423_v17  ;;  %v8331_v62 = vld [vmem:[#allocation16_spill] sm:$0xff]  ;;  %v8335_v30 = vld [vmem:[#allocation19_spill] sm:$0xff] }
 0x23c   : > { %v2179_v9 = vperm.slane %v1769_v61, %v6412_v56  ;;  %v1981_v61 = vperm.slane %v6142_v24, %v6453_v5  ;;  %v8330_v24 = vld [vmem:[#allocation25_spill] sm:$0xff]  ;;  %v2037_v51 = vperm.slane %v8331_v62, %v6465_v12  ;;  %v2036_v45 = vsel %vm1986_vm5, %v2035_v10, %v2034_v37  ;;  %v8338_v37 = vld [vmem:[#allocation10_spill] sm:$0xff] }
 0x23d   : > { %v2066_v33 = vperm.slane %v8330_v24, %v6450_v55  ;;  %v2041_v1 = vperm.slane %v8335_v30, %v6474_v39 }
 0x23e   : > { %v2181_v23 = vsel %vm1966_vm0, %v2180_v63, %v2179_v9  ;;  %v1983_v32 = vsel %vm1982_vm4, %v1981_v61, %v1979_v41  ;;  %v2038_v50 = vsel %vm1990_vm6, %v2037_v51, %v2036_v45  ;;  %v8342_v51 = vld [vmem:[#allocation30_spill] sm:$0xff] }
 0x23f   : > { %v1987_v43 = vsel %vm1986_vm5, %v1985_v29, %v1983_v32  ;;  %v2183_v27 = vsel %vm1970_vm1, %v2182_v25, %v2181_v23  ;;  %v2040_v20 = vsel %vm1994_vm7, %v2039_v6, %v2038_v50  ;;  %v8337_v29 = vld [vmem:[#allocation29_spill] sm:$0xff]  ;;  %v2001_v25 = vperm.slane %v8338_v37, %v6487_v36 }
 0x240   : > { %v1991_v48 = vsel %vm1990_vm6, %v1989_v31, %v1987_v43  ;;  %v2074_v4 = vperm.slane %v8337_v29, %v6487_v36  ;;  %v8340_v32 = vld [vmem:[#allocation17_spill] sm:$0xff]  ;;  %v2076_v45 = vperm.slane %v8342_v51, %v6501_v47 }
 0x241   : > { %v2043_v24 = vperm.slane %v8340_v32, %v6487_v36  ;;  %v8347_v29 = vld [vmem:[#allocation13_spill] sm:$0xff] }
 0x242   : > { %v6678_v38 = vpop.xlane.xlu2 %1778  ;;  %v1777_v49 = vpop.xlane.xlu1 %1776 }
 0x243   : > { %v1775_v14 = vpop.xlane.xlu0 %1774  ;;  %v2186_v26 = vperm.slane %v1777_v49, %v6444_v11  ;;  %v8336_v49 = vld [vmem:[#allocation8_spill] sm:$0xff] }
 0x244   : > { %v2184_v53 = vperm.slane %v1775_v14, %v6426_v21  ;;  %v2067_v14 = vsel %vm1986_vm5, %v2066_v33, %v2065_v3  ;;  %v1993_v63 = vperm.slane %v8336_v49, %v6477_v28  ;;  %v2042_v33 = vsel %vm8297_vm8, %v2041_v1, %v2040_v20  ;;  %v8346_v49 = vld [vmem:[#allocation32_spill] sm:$0xff] }
 0x245   : > { %v2069_v35 = vsel %vm1990_vm6, %v2068_v59, %v2067_v14  ;;  %v8339_v59 = vld [vmem:[#allocation26_spill] sm:$0xff] }
 0x246   : > { %v2185_v34 = vsel %vm1974_vm2, %v2184_v53, %v2183_v27  ;;  %v2071_v41 = vsel %vm1994_vm7, %v2070_v52, %v2069_v35  ;;  %v1995_v3 = vsel %vm1994_vm7, %v1993_v63, %v1991_v48  ;;  %v2072_v23 = vperm.slane %v8339_v59, %v6474_v39  ;;  %v8343_v52 = vld [vmem:[#allocation14_spill] sm:$0xff]  ;;  %v8349_v59 = vld [vmem:[#allocation20_spill] sm:$0xff] }
 0x247   : > { %v2187_v10 = vsel %vm1978_vm3, %v2186_v26, %v2185_v34  ;;  %v2188_v53 = vperm.slane %v6678_v38, %v6453_v5  ;;  %v1999_v31 = vsel %vm8297_vm8, %v1997_v42, %v1995_v3  ;;  %v2009_v27 = vperm.slane %v8343_v52, %v6504_v60  ;;  %v8344_v35 = vld [vmem:[#allocation22_spill] sm:$0xff] }
 0x248   : > { %v2073_v62 = vsel %vm8297_vm8, %v2072_v23, %v2071_v41  ;;  %v2003_v54 = vsel %vm8296_vm9, %v2001_v25, %v1999_v31  ;;  %v2044_v26 = vsel %vm8296_vm9, %v2043_v24, %v2042_v33  ;;  %v2047_v34 = vperm.slane %v8344_v35, %v6504_v60  ;;  %v8351_v24 = vld [vmem:[#allocation33_spill] sm:$0xff] }
 0x249   : > { %v2189_v40 = vsel %vm1982_vm4, %v2188_v53, %v2187_v10  ;;  %v2075_v6 = vsel %vm8296_vm9, %v2074_v4, %v2073_v62  ;;  %v2005_v42 = vperm.slane %v8345_v7, %v6501_v47  ;;  %v2080_v63 = vperm.slane %v8346_v49, %v6510_v44 }
 0x24a   : > { %v6711_v16 = vpop.xlane.xlu2 %1784  ;;  %v6714_v0 = vpop.xlane.xlu1 %1782  ;;  %v2077_v1 = vsel %vm8298_vm10, %v2076_v45, %v2075_v6  ;;  %v2013_v4 = vperm.slane %v8347_v29, %v6510_v44  ;;  %v2049_v23 = vperm.slane %v8349_v59, %v6510_v44  ;;  %v2082_v33 = vperm.slane %v8351_v24, %v6528_v19  ;;  %v8352_v45 = vld [vmem:[#allocation34_spill] sm:$0xff]  ;;  %v8354_v6 = vld [vmem:[#allocation12_spill] sm:$0xff]  ;;  %v8357_v59 = vld [vmem:[#allocation35_spill] sm:$0xff] }
 0x24b   : > { %v1781_v15 = vpop.xlane.xlu0 %1780  ;;  %v2192_v38 = vperm.slane %v6714_v0, %v6465_v12  ;;  %v2007_v10 = vsel %vm8298_vm10, %v2005_v42, %v2003_v54  ;;  %v2194_v25 = vperm.slane %v6711_v16, %v6477_v28 }
 0x24c   : > { %v2190_v61 = vperm.slane %v1781_v15, %v6450_v55  ;;  %v8341_v15 = vld [vmem:[#allocation21_spill] sm:$0xff]  ;;  %v2011_v3 = vsel %vm2010_vm11, %v2009_v27, %v2007_v10 }
 0x24d   : > { %v2045_v43 = vperm.slane %v8341_v15, %v6501_v47  ;;  %v2015_v54 = vsel %vm2014_vm12, %v2013_v4, %v2011_v3 }
 0x24e   : > { %v2191_v14 = vsel %vm1986_vm5, %v2190_v61, %v2189_v40  ;;  %v8348_v61 = vld [vmem:[#allocation28_spill] sm:$0xff] }
 0x24f   : > { %v2046_v0 = vsel %vm8298_vm10, %v2045_v43, %v2044_v26  ;;  %v2193_v20 = vsel %vm1990_vm6, %v2192_v38, %v2191_v14  ;;  %v2078_v37 = vperm.slane %v8348_v61, %v6504_v60  ;;  %v8353_v40 = vld [vmem:[#allocation24_spill] sm:$0xff]  ;;  %v2017_v14 = vperm.slane %v8354_v6, %v6528_v19  ;;  %v8355_v26 = vld [vmem:[#allocation15_spill] sm:$0xff] }
 0x250   : > { %v2048_v53 = vsel %vm2010_vm11, %v2047_v34, %v2046_v0  ;;  %v2195_v15 = vsel %vm1994_vm7, %v2194_v25, %v2193_v20  ;;  %v2053_v38 = vperm.slane %v8353_v40, %v8352_v45 }
 0x251   : > { %v2079_v32 = vsel %vm2010_vm11, %v2078_v37, %v2077_v1  ;;  %v2050_v51 = vsel %vm2014_vm12, %v2049_v23, %v2048_v53  ;;  %v8356_v1 = vld [vmem:[#allocation31_spill] sm:$0xff] }
 0x252   : > { %v6749_v13 = vpop.xlane.xlu2 %1790  ;;  %v1789_v9 = vpop.xlane.xlu1 %1788  ;;  %v2081_v16 = vsel %vm2014_vm12, %v2080_v63, %v2079_v32  ;;  %v2084_v49 = vperm.slane %v8356_v1, %v8352_v45  ;;  %v2146_v63 = vperm.slane %v6617_v22, %v8352_v45  ;;  %v2175_v22 = vperm.slane %v6657_v57, %v6528_v19 }
 0x253   : > { %v1787_v8 = vpop.xlane.xlu0 %1786  ;;  %v2198_v43 = vperm.slane %v1789_v9, %v6487_v36  ;;  %v2021_v9 = vperm.slane %v8355_v26, %v8352_v45  ;;  %v2083_v35 = vsel %vm2018_vm13, %v2082_v33, %v2081_v16  ;;  %v2200_v20 = vperm.slane %v6749_v13, %v6501_v47 }
 0x254   : > { %v2196_v41 = vperm.slane %v1787_v8, %v6474_v39  ;;  %v8350_v8 = vld [vmem:[#allocation23_spill] sm:$0xff]  ;;  %v2085_v4 = vsel %vm2022_vm14, %v2084_v49, %v2083_v35  ;;  %v2147_v25 = vsel %vm2022_vm14, %v2146_v63, %v6624_v18  ;;  %v2176_v57 = vsel %vm2018_vm13, %v2175_v22, %v6662_v58 }
 0x255   : > { %v2051_v31 = vperm.slane %v8350_v8, %v6528_v19  ;;  %v2177_v33 = vperm.slane %v6654_v46, %v8352_v45 }
 0x256   : > { %v2197_v62 = vsel %vm8297_vm8, %v2196_v41, %v2195_v15  ;;  %v2019_v41 = vsel %vm2018_vm13, %v2017_v14, %v2015_v54  ;;  %vm8299_vm8 = vcmask 1043459  }
 0x257   : > { %v2052_v52 = vsel %vm2018_vm13, %v2051_v31, %v2050_v51  ;;  %v2199_v34 = vsel %vm8296_vm9, %v2198_v43, %v2197_v62  ;;  %vm8300_vm9 = vcmask 1042434   ;;  %v2023_v61 = vsel %vm2022_vm14, %v2021_v9, %v2019_v41 }
 0x258   : > { %v2054_v29 = vsel %vm2022_vm14, %v2053_v38, %v2052_v52  ;;  %v2178_v51 = vsel %vm2022_vm14, %v2177_v33, %v2176_v57 }
 0x259   : > { %v2242_v37 = vsel %vm2241_vm15, %v2054_v29, %v2023_v61 }
 0x25a   : > { %v6792_v48 = vpop.xlane.xlu2 %1796  ;;  %v1795_v30 = vpop.xlane.xlu1 %1794  ;;  %v2244_v3 = vsel %vm8300_vm9, %v2085_v4, %v2242_v37  ;;  %vm2251_vm9 = vcmask 1046534  }
 0x25b   : > { %v1793_v50 = vpop.xlane.xlu0 %1792  ;;  %v2204_v10 = vperm.slane %v1795_v30, %v6510_v44  ;;  %v2246_v23 = vsel %vm8299_vm8, %v8357_v59, %v2244_v3  ;;  %v2206_v31 = vperm.slane %v6792_v48, %v6528_v19  ;;  %vm2249_vm8 = vcmask 1045509  }
 0x25c   : > { %v2202_v7 = vperm.slane %v1793_v50, %v6504_v60  ;;  %v2201_v50 = vsel %vm8298_vm10, %v2200_v20, %v2199_v34  ;;  %vm2247_vm10 = vcmask 1044484  }
 0x25d   : > { %v2248_v18 = vsel %vm2247_vm10, %v2147_v25, %v2246_v23 }
 0x25e   : > { %v2203_v13 = vsel %vm2010_vm11, %v2202_v7, %v2201_v50  ;;  %v2250_v48 = vsel %vm2249_vm8, %v2178_v51, %v2248_v18 }
 0x25f   : > { %v2205_v30 = vsel %vm2014_vm12, %v2204_v10, %v2203_v13 }
 0x260   : > { %v2207_v15 = vsel %vm2018_vm13, %v2206_v31, %v2205_v30 }
 0x262   : > { %v1803_v27 = vpop.xlane.xlu2 %1802  ;;  %v1801_v0 = vpop.xlane.xlu1 %1800 }
 0x263   : > { %v1799_v42 = vpop.xlane.xlu0 %1798  ;;  %v2211_v43 = vperm.slane %v1803_v27, %v6418_v2  ;;  %v2210_v16 = vperm.slane %v1801_v0, %v6412_v56 }
 0x264   : > { %v2208_v53 = vperm.slane %v1799_v42, %v8352_v45 }
 0x265   : > { %v2212_v40 = vsel %vm1966_vm0, %v2211_v43, %v2210_v16  ;;  %vm8358_vm0 = vcmask 654912  }
 0x266   : > { %v2209_v62 = vsel %vm2022_vm14, %v2208_v53, %v2207_v15 }
 0x267   : > { %v2252_v38 = vsel %vm2251_vm9, %v2209_v62, %v2250_v48 }
 0x26a   : > { %v1809_v8 = vpop.xlane.xlu2 %1808  ;;  %v1807_v24 = vpop.xlane.xlu1 %1806 }
 0x26b   : > { %v1805_v32 = vpop.xlane.xlu0 %1804  ;;  %v2215_v46 = vperm.slane %v1807_v24, %v6426_v21  ;;  %v2217_v27 = vperm.slane %v1809_v8, %v6444_v11 }
 0x26c   : > { %v2213_v58 = vperm.slane %v1805_v32, %v6423_v17 }
 0x26e   : > { %v2214_v2 = vsel %vm1970_vm1, %v2213_v58, %v2212_v40  ;;  %vm8359_vm1 = vcmask 720512  }
 0x26f   : > { %v2216_v52 = vsel %vm1974_vm2, %v2215_v46, %v2214_v2  ;;  %vm8360_vm2 = vcmask 786112  }
 0x270   : > { %v2218_v26 = vsel %vm1978_vm3, %v2217_v27, %v2216_v52  ;;  %vm2253_vm3 = vcmask 1047559   ;;  %v5193_v52 = vld [vmem:[%s8281_s2] sm:$0xff]  }
 0x271   : > { %v5194_v27 = vunpack.c.l.bf16 %v5193_v52 }
 0x272   : > { %v1813_v14 = vpop.xlane.xlu1 %1812  ;;  %v1815_v54 = vpop.xlane.xlu2 %1814 }
 0x273   : > { %v1811_v6 = vpop.xlane.xlu0 %1810  ;;  %v2221_v9 = vperm.slane %v1813_v14, %v6450_v55  ;;  %v2223_v0 = vperm.slane %v1815_v54, %v6465_v12 }
 0x274   : > { %v2219_v17 = vperm.slane %v1811_v6, %v6453_v5 }
 0x276   : > { %v2220_v35 = vsel %vm1982_vm4, %v2219_v17, %v2218_v26  ;;  %vm1834_vm4 = vcmp.lt.s32.totalorder %v6412_v56, 16 }
 0x277   : > { %v2222_v7 = vsel %vm1986_vm5, %v2221_v9, %v2220_v35  ;;  %v5195_v9 = vunpack.c.h.bf16 %v5193_v52  ;;  %vm8362_vm5 = vcmask 1042434  }
 0x278   : > { %v2224_v49 = vsel %vm1990_vm6, %v2223_v0, %v2222_v7  ;;  %vm8363_vm6 = vcmask 1043459  }
 0x27a   : > { %v1819_v34 = vpop.xlane.xlu1 %1818  ;;  %v1821_v1 = vpop.xlane.xlu2 %1820 }
 0x27b   : > { %v1817_v21 = vpop.xlane.xlu0 %1816  ;;  %v2227_v5 = vperm.slane %v1819_v34, %v6474_v39  ;;  %v2229_v41 = vperm.slane %v1821_v1, %v6487_v36 }
 0x27c   : > { %v2225_v42 = vperm.slane %v1817_v21, %v6477_v28  ;;  %v5511_v21 = vld [vmem:[%s8281_s2 + $0x8] sm:$0xff]  }
 0x27e   : > { %v2226_v11 = vsel %vm1994_vm7, %v2225_v42, %v2224_v49  ;;  %v5198_v42 = vunpack.c.l.bf16 %v5511_v21  ;;  %v5512_v49 = vld [vmem:[%s8281_s2 + $0x10] sm:$0xff]  }
 0x27f   : > { %v2228_v63 = vsel %vm8358_vm0, %v2227_v5, %v2226_v11  ;;  %v5199_v5 = vunpack.c.h.bf16 %v5511_v21 }
 0x280   : > { %v2230_v4 = vsel %vm8359_vm1, %v2229_v41, %v2228_v63  ;;  %v5202_v63 = vunpack.c.l.bf16 %v5512_v49 }
 0x282   : > { %v1825_v20 = vpop.xlane.xlu1 %1824  ;;  %v1827_v50 = vpop.xlane.xlu2 %1826 }
 0x283   : > { %v1823_v55 = vpop.xlane.xlu0 %1822  ;;  %v2233_v28 = vperm.slane %v1825_v20, %v6504_v60  ;;  %v2235_v39 = vperm.slane %v1827_v50, %v6510_v44  ;;  %v5513_v50 = vld [vmem:[%s8281_s2 + $0x18] sm:$0xff]  }
 0x284   : > { %v2231_v29 = vperm.slane %v1823_v55, %v6501_v47 }
 0x286   : > { %v2232_v12 = vsel %vm8360_vm2, %v2231_v29, %v2230_v4 }
 0x287   : > { %v2234_v10 = vsel %vm2010_vm11, %v2233_v28, %v2232_v12  ;;  %v5203_v28 = vunpack.c.h.bf16 %v5512_v49 }
 0x288   : > { %v2236_v36 = vsel %vm2014_vm12, %v2235_v39, %v2234_v10  ;;  %v5206_v39 = vunpack.c.l.bf16 %v5513_v50 }
 0x28a   : > { %v1831_v22 = vpop.xlane.xlu1 %1830 }
 0x28b   : > { %v1829_v61 = vpop.xlane.xlu0 %1828  ;;  %v2239_v37 = vperm.slane %v1831_v22, %v8352_v45  ;;  %v8361_v45 = vlaneseq  ;;  %v5207_v22 = vunpack.c.h.bf16 %v5513_v50 }
 0x28c   : > { %v2237_v13 = vperm.slane %v1829_v61, %v6528_v19 }
 0x28d   : > { %v6903_v30 = vshrl.u32 %v8361_v45, 7 }
 0x28e   : > { %v2238_v47 = vsel %vm2018_vm13, %v2237_v13, %v2236_v36 }
 0x28f   : > { %v2240_v60 = vsel %vm2022_vm14, %v2239_v37, %v2238_v47  ;;  %5599 = vset.pattern.permute.xlu1 %v6903_v30  ;;  %v6907_v56 = vadd.s32 16, %v6903_v30  ;;  %v6910_v53 = vadd.s32 8, %v6903_v30  ;;  %v6924_v24 = vadd.s32 72, %v6903_v30 }
 0x290   : > { %v2254_v25 = vsel %vm2253_vm3, %v2240_v60, %v2252_v38  ;;  %v6927_v18 = vadd.s32 24, %v6903_v30  ;;  %v6930_v33 = vadd.s32 32, %v6903_v30  ;;  %v6936_v15 = vadd.s32 112, %v6903_v30 }
 0x291   : > { %v2256_v3 = vsel %vm1834_vm4, %v2254_v25, -1e+30  ;;  %5601 = vset.pattern.permute.xlu0 %v6907_v56  ;;  %5600 = vset.pattern.permute.xlu2 %v6910_v53  ;;  %v6939_v43 = vadd.s32 40, %v6903_v30  ;;  %v6942_v16 = vadd.s32 48, %v6903_v30  ;;  %v6948_v62 = vadd.s32 56, %v6903_v30 }
 0x292   : > { %2257 = vmax.xlane.f32.xlu2 %v2256_v3  ;;  %v6951_v58 = vadd.s32 64, %v6903_v30  ;;  %v6961_v48 = vadd.s32 80, %v6903_v30  ;;  %v6964_v40 = vadd.s32 88, %v6903_v30  ;;  %v6971_v46 = vadd.s32 104, %v6903_v30 }
 0x293   : > { %v6974_v38 = vadd.s32 96, %v6903_v30  ;;  %v6981_v2 = vadd.s32 120, %v6903_v30 }
 0x305   : > { %v2258_v44 = vpop.xlane.xlu2 %2257 }
 0x306   : > { %v2259_v59 = vsub.f32 %v2256_v3, %v2258_v44 }
 0x308   : > { %v2260_v23 = vmul.f32 1.442695, %v2259_v59  ;;  %v5514_v59 = vld [vmem:[%s8281_s2 + $0x20] sm:$0xff]  }
 0x309   : > { %v5211_v45 = vunpack.c.h.bf16 %v5514_v59 }
 0x30a   : > { %5711 = vpow2.f32 %v2260_v23  ;;  %v5210_v23 = vunpack.c.l.bf16 %v5514_v59 }
 0x310   : > { %v5712_v19 = vpop.eup %5711 }
 0x311   : > { %2262 = vadd.xlane.f32.xlu0 %v5712_v19 }
 0x384   : > { %v2263_v8 = vpop.xlane.xlu0 %2262 }
 0x385   : > { %5713 = vrcp.f32 %v2263_v8 }
 0x38b   : > { %v5714_v57 = vpop.eup %5713 }
 0x38c   : > { %v6914_v31 = vmul.f32 %v5714_v57, %v5712_v19  ;;  %v5515_v19 = vld [vmem:[%s8281_s2 + $0x28] sm:$0xff]  }
 0x38e   : > { %v2522_v32 = vperm.slane %v6914_v31, 0  ;;  %4166 = vst [vmem:[%s497_s15] sm:$0xff] %v6914_v31  ;;  %v6957_v51 = vperm.slane %v6914_v31, 1  ;;  %v6987_v6 = vperm.slane %v6914_v31, 2  ;;  %v6995_v14 = vperm.slane %v6914_v31, 3 }
 0x38f   : > { %v7007_v17 = vperm.slane %v6914_v31, 4  ;;  %v7031_v44 = vperm.slane %v6914_v31, 6 }
 0x390   : > { %2539 = vperm.xlu0 %5601, %v2522_v32   ;;  %2533 = vperm.xlu2 %5600, %v2522_v32  }
 0x391   : > { %2527 = vperm.xlu1 %5599, %v2522_v32  }
 0x398   : > { %5608 = vset.pattern.permute.xlu0 %v6924_v24  ;;  %5602 = vset.pattern.permute.xlu2 %v6927_v18 }
 0x399   : > { %5603 = vset.pattern.permute.xlu1 %v6930_v33 }
 0x3a0   : > { %2581 = vperm.xlu0 %5608, %v2522_v32   ;;  %2545 = vperm.xlu2 %5602, %v2522_v32  }
 0x3a1   : > { %2551 = vperm.xlu1 %5603, %v2522_v32  }
 0x3a8   : > { %5613 = vset.pattern.permute.xlu0 %v6936_v15  ;;  %5604 = vset.pattern.permute.xlu2 %v6939_v43 }
 0x3a9   : > { %5605 = vset.pattern.permute.xlu1 %v6942_v16 }
 0x3b0   : > { %2611 = vperm.xlu0 %5613, %v2522_v32   ;;  %2557 = vperm.xlu2 %5604, %v2522_v32  }
 0x3b1   : > { %2563 = vperm.xlu1 %5605, %v2522_v32  }
 0x3b8   : > { %5618 = vset.pattern.permute.xlu0 %v6927_v18  ;;  %5606 = vset.pattern.permute.xlu2 %v6948_v62 }
 0x3b9   : > { %5607 = vset.pattern.permute.xlu1 %v6951_v58 }
 0x3c0   : > { %2642 = vperm.xlu0 %5618, %v6957_v51   ;;  %2569 = vperm.xlu2 %5606, %v2522_v32  }
 0x3c1   : > { %2575 = vperm.xlu1 %5607, %v2522_v32  }
 0x3c8   : > { %5623 = vset.pattern.permute.xlu0 %v6951_v58  ;;  %5609 = vset.pattern.permute.xlu2 %v6961_v48 }
 0x3c9   : > { %5610 = vset.pattern.permute.xlu1 %v6964_v40 }
 0x3d0   : > { %2672 = vperm.xlu0 %5623, %v6957_v51   ;;  %2587 = vperm.xlu2 %5609, %v2522_v32  }
 0x3d1   : > { %2593 = vperm.xlu1 %5610, %v2522_v32  }
 0x3d8   : > { %5628 = vset.pattern.permute.xlu0 %v6971_v46  ;;  %5611 = vset.pattern.permute.xlu2 %v6974_v38 }
 0x3d9   : > { %5612 = vset.pattern.permute.xlu1 %v6971_v46 }
 0x3e0   : > { %2702 = vperm.xlu0 %5628, %v6957_v51   ;;  %2599 = vperm.xlu2 %5611, %v2522_v32  }
 0x3e1   : > { %2605 = vperm.xlu1 %5612, %v2522_v32  }
 0x3e8   : > { %5633 = vset.pattern.permute.xlu0 %v6907_v56  ;;  %5614 = vset.pattern.permute.xlu2 %v6981_v2 }
 0x3e9   : > { %5615 = vset.pattern.permute.xlu1 %v6903_v30 }
 0x3ea   : > { %v2534_v54 = vpop.permute.xlu2 %2533 }
 0x3eb   : > { %v3299_v7 = vmul.f32 %v5195_v9, %v2534_v54 }
 0x3f0   : > { %2733 = vperm.xlu0 %5633, %v6987_v6   ;;  %2617 = vperm.xlu2 %5614, %v2522_v32   ;;  %v5214_v32 = vunpack.c.l.bf16 %v5515_v19 }
 0x3f1   : > { %2624 = vperm.xlu1 %5615, %v6957_v51  }
 0x3f8   : > { %5646 = vset.pattern.permute.xlu0 %v6910_v53  ;;  %5616 = vset.pattern.permute.xlu2 %v6910_v53 }
 0x3f9   : > { %5617 = vset.pattern.permute.xlu1 %v6907_v56 }
 0x3fa   : > { %v2546_v34 = vpop.permute.xlu2 %2545 }
 0x3fb   : > { %v3301_v29 = vmul.f32 %v5199_v5, %v2546_v34  ;;  %v7046_v34 = vperm.slane %v6914_v31, 7 }
 0x400   : > { %2824 = vperm.xlu0 %5646, %v6995_v14   ;;  %2630 = vperm.xlu2 %5616, %v6957_v51  }
 0x401   : > { %2636 = vperm.xlu1 %5617, %v6957_v51  }
 0x402   : > { %v2540_v0 = vpop.permute.xlu0 %2539 }
 0x403   : > { %v2528_v26 = vpop.permute.xlu1 %2527  ;;  %v3300_v11 = vmul.f32 %v5198_v42, %v2540_v0  ;;  %v5215_v42 = vunpack.c.h.bf16 %v5515_v19  ;;  %v5519_v19 = vld [vmem:[%s8281_s2 + $0x48] sm:$0xff]  }
 0x404   : > { %v3298_v35 = vmul.f32 %v5194_v27, %v2528_v26 }
 0x406   : > { %v3426_v1 = vadd.f32 %v3299_v7, %v3298_v35  ;;  %v5516_v7 = vld [vmem:[%s8281_s2 + $0x30] sm:$0xff]  }
 0x407   : > { %v5218_v0 = vunpack.c.l.bf16 %v5516_v7 }
 0x408   : > { %5659 = vset.pattern.permute.xlu0 %v6903_v30  ;;  %5619 = vset.pattern.permute.xlu2 %v6930_v33  ;;  %v3427_v20 = vadd.f32 %v3426_v1, %v3300_v11 }
 0x409   : > { %5620 = vset.pattern.permute.xlu1 %v6939_v43 }
 0x40a   : > { %v2558_v41 = vpop.permute.xlu2 %2557  ;;  %v3428_v12 = vadd.f32 %v3427_v20, %v3301_v29  ;;  %v7058_v20 = vperm.slane %v6914_v31, 5  ;;  %v5219_v29 = vunpack.c.h.bf16 %v5516_v7 }
 0x40b   : > { %v3303_v61 = vmul.f32 %v5203_v28, %v2558_v41  ;;  %v5517_v41 = vld [vmem:[%s8281_s2 + $0x38] sm:$0xff]  }
 0x40c   : > { %v5223_v50 = vunpack.c.h.bf16 %v5517_v41 }
 0x410   : > { %2915 = vperm.xlu0 %5659, %v7007_v17   ;;  %2648 = vperm.xlu2 %5619, %v6957_v51  }
 0x411   : > { %2654 = vperm.xlu1 %5620, %v6957_v51  }
 0x412   : > { %v2582_v8 = vpop.permute.xlu0 %2581 }
 0x413   : > { %v2552_v55 = vpop.permute.xlu1 %2551  ;;  %v3307_v27 = vmul.f32 %v5211_v45, %v2582_v8  ;;  %v5230_v45 = vunpack.c.l.bf16 %v5519_v19  ;;  %v5520_v8 = vld [vmem:[%s8281_s2 + $0x50] sm:$0xff]  }
 0x414   : > { %v3302_v4 = vmul.f32 %v5202_v63, %v2552_v55 }
 0x416   : > { %v3429_v10 = vadd.f32 %v3428_v12, %v3302_v4  ;;  %v5222_v4 = vunpack.c.l.bf16 %v5517_v41 }
 0x418   : > { %5664 = vset.pattern.permute.xlu0 %v6939_v43  ;;  %5621 = vset.pattern.permute.xlu2 %v6942_v16  ;;  %v3430_v36 = vadd.f32 %v3429_v10, %v3303_v61 }
 0x419   : > { %5622 = vset.pattern.permute.xlu1 %v6948_v62 }
 0x41a   : > { %v2570_v13 = vpop.permute.xlu2 %2569 }
 0x41b   : > { %v3305_v60 = vmul.f32 %v5207_v22, %v2570_v13 }
 0x420   : > { %2945 = vperm.xlu0 %5664, %v7007_v17   ;;  %2660 = vperm.xlu2 %5621, %v6957_v51  }
 0x421   : > { %2666 = vperm.xlu1 %5622, %v6957_v51  }
 0x422   : > { %v2612_v28 = vpop.permute.xlu0 %2611 }
 0x423   : > { %v2564_v37 = vpop.permute.xlu1 %2563  ;;  %v3312_v61 = vmul.f32 %v5222_v4, %v2612_v28  ;;  %v5522_v4 = vld [vmem:[%s8281_s2 + $0x60] sm:$0xff]  }
 0x424   : > { %v3304_v47 = vmul.f32 %v5206_v39, %v2564_v37 }
 0x426   : > { %v3431_v25 = vadd.f32 %v3430_v36, %v3304_v47 }
 0x428   : > { %5677 = vset.pattern.permute.xlu0 %v6903_v30  ;;  %5624 = vset.pattern.permute.xlu2 %v6924_v24  ;;  %v3432_v3 = vadd.f32 %v3431_v25, %v3305_v60 }
 0x429   : > { %5625 = vset.pattern.permute.xlu1 %v6961_v48 }
 0x42a   : > { %v2588_v52 = vpop.permute.xlu2 %2587 }
 0x42b   : > { %v3308_v9 = vmul.f32 %v5214_v32, %v2588_v52  ;;  %v5234_v52 = vunpack.c.l.bf16 %v5520_v8 }
 0x430   : > { %3109 = vperm.xlu0 %5677, %v7031_v44   ;;  %2678 = vperm.xlu2 %5624, %v6957_v51  }
 0x431   : > { %2684 = vperm.xlu1 %5625, %v6957_v51  }
 0x432   : > { %v2643_v32 = vpop.permute.xlu0 %2642 }
 0x433   : > { %v2576_v57 = vpop.permute.xlu1 %2575 }
 0x434   : > { %v3306_v54 = vmul.f32 %v5210_v23, %v2576_v57  ;;  %v5231_v57 = vunpack.c.h.bf16 %v5519_v19 }
 0x436   : > { %v3433_v26 = vadd.f32 %v3432_v3, %v3306_v54 }
 0x438   : > { %v3434_v35 = vadd.f32 %v3433_v26, %v3307_v27  ;;  %5681 = vset.pattern.permute.xlu0 %v6907_v56  ;;  %5626 = vset.pattern.permute.xlu2 %v6964_v40 }
 0x439   : > { %5627 = vset.pattern.permute.xlu1 %v6974_v38 }
 0x43a   : > { %v3435_v21 = vadd.f32 %v3434_v35, %v3308_v9  ;;  %v2600_v1 = vpop.permute.xlu2 %2599  ;;  %v3317_v9 = vmul.f32 %v5231_v57, %v2643_v32 }
 0x43b   : > { %v3310_v11 = vmul.f32 %v5218_v0, %v2600_v1  ;;  %v5521_v0 = vld [vmem:[%s8281_s2 + $0x58] sm:$0xff]   ;;  %v5235_v1 = vunpack.c.h.bf16 %v5520_v8 }
 0x43c   : > { %v5239_v28 = vunpack.c.h.bf16 %v5521_v0 }
 0x440   : > { %3218 = vperm.xlu0 %5681, %v7046_v34   ;;  %2690 = vperm.xlu2 %5626, %v6957_v51  }
 0x441   : > { %2696 = vperm.xlu1 %5627, %v6957_v51  }
 0x443   : > { %v2594_v49 = vpop.permute.xlu1 %2593 }
 0x444   : > { %v3309_v5 = vmul.f32 %v5215_v42, %v2594_v49  ;;  %v5238_v49 = vunpack.c.l.bf16 %v5521_v0 }
 0x446   : > { %v3436_v63 = vadd.f32 %v3435_v21, %v3309_v5 }
 0x448   : > { %5684 = vset.pattern.permute.xlu0 %v6939_v43  ;;  %5629 = vset.pattern.permute.xlu2 %v6936_v15  ;;  %v3437_v55 = vadd.f32 %v3436_v63, %v3310_v11 }
 0x449   : > { %5630 = vset.pattern.permute.xlu1 %v6981_v2 }
 0x44a   : > { %v2618_v39 = vpop.permute.xlu2 %2617 }
 0x44b   : > { %v3313_v22 = vmul.f32 %v5223_v50, %v2618_v39  ;;  %v2673_v50 = vpop.permute.xlu0 %2672  ;;  %v5243_v39 = vunpack.c.h.bf16 %v5522_v4 }
 0x450   : > { %3042 = vperm.xlu0 %5684, %v7058_v20   ;;  %2708 = vperm.xlu2 %5629, %v6957_v51  }
 0x451   : > { %2714 = vperm.xlu1 %5630, %v6957_v51   ;;  %v5518_v51 = vld [vmem:[%s8281_s2 + $0x40] sm:$0xff]  }
 0x452   : > { %v5227_v36 = vunpack.c.h.bf16 %v5518_v51  ;;  %v5226_v47 = vunpack.c.l.bf16 %v5518_v51 }
 0x453   : > { %v2606_v12 = vpop.permute.xlu1 %2605 }
 0x454   : > { %v3311_v10 = vmul.f32 %v5219_v29, %v2606_v12  ;;  %v5242_v12 = vunpack.c.l.bf16 %v5522_v4 }
 0x456   : > { %v3438_v31 = vadd.f32 %v3437_v55, %v3311_v10 }
 0x458   : > { %v3439_v13 = vadd.f32 %v3438_v31, %v3312_v61  ;;  %5685 = vset.pattern.permute.xlu0 %v6942_v16  ;;  %5631 = vset.pattern.permute.xlu2 %v6903_v30 }
 0x459   : > { %5632 = vset.pattern.permute.xlu1 %v6910_v53 }
 0x45a   : > { %v7069_v37 = vadd.f32 %v3439_v13, %v3313_v22  ;;  %v2631_v60 = vpop.permute.xlu2 %2630  ;;  %v3322_v22 = vmul.f32 %v5242_v12, %v2673_v50 }
 0x45b   : > { %v3315_v3 = vmul.f32 %v5227_v36, %v2631_v60  ;;  %v5523_v60 = vld [vmem:[%s8281_s2 + $0x68] sm:$0xff]  }
 0x460   : > { %2854 = vperm.xlu0 %5685, %v6995_v14   ;;  %2721 = vperm.xlu2 %5631, %v6987_v6  }
 0x461   : > { %2727 = vperm.xlu1 %5632, %v6987_v6  }
 0x463   : > { %v2625_v25 = vpop.permute.xlu1 %2624 }
 0x464   : > { %v3314_v59 = vmul.f32 %v5226_v47, %v2625_v25  ;;  %v5246_v25 = vunpack.c.l.bf16 %v5523_v60 }
 0x466   : > { %v3447_v23 = vadd.f32 %v3315_v3, %v3314_v59  ;;  %v2703_v3 = vpop.permute.xlu0 %2702  ;;  %v5247_v59 = vunpack.c.h.bf16 %v5523_v60  ;;  %v5527_v60 = vld [vmem:[%s8281_s2 + $0x88] sm:$0xff]  }
 0x468   : > { %3145 = vperm.xlu0 %5685, %v7031_v44   ;;  %5634 = vset.pattern.permute.xlu2 %v6927_v18 }
 0x469   : > { %5635 = vset.pattern.permute.xlu1 %v6930_v33 }
 0x46a   : > { %v2649_v26 = vpop.permute.xlu2 %2648 }
 0x46b   : > { %v3318_v21 = vmul.f32 %v5234_v52, %v2649_v26  ;;  %v5524_v52 = vld [vmem:[%s8281_s2 + $0x70] sm:$0xff]  }
 0x470   : > { %5689 = vset.pattern.permute.xlu0 %v6948_v62  ;;  %2739 = vperm.xlu2 %5634, %v6987_v6  }
 0x471   : > { %2745 = vperm.xlu1 %5635, %v6987_v6  }
 0x473   : > { %v2637_v54 = vpop.permute.xlu1 %2636 }
 0x474   : > { %v3316_v27 = vmul.f32 %v5230_v45, %v2637_v54  ;;  %v7118_v54 = vpop.permute.xlu0 %2733 }
 0x476   : > { %v3448_v35 = vadd.f32 %v3447_v23, %v3316_v27  ;;  %v5250_v27 = vunpack.c.l.bf16 %v5524_v52 }
 0x478   : > { %v3449_v7 = vadd.f32 %v3448_v35, %v3317_v9  ;;  %2763 = vperm.xlu0 %5689, %v6987_v6   ;;  %5636 = vset.pattern.permute.xlu2 %v6939_v43  ;;  %v5525_v9 = vld [vmem:[%s8281_s2 + $0x78] sm:$0xff]   ;;  %v5251_v35 = vunpack.c.h.bf16 %v5524_v52 }
 0x479   : > { %5637 = vset.pattern.permute.xlu1 %v6942_v16 }
 0x47a   : > { %v3450_v42 = vadd.f32 %v3449_v7, %v3318_v21  ;;  %v2661_v5 = vpop.permute.xlu2 %2660  ;;  %v5254_v7 = vunpack.c.l.bf16 %v5525_v9 }
 0x47b   : > { %v3320_v55 = vmul.f32 %v5238_v49, %v2661_v5 }
 0x47c   : > { %v7126_v26 = vpop.permute.xlu0 %2824 }
 0x480   : > { %3248 = vperm.xlu0 %5689, %v7046_v34   ;;  %2751 = vperm.xlu2 %5636, %v6987_v6  }
 0x481   : > { %2757 = vperm.xlu1 %5637, %v6987_v6  }
 0x483   : > { %v2655_v11 = vpop.permute.xlu1 %2654 }
 0x484   : > { %v3319_v63 = vmul.f32 %v5235_v1, %v2655_v11  ;;  %v3327_v1 = vmul.f32 %v5251_v35, %v2703_v3 }
 0x486   : > { %v3451_v41 = vadd.f32 %v3450_v42, %v3319_v63  ;;  %v7134_v63 = vpop.permute.xlu0 %2915 }
 0x488   : > { %5693 = vset.pattern.permute.xlu0 %v6961_v48  ;;  %5638 = vset.pattern.permute.xlu2 %v6951_v58  ;;  %v3452_v29 = vadd.f32 %v3451_v41, %v3320_v55  ;;  %v3441_v41 = vrot.slane %v7069_v37, 4 }
 0x489   : > { %5639 = vset.pattern.permute.xlu1 %v6924_v24 }
 0x48a   : > { %v2679_v31 = vpop.permute.xlu2 %2678 }
 0x48b   : > { %v3323_v51 = vmul.f32 %v5243_v39, %v2679_v31 }
 0x490   : > { %2975 = vperm.xlu0 %5693, %v7007_v17   ;;  %2769 = vperm.xlu2 %5638, %v6987_v6  }
 0x491   : > { %2775 = vperm.xlu1 %5639, %v6987_v6  }
 0x492   : > { %v7140_v4 = vpop.permute.xlu0 %2945 }
 0x493   : > { %v2667_v10 = vpop.permute.xlu1 %2666 }
 0x494   : > { %v3321_v61 = vmul.f32 %v5239_v28, %v2667_v10  ;;  %v3442_v28 = vadd.f32 %v3441_v41, %v7069_v37  ;;  %v5526_v37 = vld [vmem:[%s8281_s2 + $0x80] sm:$0xff]  }
 0x496   : > { %v3453_v13 = vadd.f32 %v3452_v29, %v3321_v61  ;;  %v5255_v29 = vunpack.c.h.bf16 %v5525_v9  ;;  %v3443_v10 = vrot.slane %v3442_v28, 2 }
 0x498   : > { %v3454_v36 = vadd.f32 %v3453_v13, %v3322_v22  ;;  %3072 = vperm.xlu0 %5693, %v7058_v20   ;;  %5640 = vset.pattern.permute.xlu2 %v6961_v48 }
 0x499   : > { %5641 = vset.pattern.permute.xlu1 %v6964_v40 }
 0x49a   : > { %v3455_v47 = vadd.f32 %v3454_v36, %v3323_v51  ;;  %v2691_v23 = vpop.permute.xlu2 %2690 }
 0x49b   : > { %v3325_v8 = vmul.f32 %v5247_v59, %v2691_v23  ;;  %v5259_v59 = vunpack.c.h.bf16 %v5526_v37 }
 0x4a0   : > { %5696 = vset.pattern.permute.xlu0 %v6964_v40  ;;  %2781 = vperm.xlu2 %5640, %v6987_v6  }
 0x4a1   : > { %2787 = vperm.xlu1 %5641, %v6987_v6  }
 0x4a2   : > { %v7146_v31 = vpop.permute.xlu0 %3109 }
 0x4a3   : > { %v2685_v19 = vpop.permute.xlu1 %2684 }
 0x4a4   : > { %v3324_v45 = vmul.f32 %v5246_v25, %v2685_v19  ;;  %v5258_v25 = vunpack.c.l.bf16 %v5526_v37 }
 0x4a6   : > { %v3456_v57 = vadd.f32 %v3455_v47, %v3324_v45  ;;  %v5262_v45 = vunpack.c.l.bf16 %v5527_v60 }
 0x4a8   : > { %2884 = vperm.xlu0 %5696, %v6995_v14   ;;  %5642 = vset.pattern.permute.xlu2 %v6971_v46  ;;  %v3457_v32 = vadd.f32 %v3456_v57, %v3325_v8 }
 0x4a9   : > { %5643 = vset.pattern.permute.xlu1 %v6936_v15 }
 0x4aa   : > { %v2709_v0 = vpop.permute.xlu2 %2708 }
 0x4ab   : > { %v3328_v5 = vmul.f32 %v5254_v7, %v2709_v0 }
 0x4b0   : > { %3175 = vperm.xlu0 %5696, %v7031_v44   ;;  %2799 = vperm.xlu2 %5642, %v6987_v6  }
 0x4b1   : > { %2805 = vperm.xlu1 %5643, %v6987_v6  }
 0x4b2   : > { %v7157_v23 = vpop.permute.xlu0 %3218 }
 0x4b3   : > { %v2697_v21 = vpop.permute.xlu1 %2696 }
 0x4b4   : > { %v3326_v42 = vmul.f32 %v5250_v27, %v2697_v21  ;;  %v5263_v27 = vunpack.c.h.bf16 %v5527_v60  ;;  %v3332_v21 = vmul.f32 %v5262_v45, %v7118_v54 }
 0x4b6   : > { %v3458_v49 = vadd.f32 %v3457_v32, %v3326_v42 }
 0x4b8   : > { %v3459_v11 = vadd.f32 %v3458_v49, %v3327_v1  ;;  %5700 = vset.pattern.permute.xlu0 %v6974_v38  ;;  %5644 = vset.pattern.permute.xlu2 %v6981_v2 }
 0x4b9   : > { %5645 = vset.pattern.permute.xlu1 %v6903_v30 }
 0x4ba   : > { %v3460_v55 = vadd.f32 %v3459_v11, %v3328_v5  ;;  %v2722_v51 = vpop.permute.xlu2 %2721  ;;  %v5528_v5 = vld [vmem:[%s8281_s2 + $0x90] sm:$0xff]  }
 0x4bb   : > { %v3330_v32 = vmul.f32 %v5258_v25, %v2722_v51  ;;  %v5266_v54 = vunpack.c.l.bf16 %v5528_v5 }
 0x4c0   : > { %2793 = vperm.xlu0 %5700, %v6987_v6   ;;  %2811 = vperm.xlu2 %5644, %v6987_v6   ;;  %v3444_v6 = vadd.f32 %v3443_v10, %v3442_v28 }
 0x4c1   : > { %2818 = vperm.xlu1 %5645, %v6995_v14  }
 0x4c2   : > { %v3445_v36 = vrot.slane %v3444_v6, 1  ;;  %v7166_v1 = vpop.permute.xlu0 %3042 }
 0x4c3   : > { %v2715_v12 = vpop.permute.xlu1 %2714 }
 0x4c4   : > { %v3329_v50 = vmul.f32 %v5255_v29, %v2715_v12  ;;  %v3446_v19 = vadd.f32 %v3445_v36, %v3444_v6 }
 0x4c6   : > { %v3461_v39 = vadd.f32 %v3460_v55, %v3329_v50  ;;  %v5267_v55 = vunpack.c.h.bf16 %v5528_v5 }
 0x4c8   : > { %v3462_v61 = vrot.slane %v3461_v39, 4  ;;  %3278 = vperm.xlu0 %5700, %v7046_v34   ;;  %5647 = vset.pattern.permute.xlu2 %v6907_v56 }
 0x4c9   : > { %5648 = vset.pattern.permute.xlu1 %v6927_v18 }
 0x4ca   : > { %v3463_v22 = vadd.f32 %v3462_v61, %v3461_v39  ;;  %v2740_v35 = vpop.permute.xlu2 %2739  ;;  %v5529_v61 = vld [vmem:[%s8281_s2 + $0x98] sm:$0xff]  }
 0x4cb   : > { %v3333_v42 = vmul.f32 %v5263_v27, %v2740_v35  ;;  %v5270_v6 = vunpack.c.l.bf16 %v5529_v61 }
 0x4cc   : > { %v3464_v13 = vrot.slane %v3463_v22, 2 }
 0x4ce   : > { %v3465_v47 = vadd.f32 %v3464_v13, %v3463_v22  ;;  %v5530_v22 = vld [vmem:[%s8281_s2 + $0xa0] sm:$0xff]   ;;  %v5271_v13 = vunpack.c.h.bf16 %v5529_v61 }
 0x4cf   : > { %v5274_v36 = vunpack.c.l.bf16 %v5530_v22 }
 0x4d0   : > { %v3466_v3 = vrot.slane %v3465_v47, 1  ;;  %5704 = vset.pattern.permute.xlu0 %v6981_v2  ;;  %2830 = vperm.xlu2 %5647, %v6995_v14  }
 0x4d1   : > { %2836 = vperm.xlu1 %5648, %v6995_v14  }
 0x4d2   : > { %v3467_v8 = vadd.f32 %v3466_v3, %v3465_v47  ;;  %v7174_v11 = vpop.permute.xlu0 %2854 }
 0x4d3   : > { %v2728_v57 = vpop.permute.xlu1 %2727 }
 0x4d4   : > { %v7161_v52 = vsel %vm2241_vm15, %v3467_v8, %v3446_v19  ;;  %v3331_v9 = vmul.f32 %v5259_v59, %v2728_v57  ;;  %v5531_v8 = vld [vmem:[%s8281_s2 + $0xa8] sm:$0xff]   ;;  %v5275_v57 = vunpack.c.h.bf16 %v5530_v22  ;;  %v5532_v22 = vld [vmem:[%s8281_s2 + $0xb0] sm:$0xff]  }
 0x4d5   : > { %v5279_v5 = vunpack.c.h.bf16 %v5531_v8 }
 0x4d6   : > { %v3468_v7 = vadd.f32 %v3331_v9, %v3330_v32  ;;  %v5278_v32 = vunpack.c.l.bf16 %v5531_v8 }
 0x4d8   : > { %v3469_v0 = vadd.f32 %v3468_v7, %v3332_v21  ;;  %3005 = vperm.xlu0 %5704, %v7007_v17   ;;  %5649 = vset.pattern.permute.xlu2 %v6930_v33 }
 0x4d9   : > { %5650 = vset.pattern.permute.xlu1 %v6939_v43 }
 0x4da   : > { %v3470_v49 = vadd.f32 %v3469_v0, %v3333_v42  ;;  %v2752_v41 = vpop.permute.xlu2 %2751  ;;  %v7179_v39 = vpop.permute.xlu0 %3145 }
 0x4db   : > { %v3335_v12 = vmul.f32 %v5267_v55, %v2752_v41 }
 0x4e0   : > { %3102 = vperm.xlu0 %5704, %v7058_v20   ;;  %2842 = vperm.xlu2 %5649, %v6995_v14  }
 0x4e1   : > { %2848 = vperm.xlu1 %5650, %v6995_v14  }
 0x4e3   : > { %v2746_v29 = vpop.permute.xlu1 %2745 }
 0x4e4   : > { %v3334_v28 = vmul.f32 %v5266_v54, %v2746_v29 }
 0x4e6   : > { %v3471_v50 = vadd.f32 %v3470_v49, %v3334_v28 }
 0x4e8   : > { %5651 = vset.pattern.permute.xlu2 %v6948_v62  ;;  %v3472_v10 = vadd.f32 %v3471_v50, %v3335_v12 }
 0x4e9   : > { %5652 = vset.pattern.permute.xlu1 %v6951_v58 }
 0x4ea   : > { %v2764_v37 = vpop.permute.xlu0 %2763  ;;  %v2770_v60 = vpop.permute.xlu2 %2769 }
 0x4eb   : > { %v3337_v25 = vmul.f32 %v5271_v13, %v2764_v37  ;;  %v3338_v59 = vmul.f32 %v5274_v36, %v2770_v60  ;;  %v5282_v13 = vunpack.c.l.bf16 %v5532_v22  ;;  %v5283_v36 = vunpack.c.h.bf16 %v5532_v22 }
 0x4f0   : > { %2860 = vperm.xlu2 %5651, %v6995_v14  }
 0x4f1   : > { %2866 = vperm.xlu1 %5652, %v6995_v14  }
 0x4f2   : > { %v7196_v21 = vpop.permute.xlu0 %3248 }
 0x4f3   : > { %v2758_v51 = vpop.permute.xlu1 %2757 }
 0x4f4   : > { %v3336_v47 = vmul.f32 %v5270_v6, %v2758_v51  ;;  %v5534_v6 = vld [vmem:[%s8281_s2 + $0xc0] sm:$0xff]  }
 0x4f5   : > { %v5291_v37 = vunpack.c.h.bf16 %v5534_v6  ;;  %v5290_v51 = vunpack.c.l.bf16 %v5534_v6 }
 0x4f6   : > { %v3473_v3 = vadd.f32 %v3472_v10, %v3336_v47  ;;  %v5533_v47 = vld [vmem:[%s8281_s2 + $0xb8] sm:$0xff]  }
 0x4f7   : > { %v3347_v8 = vmul.f32 %v5291_v37, %v7126_v26  ;;  %v5536_v26 = vld [vmem:[%s8281_s2 + $0xd0] sm:$0xff]  }
 0x4f8   : > { %v3474_v19 = vadd.f32 %v3473_v3, %v3337_v25  ;;  %5653 = vset.pattern.permute.xlu2 %v6924_v24  ;;  %v5286_v3 = vunpack.c.l.bf16 %v5533_v47 }
 0x4f9   : > { %5654 = vset.pattern.permute.xlu1 %v6961_v48 }
 0x4fa   : > { %v3475_v45 = vadd.f32 %v3474_v19, %v3338_v59  ;;  %v2782_v27 = vpop.permute.xlu2 %2781 }
 0x4fb   : > { %v3340_v7 = vmul.f32 %v5278_v32, %v2782_v27  ;;  %v5287_v27 = vunpack.c.h.bf16 %v5533_v47 }
 0x500   : > { %2872 = vperm.xlu2 %5653, %v6995_v14  }
 0x501   : > { %2878 = vperm.xlu1 %5654, %v6995_v14  }
 0x502   : > { %v7200_v49 = vpop.permute.xlu0 %2975 }
 0x503   : > { %v2776_v9 = vpop.permute.xlu1 %2775 }
 0x504   : > { %v3339_v35 = vmul.f32 %v5275_v57, %v2776_v9 }
 0x506   : > { %v3476_v42 = vadd.f32 %v3475_v45, %v3339_v35 }
 0x508   : > { %5655 = vset.pattern.permute.xlu2 %v6974_v38  ;;  %v3477_v0 = vadd.f32 %v3476_v42, %v3340_v7 }
 0x509   : > { %5656 = vset.pattern.permute.xlu1 %v6971_v46 }
 0x50a   : > { %v7204_v29 = vpop.permute.xlu0 %3072  ;;  %v2800_v12 = vpop.permute.xlu2 %2799 }
 0x50b   : > { %v3343_v32 = vmul.f32 %v5283_v36, %v2800_v12  ;;  %v5537_v36 = vld [vmem:[%s8281_s2 + $0xd8] sm:$0xff]  }
 0x50c   : > { %v5302_v47 = vunpack.c.l.bf16 %v5537_v36 }
 0x510   : > { %2890 = vperm.xlu2 %5655, %v6995_v14  }
 0x511   : > { %2896 = vperm.xlu1 %5656, %v6995_v14  }
 0x513   : > { %v2788_v54 = vpop.permute.xlu1 %2787 }
 0x514   : > { %v3341_v55 = vmul.f32 %v5279_v5, %v2788_v54 }
 0x516   : > { %v3478_v41 = vadd.f32 %v3477_v0, %v3341_v55 }
 0x518   : > { %5657 = vset.pattern.permute.xlu2 %v6936_v15 }
 0x519   : > { %5658 = vset.pattern.permute.xlu1 %v6981_v2 }
 0x51a   : > { %v7208_v28 = vpop.permute.xlu0 %2884  ;;  %v2812_v10 = vpop.permute.xlu2 %2811 }
 0x51b   : > { %v3345_v54 = vmul.f32 %v5287_v27, %v2812_v10 }
 0x520   : > { %2902 = vperm.xlu2 %5657, %v6995_v14  }
 0x521   : > { %2908 = vperm.xlu1 %5658, %v6995_v14   ;;  %v5535_v14 = vld [vmem:[%s8281_s2 + $0xc8] sm:$0xff]  }
 0x522   : > { %v7214_v50 = vpop.permute.xlu0 %3175  ;;  %v5294_v60 = vunpack.c.l.bf16 %v5535_v14  ;;  %v5295_v12 = vunpack.c.h.bf16 %v5535_v14  ;;  %v5299_v14 = vunpack.c.h.bf16 %v5536_v26 }
 0x523   : > { %v2806_v61 = vpop.permute.xlu1 %2805 }
 0x524   : > { %v3344_v42 = vmul.f32 %v5286_v3, %v2806_v61 }
 0x528   : > { %5660 = vset.pattern.permute.xlu2 %v6910_v53 }
 0x529   : > { %5661 = vset.pattern.permute.xlu1 %v6907_v56 }
 0x52a   : > { %v2831_v59 = vpop.permute.xlu2 %2830 }
 0x52b   : > { %v3348_v35 = vmul.f32 %v5294_v60, %v2831_v59 }
 0x530   : > { %2921 = vperm.xlu2 %5660, %v7007_v17  }
 0x531   : > { %2927 = vperm.xlu1 %5661, %v7007_v17  }
 0x532   : > { %v2794_v25 = vpop.permute.xlu0 %2793 }
 0x533   : > { %v3342_v19 = vmul.f32 %v5282_v13, %v2794_v25  ;;  %v2819_v45 = vpop.permute.xlu1 %2818  ;;  %v5303_v25 = vunpack.c.h.bf16 %v5537_v36 }
 0x534   : > { %v3346_v57 = vmul.f32 %v5290_v51, %v2819_v45 }
 0x535   : > { %v3479_v9 = vadd.f32 %v3478_v41, %v3342_v19  ;;  %v5298_v41 = vunpack.c.l.bf16 %v5536_v26  ;;  %v3352_v19 = vmul.f32 %v5302_v47, %v7174_v11 }
 0x536   : > { %v3489_v7 = vadd.f32 %v3347_v8, %v3346_v57 }
 0x537   : > { %v3480_v0 = vadd.f32 %v3479_v9, %v3343_v32 }
 0x538   : > { %5662 = vset.pattern.permute.xlu2 %v6927_v18  ;;  %v3490_v5 = vadd.f32 %v3489_v7, %v3348_v35  ;;  %v5538_v35 = vld [vmem:[%s8281_s2 + $0xe0] sm:$0xff]  }
 0x539   : > { %v3481_v55 = vadd.f32 %v3480_v0, %v3344_v42  ;;  %5663 = vset.pattern.permute.xlu1 %v6930_v33  ;;  %v5306_v7 = vunpack.c.l.bf16 %v5538_v35  ;;  %v5307_v11 = vunpack.c.h.bf16 %v5538_v35 }
 0x53a   : > { %v2843_v61 = vpop.permute.xlu2 %2842 }
 0x53b   : > { %v3482_v6 = vadd.f32 %v3481_v55, %v3345_v54  ;;  %v3350_v37 = vmul.f32 %v5298_v41, %v2843_v61 }
 0x53d   : > { %v3483_v32 = vrot.slane %v3482_v6, 4 }
 0x53f   : > { %v3484_v9 = vadd.f32 %v3483_v32, %v3482_v6 }
 0x540   : > { %2933 = vperm.xlu2 %5662, %v7007_v17  }
 0x541   : > { %2939 = vperm.xlu1 %5663, %v7007_v17   ;;  %v3485_v42 = vrot.slane %v3484_v9, 2 }
 0x543   : > { %v2837_v22 = vpop.permute.xlu1 %2836  ;;  %v3486_v55 = vadd.f32 %v3485_v42, %v3484_v9 }
 0x544   : > { %v3349_v13 = vmul.f32 %v5295_v12, %v2837_v22  ;;  %v5539_v22 = vld [vmem:[%s8281_s2 + $0xe8] sm:$0xff]  }
 0x545   : > { %v3487_v41 = vrot.slane %v3486_v55, 1 }
 0x546   : > { %v3491_v51 = vadd.f32 %v3490_v5, %v3349_v13  ;;  %v5310_v13 = vunpack.c.l.bf16 %v5539_v22 }
 0x547   : > { %v3488_v61 = vadd.f32 %v3487_v41, %v3486_v55 }
 0x548   : > { %5665 = vset.pattern.permute.xlu2 %v6942_v16  ;;  %v3492_v10 = vadd.f32 %v3491_v51, %v3350_v37  ;;  %v5540_v37 = vld [vmem:[%s8281_s2 + $0xf0] sm:$0xff]  }
 0x549   : > { %5666 = vset.pattern.permute.xlu1 %v6948_v62  ;;  %v3603_v51 = vsel %vm8362_vm5, %v3488_v61, %v7161_v52  ;;  %v5315_v52 = vunpack.c.h.bf16 %v5540_v37 }
 0x54a   : > { %v2861_v59 = vpop.permute.xlu2 %2860 }
 0x54b   : > { %v3353_v8 = vmul.f32 %v5303_v25, %v2861_v59 }
 0x550   : > { %2951 = vperm.xlu2 %5665, %v7007_v17  }
 0x551   : > { %2957 = vperm.xlu1 %5666, %v7007_v17  }
 0x553   : > { %v2849_v60 = vpop.permute.xlu1 %2848 }
 0x554   : > { %v3351_v3 = vmul.f32 %v5299_v14, %v2849_v60  ;;  %v5314_v14 = vunpack.c.l.bf16 %v5540_v37 }
 0x556   : > { %v3493_v45 = vadd.f32 %v3492_v10, %v3351_v3  ;;  %v5311_v10 = vunpack.c.h.bf16 %v5539_v22 }
 0x558   : > { %v3494_v57 = vadd.f32 %v3493_v45, %v3352_v19  ;;  %5667 = vset.pattern.permute.xlu2 %v6951_v58  ;;  %v3357_v25 = vmul.f32 %v5311_v10, %v7208_v28 }
 0x559   : > { %5668 = vset.pattern.permute.xlu1 %v6924_v24 }
 0x55a   : > { %v3495_v27 = vadd.f32 %v3494_v57, %v3353_v8  ;;  %v2873_v0 = vpop.permute.xlu2 %2872  ;;  %v5541_v8 = vld [vmem:[%s8281_s2 + $0xf8] sm:$0xff]  }
 0x55b   : > { %v3355_v26 = vmul.f32 %v5307_v11, %v2873_v0  ;;  %v5318_v57 = vunpack.c.l.bf16 %v5541_v8 }
 0x560   : > { %2963 = vperm.xlu2 %5667, %v7007_v17  }
 0x561   : > { %2969 = vperm.xlu1 %5668, %v7007_v17  }
 0x563   : > { %v2867_v5 = vpop.permute.xlu1 %2866 }
 0x564   : > { %v3354_v54 = vmul.f32 %v5306_v7, %v2867_v5 }
 0x566   : > { %v3496_v12 = vadd.f32 %v3495_v27, %v3354_v54  ;;  %v5542_v27 = vld [vmem:[%s8281_s2 + $0x100] sm:$0xff]  }
 0x567   : > { %v5322_v42 = vunpack.c.l.bf16 %v5542_v27  ;;  %v5323_v11 = vunpack.c.h.bf16 %v5542_v27 }
 0x568   : > { %5669 = vset.pattern.permute.xlu2 %v6964_v40  ;;  %v3497_v6 = vadd.f32 %v3496_v12, %v3355_v26  ;;  %v5319_v26 = vunpack.c.h.bf16 %v5541_v8 }
 0x569   : > { %5670 = vset.pattern.permute.xlu1 %v6974_v38 }
 0x56a   : > { %v2891_v60 = vpop.permute.xlu2 %2890 }
 0x56b   : > { %v3358_v59 = vmul.f32 %v5314_v14, %v2891_v60 }
 0x570   : > { %2981 = vperm.xlu2 %5669, %v7007_v17  }
 0x571   : > { %2987 = vperm.xlu1 %5670, %v7007_v17  }
 0x573   : > { %v2879_v36 = vpop.permute.xlu1 %2878 }
 0x574   : > { %v3356_v47 = vmul.f32 %v5310_v13, %v2879_v36 }
 0x576   : > { %v3498_v3 = vadd.f32 %v3497_v6, %v3356_v47 }
 0x578   : > { %v3499_v19 = vadd.f32 %v3498_v3, %v3357_v25  ;;  %5671 = vset.pattern.permute.xlu2 %v6971_v46 }
 0x579   : > { %5672 = vset.pattern.permute.xlu1 %v6936_v15 }
 0x57a   : > { %v3500_v45 = vadd.f32 %v3499_v19, %v3358_v59  ;;  %v2903_v32 = vpop.permute.xlu2 %2902 }
 0x57b   : > { %v3360_v35 = vmul.f32 %v5318_v57, %v2903_v32 }
 0x580   : > { %2993 = vperm.xlu2 %5671, %v7007_v17  }
 0x581   : > { %2999 = vperm.xlu1 %5672, %v7007_v17   ;;  %v3362_v17 = vmul.f32 %v5322_v42, %v7134_v63  ;;  %v5543_v63 = vld [vmem:[%s8281_s2 + $0x108] sm:$0xff]  }
 0x582   : > { %v5326_v36 = vunpack.c.l.bf16 %v5543_v63  ;;  %v5327_v47 = vunpack.c.h.bf16 %v5543_v63 }
 0x583   : > { %v2897_v28 = vpop.permute.xlu1 %2896 }
 0x584   : > { %v3359_v9 = vmul.f32 %v5315_v52, %v2897_v28  ;;  %v5544_v52 = vld [vmem:[%s8281_s2 + $0x110] sm:$0xff]  }
 0x585   : > { %v5330_v57 = vunpack.c.l.bf16 %v5544_v52  ;;  %v5331_v32 = vunpack.c.h.bf16 %v5544_v52 }
 0x586   : > { %v3501_v7 = vadd.f32 %v3500_v45, %v3359_v9 }
 0x588   : > { %5673 = vset.pattern.permute.xlu2 %v6903_v30  ;;  %v3502_v0 = vadd.f32 %v3501_v7, %v3360_v35  ;;  %v3367_v35 = vmul.f32 %v5331_v32, %v7140_v4  ;;  %v5549_v32 = vld [vmem:[%s8281_s2 + $0x138] sm:$0xff]  }
 0x589   : > { %5674 = vset.pattern.permute.xlu1 %v6910_v53 }
 0x58a   : > { %v2922_v5 = vpop.permute.xlu2 %2921 }
 0x58b   : > { %v3363_v54 = vmul.f32 %v5323_v11, %v2922_v5  ;;  %v5546_v5 = vld [vmem:[%s8281_s2 + $0x120] sm:$0xff]  }
 0x58d   : > { %v3510_v55 = vadd.f32 %v3363_v54, %v3362_v17  ;;  %v5338_v54 = vunpack.c.l.bf16 %v5546_v5 }
 0x590   : > { %3012 = vperm.xlu2 %5673, %v7058_v20  }
 0x591   : > { %3018 = vperm.xlu1 %5674, %v7058_v20  }
 0x593   : > { %v2909_v12 = vpop.permute.xlu1 %2908 }
 0x594   : > { %v3361_v6 = vmul.f32 %v5319_v26, %v2909_v12 }
 0x596   : > { %v3503_v41 = vadd.f32 %v3502_v0, %v3361_v6 }
 0x598   : > { %v3504_v61 = vrot.slane %v3503_v41, 4  ;;  %5675 = vset.pattern.permute.xlu2 %v6907_v56 }
 0x599   : > { %5676 = vset.pattern.permute.xlu1 %v6927_v18 }
 0x59a   : > { %v3505_v22 = vadd.f32 %v3504_v61, %v3503_v41  ;;  %v2934_v60 = vpop.permute.xlu2 %2933 }
 0x59b   : > { %v3365_v19 = vmul.f32 %v5327_v47, %v2934_v60 }
 0x59c   : > { %v3506_v13 = vrot.slane %v3505_v22, 2 }
 0x59e   : > { %v3507_v37 = vadd.f32 %v3506_v13, %v3505_v22 }
 0x5a0   : > { %v3508_v10 = vrot.slane %v3507_v37, 1  ;;  %3024 = vperm.xlu2 %5675, %v7058_v20  }
 0x5a1   : > { %3030 = vperm.xlu1 %5676, %v7058_v20  }
 0x5a2   : > { %v3509_v14 = vadd.f32 %v3508_v10, %v3507_v37 }
 0x5a3   : > { %v2928_v25 = vpop.permute.xlu1 %2927 }
 0x5a4   : > { %v7289_v3 = vsel %vm8363_vm6, %v3509_v14, %v3603_v51  ;;  %v3364_v59 = vmul.f32 %v5326_v36, %v2928_v25  ;;  %v5545_v51 = vld [vmem:[%s8281_s2 + $0x118] sm:$0xff]   ;;  %v5548_v25 = vld [vmem:[%s8281_s2 + $0x130] sm:$0xff]  }
 0x5a5   : > { %v5334_v27 = vunpack.c.l.bf16 %v5545_v51  ;;  %v5335_v17 = vunpack.c.h.bf16 %v5545_v51  ;;  %v7326_v51 = vpop.permute.xlu0 %3278 }
 0x5a6   : > { %v3511_v45 = vadd.f32 %v3510_v55, %v3364_v59  ;;  %v5346_v59 = vunpack.c.l.bf16 %v5548_v25 }
 0x5a8   : > { %5678 = vset.pattern.permute.xlu2 %v6910_v53  ;;  %v3512_v8 = vadd.f32 %v3511_v45, %v3365_v19  ;;  %v5347_v19 = vunpack.c.h.bf16 %v5548_v25 }
 0x5a9   : > { %5679 = vset.pattern.permute.xlu1 %v6903_v30 }
 0x5aa   : > { %v2952_v9 = vpop.permute.xlu2 %2951 }
 0x5ab   : > { %v3368_v42 = vmul.f32 %v5334_v27, %v2952_v9 }
 0x5ad   : > { %v3006_v27 = vpop.permute.xlu0 %3005 }
 0x5b0   : > { %3115 = vperm.xlu2 %5678, %v7031_v44  }
 0x5b1   : > { %3206 = vperm.xlu1 %5679, %v7046_v34  }
 0x5b3   : > { %v2940_v28 = vpop.permute.xlu1 %2939 }
 0x5b4   : > { %v3366_v53 = vmul.f32 %v5330_v57, %v2940_v28  ;;  %v5351_v28 = vunpack.c.h.bf16 %v5549_v32 }
 0x5b6   : > { %v3513_v7 = vadd.f32 %v3512_v8, %v3366_v53 }
 0x5b8   : > { %v3514_v11 = vadd.f32 %v3513_v7, %v3367_v35  ;;  %3212 = vperm.xlu2 %5678, %v7046_v34   ;;  %v3377_v35 = vmul.f32 %v5351_v28, %v3006_v27 }
 0x5b9   : > { %5680 = vset.pattern.permute.xlu1 %v6907_v56  ;;  %v5547_v56 = vld [vmem:[%s8281_s2 + $0x128] sm:$0xff]  }
 0x5ba   : > { %v3515_v0 = vadd.f32 %v3514_v11, %v3368_v42  ;;  %v2964_v55 = vpop.permute.xlu2 %2963  ;;  %v5342_v61 = vunpack.c.l.bf16 %v5547_v56  ;;  %v5343_v13 = vunpack.c.h.bf16 %v5547_v56  ;;  %v5558_v56 = vld [vmem:[%s8281_s2 + $0x180] sm:$0xff]  }
 0x5bb   : > { %v3370_v12 = vmul.f32 %v5338_v54, %v2964_v55  ;;  %v5551_v55 = vld [vmem:[%s8281_s2 + $0x148] sm:$0xff]  }
 0x5bc   : > { %v3372_v10 = vmul.f32 %v5342_v61, %v7200_v49 }
 0x5c0   : > { %5682 = vset.pattern.permute.xlu2 %v6927_v18  ;;  %v5339_v18 = vunpack.c.h.bf16 %v5546_v5 }
 0x5c1   : > { %3121 = vperm.xlu1 %5680, %v7031_v44  }
 0x5c3   : > { %v2958_v4 = vpop.permute.xlu1 %2957 }
 0x5c4   : > { %v3369_v26 = vmul.f32 %v5335_v17, %v2958_v4  ;;  %v5550_v17 = vld [vmem:[%s8281_s2 + $0x140] sm:$0xff]  }
 0x5c5   : > { %v5354_v4 = vunpack.c.l.bf16 %v5550_v17 }
 0x5c6   : > { %v3516_v6 = vadd.f32 %v3515_v0, %v3369_v26 }
 0x5c8   : > { %3127 = vperm.xlu2 %5682, %v7031_v44   ;;  %v3517_v41 = vadd.f32 %v3516_v6, %v3370_v12  ;;  %v5355_v12 = vunpack.c.h.bf16 %v5550_v17 }
 0x5c9   : > { %5683 = vset.pattern.permute.xlu1 %v6930_v33 }
 0x5ca   : > { %v2982_v63 = vpop.permute.xlu2 %2981 }
 0x5cb   : > { %v3373_v14 = vmul.f32 %v5343_v13, %v2982_v63 }
 0x5d0   : > { %3224 = vperm.xlu2 %5682, %v7046_v34  }
 0x5d1   : > { %3036 = vperm.xlu1 %5683, %v7058_v20  }
 0x5d3   : > { %v2970_v22 = vpop.permute.xlu1 %2969 }
 0x5d4   : > { %v3371_v37 = vmul.f32 %v5339_v18, %v2970_v22 }
 0x5d6   : > { %v3518_v36 = vadd.f32 %v3517_v41, %v3371_v37 }
 0x5d8   : > { %v3519_v47 = vadd.f32 %v3518_v36, %v3372_v10  ;;  %5686 = vset.pattern.permute.xlu2 %v6930_v33  ;;  %v5386_v10 = vunpack.c.l.bf16 %v5558_v56  ;;  %v5387_v36 = vunpack.c.h.bf16 %v5558_v56 }
 0x5d9   : > { %3133 = vperm.xlu1 %5683, %v7031_v44  }
 0x5da   : > { %v3520_v60 = vadd.f32 %v3519_v47, %v3373_v14  ;;  %v2994_v45 = vpop.permute.xlu2 %2993 }
 0x5db   : > { %v3375_v52 = vmul.f32 %v5347_v19, %v2994_v45  ;;  %v5359_v19 = vunpack.c.h.bf16 %v5551_v55 }
 0x5e0   : > { %3230 = vperm.xlu2 %5686, %v7046_v34  }
 0x5e1   : > { %5687 = vset.pattern.permute.xlu1 %v6939_v43  ;;  %v5350_v43 = vunpack.c.l.bf16 %v5549_v32 }
 0x5e3   : > { %v2988_v49 = vpop.permute.xlu1 %2987 }
 0x5e4   : > { %v3374_v8 = vmul.f32 %v5346_v59, %v2988_v49 }
 0x5e6   : > { %v3521_v57 = vadd.f32 %v3520_v60, %v3374_v8  ;;  %v3394_v60 = vmul.f32 %v5386_v10, %v7146_v31  ;;  %v5566_v31 = vld [vmem:[%s8281_s2 + $0x1c0] sm:$0xff]  }
 0x5e8   : > { %5688 = vset.pattern.permute.xlu2 %v6942_v16  ;;  %v3522_v33 = vadd.f32 %v3521_v57, %v3375_v52  ;;  %v5419_v52 = vunpack.c.h.bf16 %v5566_v31  ;;  %v5418_v57 = vunpack.c.l.bf16 %v5566_v31  ;;  %v4830_v31 = vld [vmem:[%s8285_s6 + $0x34] sm:$0xf] }
 0x5e9   : > { %3139 = vperm.xlu1 %5687, %v7031_v44  }
 0x5ea   : > { %v3013_v11 = vpop.permute.xlu2 %3012 }
 0x5eb   : > { %v3378_v18 = vmul.f32 %v5354_v4, %v3013_v11 }
 0x5f0   : > { %3048 = vperm.xlu2 %5688, %v7058_v20  }
 0x5f1   : > { %3236 = vperm.xlu1 %5687, %v7046_v34  }
 0x5f3   : > { %v3000_v53 = vpop.permute.xlu1 %2999 }
 0x5f4   : > { %v3376_v9 = vmul.f32 %v5350_v43, %v3000_v53 }
 0x5f6   : > { %v3523_v7 = vadd.f32 %v3522_v33, %v3376_v9 }
 0x5f8   : > { %v3524_v42 = vadd.f32 %v3523_v7, %v3377_v35  ;;  %5690 = vset.pattern.permute.xlu2 %v6948_v62  ;;  %v5358_v62 = vunpack.c.l.bf16 %v5551_v55  ;;  %v4866_v35 = vld [vmem:[%s8285_s6 + $0x154] sm:$0xf]  ;;  %v4542_v7 = vld [vmem:[%s8285_s6 + $0x168] sm:$0xf0] }
 0x5f9   : > { %5691 = vset.pattern.permute.xlu1 %v6942_v16  ;;  %v4545_v11 = vor.u32 %v4866_v35, %v4542_v7  ;;  %v5553_v35 = vld [vmem:[%s8281_s2 + $0x158] sm:$0xff]   ;;  %v5560_v7 = vld [vmem:[%s8281_s2 + $0x190] sm:$0xff]  }
 0x5fa   : > { %v3525_v0 = vrot.slane %v3524_v42, 4  ;;  %v3025_v6 = vpop.permute.xlu2 %3024 }
 0x5fb   : > { %v3380_v37 = vmul.f32 %v5358_v62, %v3025_v6  ;;  %824 = vmatpush.bf16.msra.mxu1 %v4545_v11  ;;  %v4848_v6 = vld [vmem:[%s8285_s6 + $0xc4] sm:$0xf] }
 0x5fc   : > { %v3526_v5 = vadd.f32 %v3525_v0, %v3524_v42 }
 0x5fe   : > { %v3527_v54 = vrot.slane %v3526_v5, 2 }
 0x600   : > { %v3528_v26 = vadd.f32 %v3527_v54, %v3526_v5  ;;  %3054 = vperm.xlu2 %5690, %v7058_v20   ;;  %v4518_v5 = vld [vmem:[%s8285_s6 + $0x138] sm:$0xf0] }
 0x601   : > { %3242 = vperm.xlu1 %5691, %v7046_v34  }
 0x602   : > { %v3529_v16 = vrot.slane %v3528_v26, 1 }
 0x603   : > { %v3019_v41 = vpop.permute.xlu1 %3018 }
 0x604   : > { %v3530_v61 = vadd.f32 %v3529_v16, %v3528_v26  ;;  %v3379_v22 = vmul.f32 %v5355_v12, %v3019_v41  ;;  %v4494_v26 = vld [vmem:[%s8285_s6 + $0x108] sm:$0xf0]  ;;  %v4470_v41 = vld [vmem:[%s8285_s6 + $0xd8] sm:$0xf0] }
 0x605   : > { %v5559_v12 = vld [vmem:[%s8281_s2 + $0x188] sm:$0xff]  }
 0x606   : > { %v7348_v13 = vsel %vm2247_vm10, %v3530_v61, %v7289_v3  ;;  %v3531_v63 = vadd.f32 %v3379_v22, %v3378_v18  ;;  %v5390_v62 = vunpack.c.l.bf16 %v5559_v12  ;;  %v5391_v56 = vunpack.c.h.bf16 %v5559_v12  ;;  %v4842_v61 = vld [vmem:[%s8285_s6 + $0x94] sm:$0xf]  ;;  %v4446_v22 = vld [vmem:[%s8285_s6 + $0xa8] sm:$0xf0] }
 0x607   : > { %v4473_v18 = vor.u32 %v4848_v6, %v4470_v41  ;;  %v4449_v10 = vor.u32 %v4842_v61, %v4446_v22 }
 0x608   : > { %3151 = vperm.xlu2 %5690, %v7031_v44   ;;  %v3532_v14 = vadd.f32 %v3531_v63, %v3380_v37  ;;  %v7408_v63 = vld [vmem:[%s8281_s2 + $0x1d0] sm:$0xff]  }
 0x609   : > { %5692 = vset.pattern.permute.xlu1 %v6951_v58 }
 0x60a   : > { %v3116_v47 = vpop.permute.xlu2 %3115 }
 0x60b   : > { %v3395_v25 = vmul.f32 %v5387_v36, %v3116_v47  ;;  %v5426_v47 = vunpack.c.l.bf16 %v7408_v63 }
 0x60d   : > { %v3552_v59 = vadd.f32 %v3395_v25, %v3394_v60  ;;  %v4836_v25 = vld [vmem:[%s8285_s6 + $0x64] sm:$0xf] }
 0x610   : > { %5694 = vset.pattern.permute.xlu2 %v6951_v58  ;;  %v5567_v58 = vld [vmem:[%s8281_s2 + $0x1c8] sm:$0xff]  }
 0x611   : > { %3060 = vperm.xlu1 %5692, %v7058_v20   ;;  %v5422_v33 = vunpack.c.l.bf16 %v5567_v58  ;;  %v5423_v42 = vunpack.c.h.bf16 %v5567_v58  ;;  %v4398_v58 = vld [vmem:[%s8285_s6 + $0x48] sm:$0xf0] }
 0x612   : > { %v3213_v8 = vpop.permute.xlu2 %3212 }
 0x613   : > { %v3031_v3 = vpop.permute.xlu1 %3030  ;;  %v3411_v28 = vmul.f32 %v5419_v52, %v3213_v8  ;;  %v3412_v53 = vmul.f32 %v5422_v33, %v7157_v23  ;;  %v4860_v23 = vld [vmem:[%s8285_s6 + $0x124] sm:$0xf]  ;;  %v5552_v52 = vld [vmem:[%s8281_s2 + $0x150] sm:$0xff]  }
 0x614   : > { %v3381_v45 = vmul.f32 %v5359_v19, %v3031_v3  ;;  %v4521_v54 = vor.u32 %v4860_v23, %v4518_v5  ;;  %v4422_v19 = vld [vmem:[%s8285_s6 + $0x78] sm:$0xf0]  ;;  %v5362_v33 = vunpack.c.l.bf16 %v5552_v52  ;;  %v5394_v5 = vunpack.c.l.bf16 %v5560_v7 }
 0x616   : > { %v7355_v49 = vadd.f32 %v3532_v14, %v3381_v45  ;;  %825 = vmatpush.bf16.msra.mxu1 %v4521_v54  ;;  %v4425_v45 = vor.u32 %v4836_v25, %v4422_v19  ;;  %v4532_v19 = vld [vmem:[%s8285_s6 + $0x130] sm:$0xf] }
 0x618   : > { %3157 = vperm.xlu2 %5694, %v7031_v44  }
 0x619   : > { %5695 = vset.pattern.permute.xlu1 %v6924_v24 }
 0x620   : > { %3254 = vperm.xlu2 %5694, %v7046_v34  }
 0x621   : > { %3066 = vperm.xlu1 %5695, %v7058_v20  }
 0x622   : > { %v3128_v32 = vpop.permute.xlu2 %3127 }
 0x623   : > { %v3207_v43 = vpop.permute.xlu1 %3206  ;;  %v3397_v36 = vmul.f32 %v5391_v56, %v3128_v32  ;;  %v4824_v32 = vld [vmem:[%s8285_s6 + $0x4] sm:$0xf]  ;;  %v5427_v56 = vunpack.c.h.bf16 %v7408_v63 }
 0x624   : > { %v3410_v27 = vmul.f32 %v5418_v57, %v3207_v43  ;;  %v4401_v57 = vor.u32 %v4830_v31, %v4398_v58  ;;  %v4374_v43 = vld [vmem:[%s8285_s6 + $0x18] sm:$0xf0]  ;;  %v4846_v31 = vld [vmem:[%s8285_s6 + $0xac] sm:$0xf0]  ;;  %v4508_v58 = vld [vmem:[%s8285_s6 + $0x100] sm:$0xf] }
 0x626   : > { %v3573_v9 = vadd.f32 %v3411_v28, %v3410_v27  ;;  %v5363_v28 = vunpack.c.h.bf16 %v5552_v52  ;;  %v4377_v27 = vor.u32 %v4824_v32, %v4374_v43  ;;  %v4840_v32 = vld [vmem:[%s8285_s6 + $0x7c] sm:$0xf0] }
 0x628   : > { %5697 = vset.pattern.permute.xlu2 %v6924_v24  ;;  %v3574_v0 = vadd.f32 %v3573_v9, %v3412_v53  ;;  %v4854_v24 = vld [vmem:[%s8285_s6 + $0xf4] sm:$0xf] }
 0x629   : > { %3163 = vperm.xlu1 %5695, %v7031_v44   ;;  %v4497_v16 = vor.u32 %v4854_v24, %v4494_v26 }
 0x62a   : > { %v3225_v17 = vpop.permute.xlu2 %3224 }
 0x62b   : > { %v3413_v55 = vmul.f32 %v5423_v42, %v3225_v17  ;;  %826 = vmatpush.bf16.msra.mxu1 %v4497_v16  ;;  %v3383_v42 = vmul.f32 %v5363_v28, %v7166_v1  ;;  %v8364_v17 = vld [vmem:[#allocation7_spill] sm:$0xff]  ;;  %v5367_v1 = vunpack.c.h.bf16 %v5553_v35 }
 0x62c   : > { %v4484_v28 = vld [vmem:[%s8285_s6 + $0xd0] sm:$0xf] }
 0x62d   : > { %v3575_v4 = vadd.f32 %v3574_v0, %v3413_v55  ;;  %v5366_v0 = vunpack.c.l.bf16 %v5553_v35  ;;  %v4404_v35 = vld [vmem:[%s8285_s6 + $0x38] sm:$0xf] }
 0x62f   : > { %827 = vmatpush.bf16.msra.mxu1 %v4473_v18 }
 0x630   : > { %3260 = vperm.xlu2 %5697, %v7046_v34  }
 0x631   : > { %5698 = vset.pattern.permute.xlu1 %v6961_v48 }
 0x633   : > { %v3122_v48 = vpop.permute.xlu1 %3121  ;;  %828 = vmatpush.bf16.msra.mxu1 %v4449_v10  ;;  %v4500_v10 = vld [vmem:[%s8285_s6 + $0xf8] sm:$0xf] }
 0x634   : > { %v3396_v37 = vmul.f32 %v5390_v62, %v3122_v48  ;;  %v4870_v48 = vld [vmem:[%s8285_s6 + $0x16c] sm:$0xf0] }
 0x636   : > { %v3553_v14 = vadd.f32 %v3552_v59, %v3396_v37  ;;  %v4524_v37 = vld [vmem:[%s8285_s6 + $0x128] sm:$0xf] }
 0x637   : > { %829 = vmatpush.bf16.msra.mxu1 %v4425_v45 }
 0x638   : > { %5699 = vset.pattern.permute.xlu2 %v6964_v40  ;;  %v3554_v60 = vadd.f32 %v3553_v14, %v3397_v36  ;;  %v4858_v36 = vld [vmem:[%s8285_s6 + $0x10c] sm:$0xf0]  ;;  %v4556_v14 = vld [vmem:[%s8285_s6 + $0x160] sm:$0xf] }
 0x639   : > { %3169 = vperm.xlu1 %5698, %v7031_v44  }
 0x63a   : > { %v3231_v3 = vpop.permute.xlu2 %3230 }
 0x63b   : > { %v3414_v8 = vmul.f32 %v5426_v47, %v3231_v3  ;;  %830 = vmatpush.bf16.msra.mxu1 %v4401_v57  ;;  %v4501_v47 = vor.u32 %v4858_v36, %v4500_v10  ;;  %v4865_v3 = vld [vmem:[%s8285_s6 + $0x144] sm:$0xf0]  ;;  %v4859_v57 = vld [vmem:[%s8285_s6 + $0x114] sm:$0xf0]  ;;  %v4550_v10 = vld [vmem:[%s8285_s6 + $0x170] sm:$0xf0] }
 0x63c   : > { %v4509_v43 = vor.u32 %v4859_v57, %v4508_v58  ;;  %v4868_v36 = vld [vmem:[%s8285_s6 + $0x164] sm:$0xf]  ;;  %v4862_v58 = vld [vmem:[%s8285_s6 + $0x134] sm:$0xf]  ;;  %v4534_v57 = vld [vmem:[%s8285_s6 + $0x148] sm:$0xf0] }
 0x63d   : > { %v3576_v59 = vadd.f32 %v3575_v4, %v3414_v8  ;;  %v4533_v8 = vor.u32 %v4865_v3, %v4532_v19  ;;  %v4900_v3 = vld [vmem:[%s8287_s8 + $0xe4] sm:$0xf] }
 0x63f   : > { %831 = vmatpush.bf16.msra.mxu1 %v4377_v27  ;;  %v4853_v27 = vld [vmem:[%s8285_s6 + $0xe4] sm:$0xf0] }
 0x640   : > { %3078 = vperm.xlu2 %5699, %v7058_v20  }
 0x641   : > { %3266 = vperm.xlu1 %5698, %v7046_v34  }
 0x642   : > { %832 = vmatmul.bf16.vlgmr.msra.gmra.mxu1 %v8364_v17 }
 0x643   : > { %v3037_v53 = vpop.permute.xlu1 %3036 }
 0x644   : > { %v3382_v9 = vmul.f32 %v5362_v33, %v3037_v53  ;;  %v4428_v33 = vld [vmem:[%s8285_s6 + $0x68] sm:$0xf] }
 0x645   : > { %v4429_v53 = vor.u32 %v4840_v32, %v4428_v33  ;;  %v4629_v33 = vld [vmem:[%s8287_s8 + $0x80] sm:$0xf]  ;;  %v4890_v32 = vld [vmem:[%s8287_s8 + $0x8c] sm:$0xf0] }
 0x646   : > { %v3534_v11 = vadd.f32 %v7355_v49, %v3382_v9  ;;  %v4485_v9 = vor.u32 %v4853_v27, %v4484_v28  ;;  %v4537_v28 = vor.u32 %v4862_v58, %v4534_v57  ;;  %v4630_v27 = vor.u32 %v4890_v32, %v4629_v33  ;;  %v4615_v58 = vld [vmem:[%s8287_s8 + $0x70] sm:$0xf0]  ;;  %v4837_v57 = vld [vmem:[%s8285_s6 + $0x6c] sm:$0xf]  ;;  %v4430_v33 = vld [vmem:[%s8285_s6 + $0x80] sm:$0xf0] }
 0x647   : > { %v4838_v32 = vld [vmem:[%s8285_s6 + $0x74] sm:$0xf] }
 0x648   : > { %5701 = vset.pattern.permute.xlu2 %v6974_v38  ;;  %v3535_v23 = vadd.f32 %v3534_v11, %v3383_v42  ;;  %v5395_v38 = vunpack.c.h.bf16 %v5560_v7  ;;  %v4834_v7 = vld [vmem:[%s8285_s6 + $0x4c] sm:$0xf0]  ;;  %v4460_v42 = vld [vmem:[%s8285_s6 + $0xa0] sm:$0xf]  ;;  %v4847_v11 = vld [vmem:[%s8285_s6 + $0xb4] sm:$0xf0] }
 0x649   : > { %5702 = vset.pattern.permute.xlu1 %v6964_v40 }
 0x64a   : > { %v3049_v54 = vpop.permute.xlu2 %3048 }
 0x64b   : > { %v3384_v55 = vmul.f32 %v5366_v0, %v3049_v54  ;;  %v3134_v4 = vpop.permute.xlu1 %3133  ;;  %v4405_v0 = vor.u32 %v4834_v7, %v4404_v35  ;;  %v4380_v54 = vld [vmem:[%s8285_s6 + $0x8] sm:$0xf]  ;;  %v4855_v35 = vld [vmem:[%s8285_s6 + $0xfc] sm:$0xf] }
 0x64c   : > { %v3398_v24 = vmul.f32 %v5394_v5, %v3134_v4  ;;  %v4461_v5 = vor.u32 %v4847_v11, %v4460_v42  ;;  %v4436_v4 = vld [vmem:[%s8285_s6 + $0x70] sm:$0xf]  ;;  %v4502_v11 = vld [vmem:[%s8285_s6 + $0x110] sm:$0xf0] }
 0x64d   : > { %v3536_v26 = vadd.f32 %v3535_v23, %v3384_v55  ;;  %v4828_v55 = vld [vmem:[%s8285_s6 + $0x1c] sm:$0xf0] }
 0x64e   : > { %v3555_v12 = vadd.f32 %v3554_v60, %v3398_v24  ;;  %v4871_v60 = vld [vmem:[%s8285_s6 + $0x174] sm:$0xf0] }
 0x64f   : > { %v4557_v25 = vor.u32 %v4871_v60, %v4556_v14  ;;  %v4645_v60 = vld [vmem:[%s8287_s8 + $0xa0] sm:$0xf] }
 0x650   : > { %3084 = vperm.xlu2 %5701, %v7058_v20  }
 0x651   : > { %3272 = vperm.xlu1 %5702, %v7046_v34   ;;  %863 = vmatpush.bf16.msrb.mxu0 %v4557_v25 }
 0x655   : > { %864 = vmatpush.bf16.msrb.mxu0 %v4533_v8 }
 0x658   : > { %3181 = vperm.xlu2 %5701, %v7031_v44  }
 0x659   : > { %5703 = vset.pattern.permute.xlu1 %v6971_v46  ;;  %865 = vmatpush.bf16.msrb.mxu0 %v4509_v43 }
 0x65a   : > { %v3055_v49 = vpop.permute.xlu2 %3054 }
 0x65b   : > { %v3385_v16 = vmul.f32 %v5367_v1, %v3055_v49  ;;  %v3140_v62 = vpop.permute.xlu1 %3139  ;;  %v4902_v1 = vld [vmem:[%s8287_s8 + $0xec] sm:$0xf0] }
 0x65c   : > { %v3399_v40 = vmul.f32 %v5395_v38, %v3140_v62  ;;  %v4381_v38 = vor.u32 %v4828_v55, %v4380_v54  ;;  %v4412_v62 = vld [vmem:[%s8285_s6 + $0x40] sm:$0xf]  ;;  %v4505_v54 = vor.u32 %v4855_v35, %v4502_v11  ;;  %v4880_v11 = vld [vmem:[%s8287_s8 + $0x44] sm:$0xf] }
 0x65d   : > { %v7451_v6 = vadd.f32 %v3536_v26, %v3385_v16  ;;  %866 = vmatpush.bf16.msrb.mxu0 %v4485_v9  ;;  %v4841_v26 = vld [vmem:[%s8285_s6 + $0x84] sm:$0xf0]  ;;  %v4663_v9 = vld [vmem:[%s8287_s8 + $0xd0] sm:$0xf0] }
 0x65e   : > { %v7453_v41 = vadd.f32 %v3555_v12, %v3399_v40  ;;  %v4677_v12 = vld [vmem:[%s8287_s8 + $0xe0] sm:$0xf]  ;;  %v4437_v49 = vor.u32 %v4841_v26, %v4436_v4  ;;  %v4835_v40 = vld [vmem:[%s8285_s6 + $0x54] sm:$0xf0]  ;;  %v4886_v26 = vld [vmem:[%s8287_s8 + $0x6c] sm:$0xf0] }
 0x65f   : > { %v4678_v16 = vor.u32 %v4902_v1, %v4677_v12  ;;  %v4613_v4 = vld [vmem:[%s8287_s8 + $0x60] sm:$0xf]  ;;  %v4892_v12 = vld [vmem:[%s8287_s8 + $0xa4] sm:$0xf] }
 0x660   : > { %5705 = vset.pattern.permute.xlu2 %v6971_v46  ;;  %v4548_v46 = vld [vmem:[%s8285_s6 + $0x158] sm:$0xf]  ;;  %v4614_v1 = vor.u32 %v4886_v26, %v4613_v4  ;;  %v4831_v26 = vld [vmem:[%s8285_s6 + $0x3c] sm:$0xf] }
 0x661   : > { %3090 = vperm.xlu1 %5703, %v7058_v20   ;;  %v4549_v63 = vor.u32 %v4870_v48, %v4548_v46  ;;  %867 = vmatpush.bf16.msrb.mxu0 %v4461_v5  ;;  %v4898_v46 = vld [vmem:[%s8287_s8 + $0xcc] sm:$0xf0]  ;;  %v4510_v5 = vld [vmem:[%s8285_s6 + $0x118] sm:$0xf0]  ;;  %v4903_v4 = vld [vmem:[%s8287_s8 + $0xf4] sm:$0xf0] }
 0x662   : > { %v4388_v48 = vld [vmem:[%s8285_s6 + $0x10] sm:$0xf] }
 0x663   : > { %v3237_v18 = vpop.permute.xlu1 %3236  ;;  %837 = vmatpush.bf16.msra.mxu2 %v4549_v63 }
 0x664   : > { %v3415_v61 = vmul.f32 %v5427_v56, %v3237_v18  ;;  %v4661_v56 = vld [vmem:[%s8287_s8 + $0xc0] sm:$0xf] }
 0x665   : > { %868 = vmatpush.bf16.msrb.mxu0 %v4437_v49 }
 0x666   : > { %v7458_v22 = vadd.f32 %v3576_v59, %v3415_v61  ;;  %v7507_v59 = vpop.permute.xlu2 %3151  ;;  %v4413_v61 = vor.u32 %v4835_v40, %v4412_v62  ;;  %v4478_v62 = vld [vmem:[%s8285_s6 + $0xe0] sm:$0xf0]  ;;  %v4850_v40 = vld [vmem:[%s8285_s6 + $0xd4] sm:$0xf] }
 0x668   : > { %3187 = vperm.xlu2 %5705, %v7031_v44  }
 0x669   : > { %5706 = vset.pattern.permute.xlu1 %v6936_v15  ;;  %869 = vmatpush.bf16.msrb.mxu0 %v4413_v61  ;;  %v4486_v61 = vld [vmem:[%s8285_s6 + $0xe8] sm:$0xf0] }
 0x670   : > { %3284 = vperm.xlu2 %5705, %v7046_v34  }
 0x671   : > { %3096 = vperm.xlu1 %5706, %v7058_v20   ;;  %v4864_v20 = vld [vmem:[%s8285_s6 + $0x13c] sm:$0xf0] }
 0x672   : > { %v7545_v23 = vpop.permute.xlu2 %3157 }
 0x673   : > { %v7556_v24 = vpop.permute.xlu1 %3242 }
 0x678   : > { %5707 = vset.pattern.permute.xlu2 %v6936_v15  ;;  %v4525_v15 = vor.u32 %v4864_v20, %v4524_v37  ;;  %v4829_v37 = vld [vmem:[%s8285_s6 + $0x24] sm:$0xf0]  ;;  %v4662_v20 = vor.u32 %v4898_v46, %v4661_v56  ;;  %v4597_v46 = vld [vmem:[%s8287_s8 + $0x40] sm:$0xf] }
 0x679   : > { %3193 = vperm.xlu1 %5706, %v7031_v44  }
 0x67a   : > { %838 = vmatpush.bf16.msra.mxu2 %v4525_v15  ;;  %v7587_v63 = vpop.permute.xlu2 %3254  ;;  %v4867_v15 = vld [vmem:[%s8285_s6 + $0x15c] sm:$0xf] }
 0x67b   : > { %v4553_v14 = vor.u32 %v4867_v15, %v4550_v10  ;;  %v4888_v10 = vld [vmem:[%s8287_s8 + $0x84] sm:$0xf] }
 0x67d   : > { %850 = vmatpush.bf16.msra.mxu3 %v4553_v14  ;;  %v4843_v14 = vld [vmem:[%s8285_s6 + $0x9c] sm:$0xf] }
 0x67e   : > { %839 = vmatpush.bf16.msra.mxu2 %v4501_v47  ;;  %v4558_v47 = vld [vmem:[%s8285_s6 + $0x178] sm:$0xf0] }
 0x67f   : > { %v4561_v25 = vor.u32 %v4868_v36, %v4558_v47  ;;  %v4631_v36 = vld [vmem:[%s8287_s8 + $0x90] sm:$0xf0] }
 0x680   : > { %3290 = vperm.xlu2 %5707, %v7046_v34  }
 0x681   : > { %5708 = vset.pattern.permute.xlu1 %v6981_v2  ;;  %876 = vmatpush.bf16.msrb.mxu1 %v4561_v25  ;;  %v4462_v25 = vld [vmem:[%s8285_s6 + $0xb8] sm:$0xf0] }
 0x683   : > { %v7576_v18 = vpop.permute.xlu1 %3060 }
 0x685   : > { %877 = vmatpush.bf16.msrb.mxu1 %v4537_v28  ;;  %v4433_v28 = vor.u32 %v4837_v57, %v4430_v33  ;;  %v4825_v57 = vld [vmem:[%s8285_s6 + $0xc] sm:$0xf]  ;;  %v4382_v33 = vld [vmem:[%s8285_s6 + $0x20] sm:$0xf0] }
 0x688   : > { %5709 = vset.pattern.permute.xlu2 %v6981_v2  ;;  %v4476_v2 = vld [vmem:[%s8285_s6 + $0xc8] sm:$0xf] }
 0x689   : > { %3199 = vperm.xlu1 %5708, %v7031_v44   ;;  %v4852_v44 = vld [vmem:[%s8285_s6 + $0xdc] sm:$0xf0] }
 0x68a   : > { %v4477_v45 = vor.u32 %v4852_v44, %v4476_v2  ;;  %v4894_v2 = vld [vmem:[%s8287_s8 + $0xac] sm:$0xf0]  ;;  %v4389_v44 = vor.u32 %v4829_v37, %v4388_v48  ;;  %v7643_v7 = vpop.permute.xlu2 %3260 }
 0x68b   : > { %v4646_v19 = vor.u32 %v4894_v2, %v4645_v60  ;;  %v4882_v48 = vld [vmem:[%s8287_s8 + $0x4c] sm:$0xf0]  ;;  %v4634_v60 = vor.u32 %v4888_v10, %v4631_v36  ;;  %v4454_v2 = vld [vmem:[%s8285_s6 + $0xb0] sm:$0xf0] }
 0x68c   : > { %840 = vmatpush.bf16.msra.mxu2 %v4477_v45  ;;  %v4679_v45 = vld [vmem:[%s8287_s8 + $0xf0] sm:$0xf0]  ;;  %870 = vmatpush.bf16.msrb.mxu0 %v4389_v44  ;;  %v4598_v15 = vor.u32 %v4882_v48, %v4597_v46  ;;  %v4844_v44 = vld [vmem:[%s8285_s6 + $0xa4] sm:$0xf]  ;;  %v4669_v46 = vld [vmem:[%s8287_s8 + $0xc8] sm:$0xf] }
 0x68d   : > { %v4682_v8 = vor.u32 %v4900_v3, %v4679_v45  ;;  %v4465_v3 = vor.u32 %v4844_v44, %v4462_v25  ;;  %v4581_v45 = vld [vmem:[%s8287_s8 + $0x20] sm:$0xf]  ;;  %v7787_v25 = vld [vmem:[%s8281_s2 + $0x198] sm:$0xff]  }
 0x68f   : > { %871 = vmatmul.bf16.vlgmr.msrb.gmra.mxu0 %v8364_v17 }
 0x690   : > { %3296 = vperm.xlu2 %5709, %v7046_v34   ;;  %v4452_v34 = vld [vmem:[%s8285_s6 + $0x98] sm:$0xf]  ;;  %4024 = vmatpush.bf16.msra.mxu0 %v4682_v8  ;;  %v4878_v8 = vld [vmem:[%s8287_s8 + $0x2c] sm:$0xf0] }
 0x691   : > { %v4453_v52 = vor.u32 %v4846_v31, %v4452_v34  ;;  %v4861_v34 = vld [vmem:[%s8285_s6 + $0x12c] sm:$0xf]  ;;  %v4526_v31 = vld [vmem:[%s8285_s6 + $0x140] sm:$0xf0] }
 0x693   : > { %841 = vmatpush.bf16.msra.mxu2 %v4453_v52  ;;  %v4529_v52 = vor.u32 %v4861_v34, %v4526_v31  ;;  %v7632_v43 = vpop.permute.xlu1 %3066  ;;  %v4884_v34 = vld [vmem:[%s8287_s8 + $0x64] sm:$0xf]  ;;  %v4582_v31 = vor.u32 %v4878_v8, %v4581_v45  ;;  %v7794_v45 = vld [vmem:[%s8281_s2 + $0x1d8] sm:$0xff]   ;;  %v5555_v8 = vld [vmem:[%s8281_s2 + $0x168] sm:$0xff]  }
 0x695   : > { %851 = vmatpush.bf16.msra.mxu3 %v4529_v52  ;;  %v4618_v52 = vor.u32 %v4884_v34, %v4615_v58  ;;  %v7805_v58 = vld [vmem:[%s8286_s7] sm:$0x3f] }
 0x697   : > { %842 = vmatpush.bf16.msra.mxu2 %v4429_v53  ;;  %v4896_v53 = vld [vmem:[%s8287_s8 + $0xc4] sm:$0xf] }
 0x698   : > { %v4666_v42 = vor.u32 %v4896_v53, %v4663_v9  ;;  %v4565_v53 = vld [vmem:[%s8287_s8] sm:$0xf]  ;;  %v4874_v9 = vld [vmem:[%s8287_s8 + $0xc] sm:$0xf0] }
 0x699   : > { %852 = vmatpush.bf16.msra.mxu3 %v4505_v54 }
 0x69a   : > { %4025 = vmatpush.bf16.msra.mxu0 %v4666_v42  ;;  %v7685_v37 = vpop.permute.xlu2 %3078  ;;  %v4566_v42 = vor.u32 %v4874_v9, %v4565_v53  ;;  %v4385_v53 = vor.u32 %v4825_v57, %v4382_v33  ;;  %v4390_v9 = vld [vmem:[%s8285_s6 + $0x28] sm:$0xf0]  ;;  %v4637_v33 = vld [vmem:[%s8287_s8 + $0x88] sm:$0xf] }
 0x69b   : > { %843 = vmatpush.bf16.msra.mxu2 %v4405_v0  ;;  %v4856_v0 = vld [vmem:[%s8285_s6 + $0x104] sm:$0xf]  ;;  %v7696_v47 = vpop.permute.xlu1 %3163 }
 0x69c   : > { %v4513_v55 = vor.u32 %v4856_v0, %v4510_v5  ;;  %v4599_v0 = vld [vmem:[%s8287_s8 + $0x50] sm:$0xf0]  ;;  %v4685_v5 = vld [vmem:[%s8287_s8 + $0xe8] sm:$0xf] }
 0x69e   : > { %878 = vmatpush.bf16.msrb.mxu1 %v4513_v55  ;;  %v4602_v55 = vor.u32 %v4880_v11, %v4599_v0  ;;  %v7836_v11 = vld [vmem:[%s8281_s2 + $0x1e0] sm:$0xff]  }
 0x69f   : > { %844 = vmatpush.bf16.msra.mxu2 %v4381_v38  ;;  %v4647_v38 = vld [vmem:[%s8287_s8 + $0xb0] sm:$0xf0] }
 0x6a0   : > { %v4650_v49 = vor.u32 %v4892_v12, %v4647_v38  ;;  %v4406_v12 = vld [vmem:[%s8285_s6 + $0x50] sm:$0xf0]  ;;  %v4686_v38 = vor.u32 %v4903_v4, %v4685_v5  ;;  %v4805_v4 = vld [vmem:[%s8287_s8 + $0x1e0] sm:$0xf] }
 0x6a2   : > { %845 = vmatmul.bf16.vlgmr.msra.gmra.mxu2 %v8364_v17  ;;  %4026 = vmatpush.bf16.msra.mxu0 %v4650_v49  ;;  %v4409_v49 = vor.u32 %v4831_v26, %v4406_v12  ;;  %v4934_v26 = vld [vmem:[%s8287_s8 + $0x1ec] sm:$0xf0]  ;;  %v4932_v12 = vld [vmem:[%s8287_s8 + $0x1e4] sm:$0xf] }
 0x6a3   : > { %3998 = vmatpush.bf16.msrb.mxu2 %v4678_v16  ;;  %v4849_v16 = vld [vmem:[%s8285_s6 + $0xcc] sm:$0xf] }
 0x6a4   : > { %v4481_v56 = vor.u32 %v4849_v16, %v4478_v62  ;;  %v4832_v16 = vld [vmem:[%s8285_s6 + $0x44] sm:$0xf]  ;;  %v4414_v62 = vld [vmem:[%s8285_s6 + $0x58] sm:$0xf0] }
 0x6a6   : > { %853 = vmatpush.bf16.msra.mxu3 %v4481_v56  ;;  %4027 = vmatpush.bf16.msra.mxu0 %v4634_v60  ;;  %v4417_v56 = vor.u32 %v4832_v16, %v4414_v62  ;;  %v5554_v60 = vld [vmem:[%s8281_s2 + $0x160] sm:$0xff]   ;;  %v5375_v16 = vunpack.c.h.bf16 %v5555_v8  ;;  %v4807_v62 = vld [vmem:[%s8287_s8 + $0x1f0] sm:$0xf0] }
 0x6a7   : > { %3999 = vmatpush.bf16.msrb.mxu2 %v4662_v20  ;;  %v4489_v20 = vor.u32 %v4850_v40, %v4486_v61  ;;  %v4876_v40 = vld [vmem:[%s8287_s8 + $0x24] sm:$0xf]  ;;  %v4583_v61 = vld [vmem:[%s8287_s8 + $0x30] sm:$0xf0]  ;;  %v5370_v44 = vunpack.c.l.bf16 %v5554_v60 }
 0x6a8   : > { %v4586_v48 = vor.u32 %v4876_v40, %v4583_v61  ;;  %v4653_v40 = vld [vmem:[%s8287_s8 + $0xa8] sm:$0xf] }
 0x6a9   : > { %879 = vmatpush.bf16.msrb.mxu1 %v4489_v20  ;;  %v4899_v20 = vld [vmem:[%s8287_s8 + $0xd4] sm:$0xf0]  ;;  %v3386_v34 = vmul.f32 %v5370_v44, %v7576_v18  ;;  %v4826_v18 = vld [vmem:[%s8285_s6 + $0x14] sm:$0xf] }
 0x6aa   : > { %4028 = vmatpush.bf16.msra.mxu0 %v4618_v52  ;;  %v7746_v54 = vpop.permute.xlu2 %3084  ;;  %v560_v52 = vperm.slane %v7805_v58, 1  ;;  %v4393_v5 = vor.u32 %v4826_v18, %v4390_v9  ;;  %v4891_v18 = vld [vmem:[%s8287_s8 + $0x94] sm:$0xf0]  ;;  %v3389_v9 = vmul.f32 %v5375_v16, %v7685_v37 }
 0x6ab   : > { %4000 = vmatpush.bf16.msrb.mxu2 %v4646_v19  ;;  %v4457_v19 = vor.u32 %v4843_v14, %v4454_v2 }
 0x6ad   : > { %854 = vmatpush.bf16.msra.mxu3 %v4457_v19  ;;  %880 = vmatpush.bf16.msrb.mxu1 %v4465_v3  ;;  %v5371_v19 = vunpack.c.h.bf16 %v5554_v60 }
 0x6ae   : > { %4029 = vmatpush.bf16.msra.mxu0 %v4602_v55 }
 0x6af   : > { %4001 = vmatpush.bf16.msrb.mxu2 %v4630_v27  ;;  %v4438_v27 = vld [vmem:[%s8285_s6 + $0x88] sm:$0xf0]  ;;  %v3387_v0 = vmul.f32 %v5371_v19, %v7632_v43  ;;  %v4806_v43 = vor.u32 %v4934_v26, %v4805_v4 }
 0x6b0   : > { %v4441_v35 = vor.u32 %v4838_v32, %v4438_v27  ;;  %v5398_v32 = vunpack.c.l.bf16 %v7787_v25  ;;  %v7822_v27 = vld [vmem:[%s8281_s2 + $0x170] sm:$0xff]  }
 0x6b1   : > { %855 = vmatpush.bf16.msra.mxu3 %v4433_v28  ;;  %v5430_v28 = vunpack.c.l.bf16 %v7794_v45 }
 0x6b2   : > { %881 = vmatpush.bf16.msrb.mxu1 %v4441_v35  ;;  %4030 = vmatpush.bf16.msra.mxu0 %v4586_v48  ;;  %v7777_v36 = vpop.permute.xlu2 %3181  ;;  %v4872_v35 = vld [vmem:[%s8287_s8 + $0x4] sm:$0xf]  ;;  %v4901_v48 = vld [vmem:[%s8287_s8 + $0xec] sm:$0xf]  ;;  %v7868_v60 = vmul.f32 %v5398_v32, %v7179_v39 }
 0x6b3   : > { %4002 = vmatpush.bf16.msrb.mxu2 %v4614_v1  ;;  %v7757_v1 = vpop.permute.xlu1 %3169  ;;  %v3416_v44 = vmul.f32 %v5430_v28, %v7556_v24  ;;  %v4928_v39 = vld [vmem:[%s8287_s8 + $0x1c4] sm:$0xf]  ;;  %v4897_v32 = vld [vmem:[%s8287_s8 + $0xcc] sm:$0xf] }
 0x6b5   : > { %856 = vmatpush.bf16.msra.mxu3 %v4409_v49  ;;  %v3538_v49 = vadd.f32 %v7451_v6, %v3386_v34 }
 0x6b6   : > { %882 = vmatpush.bf16.msrb.mxu1 %v4417_v56  ;;  %v4895_v56 = vld [vmem:[%s8287_s8 + $0xb4] sm:$0xf0] }
 0x6b7   : > { %4003 = vmatpush.bf16.msrb.mxu2 %v4598_v15  ;;  %v4670_v15 = vor.u32 %v4899_v20, %v4669_v46  ;;  %v4810_v46 = vor.u32 %v4932_v12, %v4807_v62  ;;  %v4654_v6 = vor.u32 %v4895_v56, %v4653_v40  ;;  %v4687_v20 = vld [vmem:[%s8287_s8 + $0xf8] sm:$0xf0]  ;;  %v3539_v34 = vadd.f32 %v3538_v49, %v3387_v0  ;;  %v4926_v49 = vld [vmem:[%s8287_s8 + $0x1ac] sm:$0xf0]  ;;  %v4924_v56 = vld [vmem:[%s8287_s8 + $0x1a4] sm:$0xf] }
 0x6b8   : > { %v4690_v19 = vor.u32 %v4901_v48, %v4687_v20  ;;  %v4638_v0 = vor.u32 %v4891_v18, %v4637_v33  ;;  %v5435_v62 = vunpack.c.h.bf16 %v7836_v11  ;;  %v4893_v48 = vld [vmem:[%s8287_s8 + $0xac] sm:$0xf]  ;;  %v4655_v20 = vld [vmem:[%s8287_s8 + $0xb8] sm:$0xf0]  ;;  %v4605_v33 = vld [vmem:[%s8287_s8 + $0x48] sm:$0xf] }
 0x6b9   : > { %857 = vmatpush.bf16.msra.mxu3 %v4385_v53  ;;  %v5434_v53 = vunpack.c.l.bf16 %v7836_v11  ;;  %v4883_v18 = vld [vmem:[%s8287_s8 + $0x54] sm:$0xf0] }
 0x6ba   : > { %883 = vmatpush.bf16.msrb.mxu1 %v4393_v5  ;;  %v4671_v5 = vld [vmem:[%s8287_s8 + $0xd8] sm:$0xf0] }
 0x6bb   : > { %4004 = vmatpush.bf16.msrb.mxu2 %v4582_v31  ;;  %v7779_v14 = vpop.permute.xlu1 %3266  ;;  %v4674_v26 = vor.u32 %v4897_v32, %v4671_v5  ;;  %v3419_v32 = vmul.f32 %v5435_v62, %v7643_v7  ;;  %v4741_v7 = vld [vmem:[%s8287_s8 + $0x160] sm:$0xf] }
 0x6bc   : > { %858 = vmatmul.bf16.vlgmr.msra.gmra.mxu3 %v8364_v17 }
 0x6bd   : > { %4011 = vmatpush.bf16.msrb.mxu3 %v4806_v43  ;;  %884 = vmatmul.bf16.vlgmr.msrb.gmra.mxu1 %v8364_v17  ;;  %v3578_v43 = vadd.f32 %v7458_v22, %v3416_v44  ;;  %v4775_v17 = vld [vmem:[%s8287_s8 + $0x1b0] sm:$0xf0]  ;;  %v4658_v44 = vor.u32 %v4893_v48, %v4655_v20 }
 0x6be   : > { %4037 = vmatpush.bf16.msra.mxu1 %v4810_v46  ;;  %v4778_v11 = vor.u32 %v4924_v56, %v4775_v17  ;;  %v4589_v56 = vld [vmem:[%s8287_s8 + $0x28] sm:$0xf]  ;;  %v4879_v17 = vld [vmem:[%s8287_s8 + $0x34] sm:$0xf0] }
 0x6bf   : > { %4005 = vmatpush.bf16.msrb.mxu2 %v4566_v42  ;;  %v833_v10 = vpop.f32.mrf.mxu1  ;;  %v4567_v42 = vld [vmem:[%s8287_s8 + $0x10] sm:$0xf0] }
 0x6c0   : > { %v4570_v55 = vor.u32 %v4872_v35, %v4567_v42  ;;  %v834_v61 = vadd.f32 %v833_v10, %v560_v52  ;;  %v5431_v10 = vunpack.c.h.bf16 %v7794_v45  ;;  %v4791_v45 = vld [vmem:[%s8287_s8 + $0x1d0] sm:$0xf0]  ;;  %v5378_v52 = vunpack.c.l.bf16 %v7822_v27  ;;  %v7902_v35 = vld [vmem:[%s8281_s2 + $0x1e8] sm:$0xff]  }
 0x6c1   : > { %v4794_v57 = vor.u32 %v4928_v39, %v4791_v45  ;;  %v4920_v39 = vld [vmem:[%s8287_s8 + $0x184] sm:$0xf]  ;;  %v5399_v45 = vunpack.c.h.bf16 %v7787_v25 }
 0x6c2   : > { %v7789_v3 = vpop.permute.xlu2 %3187  ;;  %4031 = vmatpush.bf16.msra.mxu0 %v4570_v55  ;;  %v5379_v55 = vunpack.c.h.bf16 %v7822_v27  ;;  %v7916_v4 = vmul.f32 -1.442695, %v834_v61  ;;  %v3417_v16 = vmul.f32 %v5431_v10, %v7196_v21  ;;  %v7931_v27 = vld [vmem:[%s8281_s2 + $0x1f0] sm:$0xff]   ;;  %v4621_v21 = vld [vmem:[%s8287_s8 + $0x68] sm:$0xf]  ;;  %v3390_v22 = vmul.f32 %v5378_v52, %v7746_v54  ;;  %v7982_v25 = vld [vmem:[%s8281_s2 + $0x1a0] sm:$0xff]  }
 0x6c3   : > { %4050 = vmatpush.bf16.msra.mxu2 %v4686_v38  ;;  %v7800_v31 = vpop.permute.xlu1 %3272  ;;  %v5374_v38 = vunpack.c.l.bf16 %v5555_v8  ;;  %v4930_v8 = vld [vmem:[%s8287_s8 + $0x1cc] sm:$0xf0]  ;;  %4038 = vmatpush.bf16.msra.mxu1 %v4794_v57  ;;  %v5438_v10 = vunpack.c.l.bf16 %v7902_v35  ;;  %v4759_v57 = vld [vmem:[%s8287_s8 + $0x190] sm:$0xf0]  ;;  %v3401_v48 = vmul.f32 %v5399_v45, %v7507_v59  ;;  %v5443_v45 = vunpack.c.h.bf16 %v7931_v27 }
 0x6c4   : > { %5715 = vpow2.f32 %v7916_v4  ;;  %v8032_v4 = vld [vmem:[%s8281_s2 + $0x1f8] sm:$0xff]   ;;  %v4914_v59 = vld [vmem:[%s8287_s8 + $0x14c] sm:$0xf0] }
 0x6c5   : > { %v3388_v28 = vmul.f32 %v5374_v38, %v7204_v29  ;;  %v3611_v29 = vld [vmem:[%s483_s28] sm:$0xff] }
 0x6c6   : > { %4076 = vmatpush.bf16.msrb.mxu0 %v4690_v19  ;;  %v7918_v12 = vpack.c.bf16 %v3611_v29, %v3611_v29  ;;  %v4773_v38 = vld [vmem:[%s8287_s8 + $0x1a0] sm:$0xf]  ;;  %v4762_v29 = vor.u32 %v4920_v39, %v4759_v57  ;;  %v5403_v39 = vunpack.c.h.bf16 %v7982_v25  ;;  %v4875_v57 = vld [vmem:[%s8287_s8 + $0x14] sm:$0xf0] }
 0x6c7   : > { %4051 = vmatpush.bf16.msra.mxu2 %v4670_v15  ;;  %v835_v2 = vpop.f32.mrf.mxu1  ;;  %v4789_v15 = vld [vmem:[%s8287_s8 + $0x1c0] sm:$0xf]  ;;  %v4774_v40 = vor.u32 %v4926_v49, %v4773_v38  ;;  %v3540_v46 = vadd.f32 %v3539_v34, %v3388_v28  ;;  %v5439_v28 = vunpack.c.h.bf16 %v7902_v35  ;;  %4039 = vmatpush.bf16.msra.mxu1 %v4778_v11  ;;  %v4918_v35 = vld [vmem:[%s8287_s8 + $0x16c] sm:$0xf0]  ;;  %v4623_v11 = vld [vmem:[%s8287_s8 + $0x78] sm:$0xf0] }
 0x6c8   : > { %v7874_v2 = vld [vmem:[%s8281_s2 + $0x178] sm:$0xff]   ;;  %v4790_v24 = vor.u32 %v4930_v8, %v4789_v15  ;;  %v3418_v15 = vmul.f32 %v5434_v53, %v7587_v63  ;;  %4006 = vmatmul.bf16.vlgmr.msrb.gmra.mxu2 %v7918_v12  ;;  %v4757_v19 = vld [vmem:[%s8287_s8 + $0x180] sm:$0xf]  ;;  %v4922_v8 = vld [vmem:[%s8287_s8 + $0x18c] sm:$0xf0]  ;;  %v3103_v63 = vpop.permute.xlu0 %3102  ;;  %4032 = vmatmul.bf16.vlgmr.msra.gmra.mxu0 %v7918_v12 }
 0x6c9   : > { %v5383_v61 = vunpack.c.h.bf16 %v7874_v2  ;;  %v3541_v34 = vadd.f32 %v3540_v46, %v3389_v9  ;;  %v4758_v53 = vor.u32 %v4922_v8, %v4757_v19  ;;  %v4889_v9 = vld [vmem:[%s8287_s8 + $0x8c] sm:$0xf]  ;;  %v4590_v19 = vor.u32 %v4879_v17, %v4589_v56  ;;  %v4725_v8 = vld [vmem:[%s8287_s8 + $0x140] sm:$0xf]  ;;  %v5564_v56 = vld [vmem:[%s8281_s2 + $0x1b0] sm:$0xff]  }
 0x6ca   : > { %v7913_v37 = vpop.permute.xlu2 %3284  ;;  %4012 = vmatpush.bf16.msrb.mxu3 %v4790_v24  ;;  %4077 = vmatpush.bf16.msrb.mxu0 %v4674_v26  ;;  %v5382_v24 = vunpack.c.l.bf16 %v7874_v2  ;;  %v3579_v2 = vadd.f32 %v3578_v43, %v3417_v16  ;;  %v4916_v26 = vld [vmem:[%s8287_s8 + $0x164] sm:$0xf]  ;;  %v3420_v16 = vmul.f32 %v5438_v10, %v7779_v14  ;;  %v4742_v10 = vor.u32 %v4918_v35, %v4741_v7 }
 0x6cb   : > { %4052 = vmatpush.bf16.msra.mxu2 %v4654_v6  ;;  %v4887_v6 = vld [vmem:[%s8287_s8 + $0x74] sm:$0xf0]  ;;  %v3542_v5 = vadd.f32 %v3541_v34, %v3390_v22  ;;  %v3393_v38 = vmul.f32 %v5383_v61, %v3103_v63  ;;  %v4885_v22 = vld [vmem:[%s8287_s8 + $0x6c] sm:$0xf]  ;;  %4040 = vmatpush.bf16.msra.mxu1 %v4762_v29  ;;  %v3423_v7 = vmul.f32 %v5443_v45, %v7913_v37  ;;  %v5447_v35 = vunpack.c.h.bf16 %v8032_v4  ;;  %v4591_v37 = vld [vmem:[%s8287_s8 + $0x38] sm:$0xf0] }
 0x6cc   : > { %v4622_v54 = vor.u32 %v4887_v6, %v4621_v21  ;;  %v3580_v49 = vadd.f32 %v3579_v2, %v3418_v15  ;;  %v5402_v21 = vunpack.c.l.bf16 %v7982_v25  ;;  %v8025_v6 = vld [vmem:[%s8281_s2 + $0x1a8] sm:$0xff]   ;;  %v3421_v15 = vmul.f32 %v5439_v28, %v7800_v31  ;;  %v4912_v31 = vld [vmem:[%s8287_s8 + $0x144] sm:$0xf]  ;;  %v4815_v45 = vld [vmem:[%s8287_s8 + $0x1f8] sm:$0xf0] }
 0x6cd   : > { %v4626_v34 = vor.u32 %v4885_v22, %v4623_v11  ;;  %v4881_v2 = vld [vmem:[%s8287_s8 + $0x4c] sm:$0xf]  ;;  %v4906_v22 = vld [vmem:[%s8287_s8 + $0x10c] sm:$0xf0]  ;;  %v5407_v11 = vunpack.c.h.bf16 %v8025_v6 }
 0x6ce   : > { %4013 = vmatpush.bf16.msrb.mxu3 %v4774_v40  ;;  %4078 = vmatpush.bf16.msrb.mxu0 %v4658_v44  ;;  %v4743_v40 = vld [vmem:[%s8287_s8 + $0x170] sm:$0xf0]  ;;  %v3581_v20 = vadd.f32 %v3580_v49, %v3419_v32  ;;  %v4607_v32 = vld [vmem:[%s8287_s8 + $0x58] sm:$0xf0] }
 0x6cf   : > { %4053 = vmatpush.bf16.msra.mxu2 %v4638_v0  ;;  %v5442_v0 = vunpack.c.l.bf16 %v7931_v27  ;;  %v4746_v44 = vor.u32 %v4916_v26, %v4743_v40  ;;  %v5406_v27 = vunpack.c.l.bf16 %v8025_v6  ;;  %v4610_v26 = vor.u32 %v4881_v2, %v4607_v32  ;;  %v4711_v49 = vld [vmem:[%s8287_s8 + $0x130] sm:$0xf0]  ;;  %v4873_v6 = vld [vmem:[%s8287_s8 + $0xc] sm:$0xf] }
 0x6d0   : > { %v3582_v63 = vadd.f32 %v3581_v20, %v3420_v16  ;;  %v3405_v2 = vmul.f32 %v5407_v11, %v7214_v50  ;;  %v4929_v50 = vld [vmem:[%s8287_s8 + $0x1cc] sm:$0xf] }
 0x6d1   : > { %v3422_v28 = vmul.f32 %v5442_v0, %v7326_v51  ;;  %4041 = vmatpush.bf16.msra.mxu1 %v4746_v44  ;;  %v4910_v51 = vld [vmem:[%s8287_s8 + $0x12c] sm:$0xf0]  ;;  %v3403_v0 = vmul.f32 %v5403_v39, %v7696_v47  ;;  %v4877_v47 = vld [vmem:[%s8287_s8 + $0x2c] sm:$0xf]  ;;  %v4575_v39 = vld [vmem:[%s8287_s8 + $0x18] sm:$0xf0] }
 0x6d2   : > { %4014 = vmatpush.bf16.msrb.mxu3 %v4758_v53  ;;  %v3583_v53 = vadd.f32 %v3582_v63, %v3421_v15  ;;  %v4695_v15 = vld [vmem:[%s8287_s8 + $0x110] sm:$0xf0]  ;;  %v4594_v44 = vor.u32 %v4877_v47, %v4591_v37  ;;  %v4933_v63 = vld [vmem:[%s8287_s8 + $0x1ec] sm:$0xf] }
 0x6d3   : > { %v3091_v42 = vpop.permute.xlu1 %3090  ;;  %4054 = vmatpush.bf16.msra.mxu2 %v4622_v54 }
 0x6d4   : > { %v3391_v52 = vmul.f32 %v5379_v55, %v3091_v42  ;;  %v4639_v42 = vld [vmem:[%s8287_s8 + $0x98] sm:$0xf0]  ;;  %v4606_v55 = vor.u32 %v4883_v18, %v4605_v33  ;;  %v3557_v33 = vadd.f32 %v7453_v41, %v7868_v60  ;;  %v3402_v18 = vmul.f32 %v5402_v21, %v7545_v23  ;;  %v5716_v60 = vpop.eup %5715 }
 0x6d5   : > { %v4642_v62 = vor.u32 %v4889_v9, %v4639_v42  ;;  %v5446_v9 = vunpack.c.l.bf16 %v8032_v4  ;;  %v4726_v41 = vor.u32 %v4914_v59, %v4725_v8  ;;  %v3584_v17 = vadd.f32 %v3583_v53, %v3422_v28  ;;  %v4935_v8 = vld [vmem:[%s8287_s8 + $0x1f4] sm:$0xf0] }
 0x6d6   : > { %v3543_v61 = vadd.f32 %v3542_v5, %v3391_v52  ;;  %v4727_v52 = vld [vmem:[%s8287_s8 + $0x150] sm:$0xf0]  ;;  %4015 = vmatpush.bf16.msrb.mxu3 %v4742_v10  ;;  %v3558_v23 = vadd.f32 %v3557_v33, %v3401_v48  ;;  %v5410_v59 = vunpack.c.l.bf16 %v5564_v56  ;;  %v5411_v33 = vunpack.c.h.bf16 %v5564_v56 }
 0x6d7   : > { %4055 = vmatpush.bf16.msra.mxu2 %v4606_v55  ;;  %4079 = vmatpush.bf16.msrb.mxu0 %v4642_v62  ;;  %v4730_v5 = vor.u32 %v4912_v31, %v4727_v52  ;;  %v4709_v55 = vld [vmem:[%s8287_s8 + $0x120] sm:$0xf]  ;;  %v3585_v10 = vadd.f32 %v3584_v17, %v3423_v7  ;;  %v4578_v53 = vor.u32 %v4873_v6, %v4575_v39 }
 0x6d8   : > { %v3559_v16 = vadd.f32 %v3558_v23, %v3402_v18  ;;  %v3406_v23 = vmul.f32 %v5410_v59, %v7777_v36 }
 0x6d9   : > { %4042 = vmatpush.bf16.msra.mxu1 %v4730_v5 }
 0x6da   : > { %v8013_v46 = vpop.permute.xlu2 %3290  ;;  %4016 = vmatpush.bf16.msrb.mxu3 %v4726_v41  ;;  %v3560_v4 = vadd.f32 %v3559_v16, %v3403_v0  ;;  %v4797_v41 = vld [vmem:[%s8287_s8 + $0x1c8] sm:$0xf] }
 0x6db   : > { %4056 = vmatpush.bf16.msra.mxu2 %v4590_v19  ;;  %4080 = vmatpush.bf16.msrb.mxu0 %v4626_v34  ;;  %v3424_v21 = vmul.f32 %v5446_v9, %v8013_v46  ;;  %v4904_v46 = vld [vmem:[%s8287_s8 + $0x104] sm:$0xf]  ;;  %v4813_v19 = vld [vmem:[%s8287_s8 + $0x1e8] sm:$0xf]  ;;  %v4818_v9 = vor.u32 %v4933_v63, %v4815_v45 }
 0x6dd   : > { %v3586_v52 = vadd.f32 %v3585_v10, %v3424_v21 }
 0x6df   : > { %4081 = vmatpush.bf16.msrb.mxu0 %v4610_v26 }
 0x6e3   : > { %v3097_v43 = vpop.permute.xlu1 %3096  ;;  %4082 = vmatpush.bf16.msrb.mxu0 %v4594_v44  ;;  %v4919_v44 = vld [vmem:[%s8287_s8 + $0x174] sm:$0xf0] }
 0x6e4   : > { %v3392_v14 = vmul.f32 %v5382_v24, %v3097_v43  ;;  %v4573_v24 = vld [vmem:[%s8287_s8 + $0x8] sm:$0xf]  ;;  %v3404_v43 = vmul.f32 %v5406_v27, %v7757_v1  ;;  %v4710_v1 = vor.u32 %v4910_v51, %v4709_v55  ;;  %v4698_v27 = vor.u32 %v4904_v46, %v4695_v15 }
 0x6e5   : > { %v4574_v29 = vor.u32 %v4875_v57, %v4573_v24  ;;  %v5565_v24 = vld [vmem:[%s8281_s2 + $0x1b8] sm:$0xff]   ;;  %v3407_v51 = vmul.f32 %v5411_v33, %v7789_v3 }
 0x6e6   : > { %v3544_v54 = vadd.f32 %v3543_v61, %v3392_v14  ;;  %v8092_v61 = vadd.f32 1.0, %v5716_v60  ;;  %v4693_v14 = vld [vmem:[%s8287_s8 + $0x100] sm:$0xf]  ;;  %v3561_v34 = vadd.f32 %v3560_v4, %v3404_v43  ;;  %4017 = vmatpush.bf16.msrb.mxu3 %v4710_v1  ;;  %v4931_v60 = vld [vmem:[%s8287_s8 + $0x1d4] sm:$0xf0]  ;;  %v5414_v5 = vunpack.c.l.bf16 %v5565_v24 }
 0x6e7   : > { %4057 = vmatpush.bf16.msra.mxu2 %v4574_v29  ;;  %v4694_v57 = vor.u32 %v4906_v22, %v4693_v14  ;;  %v4799_v29 = vld [vmem:[%s8287_s8 + $0x1d8] sm:$0xf0]  ;;  %v4798_v0 = vor.u32 %v4931_v60, %v4797_v41  ;;  %4083 = vmatpush.bf16.msrb.mxu0 %v4578_v53  ;;  %v4927_v3 = vld [vmem:[%s8287_s8 + $0x1b4] sm:$0xf0]  ;;  %v5415_v43 = vunpack.c.h.bf16 %v5565_v24  ;;  %v4765_v1 = vld [vmem:[%s8287_s8 + $0x188] sm:$0xf] }
 0x6e8   : > { %v3545_v25 = vadd.f32 %v3544_v54, %v3393_v38  ;;  %v4908_v38 = vld [vmem:[%s8287_s8 + $0x124] sm:$0xf]  ;;  %5717 = vrcp.f32 %v8092_v61  ;;  %v3562_v55 = vadd.f32 %v3561_v34, %v3405_v2  ;;  %v4802_v26 = vor.u32 %v4929_v50, %v4799_v29  ;;  %v4923_v14 = vld [vmem:[%s8287_s8 + $0x194] sm:$0xf0]  ;;  %v4733_v34 = vld [vmem:[%s8287_s8 + $0x148] sm:$0xf] }
 0x6e9   : > { %v4714_v20 = vor.u32 %v4908_v38, %v4711_v49  ;;  %v4781_v38 = vld [vmem:[%s8287_s8 + $0x1a8] sm:$0xf]  ;;  %v4766_v15 = vor.u32 %v4923_v14, %v4765_v1  ;;  %vm898_vm7 = vweird.f32 %v8092_v61  ;;  %v4735_v33 = vld [vmem:[%s8287_s8 + $0x158] sm:$0xf0]  ;;  %v902_v2 = vand.u32 2147483647, %v8092_v61 }
 0x6ea   : > { %v3546_v42 = vrot.slane %v3545_v25, 4  ;;  %v3297_v40 = vpop.permute.xlu2 %3296  ;;  %4058 = vmatmul.bf16.vlgmr.msra.gmra.mxu2 %v7918_v12  ;;  %4018 = vmatpush.bf16.msrb.mxu3 %v4694_v57  ;;  %v3563_v49 = vadd.f32 %v3562_v55, %v3406_v23  ;;  %v4782_v37 = vor.u32 %v4927_v3, %v4781_v38  ;;  %v4913_v57 = vld [vmem:[%s8287_s8 + $0x14c] sm:$0xf]  ;;  %v4717_v41 = vld [vmem:[%s8287_s8 + $0x128] sm:$0xf] }
 0x6eb   : > { %v3425_v54 = vmul.f32 %v5447_v35, %v3297_v40  ;;  %4043 = vmatpush.bf16.msra.mxu1 %v4714_v20  ;;  %v3194_v28 = vpop.permute.xlu1 %3193  ;;  %4084 = vmatmul.bf16.vlgmr.msrb.gmra.mxu0 %v7918_v12  ;;  %v4921_v12 = vld [vmem:[%s8287_s8 + $0x18c] sm:$0xf]  ;;  %v4911_v60 = vld [vmem:[%s8287_s8 + $0x134] sm:$0xf0]  ;;  %vm903_vm11 = vcmp.eq.f32.partialorder %v902_v2, 8.507059e+37 }
 0x6ec   : > { %v3547_v62 = vadd.f32 %v3546_v42, %v3545_v25  ;;  %v4814_v25 = vor.u32 %v4935_v8, %v4813_v19  ;;  %v3408_v16 = vmul.f32 %v5414_v5, %v3194_v28  ;;  %v3564_v40 = vadd.f32 %v3563_v49, %v3407_v51  ;;  %v4917_v19 = vld [vmem:[%s8287_s8 + $0x16c] sm:$0xf]  ;;  %v4751_v8 = vld [vmem:[%s8287_s8 + $0x178] sm:$0xf0]  ;;  %v4907_v38 = vld [vmem:[%s8287_s8 + $0x114] sm:$0xf0] }
 0x6ed   : > { %v3587_v32 = vadd.f32 %v3586_v52, %v3425_v54  ;;  %v4749_v54 = vld [vmem:[%s8287_s8 + $0x168] sm:$0xf]  ;;  %v4754_v45 = vor.u32 %v4917_v19, %v4751_v8  ;;  %v4915_v52 = vld [vmem:[%s8287_s8 + $0x154] sm:$0xf0]  ;;  %v4718_v55 = vor.u32 %v4911_v60, %v4717_v41  ;;  %v4703_v3 = vld [vmem:[%s8287_s8 + $0x118] sm:$0xf0] }
 0x6ee   : > { %v3548_v48 = vrot.slane %v3547_v62, 2  ;;  %4063 = vmatpush.bf16.msra.mxu3 %v4814_v25  ;;  %v8149_v7 = vpop.eup %5717  ;;  %v3565_v22 = vadd.f32 %v3564_v40, %v3408_v16  ;;  %v4750_v39 = vor.u32 %v4919_v44, %v4749_v54  ;;  %v561_v44 = vperm.slane %v7805_v58, 2 }
 0x6ef   : > { %4044 = vmatpush.bf16.msra.mxu1 %v4698_v27  ;;  %v3588_v35 = vrot.slane %v3587_v32, 4  ;;  %v894_v47 = vmul.f32 %v8149_v7, %v8092_v61 }
 0x6f0   : > { %v3549_v31 = vadd.f32 %v3548_v48, %v3547_v62  ;;  %v4783_v62 = vld [vmem:[%s8287_s8 + $0x1b8] sm:$0xf0] }
 0x6f1   : > { %v3589_v56 = vadd.f32 %v3588_v35, %v3587_v32  ;;  %v4767_v48 = vld [vmem:[%s8287_s8 + $0x198] sm:$0xf0]  ;;  %v895_v20 = vsub.f32 1.0, %v894_v47  ;;  %v4734_v32 = vor.u32 %v4915_v52, %v4733_v34  ;;  %v4701_v35 = vld [vmem:[%s8287_s8 + $0x108] sm:$0xf] }
 0x6f2   : > { %v3550_v18 = vrot.slane %v3549_v31, 1  ;;  %4064 = vmatpush.bf16.msra.mxu3 %v4798_v0  ;;  %v4770_v10 = vor.u32 %v4921_v12, %v4767_v48 }
 0x6f3   : > { %4089 = vmatpush.bf16.msrb.mxu1 %v4818_v9  ;;  %v3590_v4 = vrot.slane %v3589_v56, 2  ;;  %v4738_v9 = vor.u32 %v4913_v57, %v4735_v33 }
 0x6f4   : > { %v3551_v42 = vadd.f32 %v3550_v18, %v3549_v31  ;;  %v896_v31 = vmul.f32 %v8149_v7, %v895_v20  ;;  %v904_v18 = vand.u32 2147483648, %v8092_v61  ;;  %v4909_v61 = vld [vmem:[%s8287_s8 + $0x12c] sm:$0xf] }
 0x6f5   : > { %v3591_v63 = vadd.f32 %v3590_v4, %v3589_v56 }
 0x6f6   : > { %v8147_v36 = vsel %vm2249_vm8, %v3551_v42, %v7348_v13  ;;  %v4925_v13 = vld [vmem:[%s8287_s8 + $0x1ac] sm:$0xf]  ;;  %4065 = vmatpush.bf16.msra.mxu3 %v4782_v37  ;;  %vm899_vm8 = vweird.f32 %v8149_v7  ;;  %v897_v25 = vadd.f32 %v8149_v7, %v896_v31  ;;  %v4719_v42 = vld [vmem:[%s8287_s8 + $0x138] sm:$0xf0]  ;;  %v905_v5 = vor.u32 1.1754944e-38, %v904_v18 }
 0x6f7   : > { %4090 = vmatpush.bf16.msrb.mxu1 %v4802_v26  ;;  %v4786_v21 = vor.u32 %v4925_v13, %v4783_v62  ;;  %v3592_v28 = vrot.slane %v3591_v63, 1  ;;  %vm8208_vm10 = vmor %vm898_vm7, %vm899_vm8  ;;  %v4722_v0 = vor.u32 %v4909_v61, %v4719_v42  ;;  %v4702_v13 = vor.u32 %v4907_v38, %v4701_v35 }
 0x6f8   : > { %v901_v29 = vsel %vm8208_vm10, %v8149_v7, %v897_v25  ;;  %v4905_v7 = vld [vmem:[%s8287_s8 + $0x10c] sm:$0xf]  ;;  %v563_v25 = vperm.slane %v7805_v58, 4 }
 0x6f9   : > { %v3593_v51 = vadd.f32 %v3592_v28, %v3591_v63  ;;  %v906_v49 = vsel %vm903_vm11, %v905_v5, %v901_v29 }
 0x6fa   : > { %4066 = vmatpush.bf16.msra.mxu3 %v4766_v15 }
 0x6fb   : > { %v3200_v17 = vpop.permute.xlu1 %3199  ;;  %4091 = vmatpush.bf16.msrb.mxu1 %v4786_v21 }
 0x6fc   : > { %v3409_v11 = vmul.f32 %v5415_v43, %v3200_v17 }
 0x6fe   : > { %v3566_v46 = vadd.f32 %v3565_v22, %v3409_v11  ;;  %4067 = vmatpush.bf16.msra.mxu3 %v4750_v39 }
 0x6ff   : > { %4092 = vmatpush.bf16.msrb.mxu1 %v4770_v10  ;;  %v562_v10 = vperm.slane %v7805_v58, 3 }
 0x700   : > { %v3567_v6 = vrot.slane %v3566_v46, 4 }
 0x702   : > { %v3568_v59 = vadd.f32 %v3567_v6, %v3566_v46  ;;  %4068 = vmatpush.bf16.msra.mxu3 %v4734_v32 }
 0x703   : > { %4093 = vmatpush.bf16.msrb.mxu1 %v4754_v45  ;;  %v564_v45 = vperm.slane %v7805_v58, 5 }
 0x704   : > { %v3569_v24 = vrot.slane %v3568_v59, 2 }
 0x706   : > { %v3570_v27 = vadd.f32 %v3569_v24, %v3568_v59  ;;  %4069 = vmatpush.bf16.msra.mxu3 %v4718_v55 }
 0x707   : > { %4094 = vmatpush.bf16.msrb.mxu1 %v4738_v9 }
 0x708   : > { %v3571_v23 = vrot.slane %v3570_v27, 1 }
 0x70a   : > { %v3572_v50 = vadd.f32 %v3571_v23, %v3570_v27  ;;  %4070 = vmatpush.bf16.msra.mxu3 %v4702_v13 }
 0x70b   : > { %4095 = vmatpush.bf16.msrb.mxu1 %v4722_v0 }
 0x70c   : > { %v3607_v26 = vsel %vm2251_vm9, %v3572_v50, %v8147_v36  ;;  %v4706_v36 = vor.u32 %v4905_v7, %v4703_v3  ;;  %v872_v47 = vpop.f32.mrf.mxu0 }
 0x70d   : > { %v3608_v16 = vsel %vm2253_vm3, %v3593_v51, %v3607_v26  ;;  %v873_v41 = vadd.f32 %v872_v47, %v563_v25 }
 0x70e   : > { %v3610_v43 = vmul.f32 %v3608_v16, %v906_v49 }
 0x70f   : > { %4096 = vmatpush.bf16.msrb.mxu1 %v4706_v36 }
 0x710   : > { %v3613_v62 = vpack.c.bf16 %v3610_v43, %v3610_v43 }
 0x712   : > { %4019 = vmatmul.bf16.vlgmr.msrb.gmra.mxu3 %v3613_v62  ;;  %4045 = vmatmul.bf16.vlgmr.msra.gmra.mxu1 %v3613_v62 }
 0x714   : > { %v874_v56 = vpop.f32.mrf.mxu0 }
 0x715   : > { %v507_v56 = vld [vmem:[#allocation3] sm:$0xff] }
 0x722   : > { %4071 = vmatmul.bf16.vlgmr.msra.gmra.mxu3 %v3613_v62  ;;  %4097 = vmatmul.bf16.vlgmr.msrb.gmra.mxu1 %v3613_v62 }
 0x725   : > { %v846_v40 = vpop.f32.mrf.mxu2 }
 0x726   : > { %v847_v8 = vadd.f32 %v846_v40, %v561_v44 }
 0x72d   : > { %v848_v37 = vpop.f32.mrf.mxu2 }
 0x73a   : > { %v885_v17 = vpop.f32.mrf.mxu1 }
 0x73b   : > { %v886_v33 = vadd.f32 %v885_v17, %v564_v45  ;;  %v5737_v45 = vld [vmem:[#allocation2] sm:$0xff] }
 0x73f   : > { %v859_v1 = vpop.f32.mrf.mxu3 }
 0x740   : > { %v860_v54 = vadd.f32 %v859_v1, %v562_v10 }
 0x742   : > { %v887_v14 = vpop.f32.mrf.mxu1 }
 0x745   : > { %v4033_v21 = vpop.f32.mrf.mxu0 }
 0x746   : > { %v4034_v6 = vadd.f32 %v4033_v21, %v860_v54 }
 0x747   : > { %v861_v12 = vpop.f32.mrf.mxu3 }
 0x74b   : > { %v4007_v22 = vpop.f32.mrf.mxu2 }
 0x74c   : > { %v4008_v39 = vadd.f32 %v4007_v22, %v847_v8  ;;  %v4173_v22 = vstv %s8247_s26 }
 0x74d   : > { %v4035_v11 = vpop.f32.mrf.mxu0  ;;  %vm8257_vm3 = vcmp.lt.s32.totalorder %v6903_v30, %v4173_v22 }
 0x753   : > { %v4009_v48 = vpop.f32.mrf.mxu2 }
 0x768   : > { %v4085_v46 = vpop.f32.mrf.mxu0 }
 0x769   : > { %v4086_v2 = vadd.f32 %v4085_v46, %v886_v33 }
 0x76d   : > { %v4059_v20 = vpop.f32.mrf.mxu2 }
 0x76e   : > { %v4060_v5 = vadd.f32 %v4059_v20, %v873_v41 }
 0x770   : > { %v4087_v4 = vpop.f32.mrf.mxu0 }
 0x775   : > { %v4061_v15 = vpop.f32.mrf.mxu2 }
 0x78f   : > { %v4046_v19 = vpop.f32.mrf.mxu1 }
 0x790   : > { %v4047_v59 = vadd.f32 %v4046_v19, %v4034_v6 }
 0x792   : > { %v4820_v31 = vmul.f32 -1.442695, %v4047_v59 }
 0x794   : > { %5719 = vpow2.f32 %v4820_v31 }
 0x795   : > { %v4020_v63 = vpop.f32.mrf.mxu3 }
 0x796   : > { %v4021_v34 = vadd.f32 %v4020_v63, %v4008_v39 }
 0x797   : > { %v4048_v52 = vpop.f32.mrf.mxu1 }
 0x798   : > { %v4819_v24 = vmul.f32 -1.442695, %v4021_v34 }
 0x79a   : > { %v5720_v57 = vpop.eup %5719  ;;  %5721 = vpow2.f32 %v4819_v24 }
 0x79b   : > { %v4124_v18 = vadd.f32 1.0, %v5720_v57 }
 0x79d   : > { %5723 = vrcp.f32 %v4124_v18  ;;  %v4022_v27 = vpop.f32.mrf.mxu3  ;;  %v4136_v38 = vand.u32 2147483648, %v4124_v18  ;;  %vm4130_vm12 = vweird.f32 %v4124_v18  ;;  %v4134_v49 = vand.u32 2147483647, %v4124_v18 }
 0x79f   : > { %v4098_v32 = vpop.f32.mrf.mxu1  ;;  %v4137_v47 = vor.u32 1.1754944e-38, %v4136_v38  ;;  %vm4135_vm0 = vcmp.eq.f32.partialorder %v4134_v49, 8.507059e+37 }
 0x7a0   : > { %v5722_v28 = vpop.eup %5721  ;;  %v4099_v53 = vadd.f32 %v4098_v32, %v4086_v2 }
 0x7a1   : > { %v4105_v9 = vadd.f32 1.0, %v5722_v28 }
 0x7a2   : > { %v4821_v60 = vmul.f32 -1.442695, %v4099_v53 }
 0x7a3   : > { %v5724_v23 = vpop.eup %5723  ;;  %5725 = vrcp.f32 %v4105_v9  ;;  %v4117_v43 = vand.u32 2147483648, %v4105_v9  ;;  %v4115_v62 = vand.u32 2147483647, %v4105_v9  ;;  %vm4111_vm15 = vweird.f32 %v4105_v9 }
 0x7a4   : > { %v4126_v61 = vmul.f32 %v5724_v23, %v4124_v18  ;;  %5727 = vpow2.f32 %v4821_v60  ;;  %vm4131_vm9 = vweird.f32 %v5724_v23 }
 0x7a5   : > { %v4072_v42 = vpop.f32.mrf.mxu3  ;;  %vm8249_vm13 = vmor %vm4130_vm12, %vm4131_vm9  ;;  %v4118_v17 = vor.u32 1.1754944e-38, %v4117_v43  ;;  %vm4116_vm2 = vcmp.eq.f32.partialorder %v4115_v62, 8.507059e+37 }
 0x7a6   : > { %v4127_v50 = vsub.f32 1.0, %v4126_v61  ;;  %v4073_v51 = vadd.f32 %v4072_v42, %v4060_v5 }
 0x7a7   : > { %v4100_v29 = vpop.f32.mrf.mxu1 }
 0x7a8   : > { %v4128_v55 = vmul.f32 %v5724_v23, %v4127_v50  ;;  %5729 = vtanh.f32 %v4073_v51 }
 0x7a9   : > { %v5726_v0 = vpop.eup %5725 }
 0x7aa   : > { %v5728_v58 = vpop.eup %5727  ;;  %v4107_v35 = vmul.f32 %v5726_v0, %v4105_v9  ;;  %v4129_v26 = vadd.f32 %v5724_v23, %v4128_v55  ;;  %vm4112_vm14 = vweird.f32 %v5726_v0 }
 0x7ab   : > { %v4144_v7 = vadd.f32 1.0, %v5728_v58  ;;  %vm4113_vm1 = vmor %vm4111_vm15, %vm4112_vm14 }
 0x7ac   : > { %v4108_v3 = vsub.f32 1.0, %v4107_v35  ;;  %v4133_v40 = vsel %vm8249_vm13, %v5724_v23, %v4129_v26 }
 0x7ad   : > { %5731 = vrcp.f32 %v4144_v7  ;;  %v4074_v13 = vpop.f32.mrf.mxu3  ;;  %v4138_v21 = vsel %vm4135_vm0, %v4137_v47, %v4133_v40  ;;  %v4154_v54 = vand.u32 2147483647, %v4144_v7  ;;  %v4156_v44 = vand.u32 2147483648, %v4144_v7 }
 0x7ae   : > { %v4109_v36 = vmul.f32 %v5726_v0, %v4108_v3  ;;  %v5730_v1 = vpop.eup %5729  ;;  %v4160_v20 = vmul.f32 %v4138_v21, %v507_v56  ;;  %vm4150_vm5 = vweird.f32 %v4144_v7 }
 0x7af   : > { %v4157_v59 = vor.u32 1.1754944e-38, %v4156_v44  ;;  %vm4155_vm7 = vcmp.eq.f32.partialorder %v4154_v54, 8.507059e+37 }
 0x7b0   : > { %v4110_v37 = vadd.f32 %v5726_v0, %v4109_v36 }
 0x7b2   : > { %v4114_v14 = vsel %vm4113_vm1, %v5726_v0, %v4110_v37 }
 0x7b3   : > { %v5732_v11 = vpop.eup %5731  ;;  %v4119_v12 = vsel %vm4116_vm2, %v4118_v17, %v4114_v14 }
 0x7b4   : > { %v4146_v48 = vmul.f32 %v5732_v11, %v4144_v7  ;;  %v4161_v46 = vmul.f32 %v5730_v1, %v4119_v12  ;;  %vm4151_vm4 = vweird.f32 %v5732_v11 }
 0x7b5   : > { %vm4152_vm6 = vmor %vm4150_vm5, %vm4151_vm4 }
 0x7b6   : > { %v4147_v4 = vsub.f32 1.0, %v4146_v48  ;;  %v4162_v10 = vadd.f32 %v4161_v46, %v4160_v20 }
 0x7b8   : > { %v4148_v6 = vmul.f32 %v5732_v11, %v4147_v4  ;;  %5733 = vtanh.f32 %v4162_v10  ;;  %v4179_v19 = vsel %vm8257_vm3, %v4162_v10, %v507_v56 }
 0x7b9   : > { %4180 = vst [vmem:[#allocation3] sm:$0xff] %v4179_v19 }
 0x7ba   : > { %v4149_v8 = vadd.f32 %v5732_v11, %v4148_v6 }
 0x7bc   : > { %v4153_v30 = vsel %vm4152_vm6, %v5732_v11, %v4149_v8 }
 0x7bd   : > { %v4158_v31 = vsel %vm4155_vm7, %v4157_v59, %v4153_v30 }
 0x7be   : > { %v5734_v39 = vpop.eup %5733 }
 0x7bf   : > { %v4164_v63 = vmul.f32 %v5734_v39, %v4158_v31 }
 0x7c1   : > { %4165 = vst [vmem:[%s490_s12] sm:$0xff] %v4164_v63  ;;  %v4177_v34 = vsel %vm8257_vm3, %v4164_v63, %v5737_v45 }
 0x7c2   : > { %4178 = vst [vmem:[#allocation2] sm:$0xff] %v4177_v34 }
 0x7c3 PF: > { %s30_s23 = sadd.s32 1, %s5774_s23   ;;  %s8371_s21 = smov %s5770_s22 }
 0x7c4   : > { %p27_p6 = scmp.ge.s32.totalorder %s30_s23, 11   ;;  %s8372_s22 = smov %s8374_s0 }
 0x7c6   :  { %29 = sbr.rel (!%p27_p6) target bundleno = 8 (0x8), region = 114 }

// kernel: _forward_impl.1
= control target key start
LH: loop header
LB: loop body
LE: loop exit
PB: predicated region body
PF: predicated region fallthrough
CT: control target
= control target key end

     0   :  { %s5776_s20 = smov [#allocation5]   ;;  %s8279_s0 = inlined_call_operand.vmem [shape: s32[9], index: 0, kind: input, shape index: {}]   ;;  %s8280_s1 = inlined_call_operand.vmem [shape: bf16[8,128,128], index: 1, kind: input, shape index: {}]   ;;  %s8281_s2 = inlined_call_operand.vmem [shape: bf16[8,128,128], index: 2, kind: input, shape index: {}]   ;;  %s8282_s3 = inlined_call_operand.vmem [shape: f32[8,128], index: 3, kind: input, shape index: {}]   ;;  %s8283_s4 = inlined_call_operand.vmem [shape: f32[8,128], index: 4, kind: input, shape index: {}]   ;;  %s8284_s5 = inlined_call_operand.vmem [shape: f32[9,8,128], index: 5, kind: input, shape index: {}]   ;;  %s8285_s6 = inlined_call_operand.vmem [shape: bf16[128,768], index: 6, kind: input, shape index: {}]   ;;  %s8286_s7 = inlined_call_operand.vmem [shape: f32[1,768], index: 7, kind: input, shape index: {}]   ;;  %s8287_s8 = inlined_call_operand.vmem [shape: bf16[256,512], index: 8, kind: input, shape index: {}]   ;;  %s8288_s9 = inlined_call_operand.vmem [shape: f32[1,128], index: 9, kind: input, shape index: {}]   ;;  %s8289_s10 = inlined_call_operand.vmem [shape: f32[9,8,128], index: 10, kind: output, shape index: {0}]   ;;  %s8290_s11 = inlined_call_operand.vmem [shape: f32[9,8,128], index: 11, kind: output, shape index: {1}]  }
   0x1   :  { %s18_s19 = sshll.u32 %s8279_s0, 4  ;;  %s19_s19 = int_to_ptr.vmem [resolvable:$true] %s18_s19 }
   0x2   :  { %21 = dma.vmem_to_smem %s19_s19, 16, %s5776_s20, [#allocation4] }
   0x3   :  { %5762 = dma.done.wait [#allocation4], 16 }
   0x4   :  { %5763 = vsyncadd [#allocation4], 4294967280 }
   0x5   :  { %24 = sfence }
   0x6   :  { %s5840_s21 = smov 0   ;;  %s5842_s22 = smov 0  }
   0x7   :  { %s5844_s23 = smov 0  }
   0x8 LB: > { %s39_s0 = sadd.s32 1, %s5770_s22  ;;  %p4365_p0 = scmp.ge.s32.totalorder %s5774_s23, 1  ;;  %s5774_s23 = sphi %s5844_s23, %s30_s23   ;;  %s5770_s22 = sphi %s5842_s22, %s8372_s22   ;;  %s5766_s21 = sphi %s5840_s21, %s8371_s21  }
   0x9   : > { %p40_p1 = scmp.ge.s32.totalorder %s39_s0, 9  ;;  %p386_p2 = scmp.lt.s32.totalorder %s5774_s23, 10 }
   0xb   : > { %s8374_s0 = smov (%p40_p1, %s39_s0), 0  ;;  %p387_p3 = pnand %p4365_p0, %p386_p2 }
   0xd   : > { %390 = sbr.rel (%p387_p3) target bundleno = 1987 (0x7c3), region = 56 }
  0x12   : > { %p477_p4 = scmp.lt.s32.totalorder %s5766_s21, 8  ;;  %p4369_p5 = scmp.ne.s32.totalorder %s5766_s21, 0 }
  0x14   : > { %s478_s24 = scalar_select %p477_p4, %s5766_s21, 8 }
  0x15   : > { %501 = sbr.rel (%p4369_p5) target bundleno = 29 (0x1d), region = 60 }
  0x16   : > { %s5862_s25 = sshll.u32 %s478_s24, 3 }
  0x17   : > { %s483_s28 = scalar_lea.vmem %s8284_s5, %s5862_s25  ;;  %s490_s12 = scalar_lea.vmem %s8289_s10, %s5862_s25 }
  0x18   : > { %s497_s15 = scalar_lea.vmem %s8290_s11, %s5862_s25 }
  0x1a   : > { %v502_v0 = vld [vmem:[%s8282_s3] sm:$0xff] }
  0x1b   : > { %v504_v1 = vld [vmem:[%s8283_s4] sm:$0xff]  ;;  %503 = vst [vmem:[#allocation2] sm:$0xff] %v502_v0 }
  0x1c   : > { %505 = vst [vmem:[#allocation3] sm:$0xff] %v504_v1 }
  0x1d PF: > { %v4540_v2 = vld [vmem:[%s8285_s6 + $0x150] sm:$0xf]  ;;  %v4869_v3 = vld [vmem:[%s8285_s6 + $0x164] sm:$0xf0]  ;;  %v4516_v4 = vld [vmem:[%s8285_s6 + $0x120] sm:$0xf] }
  0x1e   : > { %v4541_v5 = vor.u32 %v4869_v3, %v4540_v2  ;;  %v4863_v6 = vld [vmem:[%s8285_s6 + $0x134] sm:$0xf0]  ;;  %v4492_v8 = vld [vmem:[%s8285_s6 + $0xf0] sm:$0xf]  ;;  %v4857_v9 = vld [vmem:[%s8285_s6 + $0x104] sm:$0xf0] }
  0x1f   : > { %v4517_v7 = vor.u32 %v4863_v6, %v4516_v4  ;;  %v4493_v10 = vor.u32 %v4857_v9, %v4492_v8  ;;  %v4468_v11 = vld [vmem:[%s8285_s6 + $0xc0] sm:$0xf]  ;;  %v4851_v12 = vld [vmem:[%s8285_s6 + $0xd4] sm:$0xf0]  ;;  %v4444_v14 = vld [vmem:[%s8285_s6 + $0x90] sm:$0xf] }
  0x20   : > { %811 = vmatpush.bf16.msra.mxu0 %v4541_v5  ;;  %v4469_v13 = vor.u32 %v4851_v12, %v4468_v11  ;;  %v4845_v15 = vld [vmem:[%s8285_s6 + $0xa4] sm:$0xf0]  ;;  %v4420_v17 = vld [vmem:[%s8285_s6 + $0x60] sm:$0xf]  ;;  %v4839_v18 = vld [vmem:[%s8285_s6 + $0x74] sm:$0xf0] }
  0x21   : > { %v4445_v16 = vor.u32 %v4845_v15, %v4444_v14  ;;  %v4421_v19 = vor.u32 %v4839_v18, %v4420_v17  ;;  %v4396_v20 = vld [vmem:[%s8285_s6 + $0x30] sm:$0xf]  ;;  %v4833_v21 = vld [vmem:[%s8285_s6 + $0x44] sm:$0xf0]  ;;  %v4372_v23 = vld [vmem:[%s8285_s6] sm:$0xf] }
  0x22   : > { %v4397_v22 = vor.u32 %v4833_v21, %v4396_v20  ;;  %v4827_v24 = vld [vmem:[%s8285_s6 + $0x14] sm:$0xf0]  ;;  %v506_v26 = vld [vmem:[#allocation2] sm:$0xff]  ;;  %v5449_v30 = vld [vmem:[%s8280_s1 + $0x10] sm:$0xff]   ;;  %vm1966_vm0 = vcmask 130112   ;;  %vm1970_vm1 = vcmask 195712  }
  0x23   : > { %v4373_v25 = vor.u32 %v4827_v24, %v4372_v23  ;;  %v5931_v27 = vpack.c.bf16 %v506_v26, %v506_v26  ;;  %v557_v28 = vld [vmem:[%s8286_s7] sm:$0x3f]  ;;  %v5448_v32 = vld [vmem:[%s8280_s1 + $0x8] sm:$0xff]   ;;  %v4946_v35 = vunpack.c.l.bf16 %v5449_v30  ;;  %v4947_v41 = vunpack.c.h.bf16 %v5449_v30  ;;  %v5450_v57 = vld [vmem:[%s8280_s1 + $0x18] sm:$0xff]   ;;  %s8247_s26 = sld [smem:[#allocation5 + %s5766_s21]] }
  0x24   : > { %812 = vmatpush.bf16.msra.mxu0 %v4517_v7  ;;  %v559_v29 = vperm.slane %v557_v28, 0  ;;  %v4937_v33 = vld [vmem:[%s8280_s1] sm:$0xff]   ;;  %v4942_v36 = vunpack.c.l.bf16 %v5448_v32  ;;  %v4943_v44 = vunpack.c.h.bf16 %v5448_v32  ;;  %v4951_v62 = vunpack.c.h.bf16 %v5450_v57  ;;  %v5452_v6 = vld [vmem:[%s8280_s1 + $0x28] sm:$0xff]   ;;  %v5453_v20 = vld [vmem:[%s8280_s1 + $0x30] sm:$0xff]  }
  0x25   : > { %8301 = vst [vmem:[#allocation7_spill] sm:$0xff] %v5931_v27  ;;  %v4938_v37 = vunpack.c.l.bf16 %v4937_v33  ;;  %v5955_v40 = vld [vmem:[%s8288_s9] ss:$0 sm:$0xff]  ;;  %v4939_v45 = vunpack.c.h.bf16 %v4937_v33  ;;  %v4950_v63 = vunpack.c.l.bf16 %v5450_v57  ;;  %v4959_v8 = vunpack.c.h.bf16 %v5452_v6 }
  0x26   : > { %v5451_v56 = vld [vmem:[%s8280_s1 + $0x20] sm:$0xff]   ;;  %v4958_v11 = vunpack.c.l.bf16 %v5452_v6  ;;  %v4962_v26 = vunpack.c.l.bf16 %v5453_v20  ;;  %vm1974_vm2 = vcmask 261312   ;;  %vm1978_vm3 = vcmask 326912  }
  0x27   : > { %v4954_v59 = vunpack.c.l.bf16 %v5451_v56  ;;  %v4955_v12 = vunpack.c.h.bf16 %v5451_v56  ;;  %vm1982_vm4 = vcmask 392512   ;;  %vm1986_vm5 = vcmask 458112  }
  0x28   : > { %813 = vmatpush.bf16.msra.mxu0 %v4493_v10  ;;  %vm1990_vm6 = vcmask 523712   ;;  %vm1994_vm7 = vcmask 589312   ;;  %vm8297_vm8 = vcmask 654912   ;;  %vm8296_vm9 = vcmask 720512  }
  0x29   : > { %vm8298_vm10 = vcmask 786112   ;;  %vm2010_vm11 = vcmask 851712   ;;  %vm2014_vm12 = vcmask 917312   ;;  %vm2018_vm13 = vcmask 982912  }
  0x2a   : > { %vm2022_vm14 = vcmask 1048512   ;;  %vm2241_vm15 = vcmask 1041409  }
  0x2c   : > { %814 = vmatpush.bf16.msra.mxu0 %v4469_v13 }
  0x30   : > { %815 = vmatpush.bf16.msra.mxu0 %v4445_v16 }
  0x34   : > { %816 = vmatpush.bf16.msra.mxu0 %v4421_v19  ;;  %v5454_v19 = vld [vmem:[%s8280_s1 + $0x38] sm:$0xff]  }
  0x38   : > { %817 = vmatpush.bf16.msra.mxu0 %v4397_v22  ;;  %v4966_v22 = vunpack.c.l.bf16 %v5454_v19 }
  0x3c   : > { %818 = vmatpush.bf16.msra.mxu0 %v4373_v25  ;;  %v4963_v25 = vunpack.c.h.bf16 %v5453_v20 }
  0x3f   : > { %819 = vmatmul.bf16.vlgmr.msra.gmra.mxu0 %v5931_v27 }
  0xbc   : > { %v820_v31 = vpop.f32.mrf.mxu0 }
  0xbd   : > { %v5946_v34 = vadd.f32 %v820_v31, %v559_v29 }
  0xbf   : > { %v5949_v38 = vperm.slane %v5946_v34, 0  ;;  %v1165_v28 = vrot.slane %v5946_v34, 1 }
  0xc1   : > { %v1192_v39 = vadd.f32 %v4946_v35, %v5949_v38  ;;  %v1190_v42 = vadd.f32 %v4942_v36, %v5949_v38  ;;  %v1188_v43 = vadd.f32 %v4938_v37, %v5949_v38  ;;  %v1193_v51 = vadd.f32 %v4947_v41, %v5949_v38  ;;  %v5455_v36 = vld [vmem:[%s8280_s1 + $0x40] sm:$0xff]  }
  0xc2   : > { %v1191_v54 = vadd.f32 %v4943_v44, %v5949_v38  ;;  %v1189_v55 = vadd.f32 %v4939_v45, %v5949_v38  ;;  %v1196_v1 = vadd.f32 %v4954_v59, %v5949_v38  ;;  %v1195_v4 = vadd.f32 %v4951_v62, %v5949_v38 }
  0xc3   : > { %v1320_v47 = vmax.f32 %v1192_v39, 0.0  ;;  %v1318_v48 = vmax.f32 %v1190_v42, 0.0  ;;  %v1316_v49 = vmax.f32 %v1188_v43, 0.0  ;;  %v1321_v58 = vmax.f32 %v1193_v51, 0.0 }
  0xc4   : > { %v822_v46 = vpop.f32.mrf.mxu0  ;;  %v1319_v60 = vmax.f32 %v1191_v54, 0.0  ;;  %v1317_v61 = vmax.f32 %v1189_v55, 0.0  ;;  %v1194_v5 = vadd.f32 %v4950_v63, %v5949_v38  ;;  %v1324_v7 = vmax.f32 %v1196_v1, 0.0  ;;  %v5458_v1 = vld [vmem:[%s8280_s1 + $0x58] sm:$0xff]  }
  0xc5   : > { %v1452_v50 = vmul.f32 %v5955_v40, %v1320_v47  ;;  %v1450_v52 = vmul.f32 %v5955_v40, %v1318_v48  ;;  %v1448_v53 = vmul.f32 %v5955_v40, %v1316_v49  ;;  %v1453_v0 = vmul.f32 %v5955_v40, %v1321_v58 }
  0xc6   : > { %v1451_v2 = vmul.f32 %v5955_v40, %v1319_v60  ;;  %v1449_v3 = vmul.f32 %v5955_v40, %v1317_v61  ;;  %v1323_v9 = vmax.f32 %v1195_v4, 0.0  ;;  %v1322_v10 = vmax.f32 %v1194_v5, 0.0 }
  0xc7   : > { %1584 = vadd.xlane.f32.xlu2 %v1452_v50  ;;  %1580 = vadd.xlane.f32.xlu1 %v1450_v52  ;;  %v1456_v13 = vmul.f32 %v5955_v40, %v1324_v7  ;;  %v1199_v14 = vadd.f32 %v4959_v8, %v5949_v38  ;;  %v1198_v17 = vadd.f32 %v4958_v11, %v5949_v38  ;;  %v6002_v37 = vperm.slane %v1165_v28, 0  ;;  %v5457_v52 = vld [vmem:[%s8280_s1 + $0x50] sm:$0xff]  }
  0xc8   : > { %1576 = vadd.xlane.f32.xlu0 %v1448_v53  ;;  %v1455_v15 = vmul.f32 %v5955_v40, %v1323_v9  ;;  %v1454_v16 = vmul.f32 %v5955_v40, %v1322_v10  ;;  %v1197_v18 = vadd.f32 %v4955_v12, %v5949_v38  ;;  %v1202_v30 = vadd.f32 %v4966_v22, %v5949_v38  ;;  %v5456_v53 = vld [vmem:[%s8280_s1 + $0x48] sm:$0xff]  }
  0xc9   : > { %v1327_v21 = vmax.f32 %v1199_v14, 0.0  ;;  %v1326_v23 = vmax.f32 %v1198_v17, 0.0  ;;  %v1201_v33 = vadd.f32 %v4963_v25, %v5949_v38  ;;  %v1200_v35 = vadd.f32 %v4962_v26, %v5949_v38  ;;  %v5460_v14 = vld [vmem:[%s8280_s1 + $0x68] sm:$0xff]  }
  0xca   : > { %v1325_v24 = vmax.f32 %v1197_v18, 0.0  ;;  %v1330_v39 = vmax.f32 %v1202_v30, 0.0  ;;  %v4971_v41 = vunpack.c.h.bf16 %v5455_v36  ;;  %v4967_v44 = vunpack.c.h.bf16 %v5454_v19 }
  0xcb   : > { %v1459_v29 = vmul.f32 %v5955_v40, %v1327_v21  ;;  %v1458_v31 = vmul.f32 %v5955_v40, %v1326_v23  ;;  %v1329_v42 = vmax.f32 %v1201_v33, 0.0  ;;  %v1328_v43 = vmax.f32 %v1200_v35, 0.0 }
  0xcc   : > { %v1457_v32 = vmul.f32 %v5955_v40, %v1325_v24  ;;  %v4970_v45 = vunpack.c.l.bf16 %v5455_v36  ;;  %v1462_v46 = vmul.f32 %v5955_v40, %v1330_v39  ;;  %v1205_v47 = vadd.f32 %v4971_v41, %v6002_v37 }
  0xcd   : > { %v1461_v48 = vmul.f32 %v5955_v40, %v1329_v42  ;;  %v1460_v49 = vmul.f32 %v5955_v40, %v1328_v43  ;;  %v1203_v50 = vadd.f32 %v4967_v44, %v5949_v38  ;;  %v4978_v55 = vunpack.c.l.bf16 %v5457_v52 }
  0xce   : > { %v1204_v51 = vadd.f32 %v4970_v45, %v6002_v37  ;;  %v1333_v54 = vmax.f32 %v1205_v47, 0.0  ;;  %v4974_v58 = vunpack.c.l.bf16 %v5456_v53  ;;  %v4975_v59 = vunpack.c.h.bf16 %v5456_v53  ;;  %v5463_v47 = vld [vmem:[%s8280_s1 + $0x80] sm:$0xff]  }
  0xcf   : > { %1586 = vadd.xlane.f32.xlu2 %v1453_v0  ;;  %1582 = vadd.xlane.f32.xlu1 %v1451_v2  ;;  %v1331_v56 = vmax.f32 %v1203_v50, 0.0  ;;  %v1208_v60 = vadd.f32 %v4978_v55, %v6002_v37  ;;  %v4979_v6 = vunpack.c.h.bf16 %v5457_v52  ;;  %v4982_v7 = vunpack.c.l.bf16 %v5458_v1 }
  0xd0   : > { %1578 = vadd.xlane.f32.xlu0 %v1449_v3  ;;  %v1332_v57 = vmax.f32 %v1204_v51, 0.0  ;;  %v1465_v38 = vmul.f32 %v5955_v40, %v1333_v54  ;;  %v1206_v63 = vadd.f32 %v4974_v58, %v6002_v37  ;;  %v1207_v0 = vadd.f32 %v4975_v59, %v6002_v37 }
  0xd1   : > { %v1463_v61 = vmul.f32 %v5955_v40, %v1331_v56  ;;  %v1336_v2 = vmax.f32 %v1208_v60, 0.0  ;;  %v4983_v3 = vunpack.c.h.bf16 %v5458_v1  ;;  %v1209_v12 = vadd.f32 %v4979_v6, %v6002_v37 }
  0xd2   : > { %v1464_v62 = vmul.f32 %v5955_v40, %v1332_v57  ;;  %v1334_v4 = vmax.f32 %v1206_v63, 0.0  ;;  %v1335_v5 = vmax.f32 %v1207_v0, 0.0  ;;  %v4990_v17 = vunpack.c.l.bf16 %v5460_v14 }
  0xd3   : > { %v1468_v8 = vmul.f32 %v5955_v40, %v1336_v2  ;;  %v1211_v9 = vadd.f32 %v4983_v3, %v6002_v37  ;;  %v1337_v18 = vmax.f32 %v1209_v12, 0.0  ;;  %v4991_v35 = vunpack.c.h.bf16 %v5460_v14 }
  0xd4   : > { %v1466_v10 = vmul.f32 %v5955_v40, %v1334_v4  ;;  %v1467_v11 = vmul.f32 %v5955_v40, %v1335_v5  ;;  %v1214_v23 = vadd.f32 %v4990_v17, %v6002_v37  ;;  %v1166_v39 = vrot.slane %v5946_v34, 2 }
  0xd5   : > { %v1469_v24 = vmul.f32 %v5955_v40, %v1337_v18  ;;  %v1215_v45 = vadd.f32 %v4991_v35, %v6002_v37  ;;  %v5002_v51 = vunpack.c.l.bf16 %v5463_v47  ;;  %v5003_v2 = vunpack.c.h.bf16 %v5463_v47 }
  0xd6   : > { %v1342_v30 = vmax.f32 %v1214_v23, 0.0  ;;  %v5467_v23 = vld [vmem:[%s8280_s1 + $0xa0] sm:$0xff]  }
  0xd7   : > { %1592 = vadd.xlane.f32.xlu2 %v1456_v13  ;;  %1590 = vadd.xlane.f32.xlu1 %v1455_v15  ;;  %v1210_v13 = vadd.f32 %v4982_v7, %v6002_v37  ;;  %v5459_v15 = vld [vmem:[%s8280_s1 + $0x60] sm:$0xff]   ;;  %v1343_v52 = vmax.f32 %v1215_v45, 0.0 }
  0xd8   : > { %1588 = vadd.xlane.f32.xlu0 %v1454_v16  ;;  %v1339_v16 = vmax.f32 %v1211_v9, 0.0  ;;  %v4986_v20 = vunpack.c.l.bf16 %v5459_v15  ;;  %v4987_v21 = vunpack.c.h.bf16 %v5459_v15  ;;  %v1474_v41 = vmul.f32 %v5955_v40, %v1342_v30  ;;  %v5466_v9 = vld [vmem:[%s8280_s1 + $0x98] sm:$0xff]  }
  0xd9   : > { %v1338_v19 = vmax.f32 %v1210_v13, 0.0  ;;  %v1475_v58 = vmul.f32 %v5955_v40, %v1343_v52  ;;  %v5014_v12 = vunpack.c.l.bf16 %v5466_v9  ;;  %v5018_v30 = vunpack.c.l.bf16 %v5467_v23 }
  0xda   : > { %v1471_v22 = vmul.f32 %v5955_v40, %v1339_v16  ;;  %v1212_v26 = vadd.f32 %v4986_v20, %v6002_v37  ;;  %v1213_v28 = vadd.f32 %v4987_v21, %v6002_v37 }
  0xdb   : > { %v1470_v25 = vmul.f32 %v5955_v40, %v1338_v19 }
  0xdc   : > { %v1341_v33 = vmax.f32 %v1213_v28, 0.0 }
  0xde   : > { %v1473_v44 = vmul.f32 %v5955_v40, %v1341_v33 }
  0xdf   : > { %1598 = vadd.xlane.f32.xlu2 %v1459_v29  ;;  %1596 = vadd.xlane.f32.xlu1 %v1458_v31  ;;  %v5461_v29 = vld [vmem:[%s8280_s1 + $0x70] sm:$0xff]  }
  0xe0   : > { %1594 = vadd.xlane.f32.xlu0 %v1457_v32  ;;  %v4995_v31 = vunpack.c.h.bf16 %v5461_v29  ;;  %v1340_v32 = vmax.f32 %v1212_v26, 0.0  ;;  %v4994_v36 = vunpack.c.l.bf16 %v5461_v29  ;;  %v5015_v29 = vunpack.c.h.bf16 %v5466_v9 }
  0xe2   : > { %v1217_v42 = vadd.f32 %v4995_v31, %v6002_v37  ;;  %v1472_v43 = vmul.f32 %v5955_v40, %v1340_v32 }
  0xe4   : > { %v1345_v50 = vmax.f32 %v1217_v42, 0.0  ;;  %v5468_v42 = vld [vmem:[%s8280_s1 + $0xa8] sm:$0xff]  }
  0xe5   : > { %v5022_v47 = vunpack.c.l.bf16 %v5468_v42 }
  0xe6   : > { %v1477_v56 = vmul.f32 %v5955_v40, %v1345_v50 }
  0xe7   : > { %1604 = vadd.xlane.f32.xlu2 %v1462_v46  ;;  %1602 = vadd.xlane.f32.xlu1 %v1461_v48  ;;  %v1216_v46 = vadd.f32 %v4994_v36, %v6002_v37  ;;  %v5462_v48 = vld [vmem:[%s8280_s1 + $0x78] sm:$0xff]  }
  0xe8   : > { %1600 = vadd.xlane.f32.xlu0 %v1460_v49  ;;  %v6059_v49 = vperm.slane %v1166_v39, 0  ;;  %v4998_v54 = vunpack.c.l.bf16 %v5462_v48  ;;  %v4999_v55 = vunpack.c.h.bf16 %v5462_v48  ;;  %v5023_v48 = vunpack.c.h.bf16 %v5468_v42  ;;  %v5475_v42 = vld [vmem:[%s8280_s1 + $0xe0] sm:$0xff]  }
  0xe9   : > { %v1344_v53 = vmax.f32 %v1216_v46, 0.0 }
  0xea   : > { %v1220_v57 = vadd.f32 %v5002_v51, %v6059_v49  ;;  %v1219_v60 = vadd.f32 %v4999_v55, %v6002_v37  ;;  %v1221_v7 = vadd.f32 %v5003_v2, %v6059_v49  ;;  %v1226_v18 = vadd.f32 %v5014_v12, %v6059_v49 }
  0xeb   : > { %v1476_v59 = vmul.f32 %v5955_v40, %v1344_v53  ;;  %v1227_v36 = vadd.f32 %v5015_v29, %v6059_v49  ;;  %v1228_v39 = vadd.f32 %v5018_v30, %v6059_v49  ;;  %v1231_v55 = vadd.f32 %v5023_v48, %v6059_v49 }
  0xec   : > { %v1347_v1 = vmax.f32 %v1219_v60, 0.0  ;;  %v1349_v13 = vmax.f32 %v1221_v7, 0.0 }
  0xed   : > { %v1355_v45 = vmax.f32 %v1227_v36, 0.0  ;;  %v1356_v46 = vmax.f32 %v1228_v39, 0.0 }
  0xee   : > { %v1481_v19 = vmul.f32 %v5955_v40, %v1349_v13 }
  0xef   : > { %1610 = vadd.xlane.f32.xlu2 %v1465_v38  ;;  %1608 = vadd.xlane.f32.xlu1 %v1464_v62  ;;  %v1218_v38 = vadd.f32 %v4998_v54, %v6002_v37  ;;  %v1348_v62 = vmax.f32 %v1220_v57, 0.0  ;;  %v1479_v37 = vmul.f32 %v5955_v40, %v1347_v1  ;;  %v1487_v52 = vmul.f32 %v5955_v40, %v1355_v45 }
  0xf0   : > { %1606 = vadd.xlane.f32.xlu0 %v1463_v61  ;;  %v5464_v61 = vld [vmem:[%s8280_s1 + $0x88] sm:$0xff]   ;;  %v1488_v53 = vmul.f32 %v5955_v40, %v1356_v46  ;;  %v1230_v54 = vadd.f32 %v5022_v47, %v6059_v49  ;;  %v5050_v45 = vunpack.c.l.bf16 %v5475_v42 }
  0xf1   : > { %v5007_v63 = vunpack.c.h.bf16 %v5464_v61  ;;  %v1346_v0 = vmax.f32 %v1218_v38, 0.0  ;;  %v5006_v3 = vunpack.c.l.bf16 %v5464_v61  ;;  %v1480_v4 = vmul.f32 %v5955_v40, %v1348_v62 }
  0xf2   : > { %v1359_v38 = vmax.f32 %v1231_v55, 0.0  ;;  %v1167_v62 = vrot.slane %v5946_v34, 3 }
  0xf3   : > { %v1223_v5 = vadd.f32 %v5007_v63, %v6059_v49  ;;  %v1478_v6 = vmul.f32 %v5955_v40, %v1346_v0 }
  0xf4   : > { %v1491_v2 = vmul.f32 %v5955_v40, %v1359_v38  ;;  %v5476_v38 = vld [vmem:[%s8280_s1 + $0xe8] sm:$0xff]  }
  0xf7   : > { %1616 = vadd.xlane.f32.xlu2 %v1468_v8  ;;  %1614 = vadd.xlane.f32.xlu1 %v1467_v11  ;;  %v1222_v8 = vadd.f32 %v5006_v3, %v6059_v49  ;;  %v1351_v11 = vmax.f32 %v1223_v5, 0.0  ;;  %v5472_v5 = vld [vmem:[%s8280_s1 + $0xc8] sm:$0xff]  }
  0xf8   : > { %1612 = vadd.xlane.f32.xlu0 %v1466_v10  ;;  %v5465_v10 = vld [vmem:[%s8280_s1 + $0x90] sm:$0xff]  }
  0xf9   : > { %v1350_v14 = vmax.f32 %v1222_v8, 0.0  ;;  %v5010_v15 = vunpack.c.l.bf16 %v5465_v10  ;;  %v5011_v16 = vunpack.c.h.bf16 %v5465_v10  ;;  %v1483_v17 = vmul.f32 %v5955_v40, %v1351_v11 }
  0xfa   : > { %v5038_v8 = vunpack.c.l.bf16 %v5472_v5 }
  0xfb   : > { %v1482_v20 = vmul.f32 %v5955_v40, %v1350_v14  ;;  %v1224_v21 = vadd.f32 %v5010_v15, %v6059_v49 }
  0xfd   : > { %v1352_v26 = vmax.f32 %v1224_v21, 0.0  ;;  %v5473_v21 = vld [vmem:[%s8280_s1 + $0xd0] sm:$0xff]  }
  0xfe   : > { %v5042_v29 = vunpack.c.l.bf16 %v5473_v21 }
  0xff   : > { %1622 = vadd.xlane.f32.xlu2 %v1471_v22  ;;  %1620 = vadd.xlane.f32.xlu1 %v1470_v25  ;;  %v1225_v22 = vadd.f32 %v5011_v16, %v6059_v49  ;;  %v5019_v25 = vunpack.c.h.bf16 %v5467_v23  ;;  %v1484_v33 = vmul.f32 %v5955_v40, %v1352_v26  ;;  %v5043_v23 = vunpack.c.h.bf16 %v5473_v21 }
 0x100   : > { %1618 = vadd.xlane.f32.xlu0 %v1469_v24  ;;  %v1354_v24 = vmax.f32 %v1226_v18, 0.0 }
 0x101   : > { %v1353_v28 = vmax.f32 %v1225_v22, 0.0  ;;  %v1229_v32 = vadd.f32 %v5019_v25, %v6059_v49 }
 0x102   : > { %v1486_v31 = vmul.f32 %v5955_v40, %v1354_v24 }
 0x103   : > { %v1485_v35 = vmul.f32 %v5955_v40, %v1353_v28  ;;  %v5039_v28 = vunpack.c.h.bf16 %v5472_v5 }
 0x107   : > { %1628 = vadd.xlane.f32.xlu2 %v1474_v41  ;;  %1626 = vadd.xlane.f32.xlu1 %v1473_v44  ;;  %v5469_v41 = vld [vmem:[%s8280_s1 + $0xb0] sm:$0xff]  }
 0x108   : > { %1624 = vadd.xlane.f32.xlu0 %v1472_v43  ;;  %v1357_v43 = vmax.f32 %v1229_v32, 0.0  ;;  %v5026_v44 = vunpack.c.l.bf16 %v5469_v41  ;;  %v5027_v60 = vunpack.c.h.bf16 %v5469_v41 }
 0x10a   : > { %v1489_v50 = vmul.f32 %v5955_v40, %v1357_v43  ;;  %v1232_v51 = vadd.f32 %v5026_v44, %v6059_v49  ;;  %v1233_v3 = vadd.f32 %v5027_v60, %v6059_v49  ;;  %v5474_v43 = vld [vmem:[%s8280_s1 + $0xd8] sm:$0xff]  }
 0x10c   : > { %v1360_v57 = vmax.f32 %v1232_v51, 0.0  ;;  %v1361_v10 = vmax.f32 %v1233_v3, 0.0  ;;  %v5047_v51 = vunpack.c.h.bf16 %v5474_v43 }
 0x10e   : > { %v1492_v63 = vmul.f32 %v5955_v40, %v1360_v57 }
 0x10f   : > { %1634 = vadd.xlane.f32.xlu2 %v1477_v56  ;;  %1632 = vadd.xlane.f32.xlu1 %v1476_v59  ;;  %v5470_v56 = vld [vmem:[%s8280_s1 + $0xb8] sm:$0xff]   ;;  %v1358_v59 = vmax.f32 %v1230_v54, 0.0 }
 0x110   : > { %1630 = vadd.xlane.f32.xlu0 %v1475_v58  ;;  %v5031_v58 = vunpack.c.h.bf16 %v5470_v56  ;;  %v5030_v61 = vunpack.c.l.bf16 %v5470_v56 }
 0x111   : > { %v1490_v1 = vmul.f32 %v5955_v40, %v1358_v59 }
 0x112   : > { %v1235_v0 = vadd.f32 %v5031_v58, %v6059_v49 }
 0x114   : > { %v1363_v7 = vmax.f32 %v1235_v0, 0.0 }
 0x116   : > { %v1495_v15 = vmul.f32 %v5955_v40, %v1363_v7 }
 0x117   : > { %1640 = vadd.xlane.f32.xlu2 %v1480_v4  ;;  %1638 = vadd.xlane.f32.xlu1 %v1479_v37  ;;  %v1234_v4 = vadd.f32 %v5030_v61, %v6059_v49  ;;  %v6125_v37 = vperm.slane %v1167_v62, 0  ;;  %v5055_v61 = vunpack.c.h.bf16 %v5476_v38 }
 0x118   : > { %1636 = vadd.xlane.f32.xlu0 %v1478_v6  ;;  %v5471_v6 = vld [vmem:[%s8280_s1 + $0xc0] sm:$0xff]  }
 0x119   : > { %v1362_v11 = vmax.f32 %v1234_v4, 0.0  ;;  %v5034_v49 = vunpack.c.l.bf16 %v5471_v6  ;;  %v5035_v12 = vunpack.c.h.bf16 %v5471_v6  ;;  %v1238_v16 = vadd.f32 %v5038_v8, %v6125_v37 }
 0x11a   : > { %v1239_v39 = vadd.f32 %v5039_v28, %v6125_v37  ;;  %v1240_v41 = vadd.f32 %v5042_v29, %v6125_v37  ;;  %v1244_v55 = vadd.f32 %v5050_v45, %v6125_v37  ;;  %v1243_v59 = vadd.f32 %v5047_v51, %v6125_v37 }
 0x11b   : > { %v1494_v18 = vmul.f32 %v5955_v40, %v1362_v11  ;;  %v1366_v22 = vmax.f32 %v1238_v16, 0.0  ;;  %v1247_v6 = vadd.f32 %v5055_v61, %v6125_v37 }
 0x11c   : > { %v1367_v47 = vmax.f32 %v1239_v39, 0.0  ;;  %v1368_v48 = vmax.f32 %v1240_v41, 0.0  ;;  %v1372_v60 = vmax.f32 %v1244_v55, 0.0  ;;  %v1371_v0 = vmax.f32 %v1243_v59, 0.0 }
 0x11d   : > { %v1498_v32 = vmul.f32 %v5955_v40, %v1366_v22 }
 0x11e   : > { %v1499_v56 = vmul.f32 %v5955_v40, %v1367_v47  ;;  %v1500_v57 = vmul.f32 %v5955_v40, %v1368_v48  ;;  %v1504_v5 = vmul.f32 %v5955_v40, %v1372_v60  ;;  %v1503_v8 = vmul.f32 %v5955_v40, %v1371_v0  ;;  %v5480_v60 = vld [vmem:[%s8280_s1 + $0x108] sm:$0xff]  }
 0x11f   : > { %1646 = vadd.xlane.f32.xlu2 %v1483_v17  ;;  %1644 = vadd.xlane.f32.xlu1 %v1482_v20  ;;  %v1493_v17 = vmul.f32 %v5955_v40, %v1361_v10  ;;  %v1237_v20 = vadd.f32 %v5035_v12, %v6125_v37  ;;  %v5477_v12 = vld [vmem:[%s8280_s1 + $0xf0] sm:$0xff]  }
 0x120   : > { %1642 = vadd.xlane.f32.xlu0 %v1481_v19  ;;  %v1236_v19 = vadd.f32 %v5034_v49, %v6125_v37  ;;  %v5478_v49 = vld [vmem:[%s8280_s1 + $0xf8] sm:$0xff]   ;;  %v5059_v21 = vunpack.c.h.bf16 %v5477_v12 }
 0x121   : > { %v1365_v26 = vmax.f32 %v1237_v20, 0.0  ;;  %v5062_v16 = vunpack.c.l.bf16 %v5478_v49  ;;  %v5058_v20 = vunpack.c.l.bf16 %v5477_v12  ;;  %v5063_v47 = vunpack.c.h.bf16 %v5478_v49 }
 0x122   : > { %v1364_v25 = vmax.f32 %v1236_v19, 0.0 }
 0x123   : > { %v1497_v36 = vmul.f32 %v5955_v40, %v1365_v26  ;;  %v1250_v28 = vadd.f32 %v5062_v16, %v6125_v37  ;;  %v5482_v16 = vld [vmem:[%s8280_s1 + $0x118] sm:$0xff]  }
 0x125   : > { %v1378_v41 = vmax.f32 %v1250_v28, 0.0  ;;  %v5078_v28 = vunpack.c.l.bf16 %v5482_v16 }
 0x127   : > { %1652 = vadd.xlane.f32.xlu2 %v1486_v31  ;;  %1650 = vadd.xlane.f32.xlu1 %v1485_v35  ;;  %v1496_v35 = vmul.f32 %v5955_v40, %v1364_v25  ;;  %v1168_v25 = vrot.slane %v5946_v34, 4 }
 0x128   : > { %1648 = vadd.xlane.f32.xlu0 %v1484_v33  ;;  %v1241_v33 = vadd.f32 %v5043_v23, %v6125_v37 }
 0x129   : > { %v6209_v39 = vperm.slane %v1168_v25, 0 }
 0x12a   : > { %v1369_v44 = vmax.f32 %v1241_v33, 0.0  ;;  %v1248_v33 = vadd.f32 %v5058_v20, %v6125_v37 }
 0x12c   : > { %v1501_v54 = vmul.f32 %v5955_v40, %v1369_v44  ;;  %v1376_v44 = vmax.f32 %v1248_v33, 0.0 }
 0x12f   : > { %1658 = vadd.xlane.f32.xlu2 %v1489_v50  ;;  %1656 = vadd.xlane.f32.xlu1 %v1488_v53  ;;  %v5046_v50 = vunpack.c.l.bf16 %v5474_v43 }
 0x130   : > { %1654 = vadd.xlane.f32.xlu0 %v1487_v52 }
 0x131   : > { %v1242_v58 = vadd.f32 %v5046_v50, %v6125_v37 }
 0x137   : > { %1664 = vadd.xlane.f32.xlu2 %v1492_v63  ;;  %1662 = vadd.xlane.f32.xlu1 %v1491_v2  ;;  %v1370_v63 = vmax.f32 %v1242_v58, 0.0  ;;  %v5054_v2 = vunpack.c.l.bf16 %v5476_v38  ;;  %v1251_v58 = vadd.f32 %v5063_v47, %v6125_v37  ;;  %v5481_v38 = vld [vmem:[%s8280_s1 + $0x110] sm:$0xff]   ;;  %v5483_v47 = vld [vmem:[%s8280_s1 + $0x120] sm:$0xff]  }
 0x138   : > { %1660 = vadd.xlane.f32.xlu0 %v1490_v1  ;;  %v5051_v1 = vunpack.c.h.bf16 %v5475_v42 }
 0x139   : > { %v1502_v7 = vmul.f32 %v5955_v40, %v1370_v63  ;;  %v1246_v11 = vadd.f32 %v5054_v2, %v6125_v37  ;;  %v5074_v63 = vunpack.c.l.bf16 %v5481_v38 }
 0x13a   : > { %v6127_v9 = vpop.xlane.xlu2 %1584  ;;  %v6129_v13 = vpop.xlane.xlu1 %1580  ;;  %v1245_v10 = vadd.f32 %v5051_v1, %v6125_v37  ;;  %v1379_v1 = vmax.f32 %v1251_v58, 0.0  ;;  %v5082_v58 = vunpack.c.l.bf16 %v5483_v47 }
 0x13b   : > { %v6131_v14 = vpop.xlane.xlu0 %1576  ;;  %v1374_v19 = vmax.f32 %v1246_v11, 0.0 }
 0x13c   : > { %v1511_v11 = vmul.f32 %v5955_v40, %v1379_v1 }
 0x13f   : > { %1670 = vadd.xlane.f32.xlu2 %v1495_v15  ;;  %1668 = vadd.xlane.f32.xlu1 %v1494_v18  ;;  %v1375_v15 = vmax.f32 %v1247_v6, 0.0  ;;  %v1373_v18 = vmax.f32 %v1245_v10, 0.0  ;;  %v1256_v10 = vadd.f32 %v5074_v63, %v6209_v39 }
 0x140   : > { %1666 = vadd.xlane.f32.xlu0 %v1493_v17 }
 0x141   : > { %v1507_v26 = vmul.f32 %v5955_v40, %v1375_v15  ;;  %v1505_v29 = vmul.f32 %v5955_v40, %v1373_v18  ;;  %v1384_v18 = vmax.f32 %v1256_v10, 0.0 }
 0x142   : > { %v6142_v24 = vpop.xlane.xlu2 %1586  ;;  %v6144_v30 = vpop.xlane.xlu1 %1582 }
 0x143   : > { %v6146_v31 = vpop.xlane.xlu0 %1578  ;;  %v1516_v33 = vmul.f32 %v5955_v40, %v1384_v18 }
 0x147   : > { %1676 = vadd.xlane.f32.xlu2 %v1498_v32  ;;  %1674 = vadd.xlane.f32.xlu1 %v1497_v36  ;;  %v1506_v32 = vmul.f32 %v5955_v40, %v1374_v19  ;;  %v5479_v36 = vld [vmem:[%s8280_s1 + $0x100] sm:$0xff]   ;;  %v5079_v19 = vunpack.c.h.bf16 %v5482_v16 }
 0x148   : > { %1672 = vadd.xlane.f32.xlu0 %v1496_v35  ;;  %v1249_v35 = vadd.f32 %v5059_v21, %v6125_v37  ;;  %v5067_v42 = vunpack.c.h.bf16 %v5479_v36  ;;  %v5066_v48 = vunpack.c.l.bf16 %v5479_v36  ;;  %v5070_v37 = vunpack.c.l.bf16 %v5480_v60 }
 0x14a   : > { %v6160_v46 = vpop.xlane.xlu2 %1592  ;;  %v6162_v52 = vpop.xlane.xlu1 %1590  ;;  %v1377_v45 = vmax.f32 %v1249_v35, 0.0  ;;  %v1253_v55 = vadd.f32 %v5067_v42, %v6209_v39  ;;  %v1252_v59 = vadd.f32 %v5066_v48, %v6209_v39  ;;  %v1254_v12 = vadd.f32 %v5070_v37, %v6209_v39 }
 0x14b   : > { %8302 = vst [vmem:[#allocation8_spill] sm:$0xff] %v6160_v46  ;;  %v6164_v53 = vpop.xlane.xlu0 %1588  ;;  %v1259_v35 = vadd.f32 %v5079_v19, %v6209_v39  ;;  %v1260_v37 = vadd.f32 %v5082_v58, %v6209_v39 }
 0x14c   : > { %v1381_v61 = vmax.f32 %v1253_v55, 0.0  ;;  %v1380_v2 = vmax.f32 %v1252_v59, 0.0  ;;  %v1382_v21 = vmax.f32 %v1254_v12, 0.0  ;;  %v5083_v59 = vunpack.c.h.bf16 %v5483_v47 }
 0x14d   : > { %v1387_v48 = vmax.f32 %v1259_v35, 0.0  ;;  %v1388_v12 = vmax.f32 %v1260_v37, 0.0 }
 0x14e   : > { %v1512_v49 = vmul.f32 %v5955_v40, %v1380_v2  ;;  %v1514_v36 = vmul.f32 %v5955_v40, %v1382_v21 }
 0x14f   : > { %1682 = vadd.xlane.f32.xlu2 %v1501_v54  ;;  %1680 = vadd.xlane.f32.xlu1 %v1500_v57  ;;  %v1510_v54 = vmul.f32 %v5955_v40, %v1378_v41  ;;  %v1509_v57 = vmul.f32 %v5955_v40, %v1377_v45  ;;  %v5484_v45 = vld [vmem:[%s8280_s1 + $0x128] sm:$0xff]  }
 0x150   : > { %1678 = vadd.xlane.f32.xlu0 %v1499_v56  ;;  %v1508_v56 = vmul.f32 %v5955_v40, %v1376_v44  ;;  %v1258_v44 = vadd.f32 %v5078_v28, %v6209_v39  ;;  %v5087_v16 = vunpack.c.h.bf16 %v5484_v45 }
 0x152   : > { %v6175_v62 = vpop.xlane.xlu2 %1598  ;;  %v6177_v3 = vpop.xlane.xlu1 %1596 }
 0x153   : > { %8303 = vst [vmem:[#allocation9_spill] sm:$0xff] %v6175_v62  ;;  %v6179_v4 = vpop.xlane.xlu0 %1594 }
 0x154   : > { %8304 = vst [vmem:[#allocation10_spill] sm:$0xff] %v6177_v3 }
 0x155   : > { %8305 = vst [vmem:[#allocation11_spill] sm:$0xff] %v6179_v4 }
 0x157   : > { %1688 = vadd.xlane.f32.xlu2 %v1504_v5  ;;  %1686 = vadd.xlane.f32.xlu1 %v1503_v8  ;;  %v5071_v5 = vunpack.c.h.bf16 %v5480_v60  ;;  %v1513_v8 = vmul.f32 %v5955_v40, %v1381_v61  ;;  %v1519_v61 = vmul.f32 %v5955_v40, %v1387_v48 }
 0x158   : > { %1684 = vadd.xlane.f32.xlu0 %v1502_v7 }
 0x159   : > { %v1255_v15 = vadd.f32 %v5071_v5, %v6209_v39  ;;  %v1261_v5 = vadd.f32 %v5083_v59, %v6209_v39 }
 0x15a   : > { %v6193_v17 = vpop.xlane.xlu2 %1604  ;;  %v6195_v22 = vpop.xlane.xlu1 %1602 }
 0x15b   : > { %8306 = vst [vmem:[#allocation12_spill] sm:$0xff] %v6193_v17  ;;  %v6197_v23 = vpop.xlane.xlu0 %1600  ;;  %v1383_v25 = vmax.f32 %v1255_v15, 0.0  ;;  %v1389_v15 = vmax.f32 %v1261_v5, 0.0 }
 0x15c   : > { %8307 = vst [vmem:[#allocation13_spill] sm:$0xff] %v6195_v22 }
 0x15d   : > { %8308 = vst [vmem:[#allocation14_spill] sm:$0xff] %v6197_v23  ;;  %v1515_v41 = vmul.f32 %v5955_v40, %v1383_v25  ;;  %v1169_v25 = vrot.slane %v5946_v34, 5  ;;  %v1521_v35 = vmul.f32 %v5955_v40, %v1389_v15 }
 0x15f   : > { %1694 = vadd.xlane.f32.xlu2 %v1507_v26  ;;  %1692 = vadd.xlane.f32.xlu1 %v1506_v32  ;;  %v5075_v26 = vunpack.c.h.bf16 %v5481_v38 }
 0x160   : > { %1690 = vadd.xlane.f32.xlu0 %v1505_v29 }
 0x161   : > { %v1257_v42 = vadd.f32 %v5075_v26, %v6209_v39 }
 0x162   : > { %v6211_v43 = vpop.xlane.xlu2 %1610  ;;  %v6215_v51 = vpop.xlane.xlu1 %1608 }
 0x163   : > { %v6213_v50 = vpop.xlane.xlu0 %1606 }
 0x164   : > { %8309 = vst [vmem:[#allocation15_spill] sm:$0xff] %v6213_v50 }
 0x167   : > { %1700 = vadd.xlane.f32.xlu2 %v1510_v54  ;;  %1698 = vadd.xlane.f32.xlu1 %v1509_v57  ;;  %v5086_v54 = vunpack.c.l.bf16 %v5484_v45  ;;  %v1386_v57 = vmax.f32 %v1258_v44, 0.0  ;;  %v5486_v44 = vld [vmem:[%s8280_s1 + $0x138] sm:$0xff]   ;;  %v6296_v45 = vperm.slane %v1169_v25, 0 }
 0x168   : > { %1696 = vadd.xlane.f32.xlu0 %v1508_v56  ;;  %v1385_v56 = vmax.f32 %v1257_v42, 0.0  ;;  %v5487_v42 = vld [vmem:[%s8280_s1 + $0x140] sm:$0xff]   ;;  %v5094_v58 = vunpack.c.l.bf16 %v5486_v44  ;;  %v5095_v59 = vunpack.c.h.bf16 %v5486_v44 }
 0x169   : > { %v1262_v63 = vadd.f32 %v5086_v54, %v6209_v39  ;;  %v1518_v2 = vmul.f32 %v5955_v40, %v1386_v57  ;;  %v5098_v48 = vunpack.c.l.bf16 %v5487_v42 }
 0x16a   : > { %v6229_v0 = vpop.xlane.xlu2 %1616  ;;  %v6233_v7 = vpop.xlane.xlu1 %1614  ;;  %v1517_v1 = vmul.f32 %v5955_v40, %v1385_v56 }
 0x16b   : > { %v6231_v6 = vpop.xlane.xlu0 %1612  ;;  %v1390_v10 = vmax.f32 %v1262_v63, 0.0 }
 0x16d   : > { %v1522_v26 = vmul.f32 %v5955_v40, %v1390_v10  ;;  %v1267_v10 = vadd.f32 %v5095_v59, %v6209_v39 }
 0x16f   : > { %1706 = vadd.xlane.f32.xlu2 %v1513_v8  ;;  %1704 = vadd.xlane.f32.xlu1 %v1512_v49  ;;  %v5485_v8 = vld [vmem:[%s8280_s1 + $0x130] sm:$0xff]   ;;  %v1395_v25 = vmax.f32 %v1267_v10, 0.0 }
 0x170   : > { %1702 = vadd.xlane.f32.xlu0 %v1511_v11  ;;  %v5091_v11 = vunpack.c.h.bf16 %v5485_v8  ;;  %v5090_v18 = vunpack.c.l.bf16 %v5485_v8  ;;  %v1266_v8 = vadd.f32 %v5094_v58, %v6209_v39 }
 0x171   : > { %v1527_v44 = vmul.f32 %v5955_v40, %v1395_v25 }
 0x172   : > { %v6244_v20 = vpop.xlane.xlu2 %1622  ;;  %v6248_v32 = vpop.xlane.xlu1 %1620  ;;  %v1265_v28 = vadd.f32 %v5091_v11, %v6209_v39  ;;  %v5488_v11 = vld [vmem:[%s8280_s1 + $0x148] sm:$0xff]  }
 0x173   : > { %8310 = vst [vmem:[#allocation16_spill] sm:$0xff] %v6244_v20  ;;  %v6246_v29 = vpop.xlane.xlu0 %1618  ;;  %v5103_v15 = vunpack.c.h.bf16 %v5488_v11 }
 0x174   : > { %v1393_v47 = vmax.f32 %v1265_v28, 0.0  ;;  %v5102_v28 = vunpack.c.l.bf16 %v5488_v11 }
 0x177   : > { %1712 = vadd.xlane.f32.xlu2 %v1516_v33  ;;  %1710 = vadd.xlane.f32.xlu1 %v1515_v41  ;;  %v1520_v33 = vmul.f32 %v5955_v40, %v1388_v12  ;;  %v1264_v41 = vadd.f32 %v5090_v18, %v6209_v39  ;;  %v1394_v18 = vmax.f32 %v1266_v8, 0.0 }
 0x178   : > { %1708 = vadd.xlane.f32.xlu0 %v1514_v36  ;;  %v1263_v36 = vadd.f32 %v5087_v16, %v6209_v39 }
 0x179   : > { %v1392_v57 = vmax.f32 %v1264_v41, 0.0  ;;  %v1526_v41 = vmul.f32 %v5955_v40, %v1394_v18 }
 0x17a   : > { %v6262_v55 = vpop.xlane.xlu2 %1628  ;;  %v6266_v60 = vpop.xlane.xlu1 %1626  ;;  %v1391_v56 = vmax.f32 %v1263_v36, 0.0  ;;  %v1271_v36 = vadd.f32 %v5103_v15, %v6296_v45 }
 0x17b   : > { %8311 = vst [vmem:[#allocation17_spill] sm:$0xff] %v6262_v55  ;;  %v6264_v38 = vpop.xlane.xlu0 %1624  ;;  %v1524_v5 = vmul.f32 %v5955_v40, %v1392_v57 }
 0x17c   : > { %8312 = vst [vmem:[#allocation18_spill] sm:$0xff] %v6264_v38  ;;  %v1523_v37 = vmul.f32 %v5955_v40, %v1391_v56  ;;  %v5489_v56 = vld [vmem:[%s8280_s1 + $0x150] sm:$0xff]   ;;  %v1399_v57 = vmax.f32 %v1271_v36, 0.0 }
 0x17d   : > { %8313 = vst [vmem:[#allocation19_spill] sm:$0xff] %v6266_v60 }
 0x17e   : > { %v1531_v11 = vmul.f32 %v5955_v40, %v1399_v57 }
 0x17f   : > { %1718 = vadd.xlane.f32.xlu2 %v1519_v61  ;;  %1716 = vadd.xlane.f32.xlu1 %v1518_v2  ;;  %v1268_v2 = vadd.f32 %v5098_v48, %v6296_v45  ;;  %v1270_v48 = vadd.f32 %v5102_v28, %v6296_v45  ;;  %v5491_v28 = vld [vmem:[%s8280_s1 + $0x160] sm:$0xff]  }
 0x180   : > { %1714 = vadd.xlane.f32.xlu0 %v1517_v1  ;;  %v1525_v1 = vmul.f32 %v5955_v40, %v1393_v47  ;;  %v5115_v36 = vunpack.c.h.bf16 %v5491_v28 }
 0x181   : > { %v1396_v12 = vmax.f32 %v1268_v2, 0.0  ;;  %v1398_v2 = vmax.f32 %v1270_v48, 0.0 }
 0x182   : > { %v6277_v49 = vpop.xlane.xlu2 %1634  ;;  %v6281_v21 = vpop.xlane.xlu1 %1632 }
 0x183   : > { %8314 = vst [vmem:[#allocation20_spill] sm:$0xff] %v6277_v49  ;;  %v6279_v19 = vpop.xlane.xlu0 %1630  ;;  %v1528_v39 = vmul.f32 %v5955_v40, %v1396_v12  ;;  %v1530_v18 = vmul.f32 %v5955_v40, %v1398_v2  ;;  %v1277_v2 = vadd.f32 %v5115_v36, %v6296_v45 }
 0x184   : > { %8315 = vst [vmem:[#allocation21_spill] sm:$0xff] %v6279_v19 }
 0x185   : > { %8316 = vst [vmem:[#allocation22_spill] sm:$0xff] %v6281_v21 }
 0x187   : > { %1724 = vadd.xlane.f32.xlu2 %v1522_v26  ;;  %1722 = vadd.xlane.f32.xlu1 %v1521_v35  ;;  %v5099_v26 = vunpack.c.h.bf16 %v5487_v42  ;;  %v5490_v42 = vld [vmem:[%s8280_s1 + $0x158] sm:$0xff]  }
 0x188   : > { %1720 = vadd.xlane.f32.xlu0 %v1520_v33  ;;  %v5110_v58 = vunpack.c.l.bf16 %v5490_v42  ;;  %v5111_v48 = vunpack.c.h.bf16 %v5490_v42 }
 0x189   : > { %v1269_v47 = vadd.f32 %v5099_v26, %v6296_v45 }
 0x18a   : > { %v6298_v54 = vpop.xlane.xlu2 %1640  ;;  %v6302_v63 = vpop.xlane.xlu1 %1638  ;;  %v1274_v12 = vadd.f32 %v5110_v58, %v6296_v45  ;;  %v6355_v58 = vld [vmem:[%s8288_s9] ss:$0 sm:$0xff]  ;;  %v1275_v42 = vadd.f32 %v5111_v48, %v6296_v45 }
 0x18b   : > { %v6300_v61 = vpop.xlane.xlu0 %1636  ;;  %8318 = vst [vmem:[#allocation24_spill] sm:$0xff] %v6302_v63 }
 0x18c   : > { %8317 = vst [vmem:[#allocation23_spill] sm:$0xff] %v6300_v61 }
 0x18f   : > { %1730 = vadd.xlane.f32.xlu2 %v1525_v1  ;;  %1728 = vadd.xlane.f32.xlu1 %v1524_v5  ;;  %v1397_v1 = vmax.f32 %v1269_v47, 0.0  ;;  %v5107_v5 = vunpack.c.h.bf16 %v5489_v56 }
 0x190   : > { %1726 = vadd.xlane.f32.xlu0 %v1523_v37  ;;  %v5106_v37 = vunpack.c.l.bf16 %v5489_v56  ;;  %v5114_v56 = vunpack.c.l.bf16 %v5491_v28  ;;  %v1403_v28 = vmax.f32 %v1275_v42, 0.0  ;;  %v5494_v42 = vld [vmem:[%s8280_s1 + $0x178] sm:$0xff]  }
 0x191   : > { %v1529_v15 = vmul.f32 %v5955_v40, %v1397_v1  ;;  %v1273_v26 = vadd.f32 %v5107_v5, %v6296_v45  ;;  %v5126_v17 = vunpack.c.l.bf16 %v5494_v42 }
 0x192   : > { %v6313_v16 = vpop.xlane.xlu2 %1646  ;;  %v6317_v35 = vpop.xlane.xlu1 %1644  ;;  %v1272_v25 = vadd.f32 %v5106_v37, %v6296_v45  ;;  %v1535_v27 = vmul.f32 %v6355_v58, %v1403_v28 }
 0x193   : > { %v6315_v33 = vpop.xlane.xlu0 %1642  ;;  %v1401_v47 = vmax.f32 %v1273_v26, 0.0 }
 0x195   : > { %v1533_v5 = vmul.f32 %v6355_v58, %v1401_v47 }
 0x197   : > { %1736 = vadd.xlane.f32.xlu2 %v1528_v39  ;;  %1734 = vadd.xlane.f32.xlu1 %v1527_v44  ;;  %v1402_v39 = vmax.f32 %v1274_v12, 0.0  ;;  %v1400_v44 = vmax.f32 %v1272_v25, 0.0  ;;  %v5493_v12 = vld [vmem:[%s8280_s1 + $0x170] sm:$0xff]  }
 0x198   : > { %1732 = vadd.xlane.f32.xlu0 %v1526_v41  ;;  %v5122_v25 = vunpack.c.l.bf16 %v5493_v12  ;;  %v5123_v28 = vunpack.c.h.bf16 %v5493_v12  ;;  %v5495_v12 = vld [vmem:[%s8280_s1 + $0x180] sm:$0xff]  }
 0x199   : > { %v1534_v1 = vmul.f32 %v6355_v58, %v1402_v39  ;;  %v1532_v37 = vmul.f32 %v6355_v58, %v1400_v44 }
 0x19a   : > { %v6331_v59 = vpop.xlane.xlu2 %1652  ;;  %v6335_v10 = vpop.xlane.xlu1 %1650 }
 0x19b   : > { %8319 = vst [vmem:[#allocation25_spill] sm:$0xff] %v6331_v59  ;;  %v6333_v8 = vpop.xlane.xlu0 %1648 }
 0x19f   : > { %1742 = vadd.xlane.f32.xlu2 %v1531_v11  ;;  %1740 = vadd.xlane.f32.xlu1 %v1530_v18  ;;  %v1276_v11 = vadd.f32 %v5114_v56, %v6296_v45  ;;  %v1405_v18 = vmax.f32 %v1277_v2, 0.0 }
 0x1a0   : > { %1738 = vadd.xlane.f32.xlu0 %v1529_v15  ;;  %v5492_v15 = vld [vmem:[%s8280_s1 + $0x168] sm:$0xff]  }
 0x1a1   : > { %v1404_v39 = vmax.f32 %v1276_v11, 0.0  ;;  %v5118_v36 = vunpack.c.l.bf16 %v5492_v15  ;;  %v5119_v44 = vunpack.c.h.bf16 %v5492_v15  ;;  %v1537_v56 = vmul.f32 %v6355_v58, %v1405_v18 }
 0x1a2   : > { %v6346_v41 = vpop.xlane.xlu2 %1658  ;;  %v6350_v57 = vpop.xlane.xlu1 %1656  ;;  %v5127_v15 = vunpack.c.h.bf16 %v5494_v42 }
 0x1a3   : > { %8320 = vst [vmem:[#allocation26_spill] sm:$0xff] %v6346_v41  ;;  %v6348_v40 = vpop.xlane.xlu0 %1654  ;;  %v1278_v2 = vadd.f32 %v5118_v36, %v6296_v45 }
 0x1a4   : > { %8321 = vst [vmem:[#allocation27_spill] sm:$0xff] %v6350_v57 }
 0x1a7   : > { %1748 = vadd.xlane.f32.xlu2 %v1534_v1  ;;  %1746 = vadd.xlane.f32.xlu1 %v1533_v5  ;;  %v1280_v1 = vadd.f32 %v5122_v25, %v6296_v45  ;;  %v1279_v5 = vadd.f32 %v5119_v44, %v6296_v45  ;;  %v1406_v25 = vmax.f32 %v1278_v2, 0.0  ;;  %v1170_v44 = vrot.slane %v5946_v34, 6 }
 0x1a8   : > { %1744 = vadd.xlane.f32.xlu0 %v1532_v37  ;;  %v1536_v37 = vmul.f32 %v6355_v58, %v1404_v39  ;;  %v1282_v2 = vadd.f32 %v5126_v17, %v6296_v45 }
 0x1a9   : > { %v1408_v11 = vmax.f32 %v1280_v1, 0.0  ;;  %v1407_v50 = vmax.f32 %v1279_v5, 0.0  ;;  %v5496_v5 = vld [vmem:[%s8280_s1 + $0x188] sm:$0xff]   ;;  %v6403_v42 = vperm.slane %v1170_v44, 0  ;;  %v5497_v44 = vld [vmem:[%s8280_s1 + $0x190] sm:$0xff]  }
 0x1aa   : > { %v6369_v26 = vpop.xlane.xlu2 %1664  ;;  %v6373_v48 = vpop.xlane.xlu1 %1662  ;;  %v1410_v17 = vmax.f32 %v1282_v2, 0.0  ;;  %v5138_v62 = vunpack.c.l.bf16 %v5497_v44 }
 0x1ab   : > { %8322 = vst [vmem:[#allocation28_spill] sm:$0xff] %v6369_v26  ;;  %v6371_v47 = vpop.xlane.xlu0 %1660  ;;  %v1540_v63 = vmul.f32 %v6355_v58, %v1408_v11  ;;  %v1539_v1 = vmul.f32 %v6355_v58, %v1407_v50  ;;  %v5134_v50 = vunpack.c.l.bf16 %v5496_v5 }
 0x1ac   : > { %8323 = vst [vmem:[#allocation29_spill] sm:$0xff] %v6371_v47 }
 0x1ad   : > { %8324 = vst [vmem:[#allocation30_spill] sm:$0xff] %v6373_v48 }
 0x1af   : > { %1754 = vadd.xlane.f32.xlu2 %v1537_v56  ;;  %1752 = vadd.xlane.f32.xlu1 %v1536_v37  ;;  %v1283_v56 = vadd.f32 %v5127_v15, %v6296_v45  ;;  %v1281_v37 = vadd.f32 %v5123_v28, %v6296_v45  ;;  %v5130_v15 = vunpack.c.l.bf16 %v5495_v12  ;;  %v5131_v45 = vunpack.c.h.bf16 %v5495_v12 }
 0x1b0   : > { %1750 = vadd.xlane.f32.xlu0 %v1535_v27  ;;  %v1538_v27 = vmul.f32 %v6355_v58, %v1406_v25  ;;  %v8293_v25 = vlaneseq  ;;  %v5135_v12 = vunpack.c.h.bf16 %v5496_v5 }
 0x1b1   : > { %v1411_v11 = vmax.f32 %v1283_v56, 0.0  ;;  %v1284_v26 = vadd.f32 %v5130_v15, %v6403_v42 }
 0x1b2   : > { %v6384_v18 = vpop.xlane.xlu2 %1670  ;;  %v6388_v36 = vpop.xlane.xlu1 %1668  ;;  %v6412_v56 = vand.u32 127, %v8293_v25  ;;  %v1287_v5 = vadd.f32 %v5135_v12, %v6403_v42  ;;  %v1288_v12 = vadd.f32 %v5138_v62, %v6403_v42 }
 0x1b3   : > { %8325 = vst [vmem:[#allocation31_spill] sm:$0xff] %v6384_v18  ;;  %v6386_v39 = vpop.xlane.xlu0 %1666  ;;  %v1409_v18 = vmax.f32 %v1281_v37, 0.0  ;;  %v1543_v49 = vmul.f32 %v6355_v58, %v1411_v11  ;;  %v1285_v37 = vadd.f32 %v5131_v45, %v6403_v42  ;;  %v5139_v11 = vunpack.c.h.bf16 %v5497_v44  ;;  %v5498_v44 = vld [vmem:[%s8280_s1 + $0x198] sm:$0xff]  }
 0x1b4   : > { %8326 = vst [vmem:[#allocation32_spill] sm:$0xff] %v6386_v39  ;;  %v6418_v2 = vadd.s32 4294967288, %v6412_v56  ;;  %v1412_v15 = vmax.f32 %v1284_v26, 0.0  ;;  %v6426_v21 = vadd.s32 4294967272, %v6412_v56  ;;  %v1416_v48 = vmax.f32 %v1288_v12, 0.0 }
 0x1b5   : > { %8327 = vst [vmem:[#allocation33_spill] sm:$0xff] %v6388_v36  ;;  %v1289_v26 = vadd.f32 %v5139_v11, %v6403_v42  ;;  %v6444_v11 = vadd.s32 4294967264, %v6412_v56  ;;  %v5143_v19 = vunpack.c.h.bf16 %v5498_v44  ;;  %v6450_v55 = vadd.s32 4294967248, %v6412_v56 }
 0x1b6   : > { %v6465_v12 = vadd.s32 4294967240, %v6412_v56  ;;  %v6504_v60 = vadd.s32 4294967200, %v6412_v56 }
 0x1b7   : > { %1760 = vadd.xlane.f32.xlu2 %v1540_v63  ;;  %1758 = vadd.xlane.f32.xlu1 %v1539_v1  ;;  %v1286_v63 = vadd.f32 %v5134_v50, %v6403_v42  ;;  %v1542_v1 = vmul.f32 %v6355_v58, %v1410_v17  ;;  %v6423_v17 = vadd.s32 4294967280, %v6412_v56 }
 0x1b8   : > { %1756 = vadd.xlane.f32.xlu0 %v1538_v27  ;;  %v1541_v27 = vmul.f32 %v6355_v58, %v1409_v18  ;;  %v1413_v18 = vmax.f32 %v1285_v37, 0.0 }
 0x1b9   : > { %v1414_v50 = vmax.f32 %v1286_v63, 0.0 }
 0x1ba   : > { %v1677_v28 = vpop.xlane.xlu2 %1676  ;;  %v1675_v61 = vpop.xlane.xlu1 %1674  ;;  %v1545_v37 = vmul.f32 %v6355_v58, %v1413_v18 }
 0x1bb   : > { %v1673_v36 = vpop.xlane.xlu0 %1672  ;;  %v2087_v25 = vperm.slane %v1675_v61, %v6418_v2  ;;  %v1544_v61 = vmul.f32 %v6355_v58, %v1412_v15  ;;  %v1546_v63 = vmul.f32 %v6355_v58, %v1414_v50  ;;  %v1415_v15 = vmax.f32 %v1287_v5, 0.0 }
 0x1bc   : > { %v2086_v22 = vperm.slane %v1673_v36, %v6412_v56  ;;  %v2089_v36 = vperm.slane %v1677_v28, %v6423_v17  ;;  %v5499_v28 = vld [vmem:[%s8280_s1 + $0x1a0] sm:$0xff]   ;;  %v1417_v50 = vmax.f32 %v1289_v26, 0.0  ;;  %v6453_v5 = vadd.s32 4294967256, %v6412_v56 }
 0x1bd   : > { %v5146_v62 = vunpack.c.l.bf16 %v5499_v28  ;;  %v1547_v26 = vmul.f32 %v6355_v58, %v1415_v15  ;;  %v1548_v15 = vmul.f32 %v6355_v58, %v1416_v48 }
 0x1bf   : > { %1766 = vadd.xlane.f32.xlu2 %v1543_v49  ;;  %1764 = vadd.xlane.f32.xlu1 %v1542_v1 }
 0x1c0   : > { %1762 = vadd.xlane.f32.xlu0 %v1541_v27  ;;  %v2088_v27 = vsel %vm1966_vm0, %v2087_v25, %v2086_v22  ;;  %v5142_v22 = vunpack.c.l.bf16 %v5498_v44  ;;  %v1292_v44 = vadd.f32 %v5146_v62, %v6403_v42 }
 0x1c1   : > { %v2090_v25 = vsel %vm1970_vm1, %v2089_v36, %v2088_v27 }
 0x1c2   : > { %v1683_v39 = vpop.xlane.xlu2 %1682  ;;  %v1681_v45 = vpop.xlane.xlu1 %1680  ;;  %v1290_v36 = vadd.f32 %v5142_v22, %v6403_v42  ;;  %v1291_v22 = vadd.f32 %v5143_v19, %v6403_v42  ;;  %v1420_v41 = vmax.f32 %v1292_v44, 0.0 }
 0x1c3   : > { %v1679_v49 = vpop.xlane.xlu0 %1678  ;;  %v2093_v18 = vperm.slane %v1681_v45, %v6444_v11 }
 0x1c4   : > { %v2091_v1 = vperm.slane %v1679_v49, %v6426_v21  ;;  %v1418_v19 = vmax.f32 %v1290_v36, 0.0  ;;  %v1419_v47 = vmax.f32 %v1291_v22, 0.0  ;;  %v6487_v36 = vadd.s32 4294967216, %v6412_v56 }
 0x1c6   : > { %v2092_v49 = vsel %vm1974_vm2, %v2091_v1, %v2090_v25  ;;  %v1549_v1 = vmul.f32 %v6355_v58, %v1417_v50  ;;  %v2095_v25 = vperm.slane %v1683_v39, %v6453_v5  ;;  %v6474_v39 = vadd.s32 4294967224, %v6412_v56 }
 0x1c7   : > { %1772 = vadd.xlane.f32.xlu2 %v1546_v63  ;;  %1770 = vadd.xlane.f32.xlu1 %v1545_v37  ;;  %v2094_v45 = vsel %vm1978_vm3, %v2093_v18, %v2092_v49  ;;  %v5500_v37 = vld [vmem:[%s8280_s1 + $0x1a8] sm:$0xff]   ;;  %v5147_v18 = vunpack.c.h.bf16 %v5499_v28  ;;  %v6477_v28 = vadd.s32 4294967232, %v6412_v56 }
 0x1c8   : > { %1768 = vadd.xlane.f32.xlu0 %v1544_v61  ;;  %v2096_v50 = vsel %vm1982_vm4, %v2095_v25, %v2094_v45  ;;  %v5151_v49 = vunpack.c.h.bf16 %v5500_v37  ;;  %v5150_v3 = vunpack.c.l.bf16 %v5500_v37  ;;  %v5501_v37 = vld [vmem:[%s8280_s1 + $0x1b0] sm:$0xff]  }
 0x1ca   : > { %v1689_v23 = vpop.xlane.xlu2 %1688  ;;  %v1687_v61 = vpop.xlane.xlu1 %1686  ;;  %v1295_v44 = vadd.f32 %v5151_v49, %v6403_v42  ;;  %v1294_v22 = vadd.f32 %v5150_v3, %v6403_v42 }
 0x1cb   : > { %v1685_v63 = vpop.xlane.xlu0 %1684  ;;  %v2099_v62 = vperm.slane %v1687_v61, %v6465_v12  ;;  %v2101_v25 = vperm.slane %v1689_v23, %v6477_v28  ;;  %v5154_v23 = vunpack.c.l.bf16 %v5501_v37 }
 0x1cc   : > { %v2097_v27 = vperm.slane %v1685_v63, %v6450_v55 }
 0x1ce   : > { %v2098_v63 = vsel %vm1986_vm5, %v2097_v27, %v2096_v50  ;;  %v1293_v27 = vadd.f32 %v5147_v18, %v6403_v42  ;;  %v1550_v50 = vmul.f32 %v6355_v58, %v1418_v19  ;;  %v1551_v18 = vmul.f32 %v6355_v58, %v1419_v47 }
 0x1cf   : > { %1778 = vadd.xlane.f32.xlu2 %v1549_v1  ;;  %1776 = vadd.xlane.f32.xlu1 %v1548_v15  ;;  %v2100_v61 = vsel %vm1990_vm6, %v2099_v62, %v2098_v63  ;;  %v1552_v15 = vmul.f32 %v6355_v58, %v1420_v41  ;;  %v5502_v62 = vld [vmem:[%s8280_s1 + $0x1b8] sm:$0xff]   ;;  %v1422_v19 = vmax.f32 %v1294_v22, 0.0  ;;  %v6501_v47 = vadd.s32 4294967208, %v6412_v56 }
 0x1d0   : > { %1774 = vadd.xlane.f32.xlu0 %v1547_v26  ;;  %v2102_v49 = vsel %vm1994_vm7, %v2101_v25, %v2100_v61  ;;  %v1421_v3 = vmax.f32 %v1293_v27, 0.0  ;;  %v5158_v46 = vunpack.c.l.bf16 %v5502_v62  ;;  %v5155_v25 = vunpack.c.h.bf16 %v5501_v37 }
 0x1d1   : > { %v1296_v27 = vadd.f32 %v5154_v23, %v6403_v42 }
 0x1d2   : > { %v1695_v48 = vpop.xlane.xlu2 %1694  ;;  %v1693_v1 = vpop.xlane.xlu1 %1692  ;;  %v1297_v4 = vadd.f32 %v5155_v25, %v6403_v42  ;;  %v6531_v25 = vadd.s32 4294967176, %v6412_v56 }
 0x1d3   : > { %v1691_v45 = vpop.xlane.xlu0 %1690  ;;  %v2105_v63 = vperm.slane %v1693_v1, %v6487_v36  ;;  %v1171_v1 = vrot.slane %v5946_v34, 7  ;;  %v2107_v22 = vperm.slane %v1695_v48, %v6501_v47  ;;  %v1554_v34 = vmul.f32 %v6355_v58, %v1422_v19  ;;  %v5503_v48 = vld [vmem:[%s8280_s1 + $0x1c0] sm:$0xff]  }
 0x1d4   : > { %v2103_v26 = vperm.slane %v1691_v45, %v6474_v39  ;;  %v1423_v45 = vmax.f32 %v1295_v44, 0.0  ;;  %v6510_v44 = vadd.s32 4294967192, %v6412_v56  ;;  %v6528_v19 = vadd.s32 4294967184, %v6412_v56  ;;  %8328 = vst [vmem:[#allocation34_spill] sm:$0xff] %v6531_v25 }
 0x1d6   : > { %v2104_v41 = vsel %vm8297_vm8, %v2103_v26, %v2102_v49  ;;  %v1553_v49 = vmul.f32 %v6355_v58, %v1421_v3  ;;  %v1555_v37 = vmul.f32 %v6355_v58, %v1423_v45  ;;  %v1424_v45 = vmax.f32 %v1296_v27, 0.0 }
 0x1d7   : > { %1784 = vadd.xlane.f32.xlu2 %v1552_v15  ;;  %1782 = vadd.xlane.f32.xlu1 %v1551_v18  ;;  %v2106_v15 = vsel %vm8296_vm9, %v2105_v63, %v2104_v41  ;;  %v1298_v63 = vadd.f32 %v5158_v46, %v6403_v42  ;;  %v5159_v46 = vunpack.c.h.bf16 %v5502_v62 }
 0x1d8   : > { %1780 = vadd.xlane.f32.xlu0 %v1550_v50  ;;  %v2108_v41 = vsel %vm8298_vm10, %v2107_v22, %v2106_v15 }
 0x1d9   : > { %v1426_v15 = vmax.f32 %v1298_v63, 0.0  ;;  %v1299_v27 = vadd.f32 %v5159_v46, %v6403_v42 }
 0x1da   : > { %v1701_v61 = vpop.xlane.xlu2 %1700  ;;  %v1699_v50 = vpop.xlane.xlu1 %1698 }
 0x1db   : > { %v1697_v26 = vpop.xlane.xlu0 %1696  ;;  %v2111_v23 = vperm.slane %v1699_v50, %v6510_v44  ;;  %v5163_v50 = vunpack.c.h.bf16 %v5503_v48 }
 0x1dc   : > { %v2109_v18 = vperm.slane %v1697_v26, %v6504_v60  ;;  %v6525_v26 = vperm.slane %v1171_v1, 0  ;;  %v2113_v1 = vperm.slane %v1701_v61, %v6528_v19 }
 0x1de   : > { %v2110_v3 = vsel %vm2010_vm11, %v2109_v18, %v2108_v41  ;;  %v1425_v18 = vmax.f32 %v1297_v4, 0.0  ;;  %v1558_v41 = vmul.f32 %v6355_v58, %v1426_v15  ;;  %v1301_v38 = vadd.f32 %v5163_v50, %v6525_v26  ;;  %v5504_v4 = vld [vmem:[%s8280_s1 + $0x1c8] sm:$0xff]  }
 0x1df   : > { %1790 = vadd.xlane.f32.xlu2 %v1555_v37  ;;  %1788 = vadd.xlane.f32.xlu1 %v1554_v34  ;;  %v2112_v22 = vsel %vm2014_vm12, %v2111_v23, %v2110_v3  ;;  %v5162_v37 = vunpack.c.l.bf16 %v5503_v48  ;;  %v1556_v23 = vmul.f32 %v6355_v58, %v1424_v45  ;;  %v5505_v3 = vld [vmem:[%s8280_s1 + $0x1d0] sm:$0xff]   ;;  %v5166_v46 = vunpack.c.l.bf16 %v5504_v4 }
 0x1e0   : > { %1786 = vadd.xlane.f32.xlu0 %v1553_v49  ;;  %v2114_v63 = vsel %vm2018_vm13, %v2113_v1, %v2112_v22  ;;  %v1557_v48 = vmul.f32 %v6355_v58, %v1425_v18  ;;  %v1427_v15 = vmax.f32 %v1299_v27, 0.0  ;;  %v1429_v50 = vmax.f32 %v1301_v38, 0.0 }
 0x1e1   : > { %v1300_v42 = vadd.f32 %v5162_v37, %v6525_v26  ;;  %v5170_v22 = vunpack.c.l.bf16 %v5505_v3  ;;  %v5167_v18 = vunpack.c.h.bf16 %v5504_v4 }
 0x1e2   : > { %v1707_v57 = vpop.xlane.xlu2 %1706  ;;  %v1705_v34 = vpop.xlane.xlu1 %1704 }
 0x1e3   : > { %v1703_v49 = vpop.xlane.xlu0 %1702  ;;  %v2118_v1 = vperm.slane %v1707_v57, %v6418_v2  ;;  %v1304_v38 = vadd.f32 %v5170_v22, %v6525_v26  ;;  %v1303_v4 = vadd.f32 %v5167_v18, %v6525_v26 }
 0x1e4   : > { %v2115_v62 = vperm.slane %v1703_v49, %v6531_v25  ;;  %v2117_v49 = vperm.slane %v1705_v34, %v6412_v56  ;;  %v1302_v25 = vadd.f32 %v5166_v46, %v6525_v26 }
 0x1e6   : > { %v6544_v61 = vsel %vm2022_vm14, %v2115_v62, %v2114_v63  ;;  %v1428_v62 = vmax.f32 %v1300_v42, 0.0  ;;  %v2119_v27 = vsel %vm1966_vm0, %v2118_v1, %v2117_v49  ;;  %v1430_v46 = vmax.f32 %v1302_v25, 0.0 }
 0x1e7   : > { %8329 = vst [vmem:[#allocation35_spill] sm:$0xff] %v6544_v61  ;;  %1796 = vadd.xlane.f32.xlu2 %v1558_v41  ;;  %1794 = vadd.xlane.f32.xlu1 %v1557_v48  ;;  %v1559_v41 = vmul.f32 %v6355_v58, %v1427_v15  ;;  %v5506_v48 = vld [vmem:[%s8280_s1 + $0x1d8] sm:$0xff]   ;;  %v1432_v15 = vmax.f32 %v1304_v38, 0.0  ;;  %v5507_v38 = vld [vmem:[%s8280_s1 + $0x1e0] sm:$0xff]  }
 0x1e8   : > { %1792 = vadd.xlane.f32.xlu0 %v1556_v23  ;;  %v1561_v23 = vmul.f32 %v6355_v58, %v1429_v50  ;;  %v1560_v34 = vmul.f32 %v6355_v58, %v1428_v62  ;;  %v5171_v50 = vunpack.c.h.bf16 %v5505_v3  ;;  %v5175_v22 = vunpack.c.h.bf16 %v5506_v48 }
 0x1e9   : > { %v5174_v62 = vunpack.c.l.bf16 %v5506_v48  ;;  %v1564_v25 = vmul.f32 %v6355_v58, %v1432_v15  ;;  %v5178_v48 = vunpack.c.l.bf16 %v5507_v38 }
 0x1ea   : > { %v1713_v45 = vpop.xlane.xlu2 %1712  ;;  %v1711_v37 = vpop.xlane.xlu1 %1710  ;;  %v1305_v3 = vadd.f32 %v5171_v50, %v6525_v26 }
 0x1eb   : > { %v1709_v63 = vpop.xlane.xlu0 %1708  ;;  %v2122_v57 = vperm.slane %v1711_v37, %v6426_v21  ;;  %v2124_v18 = vperm.slane %v1713_v45, %v6444_v11 }
 0x1ec   : > { %v2120_v61 = vperm.slane %v1709_v63, %v6423_v17  ;;  %v1431_v63 = vmax.f32 %v1303_v4, 0.0  ;;  %v5508_v4 = vld [vmem:[%s8280_s1 + $0x1e8] sm:$0xff]  }
 0x1ed   : > { %v5182_v15 = vunpack.c.l.bf16 %v5508_v4 }
 0x1ee   : > { %v2121_v42 = vsel %vm1970_vm1, %v2120_v61, %v2119_v27  ;;  %v1562_v61 = vmul.f32 %v6355_v58, %v1430_v46 }
 0x1ef   : > { %1802 = vadd.xlane.f32.xlu2 %v1561_v23  ;;  %1800 = vadd.xlane.f32.xlu1 %v1560_v34  ;;  %v2123_v1 = vsel %vm1974_vm2, %v2122_v57, %v2121_v42  ;;  %v1307_v23 = vadd.f32 %v5175_v22, %v6525_v26  ;;  %v1563_v57 = vmul.f32 %v6355_v58, %v1431_v63  ;;  %v1433_v42 = vmax.f32 %v1305_v3, 0.0 }
 0x1f0   : > { %1798 = vadd.xlane.f32.xlu0 %v1559_v41  ;;  %v2125_v41 = vsel %vm1978_vm3, %v2124_v18, %v2123_v1  ;;  %v1306_v34 = vadd.f32 %v5174_v62, %v6525_v26  ;;  %v1310_v3 = vadd.f32 %v5182_v15, %v6525_v26 }
 0x1f1   : > { %v1435_v46 = vmax.f32 %v1307_v23, 0.0 }
 0x1f2   : > { %v1719_v49 = vpop.xlane.xlu2 %1718  ;;  %v1717_v20 = vpop.xlane.xlu1 %1716  ;;  %v1434_v22 = vmax.f32 %v1306_v34, 0.0  ;;  %v1438_v34 = vmax.f32 %v1310_v3, 0.0 }
 0x1f3   : > { %v1715_v37 = vpop.xlane.xlu0 %1714  ;;  %v2128_v27 = vperm.slane %v1717_v20, %v6450_v55  ;;  %v5179_v20 = vunpack.c.h.bf16 %v5507_v38  ;;  %v2130_v1 = vperm.slane %v1719_v49, %v6465_v12 }
 0x1f4   : > { %v2126_v59 = vperm.slane %v1715_v37, %v6453_v5  ;;  %v1308_v37 = vadd.f32 %v5178_v48, %v6525_v26  ;;  %v1566_v49 = vmul.f32 %v6355_v58, %v1434_v22  ;;  %v5183_v48 = vunpack.c.h.bf16 %v5508_v4 }
 0x1f6   : > { %v2127_v45 = vsel %vm1982_vm4, %v2126_v59, %v2125_v41  ;;  %v1565_v41 = vmul.f32 %v6355_v58, %v1433_v42  ;;  %v1311_v4 = vadd.f32 %v5183_v48, %v6525_v26 }
 0x1f7   : > { %1808 = vadd.xlane.f32.xlu2 %v1564_v25  ;;  %1806 = vadd.xlane.f32.xlu1 %v1563_v57  ;;  %v2129_v50 = vsel %vm1986_vm5, %v2128_v27, %v2127_v45  ;;  %v1567_v25 = vmul.f32 %v6355_v58, %v1435_v46  ;;  %v1309_v45 = vadd.f32 %v5179_v20, %v6525_v26  ;;  %v5509_v27 = vld [vmem:[%s8280_s1 + $0x1f0] sm:$0xff]   ;;  %v1436_v57 = vmax.f32 %v1308_v37, 0.0 }
 0x1f8   : > { %1804 = vadd.xlane.f32.xlu0 %v1562_v61  ;;  %v2131_v61 = vsel %vm1990_vm6, %v2130_v1, %v2129_v50  ;;  %v5187_v42 = vunpack.c.h.bf16 %v5509_v27  ;;  %v5186_v1 = vunpack.c.l.bf16 %v5509_v27  ;;  %v1570_v37 = vmul.f32 %v6355_v58, %v1438_v34 }
 0x1f9   : > { %v1437_v50 = vmax.f32 %v1309_v45, 0.0  ;;  %v1439_v34 = vmax.f32 %v1311_v4, 0.0 }
 0x1fa   : > { %v1725_v59 = vpop.xlane.xlu2 %1724  ;;  %v1723_v62 = vpop.xlane.xlu1 %1722 }
 0x1fb   : > { %v1721_v63 = vpop.xlane.xlu0 %1720  ;;  %v2134_v38 = vperm.slane %v1723_v62, %v6474_v39  ;;  %v2136_v22 = vperm.slane %v1725_v59, %v6487_v36  ;;  %v1569_v59 = vmul.f32 %v6355_v58, %v1437_v50 }
 0x1fc   : > { %v2132_v18 = vperm.slane %v1721_v63, %v6477_v28 }
 0x1fe   : > { %v2133_v23 = vsel %vm1994_vm7, %v2132_v18, %v2131_v61  ;;  %v1568_v18 = vmul.f32 %v6355_v58, %v1436_v57 }
 0x1ff   : > { %1814 = vadd.xlane.f32.xlu2 %v1567_v25  ;;  %1812 = vadd.xlane.f32.xlu1 %v1566_v49  ;;  %v2135_v46 = vsel %vm8297_vm8, %v2134_v38, %v2133_v23  ;;  %v1312_v23 = vadd.f32 %v5186_v1, %v6525_v26  ;;  %v5510_v38 = vld [vmem:[%s8280_s1 + $0x1f8] sm:$0xff]  }
 0x200   : > { %1810 = vadd.xlane.f32.xlu0 %v1565_v41  ;;  %v2137_v61 = vsel %vm8296_vm9, %v2136_v22, %v2135_v46  ;;  %v1313_v41 = vadd.f32 %v5187_v42, %v6525_v26  ;;  %v5190_v45 = vunpack.c.l.bf16 %v5510_v38  ;;  %v5191_v42 = vunpack.c.h.bf16 %v5510_v38 }
 0x201   : > { %v1440_v48 = vmax.f32 %v1312_v23, 0.0 }
 0x202   : > { %v1731_v15 = vpop.xlane.xlu2 %1730  ;;  %v1729_v20 = vpop.xlane.xlu1 %1728  ;;  %v1441_v49 = vmax.f32 %v1313_v41, 0.0 }
 0x203   : > { %v1727_v63 = vpop.xlane.xlu0 %1726  ;;  %v2140_v3 = vperm.slane %v1729_v20, %v6504_v60  ;;  %v2142_v46 = vperm.slane %v1731_v15, %v6510_v44  ;;  %v1315_v15 = vadd.f32 %v5191_v42, %v6525_v26 }
 0x204   : > { %v2138_v62 = vperm.slane %v1727_v63, %v6501_v47  ;;  %v1573_v20 = vmul.f32 %v6355_v58, %v1441_v49 }
 0x206   : > { %v2139_v25 = vsel %vm8298_vm10, %v2138_v62, %v2137_v61  ;;  %v1314_v62 = vadd.f32 %v5190_v45, %v6525_v26  ;;  %v1571_v61 = vmul.f32 %v6355_v58, %v1439_v34 }
 0x207   : > { %1820 = vadd.xlane.f32.xlu2 %v1570_v37  ;;  %1818 = vadd.xlane.f32.xlu1 %v1569_v59  ;;  %v2141_v27 = vsel %vm2010_vm11, %v2140_v3, %v2139_v25  ;;  %v1572_v37 = vmul.f32 %v6355_v58, %v1440_v48  ;;  %v1443_v25 = vmax.f32 %v1315_v15, 0.0 }
 0x208   : > { %1816 = vadd.xlane.f32.xlu0 %v1568_v18  ;;  %v2143_v63 = vsel %vm2014_vm12, %v2142_v46, %v2141_v27  ;;  %v1442_v41 = vmax.f32 %v1314_v62, 0.0 }
 0x209   : > { %v1575_v27 = vmul.f32 %v6355_v58, %v1443_v25 }
 0x20a   : > { %v1737_v57 = vpop.xlane.xlu2 %1736  ;;  %v6617_v22 = vpop.xlane.xlu1 %1734  ;;  %v1574_v45 = vmul.f32 %v6355_v58, %v1442_v41 }
 0x20b   : > { %v1733_v50 = vpop.xlane.xlu0 %1732  ;;  %v2148_v38 = vperm.slane %v1737_v57, %v6412_v56 }
 0x20c   : > { %v2144_v1 = vperm.slane %v1733_v50, %v6528_v19 }
 0x20e   : > { %v6624_v18 = vsel %vm2018_vm13, %v2144_v1, %v2143_v63 }
 0x20f   : > { %1826 = vadd.xlane.f32.xlu2 %v1573_v20  ;;  %1824 = vadd.xlane.f32.xlu1 %v1572_v37 }
 0x210   : > { %1822 = vadd.xlane.f32.xlu0 %v1571_v61 }
 0x212   : > { %v1743_v4 = vpop.xlane.xlu2 %1742  ;;  %v1741_v59 = vpop.xlane.xlu1 %1740 }
 0x213   : > { %v1739_v3 = vpop.xlane.xlu0 %1738  ;;  %v2151_v49 = vperm.slane %v1741_v59, %v6423_v17  ;;  %v2153_v42 = vperm.slane %v1743_v4, %v6426_v21 }
 0x214   : > { %v2149_v23 = vperm.slane %v1739_v3, %v6418_v2 }
 0x216   : > { %v2150_v26 = vsel %vm1966_vm0, %v2149_v23, %v2148_v38 }
 0x217   : > { %1830 = vadd.xlane.f32.xlu1 %v1575_v27  ;;  %v2152_v34 = vsel %vm1970_vm1, %v2151_v49, %v2150_v26 }
 0x218   : > { %1828 = vadd.xlane.f32.xlu0 %v1574_v45  ;;  %v2154_v57 = vsel %vm1974_vm2, %v2153_v42, %v2152_v34 }
 0x21a   : > { %v1749_v48 = vpop.xlane.xlu2 %1748  ;;  %v1747_v50 = vpop.xlane.xlu1 %1746 }
 0x21b   : > { %v1745_v46 = vpop.xlane.xlu0 %1744  ;;  %v2157_v20 = vperm.slane %v1747_v50, %v6453_v5  ;;  %v2159_v61 = vperm.slane %v1749_v48, %v6450_v55 }
 0x21c   : > { %v2155_v1 = vperm.slane %v1745_v46, %v6444_v11 }
 0x21e   : > { %v2156_v63 = vsel %vm1978_vm3, %v2155_v1, %v2154_v57 }
 0x21f   : > { %v2158_v58 = vsel %vm1982_vm4, %v2157_v20, %v2156_v63 }
 0x220   : > { %v2160_v4 = vsel %vm1986_vm5, %v2159_v61, %v2158_v58 }
 0x222   : > { %v1755_v62 = vpop.xlane.xlu2 %1754  ;;  %v1753_v15 = vpop.xlane.xlu1 %1752 }
 0x223   : > { %v1751_v37 = vpop.xlane.xlu0 %1750  ;;  %v2163_v3 = vperm.slane %v1753_v15, %v6477_v28  ;;  %v2165_v38 = vperm.slane %v1755_v62, %v6474_v39  ;;  %v1965_v15 = vperm.slane %v6146_v31, %v6418_v2 }
 0x224   : > { %v2161_v41 = vperm.slane %v1751_v37, %v6465_v12 }
 0x226   : > { %v2162_v25 = vsel %vm1990_vm6, %v2161_v41, %v2160_v4  ;;  %v2056_v41 = vperm.slane %v6315_v33, %v6418_v2  ;;  %v1963_v4 = vperm.slane %v6131_v14, %v6412_v56  ;;  %v2058_v33 = vperm.slane %v6317_v35, %v6423_v17 }
 0x227   : > { %v2164_v59 = vsel %vm1994_vm7, %v2163_v3, %v2162_v25  ;;  %v2025_v25 = vperm.slane %v6211_v43, %v6418_v2  ;;  %v2024_v3 = vperm.slane %v6215_v51, %v6412_v56  ;;  %v1969_v43 = vperm.slane %v6129_v13, %v6423_v17 }
 0x228   : > { %v2166_v26 = vsel %vm8297_vm8, %v2165_v38, %v2164_v59  ;;  %v2027_v59 = vperm.slane %v6231_v6, %v6423_v17  ;;  %v1967_v31 = vsel %vm1966_vm0, %v1965_v15, %v1963_v4  ;;  %v2029_v6 = vperm.slane %v6233_v7, %v6426_v21 }
 0x229   : > { %v1977_v13 = vperm.slane %v6127_v9, %v6444_v11 }
 0x22a   : > { %v1761_v23 = vpop.xlane.xlu2 %1760  ;;  %v1759_v45 = vpop.xlane.xlu1 %1758 }
 0x22b   : > { %v1757_v49 = vpop.xlane.xlu0 %1756  ;;  %v2169_v48 = vperm.slane %v1759_v45, %v6501_v47  ;;  %v2171_v50 = vperm.slane %v1761_v23, %v6504_v60  ;;  %v2055_v23 = vperm.slane %v6298_v54, %v6412_v56  ;;  %v2026_v45 = vsel %vm1966_vm0, %v2025_v25, %v2024_v3 }
 0x22c   : > { %v2167_v27 = vperm.slane %v1757_v49, %v6487_v36  ;;  %v1971_v54 = vsel %vm1970_vm1, %v1969_v43, %v1967_v31  ;;  %v1989_v31 = vperm.slane %v6162_v52, %v6465_v12 }
 0x22d   : > { %v2057_v51 = vsel %vm1966_vm0, %v2056_v41, %v2055_v23 }
 0x22e   : > { %v2168_v34 = vsel %vm8296_vm9, %v2167_v27, %v2166_v26  ;;  %v2028_v27 = vsel %vm1970_vm1, %v2027_v59, %v2026_v45  ;;  %v1973_v26 = vperm.slane %v6144_v30, %v6426_v21  ;;  %v2059_v35 = vsel %vm1970_vm1, %v2058_v33, %v2057_v51 }
 0x22f   : > { %v2170_v42 = vsel %vm8298_vm10, %v2169_v48, %v2168_v34  ;;  %v2062_v34 = vperm.slane %v6333_v8, %v6444_v11  ;;  %v2060_v48 = vperm.slane %v6313_v16, %v6426_v21  ;;  %v2033_v30 = vperm.slane %v6246_v29, %v6453_v5 }
 0x230   : > { %v2172_v20 = vsel %vm2010_vm11, %v2171_v50, %v2170_v42  ;;  %v1975_v7 = vsel %vm1974_vm2, %v1973_v26, %v1971_v54  ;;  %v2031_v42 = vperm.slane %v6229_v0, %v6444_v11  ;;  %v2030_v50 = vsel %vm1974_vm2, %v2029_v6, %v2028_v27  ;;  %v8333_v54 = vld [vmem:[#allocation27_spill] sm:$0xff] }
 0x231   : > { %v2064_v8 = vperm.slane %v6335_v10, %v6453_v5  ;;  %v1979_v41 = vsel %vm1978_vm3, %v1977_v13, %v1975_v7  ;;  %v1985_v29 = vperm.slane %v6164_v53, %v6450_v55  ;;  %v2035_v10 = vperm.slane %v6248_v32, %v6450_v55  ;;  %v8334_v7 = vld [vmem:[#allocation11_spill] sm:$0xff] }
 0x232   : > { %v6654_v46 = vpop.xlane.xlu2 %1766  ;;  %v6657_v57 = vpop.xlane.xlu1 %1764  ;;  %v2032_v4 = vsel %vm1978_vm3, %v2031_v42, %v2030_v50  ;;  %v2068_v59 = vperm.slane %v6348_v40, %v6465_v12  ;;  %v8332_v40 = vld [vmem:[#allocation18_spill] sm:$0xff]  ;;  %v2070_v52 = vperm.slane %v8333_v54, %v6477_v28  ;;  %v1997_v42 = vperm.slane %v8334_v7, %v6474_v39  ;;  %v8345_v7 = vld [vmem:[#allocation9_spill] sm:$0xff] }
 0x233   : > { %v1763_v1 = vpop.xlane.xlu0 %1762  ;;  %v2039_v6 = vperm.slane %v8332_v40, %v6477_v28 }
 0x234   : > { %v2173_v63 = vperm.slane %v1763_v1, %v6510_v44  ;;  %v2061_v1 = vsel %vm1974_vm2, %v2060_v48, %v2059_v35 }
 0x236   : > { %v6662_v58 = vsel %vm2014_vm12, %v2173_v63, %v2172_v20  ;;  %v2063_v20 = vsel %vm1978_vm3, %v2062_v34, %v2061_v1 }
 0x237   : > { %v2065_v3 = vsel %vm1982_vm4, %v2064_v8, %v2063_v20 }
 0x23a   : > { %v1773_v62 = vpop.xlane.xlu2 %1772  ;;  %v1771_v37 = vpop.xlane.xlu1 %1770 }
 0x23b   : > { %v1769_v61 = vpop.xlane.xlu0 %1768  ;;  %v2180_v63 = vperm.slane %v1771_v37, %v6418_v2  ;;  %v2034_v37 = vsel %vm1982_vm4, %v2033_v30, %v2032_v4  ;;  %v2182_v25 = vperm.slane %v1773_v62, %v6423_v17  ;;  %v8331_v62 = vld [vmem:[#allocation16_spill] sm:$0xff]  ;;  %v8335_v30 = vld [vmem:[#allocation19_spill] sm:$0xff] }
 0x23c   : > { %v2179_v9 = vperm.slane %v1769_v61, %v6412_v56  ;;  %v1981_v61 = vperm.slane %v6142_v24, %v6453_v5  ;;  %v8330_v24 = vld [vmem:[#allocation25_spill] sm:$0xff]  ;;  %v2037_v51 = vperm.slane %v8331_v62, %v6465_v12  ;;  %v2036_v45 = vsel %vm1986_vm5, %v2035_v10, %v2034_v37  ;;  %v8338_v37 = vld [vmem:[#allocation10_spill] sm:$0xff] }
 0x23d   : > { %v2066_v33 = vperm.slane %v8330_v24, %v6450_v55  ;;  %v2041_v1 = vperm.slane %v8335_v30, %v6474_v39 }
 0x23e   : > { %v2181_v23 = vsel %vm1966_vm0, %v2180_v63, %v2179_v9  ;;  %v1983_v32 = vsel %vm1982_vm4, %v1981_v61, %v1979_v41  ;;  %v2038_v50 = vsel %vm1990_vm6, %v2037_v51, %v2036_v45  ;;  %v8342_v51 = vld [vmem:[#allocation30_spill] sm:$0xff] }
 0x23f   : > { %v1987_v43 = vsel %vm1986_vm5, %v1985_v29, %v1983_v32  ;;  %v2183_v27 = vsel %vm1970_vm1, %v2182_v25, %v2181_v23  ;;  %v2040_v20 = vsel %vm1994_vm7, %v2039_v6, %v2038_v50  ;;  %v8337_v29 = vld [vmem:[#allocation29_spill] sm:$0xff]  ;;  %v2001_v25 = vperm.slane %v8338_v37, %v6487_v36 }
 0x240   : > { %v1991_v48 = vsel %vm1990_vm6, %v1989_v31, %v1987_v43  ;;  %v2074_v4 = vperm.slane %v8337_v29, %v6487_v36  ;;  %v8340_v32 = vld [vmem:[#allocation17_spill] sm:$0xff]  ;;  %v2076_v45 = vperm.slane %v8342_v51, %v6501_v47 }
 0x241   : > { %v2043_v24 = vperm.slane %v8340_v32, %v6487_v36  ;;  %v8347_v29 = vld [vmem:[#allocation13_spill] sm:$0xff] }
 0x242   : > { %v6678_v38 = vpop.xlane.xlu2 %1778  ;;  %v1777_v49 = vpop.xlane.xlu1 %1776 }
 0x243   : > { %v1775_v14 = vpop.xlane.xlu0 %1774  ;;  %v2186_v26 = vperm.slane %v1777_v49, %v6444_v11  ;;  %v8336_v49 = vld [vmem:[#allocation8_spill] sm:$0xff] }
 0x244   : > { %v2184_v53 = vperm.slane %v1775_v14, %v6426_v21  ;;  %v2067_v14 = vsel %vm1986_vm5, %v2066_v33, %v2065_v3  ;;  %v1993_v63 = vperm.slane %v8336_v49, %v6477_v28  ;;  %v2042_v33 = vsel %vm8297_vm8, %v2041_v1, %v2040_v20  ;;  %v8346_v49 = vld [vmem:[#allocation32_spill] sm:$0xff] }
 0x245   : > { %v2069_v35 = vsel %vm1990_vm6, %v2068_v59, %v2067_v14  ;;  %v8339_v59 = vld [vmem:[#allocation26_spill] sm:$0xff] }
 0x246   : > { %v2185_v34 = vsel %vm1974_vm2, %v2184_v53, %v2183_v27  ;;  %v2071_v41 = vsel %vm1994_vm7, %v2070_v52, %v2069_v35  ;;  %v1995_v3 = vsel %vm1994_vm7, %v1993_v63, %v1991_v48  ;;  %v2072_v23 = vperm.slane %v8339_v59, %v6474_v39  ;;  %v8343_v52 = vld [vmem:[#allocation14_spill] sm:$0xff]  ;;  %v8349_v59 = vld [vmem:[#allocation20_spill] sm:$0xff] }
 0x247   : > { %v2187_v10 = vsel %vm1978_vm3, %v2186_v26, %v2185_v34  ;;  %v2188_v53 = vperm.slane %v6678_v38, %v6453_v5  ;;  %v1999_v31 = vsel %vm8297_vm8, %v1997_v42, %v1995_v3  ;;  %v2009_v27 = vperm.slane %v8343_v52, %v6504_v60  ;;  %v8344_v35 = vld [vmem:[#allocation22_spill] sm:$0xff] }
 0x248   : > { %v2073_v62 = vsel %vm8297_vm8, %v2072_v23, %v2071_v41  ;;  %v2003_v54 = vsel %vm8296_vm9, %v2001_v25, %v1999_v31  ;;  %v2044_v26 = vsel %vm8296_vm9, %v2043_v24, %v2042_v33  ;;  %v2047_v34 = vperm.slane %v8344_v35, %v6504_v60  ;;  %v8351_v24 = vld [vmem:[#allocation33_spill] sm:$0xff] }
 0x249   : > { %v2189_v40 = vsel %vm1982_vm4, %v2188_v53, %v2187_v10  ;;  %v2075_v6 = vsel %vm8296_vm9, %v2074_v4, %v2073_v62  ;;  %v2005_v42 = vperm.slane %v8345_v7, %v6501_v47  ;;  %v2080_v63 = vperm.slane %v8346_v49, %v6510_v44 }
 0x24a   : > { %v6711_v16 = vpop.xlane.xlu2 %1784  ;;  %v6714_v0 = vpop.xlane.xlu1 %1782  ;;  %v2077_v1 = vsel %vm8298_vm10, %v2076_v45, %v2075_v6  ;;  %v2013_v4 = vperm.slane %v8347_v29, %v6510_v44  ;;  %v2049_v23 = vperm.slane %v8349_v59, %v6510_v44  ;;  %v2082_v33 = vperm.slane %v8351_v24, %v6528_v19  ;;  %v8352_v45 = vld [vmem:[#allocation34_spill] sm:$0xff]  ;;  %v8354_v6 = vld [vmem:[#allocation12_spill] sm:$0xff]  ;;  %v8357_v59 = vld [vmem:[#allocation35_spill] sm:$0xff] }
 0x24b   : > { %v1781_v15 = vpop.xlane.xlu0 %1780  ;;  %v2192_v38 = vperm.slane %v6714_v0, %v6465_v12  ;;  %v2007_v10 = vsel %vm8298_vm10, %v2005_v42, %v2003_v54  ;;  %v2194_v25 = vperm.slane %v6711_v16, %v6477_v28 }
 0x24c   : > { %v2190_v61 = vperm.slane %v1781_v15, %v6450_v55  ;;  %v8341_v15 = vld [vmem:[#allocation21_spill] sm:$0xff]  ;;  %v2011_v3 = vsel %vm2010_vm11, %v2009_v27, %v2007_v10 }
 0x24d   : > { %v2045_v43 = vperm.slane %v8341_v15, %v6501_v47  ;;  %v2015_v54 = vsel %vm2014_vm12, %v2013_v4, %v2011_v3 }
 0x24e   : > { %v2191_v14 = vsel %vm1986_vm5, %v2190_v61, %v2189_v40  ;;  %v8348_v61 = vld [vmem:[#allocation28_spill] sm:$0xff] }
 0x24f   : > { %v2046_v0 = vsel %vm8298_vm10, %v2045_v43, %v2044_v26  ;;  %v2193_v20 = vsel %vm1990_vm6, %v2192_v38, %v2191_v14  ;;  %v2078_v37 = vperm.slane %v8348_v61, %v6504_v60  ;;  %v8353_v40 = vld [vmem:[#allocation24_spill] sm:$0xff]  ;;  %v2017_v14 = vperm.slane %v8354_v6, %v6528_v19  ;;  %v8355_v26 = vld [vmem:[#allocation15_spill] sm:$0xff] }
 0x250   : > { %v2048_v53 = vsel %vm2010_vm11, %v2047_v34, %v2046_v0  ;;  %v2195_v15 = vsel %vm1994_vm7, %v2194_v25, %v2193_v20  ;;  %v2053_v38 = vperm.slane %v8353_v40, %v8352_v45 }
 0x251   : > { %v2079_v32 = vsel %vm2010_vm11, %v2078_v37, %v2077_v1  ;;  %v2050_v51 = vsel %vm2014_vm12, %v2049_v23, %v2048_v53  ;;  %v8356_v1 = vld [vmem:[#allocation31_spill] sm:$0xff] }
 0x252   : > { %v6749_v13 = vpop.xlane.xlu2 %1790  ;;  %v1789_v9 = vpop.xlane.xlu1 %1788  ;;  %v2081_v16 = vsel %vm2014_vm12, %v2080_v63, %v2079_v32  ;;  %v2084_v49 = vperm.slane %v8356_v1, %v8352_v45  ;;  %v2146_v63 = vperm.slane %v6617_v22, %v8352_v45  ;;  %v2175_v22 = vperm.slane %v6657_v57, %v6528_v19 }
 0x253   : > { %v1787_v8 = vpop.xlane.xlu0 %1786  ;;  %v2198_v43 = vperm.slane %v1789_v9, %v6487_v36  ;;  %v2021_v9 = vperm.slane %v8355_v26, %v8352_v45  ;;  %v2083_v35 = vsel %vm2018_vm13, %v2082_v33, %v2081_v16  ;;  %v2200_v20 = vperm.slane %v6749_v13, %v6501_v47 }
 0x254   : > { %v2196_v41 = vperm.slane %v1787_v8, %v6474_v39  ;;  %v8350_v8 = vld [vmem:[#allocation23_spill] sm:$0xff]  ;;  %v2085_v4 = vsel %vm2022_vm14, %v2084_v49, %v2083_v35  ;;  %v2147_v25 = vsel %vm2022_vm14, %v2146_v63, %v6624_v18  ;;  %v2176_v57 = vsel %vm2018_vm13, %v2175_v22, %v6662_v58 }
 0x255   : > { %v2051_v31 = vperm.slane %v8350_v8, %v6528_v19  ;;  %v2177_v33 = vperm.slane %v6654_v46, %v8352_v45 }
 0x256   : > { %v2197_v62 = vsel %vm8297_vm8, %v2196_v41, %v2195_v15  ;;  %v2019_v41 = vsel %vm2018_vm13, %v2017_v14, %v2015_v54  ;;  %vm8299_vm8 = vcmask 1043459  }
 0x257   : > { %v2052_v52 = vsel %vm2018_vm13, %v2051_v31, %v2050_v51  ;;  %v2199_v34 = vsel %vm8296_vm9, %v2198_v43, %v2197_v62  ;;  %vm8300_vm9 = vcmask 1042434   ;;  %v2023_v61 = vsel %vm2022_vm14, %v2021_v9, %v2019_v41 }
 0x258   : > { %v2054_v29 = vsel %vm2022_vm14, %v2053_v38, %v2052_v52  ;;  %v2178_v51 = vsel %vm2022_vm14, %v2177_v33, %v2176_v57 }
 0x259   : > { %v2242_v37 = vsel %vm2241_vm15, %v2054_v29, %v2023_v61 }
 0x25a   : > { %v6792_v48 = vpop.xlane.xlu2 %1796  ;;  %v1795_v30 = vpop.xlane.xlu1 %1794  ;;  %v2244_v3 = vsel %vm8300_vm9, %v2085_v4, %v2242_v37  ;;  %vm2251_vm9 = vcmask 1046534  }
 0x25b   : > { %v1793_v50 = vpop.xlane.xlu0 %1792  ;;  %v2204_v10 = vperm.slane %v1795_v30, %v6510_v44  ;;  %v2246_v23 = vsel %vm8299_vm8, %v8357_v59, %v2244_v3  ;;  %v2206_v31 = vperm.slane %v6792_v48, %v6528_v19  ;;  %vm2249_vm8 = vcmask 1045509  }
 0x25c   : > { %v2202_v7 = vperm.slane %v1793_v50, %v6504_v60  ;;  %v2201_v50 = vsel %vm8298_vm10, %v2200_v20, %v2199_v34  ;;  %vm2247_vm10 = vcmask 1044484  }
 0x25d   : > { %v2248_v18 = vsel %vm2247_vm10, %v2147_v25, %v2246_v23 }
 0x25e   : > { %v2203_v13 = vsel %vm2010_vm11, %v2202_v7, %v2201_v50  ;;  %v2250_v48 = vsel %vm2249_vm8, %v2178_v51, %v2248_v18 }
 0x25f   : > { %v2205_v30 = vsel %vm2014_vm12, %v2204_v10, %v2203_v13 }
 0x260   : > { %v2207_v15 = vsel %vm2018_vm13, %v2206_v31, %v2205_v30 }
 0x262   : > { %v1803_v27 = vpop.xlane.xlu2 %1802  ;;  %v1801_v0 = vpop.xlane.xlu1 %1800 }
 0x263   : > { %v1799_v42 = vpop.xlane.xlu0 %1798  ;;  %v2211_v43 = vperm.slane %v1803_v27, %v6418_v2  ;;  %v2210_v16 = vperm.slane %v1801_v0, %v6412_v56 }
 0x264   : > { %v2208_v53 = vperm.slane %v1799_v42, %v8352_v45 }
 0x265   : > { %v2212_v40 = vsel %vm1966_vm0, %v2211_v43, %v2210_v16  ;;  %vm8358_vm0 = vcmask 654912  }
 0x266   : > { %v2209_v62 = vsel %vm2022_vm14, %v2208_v53, %v2207_v15 }
 0x267   : > { %v2252_v38 = vsel %vm2251_vm9, %v2209_v62, %v2250_v48 }
 0x26a   : > { %v1809_v8 = vpop.xlane.xlu2 %1808  ;;  %v1807_v24 = vpop.xlane.xlu1 %1806 }
 0x26b   : > { %v1805_v32 = vpop.xlane.xlu0 %1804  ;;  %v2215_v46 = vperm.slane %v1807_v24, %v6426_v21  ;;  %v2217_v27 = vperm.slane %v1809_v8, %v6444_v11 }
 0x26c   : > { %v2213_v58 = vperm.slane %v1805_v32, %v6423_v17 }
 0x26e   : > { %v2214_v2 = vsel %vm1970_vm1, %v2213_v58, %v2212_v40  ;;  %vm8359_vm1 = vcmask 720512  }
 0x26f   : > { %v2216_v52 = vsel %vm1974_vm2, %v2215_v46, %v2214_v2  ;;  %vm8360_vm2 = vcmask 786112  }
 0x270   : > { %v2218_v26 = vsel %vm1978_vm3, %v2217_v27, %v2216_v52  ;;  %vm2253_vm3 = vcmask 1047559   ;;  %v5193_v52 = vld [vmem:[%s8281_s2] sm:$0xff]  }
 0x271   : > { %v5194_v27 = vunpack.c.l.bf16 %v5193_v52 }
 0x272   : > { %v1813_v14 = vpop.xlane.xlu1 %1812  ;;  %v1815_v54 = vpop.xlane.xlu2 %1814 }
 0x273   : > { %v1811_v6 = vpop.xlane.xlu0 %1810  ;;  %v2221_v9 = vperm.slane %v1813_v14, %v6450_v55  ;;  %v2223_v0 = vperm.slane %v1815_v54, %v6465_v12 }
 0x274   : > { %v2219_v17 = vperm.slane %v1811_v6, %v6453_v5 }
 0x276   : > { %v2220_v35 = vsel %vm1982_vm4, %v2219_v17, %v2218_v26  ;;  %vm1834_vm4 = vcmp.lt.s32.totalorder %v6412_v56, 16 }
 0x277   : > { %v2222_v7 = vsel %vm1986_vm5, %v2221_v9, %v2220_v35  ;;  %v5195_v9 = vunpack.c.h.bf16 %v5193_v52  ;;  %vm8362_vm5 = vcmask 1042434  }
 0x278   : > { %v2224_v49 = vsel %vm1990_vm6, %v2223_v0, %v2222_v7  ;;  %vm8363_vm6 = vcmask 1043459  }
 0x27a   : > { %v1819_v34 = vpop.xlane.xlu1 %1818  ;;  %v1821_v1 = vpop.xlane.xlu2 %1820 }
 0x27b   : > { %v1817_v21 = vpop.xlane.xlu0 %1816  ;;  %v2227_v5 = vperm.slane %v1819_v34, %v6474_v39  ;;  %v2229_v41 = vperm.slane %v1821_v1, %v6487_v36 }
 0x27c   : > { %v2225_v42 = vperm.slane %v1817_v21, %v6477_v28  ;;  %v5511_v21 = vld [vmem:[%s8281_s2 + $0x8] sm:$0xff]  }
 0x27e   : > { %v2226_v11 = vsel %vm1994_vm7, %v2225_v42, %v2224_v49  ;;  %v5198_v42 = vunpack.c.l.bf16 %v5511_v21  ;;  %v5512_v49 = vld [vmem:[%s8281_s2 + $0x10] sm:$0xff]  }
 0x27f   : > { %v2228_v63 = vsel %vm8358_vm0, %v2227_v5, %v2226_v11  ;;  %v5199_v5 = vunpack.c.h.bf16 %v5511_v21 }
 0x280   : > { %v2230_v4 = vsel %vm8359_vm1, %v2229_v41, %v2228_v63  ;;  %v5202_v63 = vunpack.c.l.bf16 %v5512_v49 }
 0x282   : > { %v1825_v20 = vpop.xlane.xlu1 %1824  ;;  %v1827_v50 = vpop.xlane.xlu2 %1826 }
 0x283   : > { %v1823_v55 = vpop.xlane.xlu0 %1822  ;;  %v2233_v28 = vperm.slane %v1825_v20, %v6504_v60  ;;  %v2235_v39 = vperm.slane %v1827_v50, %v6510_v44  ;;  %v5513_v50 = vld [vmem:[%s8281_s2 + $0x18] sm:$0xff]  }
 0x284   : > { %v2231_v29 = vperm.slane %v1823_v55, %v6501_v47 }
 0x286   : > { %v2232_v12 = vsel %vm8360_vm2, %v2231_v29, %v2230_v4 }
 0x287   : > { %v2234_v10 = vsel %vm2010_vm11, %v2233_v28, %v2232_v12  ;;  %v5203_v28 = vunpack.c.h.bf16 %v5512_v49 }
 0x288   : > { %v2236_v36 = vsel %vm2014_vm12, %v2235_v39, %v2234_v10  ;;  %v5206_v39 = vunpack.c.l.bf16 %v5513_v50 }
 0x28a   : > { %v1831_v22 = vpop.xlane.xlu1 %1830 }
 0x28b   : > { %v1829_v61 = vpop.xlane.xlu0 %1828  ;;  %v2239_v37 = vperm.slane %v1831_v22, %v8352_v45  ;;  %v8361_v45 = vlaneseq  ;;  %v5207_v22 = vunpack.c.h.bf16 %v5513_v50 }
 0x28c   : > { %v2237_v13 = vperm.slane %v1829_v61, %v6528_v19 }
 0x28d   : > { %v6903_v30 = vshrl.u32 %v8361_v45, 7 }
 0x28e   : > { %v2238_v47 = vsel %vm2018_vm13, %v2237_v13, %v2236_v36 }
 0x28f   : > { %v2240_v60 = vsel %vm2022_vm14, %v2239_v37, %v2238_v47  ;;  %5599 = vset.pattern.permute.xlu1 %v6903_v30  ;;  %v6907_v56 = vadd.s32 16, %v6903_v30  ;;  %v6910_v53 = vadd.s32 8, %v6903_v30  ;;  %v6924_v24 = vadd.s32 72, %v6903_v30 }
 0x290   : > { %v2254_v25 = vsel %vm2253_vm3, %v2240_v60, %v2252_v38  ;;  %v6927_v18 = vadd.s32 24, %v6903_v30  ;;  %v6930_v33 = vadd.s32 32, %v6903_v30  ;;  %v6936_v15 = vadd.s32 112, %v6903_v30 }
 0x291   : > { %v2256_v3 = vsel %vm1834_vm4, %v2254_v25, -1e+30  ;;  %5601 = vset.pattern.permute.xlu0 %v6907_v56  ;;  %5600 = vset.pattern.permute.xlu2 %v6910_v53  ;;  %v6939_v43 = vadd.s32 40, %v6903_v30  ;;  %v6942_v16 = vadd.s32 48, %v6903_v30  ;;  %v6948_v62 = vadd.s32 56, %v6903_v30 }
 0x292   : > { %2257 = vmax.xlane.f32.xlu2 %v2256_v3  ;;  %v6951_v58 = vadd.s32 64, %v6903_v30  ;;  %v6961_v48 = vadd.s32 80, %v6903_v30  ;;  %v6964_v40 = vadd.s32 88, %v6903_v30  ;;  %v6971_v46 = vadd.s32 104, %v6903_v30 }
 0x293   : > { %v6974_v38 = vadd.s32 96, %v6903_v30  ;;  %v6981_v2 = vadd.s32 120, %v6903_v30 }
 0x305   : > { %v2258_v44 = vpop.xlane.xlu2 %2257 }
 0x306   : > { %v2259_v59 = vsub.f32 %v2256_v3, %v2258_v44 }
 0x308   : > { %v2260_v23 = vmul.f32 1.442695, %v2259_v59  ;;  %v5514_v59 = vld [vmem:[%s8281_s2 + $0x20] sm:$0xff]  }
 0x309   : > { %v5211_v45 = vunpack.c.h.bf16 %v5514_v59 }
 0x30a   : > { %5711 = vpow2.f32 %v2260_v23  ;;  %v5210_v23 = vunpack.c.l.bf16 %v5514_v59 }
 0x310   : > { %v5712_v19 = vpop.eup %5711 }
 0x311   : > { %2262 = vadd.xlane.f32.xlu0 %v5712_v19 }
 0x384   : > { %v2263_v8 = vpop.xlane.xlu0 %2262 }
 0x385   : > { %5713 = vrcp.f32 %v2263_v8 }
 0x38b   : > { %v5714_v57 = vpop.eup %5713 }
 0x38c   : > { %v6914_v31 = vmul.f32 %v5714_v57, %v5712_v19  ;;  %v5515_v19 = vld [vmem:[%s8281_s2 + $0x28] sm:$0xff]  }
 0x38e   : > { %v2522_v32 = vperm.slane %v6914_v31, 0  ;;  %4166 = vst [vmem:[%s497_s15] sm:$0xff] %v6914_v31  ;;  %v6957_v51 = vperm.slane %v6914_v31, 1  ;;  %v6987_v6 = vperm.slane %v6914_v31, 2  ;;  %v6995_v14 = vperm.slane %v6914_v31, 3 }
 0x38f   : > { %v7007_v17 = vperm.slane %v6914_v31, 4  ;;  %v7031_v44 = vperm.slane %v6914_v31, 6 }
 0x390   : > { %2539 = vperm.xlu0 %5601, %v2522_v32   ;;  %2533 = vperm.xlu2 %5600, %v2522_v32  }
 0x391   : > { %2527 = vperm.xlu1 %5599, %v2522_v32  }
 0x398   : > { %5608 = vset.pattern.permute.xlu0 %v6924_v24  ;;  %5602 = vset.pattern.permute.xlu2 %v6927_v18 }
 0x399   : > { %5603 = vset.pattern.permute.xlu1 %v6930_v33 }
 0x3a0   : > { %2581 = vperm.xlu0 %5608, %v2522_v32   ;;  %2545 = vperm.xlu2 %5602, %v2522_v32  }
 0x3a1   : > { %2551 = vperm.xlu1 %5603, %v2522_v32  }
 0x3a8   : > { %5613 = vset.pattern.permute.xlu0 %v6936_v15  ;;  %5604 = vset.pattern.permute.xlu2 %v6939_v43 }
 0x3a9   : > { %5605 = vset.pattern.permute.xlu1 %v6942_v16 }
 0x3b0   : > { %2611 = vperm.xlu0 %5613, %v2522_v32   ;;  %2557 = vperm.xlu2 %5604, %v2522_v32  }
 0x3b1   : > { %2563 = vperm.xlu1 %5605, %v2522_v32  }
 0x3b8   : > { %5618 = vset.pattern.permute.xlu0 %v6927_v18  ;;  %5606 = vset.pattern.permute.xlu2 %v6948_v62 }
 0x3b9   : > { %5607 = vset.pattern.permute.xlu1 %v6951_v58 }
 0x3c0   : > { %2642 = vperm.xlu0 %5618, %v6957_v51   ;;  %2569 = vperm.xlu2 %5606, %v2522_v32  }
 0x3c1   : > { %2575 = vperm.xlu1 %5607, %v2522_v32  }
 0x3c8   : > { %5623 = vset.pattern.permute.xlu0 %v6951_v58  ;;  %5609 = vset.pattern.permute.xlu2 %v6961_v48 }
 0x3c9   : > { %5610 = vset.pattern.permute.xlu1 %v6964_v40 }
 0x3d0   : > { %2672 = vperm.xlu0 %5623, %v6957_v51   ;;  %2587 = vperm.xlu2 %5609, %v2522_v32  }
 0x3d1   : > { %2593 = vperm.xlu1 %5610, %v2522_v32  }
 0x3d8   : > { %5628 = vset.pattern.permute.xlu0 %v6971_v46  ;;  %5611 = vset.pattern.permute.xlu2 %v6974_v38 }
 0x3d9   : > { %5612 = vset.pattern.permute.xlu1 %v6971_v46 }
 0x3e0   : > { %2702 = vperm.xlu0 %5628, %v6957_v51   ;;  %2599 = vperm.xlu2 %5611, %v2522_v32  }
 0x3e1   : > { %2605 = vperm.xlu1 %5612, %v2522_v32  }
 0x3e8   : > { %5633 = vset.pattern.permute.xlu0 %v6907_v56  ;;  %5614 = vset.pattern.permute.xlu2 %v6981_v2 }
 0x3e9   : > { %5615 = vset.pattern.permute.xlu1 %v6903_v30 }
 0x3ea   : > { %v2534_v54 = vpop.permute.xlu2 %2533 }
 0x3eb   : > { %v3299_v7 = vmul.f32 %v5195_v9, %v2534_v54 }
 0x3f0   : > { %2733 = vperm.xlu0 %5633, %v6987_v6   ;;  %2617 = vperm.xlu2 %5614, %v2522_v32   ;;  %v5214_v32 = vunpack.c.l.bf16 %v5515_v19 }
 0x3f1   : > { %2624 = vperm.xlu1 %5615, %v6957_v51  }
 0x3f8   : > { %5646 = vset.pattern.permute.xlu0 %v6910_v53  ;;  %5616 = vset.pattern.permute.xlu2 %v6910_v53 }
 0x3f9   : > { %5617 = vset.pattern.permute.xlu1 %v6907_v56 }
 0x3fa   : > { %v2546_v34 = vpop.permute.xlu2 %2545 }
 0x3fb   : > { %v3301_v29 = vmul.f32 %v5199_v5, %v2546_v34  ;;  %v7046_v34 = vperm.slane %v6914_v31, 7 }
 0x400   : > { %2824 = vperm.xlu0 %5646, %v6995_v14   ;;  %2630 = vperm.xlu2 %5616, %v6957_v51  }
 0x401   : > { %2636 = vperm.xlu1 %5617, %v6957_v51  }
 0x402   : > { %v2540_v0 = vpop.permute.xlu0 %2539 }
 0x403   : > { %v2528_v26 = vpop.permute.xlu1 %2527  ;;  %v3300_v11 = vmul.f32 %v5198_v42, %v2540_v0  ;;  %v5215_v42 = vunpack.c.h.bf16 %v5515_v19  ;;  %v5519_v19 = vld [vmem:[%s8281_s2 + $0x48] sm:$0xff]  }
 0x404   : > { %v3298_v35 = vmul.f32 %v5194_v27, %v2528_v26 }
 0x406   : > { %v3426_v1 = vadd.f32 %v3299_v7, %v3298_v35  ;;  %v5516_v7 = vld [vmem:[%s8281_s2 + $0x30] sm:$0xff]  }
 0x407   : > { %v5218_v0 = vunpack.c.l.bf16 %v5516_v7 }
 0x408   : > { %5659 = vset.pattern.permute.xlu0 %v6903_v30  ;;  %5619 = vset.pattern.permute.xlu2 %v6930_v33  ;;  %v3427_v20 = vadd.f32 %v3426_v1, %v3300_v11 }
 0x409   : > { %5620 = vset.pattern.permute.xlu1 %v6939_v43 }
 0x40a   : > { %v2558_v41 = vpop.permute.xlu2 %2557  ;;  %v3428_v12 = vadd.f32 %v3427_v20, %v3301_v29  ;;  %v7058_v20 = vperm.slane %v6914_v31, 5  ;;  %v5219_v29 = vunpack.c.h.bf16 %v5516_v7 }
 0x40b   : > { %v3303_v61 = vmul.f32 %v5203_v28, %v2558_v41  ;;  %v5517_v41 = vld [vmem:[%s8281_s2 + $0x38] sm:$0xff]  }
 0x40c   : > { %v5223_v50 = vunpack.c.h.bf16 %v5517_v41 }
 0x410   : > { %2915 = vperm.xlu0 %5659, %v7007_v17   ;;  %2648 = vperm.xlu2 %5619, %v6957_v51  }
 0x411   : > { %2654 = vperm.xlu1 %5620, %v6957_v51  }
 0x412   : > { %v2582_v8 = vpop.permute.xlu0 %2581 }
 0x413   : > { %v2552_v55 = vpop.permute.xlu1 %2551  ;;  %v3307_v27 = vmul.f32 %v5211_v45, %v2582_v8  ;;  %v5230_v45 = vunpack.c.l.bf16 %v5519_v19  ;;  %v5520_v8 = vld [vmem:[%s8281_s2 + $0x50] sm:$0xff]  }
 0x414   : > { %v3302_v4 = vmul.f32 %v5202_v63, %v2552_v55 }
 0x416   : > { %v3429_v10 = vadd.f32 %v3428_v12, %v3302_v4  ;;  %v5222_v4 = vunpack.c.l.bf16 %v5517_v41 }
 0x418   : > { %5664 = vset.pattern.permute.xlu0 %v6939_v43  ;;  %5621 = vset.pattern.permute.xlu2 %v6942_v16  ;;  %v3430_v36 = vadd.f32 %v3429_v10, %v3303_v61 }
 0x419   : > { %5622 = vset.pattern.permute.xlu1 %v6948_v62 }
 0x41a   : > { %v2570_v13 = vpop.permute.xlu2 %2569 }
 0x41b   : > { %v3305_v60 = vmul.f32 %v5207_v22, %v2570_v13 }
 0x420   : > { %2945 = vperm.xlu0 %5664, %v7007_v17   ;;  %2660 = vperm.xlu2 %5621, %v6957_v51  }
 0x421   : > { %2666 = vperm.xlu1 %5622, %v6957_v51  }
 0x422   : > { %v2612_v28 = vpop.permute.xlu0 %2611 }
 0x423   : > { %v2564_v37 = vpop.permute.xlu1 %2563  ;;  %v3312_v61 = vmul.f32 %v5222_v4, %v2612_v28  ;;  %v5522_v4 = vld [vmem:[%s8281_s2 + $0x60] sm:$0xff]  }
 0x424   : > { %v3304_v47 = vmul.f32 %v5206_v39, %v2564_v37 }
 0x426   : > { %v3431_v25 = vadd.f32 %v3430_v36, %v3304_v47 }
 0x428   : > { %5677 = vset.pattern.permute.xlu0 %v6903_v30  ;;  %5624 = vset.pattern.permute.xlu2 %v6924_v24  ;;  %v3432_v3 = vadd.f32 %v3431_v25, %v3305_v60 }
 0x429   : > { %5625 = vset.pattern.permute.xlu1 %v6961_v48 }
 0x42a   : > { %v2588_v52 = vpop.permute.xlu2 %2587 }
 0x42b   : > { %v3308_v9 = vmul.f32 %v5214_v32, %v2588_v52  ;;  %v5234_v52 = vunpack.c.l.bf16 %v5520_v8 }
 0x430   : > { %3109 = vperm.xlu0 %5677, %v7031_v44   ;;  %2678 = vperm.xlu2 %5624, %v6957_v51  }
 0x431   : > { %2684 = vperm.xlu1 %5625, %v6957_v51  }
 0x432   : > { %v2643_v32 = vpop.permute.xlu0 %2642 }
 0x433   : > { %v2576_v57 = vpop.permute.xlu1 %2575 }
 0x434   : > { %v3306_v54 = vmul.f32 %v5210_v23, %v2576_v57  ;;  %v5231_v57 = vunpack.c.h.bf16 %v5519_v19 }
 0x436   : > { %v3433_v26 = vadd.f32 %v3432_v3, %v3306_v54 }
 0x438   : > { %v3434_v35 = vadd.f32 %v3433_v26, %v3307_v27  ;;  %5681 = vset.pattern.permute.xlu0 %v6907_v56  ;;  %5626 = vset.pattern.permute.xlu2 %v6964_v40 }
 0x439   : > { %5627 = vset.pattern.permute.xlu1 %v6974_v38 }
 0x43a   : > { %v3435_v21 = vadd.f32 %v3434_v35, %v3308_v9  ;;  %v2600_v1 = vpop.permute.xlu2 %2599  ;;  %v3317_v9 = vmul.f32 %v5231_v57, %v2643_v32 }
 0x43b   : > { %v3310_v11 = vmul.f32 %v5218_v0, %v2600_v1  ;;  %v5521_v0 = vld [vmem:[%s8281_s2 + $0x58] sm:$0xff]   ;;  %v5235_v1 = vunpack.c.h.bf16 %v5520_v8 }
 0x43c   : > { %v5239_v28 = vunpack.c.h.bf16 %v5521_v0 }
 0x440   : > { %3218 = vperm.xlu0 %5681, %v7046_v34   ;;  %2690 = vperm.xlu2 %5626, %v6957_v51  }
 0x441   : > { %2696 = vperm.xlu1 %5627, %v6957_v51  }
 0x443   : > { %v2594_v49 = vpop.permute.xlu1 %2593 }
 0x444   : > { %v3309_v5 = vmul.f32 %v5215_v42, %v2594_v49  ;;  %v5238_v49 = vunpack.c.l.bf16 %v5521_v0 }
 0x446   : > { %v3436_v63 = vadd.f32 %v3435_v21, %v3309_v5 }
 0x448   : > { %5684 = vset.pattern.permute.xlu0 %v6939_v43  ;;  %5629 = vset.pattern.permute.xlu2 %v6936_v15  ;;  %v3437_v55 = vadd.f32 %v3436_v63, %v3310_v11 }
 0x449   : > { %5630 = vset.pattern.permute.xlu1 %v6981_v2 }
 0x44a   : > { %v2618_v39 = vpop.permute.xlu2 %2617 }
 0x44b   : > { %v3313_v22 = vmul.f32 %v5223_v50, %v2618_v39  ;;  %v2673_v50 = vpop.permute.xlu0 %2672  ;;  %v5243_v39 = vunpack.c.h.bf16 %v5522_v4 }
 0x450   : > { %3042 = vperm.xlu0 %5684, %v7058_v20   ;;  %2708 = vperm.xlu2 %5629, %v6957_v51  }
 0x451   : > { %2714 = vperm.xlu1 %5630, %v6957_v51   ;;  %v5518_v51 = vld [vmem:[%s8281_s2 + $0x40] sm:$0xff]  }
 0x452   : > { %v5227_v36 = vunpack.c.h.bf16 %v5518_v51  ;;  %v5226_v47 = vunpack.c.l.bf16 %v5518_v51 }
 0x453   : > { %v2606_v12 = vpop.permute.xlu1 %2605 }
 0x454   : > { %v3311_v10 = vmul.f32 %v5219_v29, %v2606_v12  ;;  %v5242_v12 = vunpack.c.l.bf16 %v5522_v4 }
 0x456   : > { %v3438_v31 = vadd.f32 %v3437_v55, %v3311_v10 }
 0x458   : > { %v3439_v13 = vadd.f32 %v3438_v31, %v3312_v61  ;;  %5685 = vset.pattern.permute.xlu0 %v6942_v16  ;;  %5631 = vset.pattern.permute.xlu2 %v6903_v30 }
 0x459   : > { %5632 = vset.pattern.permute.xlu1 %v6910_v53 }
 0x45a   : > { %v7069_v37 = vadd.f32 %v3439_v13, %v3313_v22  ;;  %v2631_v60 = vpop.permute.xlu2 %2630  ;;  %v3322_v22 = vmul.f32 %v5242_v12, %v2673_v50 }
 0x45b   : > { %v3315_v3 = vmul.f32 %v5227_v36, %v2631_v60  ;;  %v5523_v60 = vld [vmem:[%s8281_s2 + $0x68] sm:$0xff]  }
 0x460   : > { %2854 = vperm.xlu0 %5685, %v6995_v14   ;;  %2721 = vperm.xlu2 %5631, %v6987_v6  }
 0x461   : > { %2727 = vperm.xlu1 %5632, %v6987_v6  }
 0x463   : > { %v2625_v25 = vpop.permute.xlu1 %2624 }
 0x464   : > { %v3314_v59 = vmul.f32 %v5226_v47, %v2625_v25  ;;  %v5246_v25 = vunpack.c.l.bf16 %v5523_v60 }
 0x466   : > { %v3447_v23 = vadd.f32 %v3315_v3, %v3314_v59  ;;  %v2703_v3 = vpop.permute.xlu0 %2702  ;;  %v5247_v59 = vunpack.c.h.bf16 %v5523_v60  ;;  %v5527_v60 = vld [vmem:[%s8281_s2 + $0x88] sm:$0xff]  }
 0x468   : > { %3145 = vperm.xlu0 %5685, %v7031_v44   ;;  %5634 = vset.pattern.permute.xlu2 %v6927_v18 }
 0x469   : > { %5635 = vset.pattern.permute.xlu1 %v6930_v33 }
 0x46a   : > { %v2649_v26 = vpop.permute.xlu2 %2648 }
 0x46b   : > { %v3318_v21 = vmul.f32 %v5234_v52, %v2649_v26  ;;  %v5524_v52 = vld [vmem:[%s8281_s2 + $0x70] sm:$0xff]  }
 0x470   : > { %5689 = vset.pattern.permute.xlu0 %v6948_v62  ;;  %2739 = vperm.xlu2 %5634, %v6987_v6  }
 0x471   : > { %2745 = vperm.xlu1 %5635, %v6987_v6  }
 0x473   : > { %v2637_v54 = vpop.permute.xlu1 %2636 }
 0x474   : > { %v3316_v27 = vmul.f32 %v5230_v45, %v2637_v54  ;;  %v7118_v54 = vpop.permute.xlu0 %2733 }
 0x476   : > { %v3448_v35 = vadd.f32 %v3447_v23, %v3316_v27  ;;  %v5250_v27 = vunpack.c.l.bf16 %v5524_v52 }
 0x478   : > { %v3449_v7 = vadd.f32 %v3448_v35, %v3317_v9  ;;  %2763 = vperm.xlu0 %5689, %v6987_v6   ;;  %5636 = vset.pattern.permute.xlu2 %v6939_v43  ;;  %v5525_v9 = vld [vmem:[%s8281_s2 + $0x78] sm:$0xff]   ;;  %v5251_v35 = vunpack.c.h.bf16 %v5524_v52 }
 0x479   : > { %5637 = vset.pattern.permute.xlu1 %v6942_v16 }
 0x47a   : > { %v3450_v42 = vadd.f32 %v3449_v7, %v3318_v21  ;;  %v2661_v5 = vpop.permute.xlu2 %2660  ;;  %v5254_v7 = vunpack.c.l.bf16 %v5525_v9 }
 0x47b   : > { %v3320_v55 = vmul.f32 %v5238_v49, %v2661_v5 }
 0x47c   : > { %v7126_v26 = vpop.permute.xlu0 %2824 }
 0x480   : > { %3248 = vperm.xlu0 %5689, %v7046_v34   ;;  %2751 = vperm.xlu2 %5636, %v6987_v6  }
 0x481   : > { %2757 = vperm.xlu1 %5637, %v6987_v6  }
 0x483   : > { %v2655_v11 = vpop.permute.xlu1 %2654 }
 0x484   : > { %v3319_v63 = vmul.f32 %v5235_v1, %v2655_v11  ;;  %v3327_v1 = vmul.f32 %v5251_v35, %v2703_v3 }
 0x486   : > { %v3451_v41 = vadd.f32 %v3450_v42, %v3319_v63  ;;  %v7134_v63 = vpop.permute.xlu0 %2915 }
 0x488   : > { %5693 = vset.pattern.permute.xlu0 %v6961_v48  ;;  %5638 = vset.pattern.permute.xlu2 %v6951_v58  ;;  %v3452_v29 = vadd.f32 %v3451_v41, %v3320_v55  ;;  %v3441_v41 = vrot.slane %v7069_v37, 4 }
 0x489   : > { %5639 = vset.pattern.permute.xlu1 %v6924_v24 }
 0x48a   : > { %v2679_v31 = vpop.permute.xlu2 %2678 }
 0x48b   : > { %v3323_v51 = vmul.f32 %v5243_v39, %v2679_v31 }
 0x490   : > { %2975 = vperm.xlu0 %5693, %v7007_v17   ;;  %2769 = vperm.xlu2 %5638, %v6987_v6  }
 0x491   : > { %2775 = vperm.xlu1 %5639, %v6987_v6  }
 0x492   : > { %v7140_v4 = vpop.permute.xlu0 %2945 }
 0x493   : > { %v2667_v10 = vpop.permute.xlu1 %2666 }
 0x494   : > { %v3321_v61 = vmul.f32 %v5239_v28, %v2667_v10  ;;  %v3442_v28 = vadd.f32 %v3441_v41, %v7069_v37  ;;  %v5526_v37 = vld [vmem:[%s8281_s2 + $0x80] sm:$0xff]  }
 0x496   : > { %v3453_v13 = vadd.f32 %v3452_v29, %v3321_v61  ;;  %v5255_v29 = vunpack.c.h.bf16 %v5525_v9  ;;  %v3443_v10 = vrot.slane %v3442_v28, 2 }
 0x498   : > { %v3454_v36 = vadd.f32 %v3453_v13, %v3322_v22  ;;  %3072 = vperm.xlu0 %5693, %v7058_v20   ;;  %5640 = vset.pattern.permute.xlu2 %v6961_v48 }
 0x499   : > { %5641 = vset.pattern.permute.xlu1 %v6964_v40 }
 0x49a   : > { %v3455_v47 = vadd.f32 %v3454_v36, %v3323_v51  ;;  %v2691_v23 = vpop.permute.xlu2 %2690 }
 0x49b   : > { %v3325_v8 = vmul.f32 %v5247_v59, %v2691_v23  ;;  %v5259_v59 = vunpack.c.h.bf16 %v5526_v37 }
 0x4a0   : > { %5696 = vset.pattern.permute.xlu0 %v6964_v40  ;;  %2781 = vperm.xlu2 %5640, %v6987_v6  }
 0x4a1   : > { %2787 = vperm.xlu1 %5641, %v6987_v6  }
 0x4a2   : > { %v7146_v31 = vpop.permute.xlu0 %3109 }
 0x4a3   : > { %v2685_v19 = vpop.permute.xlu1 %2684 }
 0x4a4   : > { %v3324_v45 = vmul.f32 %v5246_v25, %v2685_v19  ;;  %v5258_v25 = vunpack.c.l.bf16 %v5526_v37 }
 0x4a6   : > { %v3456_v57 = vadd.f32 %v3455_v47, %v3324_v45  ;;  %v5262_v45 = vunpack.c.l.bf16 %v5527_v60 }
 0x4a8   : > { %2884 = vperm.xlu0 %5696, %v6995_v14   ;;  %5642 = vset.pattern.permute.xlu2 %v6971_v46  ;;  %v3457_v32 = vadd.f32 %v3456_v57, %v3325_v8 }
 0x4a9   : > { %5643 = vset.pattern.permute.xlu1 %v6936_v15 }
 0x4aa   : > { %v2709_v0 = vpop.permute.xlu2 %2708 }
 0x4ab   : > { %v3328_v5 = vmul.f32 %v5254_v7, %v2709_v0 }
 0x4b0   : > { %3175 = vperm.xlu0 %5696, %v7031_v44   ;;  %2799 = vperm.xlu2 %5642, %v6987_v6  }
 0x4b1   : > { %2805 = vperm.xlu1 %5643, %v6987_v6  }
 0x4b2   : > { %v7157_v23 = vpop.permute.xlu0 %3218 }
 0x4b3   : > { %v2697_v21 = vpop.permute.xlu1 %2696 }
 0x4b4   : > { %v3326_v42 = vmul.f32 %v5250_v27, %v2697_v21  ;;  %v5263_v27 = vunpack.c.h.bf16 %v5527_v60  ;;  %v3332_v21 = vmul.f32 %v5262_v45, %v7118_v54 }
 0x4b6   : > { %v3458_v49 = vadd.f32 %v3457_v32, %v3326_v42 }
 0x4b8   : > { %v3459_v11 = vadd.f32 %v3458_v49, %v3327_v1  ;;  %5700 = vset.pattern.permute.xlu0 %v6974_v38  ;;  %5644 = vset.pattern.permute.xlu2 %v6981_v2 }
 0x4b9   : > { %5645 = vset.pattern.permute.xlu1 %v6903_v30 }
 0x4ba   : > { %v3460_v55 = vadd.f32 %v3459_v11, %v3328_v5  ;;  %v2722_v51 = vpop.permute.xlu2 %2721  ;;  %v5528_v5 = vld [vmem:[%s8281_s2 + $0x90] sm:$0xff]  }
 0x4bb   : > { %v3330_v32 = vmul.f32 %v5258_v25, %v2722_v51  ;;  %v5266_v54 = vunpack.c.l.bf16 %v5528_v5 }
 0x4c0   : > { %2793 = vperm.xlu0 %5700, %v6987_v6   ;;  %2811 = vperm.xlu2 %5644, %v6987_v6   ;;  %v3444_v6 = vadd.f32 %v3443_v10, %v3442_v28 }
 0x4c1   : > { %2818 = vperm.xlu1 %5645, %v6995_v14  }
 0x4c2   : > { %v3445_v36 = vrot.slane %v3444_v6, 1  ;;  %v7166_v1 = vpop.permute.xlu0 %3042 }
 0x4c3   : > { %v2715_v12 = vpop.permute.xlu1 %2714 }
 0x4c4   : > { %v3329_v50 = vmul.f32 %v5255_v29, %v2715_v12  ;;  %v3446_v19 = vadd.f32 %v3445_v36, %v3444_v6 }
 0x4c6   : > { %v3461_v39 = vadd.f32 %v3460_v55, %v3329_v50  ;;  %v5267_v55 = vunpack.c.h.bf16 %v5528_v5 }
 0x4c8   : > { %v3462_v61 = vrot.slane %v3461_v39, 4  ;;  %3278 = vperm.xlu0 %5700, %v7046_v34   ;;  %5647 = vset.pattern.permute.xlu2 %v6907_v56 }
 0x4c9   : > { %5648 = vset.pattern.permute.xlu1 %v6927_v18 }
 0x4ca   : > { %v3463_v22 = vadd.f32 %v3462_v61, %v3461_v39  ;;  %v2740_v35 = vpop.permute.xlu2 %2739  ;;  %v5529_v61 = vld [vmem:[%s8281_s2 + $0x98] sm:$0xff]  }
 0x4cb   : > { %v3333_v42 = vmul.f32 %v5263_v27, %v2740_v35  ;;  %v5270_v6 = vunpack.c.l.bf16 %v5529_v61 }
 0x4cc   : > { %v3464_v13 = vrot.slane %v3463_v22, 2 }
 0x4ce   : > { %v3465_v47 = vadd.f32 %v3464_v13, %v3463_v22  ;;  %v5530_v22 = vld [vmem:[%s8281_s2 + $0xa0] sm:$0xff]   ;;  %v5271_v13 = vunpack.c.h.bf16 %v5529_v61 }
 0x4cf   : > { %v5274_v36 = vunpack.c.l.bf16 %v5530_v22 }
 0x4d0   : > { %v3466_v3 = vrot.slane %v3465_v47, 1  ;;  %5704 = vset.pattern.permute.xlu0 %v6981_v2  ;;  %2830 = vperm.xlu2 %5647, %v6995_v14  }
 0x4d1   : > { %2836 = vperm.xlu1 %5648, %v6995_v14  }
 0x4d2   : > { %v3467_v8 = vadd.f32 %v3466_v3, %v3465_v47  ;;  %v7174_v11 = vpop.permute.xlu0 %2854 }
 0x4d3   : > { %v2728_v57 = vpop.permute.xlu1 %2727 }
 0x4d4   : > { %v7161_v52 = vsel %vm2241_vm15, %v3467_v8, %v3446_v19  ;;  %v3331_v9 = vmul.f32 %v5259_v59, %v2728_v57  ;;  %v5531_v8 = vld [vmem:[%s8281_s2 + $0xa8] sm:$0xff]   ;;  %v5275_v57 = vunpack.c.h.bf16 %v5530_v22  ;;  %v5532_v22 = vld [vmem:[%s8281_s2 + $0xb0] sm:$0xff]  }
 0x4d5   : > { %v5279_v5 = vunpack.c.h.bf16 %v5531_v8 }
 0x4d6   : > { %v3468_v7 = vadd.f32 %v3331_v9, %v3330_v32  ;;  %v5278_v32 = vunpack.c.l.bf16 %v5531_v8 }
 0x4d8   : > { %v3469_v0 = vadd.f32 %v3468_v7, %v3332_v21  ;;  %3005 = vperm.xlu0 %5704, %v7007_v17   ;;  %5649 = vset.pattern.permute.xlu2 %v6930_v33 }
 0x4d9   : > { %5650 = vset.pattern.permute.xlu1 %v6939_v43 }
 0x4da   : > { %v3470_v49 = vadd.f32 %v3469_v0, %v3333_v42  ;;  %v2752_v41 = vpop.permute.xlu2 %2751  ;;  %v7179_v39 = vpop.permute.xlu0 %3145 }
 0x4db   : > { %v3335_v12 = vmul.f32 %v5267_v55, %v2752_v41 }
 0x4e0   : > { %3102 = vperm.xlu0 %5704, %v7058_v20   ;;  %2842 = vperm.xlu2 %5649, %v6995_v14  }
 0x4e1   : > { %2848 = vperm.xlu1 %5650, %v6995_v14  }
 0x4e3   : > { %v2746_v29 = vpop.permute.xlu1 %2745 }
 0x4e4   : > { %v3334_v28 = vmul.f32 %v5266_v54, %v2746_v29 }
 0x4e6   : > { %v3471_v50 = vadd.f32 %v3470_v49, %v3334_v28 }
 0x4e8   : > { %5651 = vset.pattern.permute.xlu2 %v6948_v62  ;;  %v3472_v10 = vadd.f32 %v3471_v50, %v3335_v12 }
 0x4e9   : > { %5652 = vset.pattern.permute.xlu1 %v6951_v58 }
 0x4ea   : > { %v2764_v37 = vpop.permute.xlu0 %2763  ;;  %v2770_v60 = vpop.permute.xlu2 %2769 }
 0x4eb   : > { %v3337_v25 = vmul.f32 %v5271_v13, %v2764_v37  ;;  %v3338_v59 = vmul.f32 %v5274_v36, %v2770_v60  ;;  %v5282_v13 = vunpack.c.l.bf16 %v5532_v22  ;;  %v5283_v36 = vunpack.c.h.bf16 %v5532_v22 }
 0x4f0   : > { %2860 = vperm.xlu2 %5651, %v6995_v14  }
 0x4f1   : > { %2866 = vperm.xlu1 %5652, %v6995_v14  }
 0x4f2   : > { %v7196_v21 = vpop.permute.xlu0 %3248 }
 0x4f3   : > { %v2758_v51 = vpop.permute.xlu1 %2757 }
 0x4f4   : > { %v3336_v47 = vmul.f32 %v5270_v6, %v2758_v51  ;;  %v5534_v6 = vld [vmem:[%s8281_s2 + $0xc0] sm:$0xff]  }
 0x4f5   : > { %v5291_v37 = vunpack.c.h.bf16 %v5534_v6  ;;  %v5290_v51 = vunpack.c.l.bf16 %v5534_v6 }
 0x4f6   : > { %v3473_v3 = vadd.f32 %v3472_v10, %v3336_v47  ;;  %v5533_v47 = vld [vmem:[%s8281_s2 + $0xb8] sm:$0xff]  }
 0x4f7   : > { %v3347_v8 = vmul.f32 %v5291_v37, %v7126_v26  ;;  %v5536_v26 = vld [vmem:[%s8281_s2 + $0xd0] sm:$0xff]  }
 0x4f8   : > { %v3474_v19 = vadd.f32 %v3473_v3, %v3337_v25  ;;  %5653 = vset.pattern.permute.xlu2 %v6924_v24  ;;  %v5286_v3 = vunpack.c.l.bf16 %v5533_v47 }
 0x4f9   : > { %5654 = vset.pattern.permute.xlu1 %v6961_v48 }
 0x4fa   : > { %v3475_v45 = vadd.f32 %v3474_v19, %v3338_v59  ;;  %v2782_v27 = vpop.permute.xlu2 %2781 }
 0x4fb   : > { %v3340_v7 = vmul.f32 %v5278_v32, %v2782_v27  ;;  %v5287_v27 = vunpack.c.h.bf16 %v5533_v47 }
 0x500   : > { %2872 = vperm.xlu2 %5653, %v6995_v14  }
 0x501   : > { %2878 = vperm.xlu1 %5654, %v6995_v14  }
 0x502   : > { %v7200_v49 = vpop.permute.xlu0 %2975 }
 0x503   : > { %v2776_v9 = vpop.permute.xlu1 %2775 }
 0x504   : > { %v3339_v35 = vmul.f32 %v5275_v57, %v2776_v9 }
 0x506   : > { %v3476_v42 = vadd.f32 %v3475_v45, %v3339_v35 }
 0x508   : > { %5655 = vset.pattern.permute.xlu2 %v6974_v38  ;;  %v3477_v0 = vadd.f32 %v3476_v42, %v3340_v7 }
 0x509   : > { %5656 = vset.pattern.permute.xlu1 %v6971_v46 }
 0x50a   : > { %v7204_v29 = vpop.permute.xlu0 %3072  ;;  %v2800_v12 = vpop.permute.xlu2 %2799 }
 0x50b   : > { %v3343_v32 = vmul.f32 %v5283_v36, %v2800_v12  ;;  %v5537_v36 = vld [vmem:[%s8281_s2 + $0xd8] sm:$0xff]  }
 0x50c   : > { %v5302_v47 = vunpack.c.l.bf16 %v5537_v36 }
 0x510   : > { %2890 = vperm.xlu2 %5655, %v6995_v14  }
 0x511   : > { %2896 = vperm.xlu1 %5656, %v6995_v14  }
 0x513   : > { %v2788_v54 = vpop.permute.xlu1 %2787 }
 0x514   : > { %v3341_v55 = vmul.f32 %v5279_v5, %v2788_v54 }
 0x516   : > { %v3478_v41 = vadd.f32 %v3477_v0, %v3341_v55 }
 0x518   : > { %5657 = vset.pattern.permute.xlu2 %v6936_v15 }
 0x519   : > { %5658 = vset.pattern.permute.xlu1 %v6981_v2 }
 0x51a   : > { %v7208_v28 = vpop.permute.xlu0 %2884  ;;  %v2812_v10 = vpop.permute.xlu2 %2811 }
 0x51b   : > { %v3345_v54 = vmul.f32 %v5287_v27, %v2812_v10 }
 0x520   : > { %2902 = vperm.xlu2 %5657, %v6995_v14  }
 0x521   : > { %2908 = vperm.xlu1 %5658, %v6995_v14   ;;  %v5535_v14 = vld [vmem:[%s8281_s2 + $0xc8] sm:$0xff]  }
 0x522   : > { %v7214_v50 = vpop.permute.xlu0 %3175  ;;  %v5294_v60 = vunpack.c.l.bf16 %v5535_v14  ;;  %v5295_v12 = vunpack.c.h.bf16 %v5535_v14  ;;  %v5299_v14 = vunpack.c.h.bf16 %v5536_v26 }
 0x523   : > { %v2806_v61 = vpop.permute.xlu1 %2805 }
 0x524   : > { %v3344_v42 = vmul.f32 %v5286_v3, %v2806_v61 }
 0x528   : > { %5660 = vset.pattern.permute.xlu2 %v6910_v53 }
 0x529   : > { %5661 = vset.pattern.permute.xlu1 %v6907_v56 }
 0x52a   : > { %v2831_v59 = vpop.permute.xlu2 %2830 }
 0x52b   : > { %v3348_v35 = vmul.f32 %v5294_v60, %v2831_v59 }
 0x530   : > { %2921 = vperm.xlu2 %5660, %v7007_v17  }
 0x531   : > { %2927 = vperm.xlu1 %5661, %v7007_v17  }
 0x532   : > { %v2794_v25 = vpop.permute.xlu0 %2793 }
 0x533   : > { %v3342_v19 = vmul.f32 %v5282_v13, %v2794_v25  ;;  %v2819_v45 = vpop.permute.xlu1 %2818  ;;  %v5303_v25 = vunpack.c.h.bf16 %v5537_v36 }
 0x534   : > { %v3346_v57 = vmul.f32 %v5290_v51, %v2819_v45 }
 0x535   : > { %v3479_v9 = vadd.f32 %v3478_v41, %v3342_v19  ;;  %v5298_v41 = vunpack.c.l.bf16 %v5536_v26  ;;  %v3352_v19 = vmul.f32 %v5302_v47, %v7174_v11 }
 0x536   : > { %v3489_v7 = vadd.f32 %v3347_v8, %v3346_v57 }
 0x537   : > { %v3480_v0 = vadd.f32 %v3479_v9, %v3343_v32 }
 0x538   : > { %5662 = vset.pattern.permute.xlu2 %v6927_v18  ;;  %v3490_v5 = vadd.f32 %v3489_v7, %v3348_v35  ;;  %v5538_v35 = vld [vmem:[%s8281_s2 + $0xe0] sm:$0xff]  }
 0x539   : > { %v3481_v55 = vadd.f32 %v3480_v0, %v3344_v42  ;;  %5663 = vset.pattern.permute.xlu1 %v6930_v33  ;;  %v5306_v7 = vunpack.c.l.bf16 %v5538_v35  ;;  %v5307_v11 = vunpack.c.h.bf16 %v5538_v35 }
 0x53a   : > { %v2843_v61 = vpop.permute.xlu2 %2842 }
 0x53b   : > { %v3482_v6 = vadd.f32 %v3481_v55, %v3345_v54  ;;  %v3350_v37 = vmul.f32 %v5298_v41, %v2843_v61 }
 0x53d   : > { %v3483_v32 = vrot.slane %v3482_v6, 4 }
 0x53f   : > { %v3484_v9 = vadd.f32 %v3483_v32, %v3482_v6 }
 0x540   : > { %2933 = vperm.xlu2 %5662, %v7007_v17  }
 0x541   : > { %2939 = vperm.xlu1 %5663, %v7007_v17   ;;  %v3485_v42 = vrot.slane %v3484_v9, 2 }
 0x543   : > { %v2837_v22 = vpop.permute.xlu1 %2836  ;;  %v3486_v55 = vadd.f32 %v3485_v42, %v3484_v9 }
 0x544   : > { %v3349_v13 = vmul.f32 %v5295_v12, %v2837_v22  ;;  %v5539_v22 = vld [vmem:[%s8281_s2 + $0xe8] sm:$0xff]  }
 0x545   : > { %v3487_v41 = vrot.slane %v3486_v55, 1 }
 0x546   : > { %v3491_v51 = vadd.f32 %v3490_v5, %v3349_v13  ;;  %v5310_v13 = vunpack.c.l.bf16 %v5539_v22 }
 0x547   : > { %v3488_v61 = vadd.f32 %v3487_v41, %v3486_v55 }
 0x548   : > { %5665 = vset.pattern.permute.xlu2 %v6942_v16  ;;  %v3492_v10 = vadd.f32 %v3491_v51, %v3350_v37  ;;  %v5540_v37 = vld [vmem:[%s8281_s2 + $0xf0] sm:$0xff]  }
 0x549   : > { %5666 = vset.pattern.permute.xlu1 %v6948_v62  ;;  %v3603_v51 = vsel %vm8362_vm5, %v3488_v61, %v7161_v52  ;;  %v5315_v52 = vunpack.c.h.bf16 %v5540_v37 }
 0x54a   : > { %v2861_v59 = vpop.permute.xlu2 %2860 }
 0x54b   : > { %v3353_v8 = vmul.f32 %v5303_v25, %v2861_v59 }
 0x550   : > { %2951 = vperm.xlu2 %5665, %v7007_v17  }
 0x551   : > { %2957 = vperm.xlu1 %5666, %v7007_v17  }
 0x553   : > { %v2849_v60 = vpop.permute.xlu1 %2848 }
 0x554   : > { %v3351_v3 = vmul.f32 %v5299_v14, %v2849_v60  ;;  %v5314_v14 = vunpack.c.l.bf16 %v5540_v37 }
 0x556   : > { %v3493_v45 = vadd.f32 %v3492_v10, %v3351_v3  ;;  %v5311_v10 = vunpack.c.h.bf16 %v5539_v22 }
 0x558   : > { %v3494_v57 = vadd.f32 %v3493_v45, %v3352_v19  ;;  %5667 = vset.pattern.permute.xlu2 %v6951_v58  ;;  %v3357_v25 = vmul.f32 %v5311_v10, %v7208_v28 }
 0x559   : > { %5668 = vset.pattern.permute.xlu1 %v6924_v24 }
 0x55a   : > { %v3495_v27 = vadd.f32 %v3494_v57, %v3353_v8  ;;  %v2873_v0 = vpop.permute.xlu2 %2872  ;;  %v5541_v8 = vld [vmem:[%s8281_s2 + $0xf8] sm:$0xff]  }
 0x55b   : > { %v3355_v26 = vmul.f32 %v5307_v11, %v2873_v0  ;;  %v5318_v57 = vunpack.c.l.bf16 %v5541_v8 }
 0x560   : > { %2963 = vperm.xlu2 %5667, %v7007_v17  }
 0x561   : > { %2969 = vperm.xlu1 %5668, %v7007_v17  }
 0x563   : > { %v2867_v5 = vpop.permute.xlu1 %2866 }
 0x564   : > { %v3354_v54 = vmul.f32 %v5306_v7, %v2867_v5 }
 0x566   : > { %v3496_v12 = vadd.f32 %v3495_v27, %v3354_v54  ;;  %v5542_v27 = vld [vmem:[%s8281_s2 + $0x100] sm:$0xff]  }
 0x567   : > { %v5322_v42 = vunpack.c.l.bf16 %v5542_v27  ;;  %v5323_v11 = vunpack.c.h.bf16 %v5542_v27 }
 0x568   : > { %5669 = vset.pattern.permute.xlu2 %v6964_v40  ;;  %v3497_v6 = vadd.f32 %v3496_v12, %v3355_v26  ;;  %v5319_v26 = vunpack.c.h.bf16 %v5541_v8 }
 0x569   : > { %5670 = vset.pattern.permute.xlu1 %v6974_v38 }
 0x56a   : > { %v2891_v60 = vpop.permute.xlu2 %2890 }
 0x56b   : > { %v3358_v59 = vmul.f32 %v5314_v14, %v2891_v60 }
 0x570   : > { %2981 = vperm.xlu2 %5669, %v7007_v17  }
 0x571   : > { %2987 = vperm.xlu1 %5670, %v7007_v17  }
 0x573   : > { %v2879_v36 = vpop.permute.xlu1 %2878 }
 0x574   : > { %v3356_v47 = vmul.f32 %v5310_v13, %v2879_v36 }
 0x576   : > { %v3498_v3 = vadd.f32 %v3497_v6, %v3356_v47 }
 0x578   : > { %v3499_v19 = vadd.f32 %v3498_v3, %v3357_v25  ;;  %5671 = vset.pattern.permute.xlu2 %v6971_v46 }
 0x579   : > { %5672 = vset.pattern.permute.xlu1 %v6936_v15 }
 0x57a   : > { %v3500_v45 = vadd.f32 %v3499_v19, %v3358_v59  ;;  %v2903_v32 = vpop.permute.xlu2 %2902 }
 0x57b   : > { %v3360_v35 = vmul.f32 %v5318_v57, %v2903_v32 }
 0x580   : > { %2993 = vperm.xlu2 %5671, %v7007_v17  }
 0x581   : > { %2999 = vperm.xlu1 %5672, %v7007_v17   ;;  %v3362_v17 = vmul.f32 %v5322_v42, %v7134_v63  ;;  %v5543_v63 = vld [vmem:[%s8281_s2 + $0x108] sm:$0xff]  }
 0x582   : > { %v5326_v36 = vunpack.c.l.bf16 %v5543_v63  ;;  %v5327_v47 = vunpack.c.h.bf16 %v5543_v63 }
 0x583   : > { %v2897_v28 = vpop.permute.xlu1 %2896 }
 0x584   : > { %v3359_v9 = vmul.f32 %v5315_v52, %v2897_v28  ;;  %v5544_v52 = vld [vmem:[%s8281_s2 + $0x110] sm:$0xff]  }
 0x585   : > { %v5330_v57 = vunpack.c.l.bf16 %v5544_v52  ;;  %v5331_v32 = vunpack.c.h.bf16 %v5544_v52 }
 0x586   : > { %v3501_v7 = vadd.f32 %v3500_v45, %v3359_v9 }
 0x588   : > { %5673 = vset.pattern.permute.xlu2 %v6903_v30  ;;  %v3502_v0 = vadd.f32 %v3501_v7, %v3360_v35  ;;  %v3367_v35 = vmul.f32 %v5331_v32, %v7140_v4  ;;  %v5549_v32 = vld [vmem:[%s8281_s2 + $0x138] sm:$0xff]  }
 0x589   : > { %5674 = vset.pattern.permute.xlu1 %v6910_v53 }
 0x58a   : > { %v2922_v5 = vpop.permute.xlu2 %2921 }
 0x58b   : > { %v3363_v54 = vmul.f32 %v5323_v11, %v2922_v5  ;;  %v5546_v5 = vld [vmem:[%s8281_s2 + $0x120] sm:$0xff]  }
 0x58d   : > { %v3510_v55 = vadd.f32 %v3363_v54, %v3362_v17  ;;  %v5338_v54 = vunpack.c.l.bf16 %v5546_v5 }
 0x590   : > { %3012 = vperm.xlu2 %5673, %v7058_v20  }
 0x591   : > { %3018 = vperm.xlu1 %5674, %v7058_v20  }
 0x593   : > { %v2909_v12 = vpop.permute.xlu1 %2908 }
 0x594   : > { %v3361_v6 = vmul.f32 %v5319_v26, %v2909_v12 }
 0x596   : > { %v3503_v41 = vadd.f32 %v3502_v0, %v3361_v6 }
 0x598   : > { %v3504_v61 = vrot.slane %v3503_v41, 4  ;;  %5675 = vset.pattern.permute.xlu2 %v6907_v56 }
 0x599   : > { %5676 = vset.pattern.permute.xlu1 %v6927_v18 }
 0x59a   : > { %v3505_v22 = vadd.f32 %v3504_v61, %v3503_v41  ;;  %v2934_v60 = vpop.permute.xlu2 %2933 }
 0x59b   : > { %v3365_v19 = vmul.f32 %v5327_v47, %v2934_v60 }
 0x59c   : > { %v3506_v13 = vrot.slane %v3505_v22, 2 }
 0x59e   : > { %v3507_v37 = vadd.f32 %v3506_v13, %v3505_v22 }
 0x5a0   : > { %v3508_v10 = vrot.slane %v3507_v37, 1  ;;  %3024 = vperm.xlu2 %5675, %v7058_v20  }
 0x5a1   : > { %3030 = vperm.xlu1 %5676, %v7058_v20  }
 0x5a2   : > { %v3509_v14 = vadd.f32 %v3508_v10, %v3507_v37 }
 0x5a3   : > { %v2928_v25 = vpop.permute.xlu1 %2927 }
 0x5a4   : > { %v7289_v3 = vsel %vm8363_vm6, %v3509_v14, %v3603_v51  ;;  %v3364_v59 = vmul.f32 %v5326_v36, %v2928_v25  ;;  %v5545_v51 = vld [vmem:[%s8281_s2 + $0x118] sm:$0xff]   ;;  %v5548_v25 = vld [vmem:[%s8281_s2 + $0x130] sm:$0xff]  }
 0x5a5   : > { %v5334_v27 = vunpack.c.l.bf16 %v5545_v51  ;;  %v5335_v17 = vunpack.c.h.bf16 %v5545_v51  ;;  %v7326_v51 = vpop.permute.xlu0 %3278 }
 0x5a6   : > { %v3511_v45 = vadd.f32 %v3510_v55, %v3364_v59  ;;  %v5346_v59 = vunpack.c.l.bf16 %v5548_v25 }
 0x5a8   : > { %5678 = vset.pattern.permute.xlu2 %v6910_v53  ;;  %v3512_v8 = vadd.f32 %v3511_v45, %v3365_v19  ;;  %v5347_v19 = vunpack.c.h.bf16 %v5548_v25 }
 0x5a9   : > { %5679 = vset.pattern.permute.xlu1 %v6903_v30 }
 0x5aa   : > { %v2952_v9 = vpop.permute.xlu2 %2951 }
 0x5ab   : > { %v3368_v42 = vmul.f32 %v5334_v27, %v2952_v9 }
 0x5ad   : > { %v3006_v27 = vpop.permute.xlu0 %3005 }
 0x5b0   : > { %3115 = vperm.xlu2 %5678, %v7031_v44  }
 0x5b1   : > { %3206 = vperm.xlu1 %5679, %v7046_v34  }
 0x5b3   : > { %v2940_v28 = vpop.permute.xlu1 %2939 }
 0x5b4   : > { %v3366_v53 = vmul.f32 %v5330_v57, %v2940_v28  ;;  %v5351_v28 = vunpack.c.h.bf16 %v5549_v32 }
 0x5b6   : > { %v3513_v7 = vadd.f32 %v3512_v8, %v3366_v53 }
 0x5b8   : > { %v3514_v11 = vadd.f32 %v3513_v7, %v3367_v35  ;;  %3212 = vperm.xlu2 %5678, %v7046_v34   ;;  %v3377_v35 = vmul.f32 %v5351_v28, %v3006_v27 }
 0x5b9   : > { %5680 = vset.pattern.permute.xlu1 %v6907_v56  ;;  %v5547_v56 = vld [vmem:[%s8281_s2 + $0x128] sm:$0xff]  }
 0x5ba   : > { %v3515_v0 = vadd.f32 %v3514_v11, %v3368_v42  ;;  %v2964_v55 = vpop.permute.xlu2 %2963  ;;  %v5342_v61 = vunpack.c.l.bf16 %v5547_v56  ;;  %v5343_v13 = vunpack.c.h.bf16 %v5547_v56  ;;  %v5558_v56 = vld [vmem:[%s8281_s2 + $0x180] sm:$0xff]  }
 0x5bb   : > { %v3370_v12 = vmul.f32 %v5338_v54, %v2964_v55  ;;  %v5551_v55 = vld [vmem:[%s8281_s2 + $0x148] sm:$0xff]  }
 0x5bc   : > { %v3372_v10 = vmul.f32 %v5342_v61, %v7200_v49 }
 0x5c0   : > { %5682 = vset.pattern.permute.xlu2 %v6927_v18  ;;  %v5339_v18 = vunpack.c.h.bf16 %v5546_v5 }
 0x5c1   : > { %3121 = vperm.xlu1 %5680, %v7031_v44  }
 0x5c3   : > { %v2958_v4 = vpop.permute.xlu1 %2957 }
 0x5c4   : > { %v3369_v26 = vmul.f32 %v5335_v17, %v2958_v4  ;;  %v5550_v17 = vld [vmem:[%s8281_s2 + $0x140] sm:$0xff]  }
 0x5c5   : > { %v5354_v4 = vunpack.c.l.bf16 %v5550_v17 }
 0x5c6   : > { %v3516_v6 = vadd.f32 %v3515_v0, %v3369_v26 }
 0x5c8   : > { %3127 = vperm.xlu2 %5682, %v7031_v44   ;;  %v3517_v41 = vadd.f32 %v3516_v6, %v3370_v12  ;;  %v5355_v12 = vunpack.c.h.bf16 %v5550_v17 }
 0x5c9   : > { %5683 = vset.pattern.permute.xlu1 %v6930_v33 }
 0x5ca   : > { %v2982_v63 = vpop.permute.xlu2 %2981 }
 0x5cb   : > { %v3373_v14 = vmul.f32 %v5343_v13, %v2982_v63 }
 0x5d0   : > { %3224 = vperm.xlu2 %5682, %v7046_v34  }
 0x5d1   : > { %3036 = vperm.xlu1 %5683, %v7058_v20  }
 0x5d3   : > { %v2970_v22 = vpop.permute.xlu1 %2969 }
 0x5d4   : > { %v3371_v37 = vmul.f32 %v5339_v18, %v2970_v22 }
 0x5d6   : > { %v3518_v36 = vadd.f32 %v3517_v41, %v3371_v37 }
 0x5d8   : > { %v3519_v47 = vadd.f32 %v3518_v36, %v3372_v10  ;;  %5686 = vset.pattern.permute.xlu2 %v6930_v33  ;;  %v5386_v10 = vunpack.c.l.bf16 %v5558_v56  ;;  %v5387_v36 = vunpack.c.h.bf16 %v5558_v56 }
 0x5d9   : > { %3133 = vperm.xlu1 %5683, %v7031_v44  }
 0x5da   : > { %v3520_v60 = vadd.f32 %v3519_v47, %v3373_v14  ;;  %v2994_v45 = vpop.permute.xlu2 %2993 }
 0x5db   : > { %v3375_v52 = vmul.f32 %v5347_v19, %v2994_v45  ;;  %v5359_v19 = vunpack.c.h.bf16 %v5551_v55 }
 0x5e0   : > { %3230 = vperm.xlu2 %5686, %v7046_v34  }
 0x5e1   : > { %5687 = vset.pattern.permute.xlu1 %v6939_v43  ;;  %v5350_v43 = vunpack.c.l.bf16 %v5549_v32 }
 0x5e3   : > { %v2988_v49 = vpop.permute.xlu1 %2987 }
 0x5e4   : > { %v3374_v8 = vmul.f32 %v5346_v59, %v2988_v49 }
 0x5e6   : > { %v3521_v57 = vadd.f32 %v3520_v60, %v3374_v8  ;;  %v3394_v60 = vmul.f32 %v5386_v10, %v7146_v31  ;;  %v5566_v31 = vld [vmem:[%s8281_s2 + $0x1c0] sm:$0xff]  }
 0x5e8   : > { %5688 = vset.pattern.permute.xlu2 %v6942_v16  ;;  %v3522_v33 = vadd.f32 %v3521_v57, %v3375_v52  ;;  %v5419_v52 = vunpack.c.h.bf16 %v5566_v31  ;;  %v5418_v57 = vunpack.c.l.bf16 %v5566_v31  ;;  %v4830_v31 = vld [vmem:[%s8285_s6 + $0x34] sm:$0xf] }
 0x5e9   : > { %3139 = vperm.xlu1 %5687, %v7031_v44  }
 0x5ea   : > { %v3013_v11 = vpop.permute.xlu2 %3012 }
 0x5eb   : > { %v3378_v18 = vmul.f32 %v5354_v4, %v3013_v11 }
 0x5f0   : > { %3048 = vperm.xlu2 %5688, %v7058_v20  }
 0x5f1   : > { %3236 = vperm.xlu1 %5687, %v7046_v34  }
 0x5f3   : > { %v3000_v53 = vpop.permute.xlu1 %2999 }
 0x5f4   : > { %v3376_v9 = vmul.f32 %v5350_v43, %v3000_v53 }
 0x5f6   : > { %v3523_v7 = vadd.f32 %v3522_v33, %v3376_v9 }
 0x5f8   : > { %v3524_v42 = vadd.f32 %v3523_v7, %v3377_v35  ;;  %5690 = vset.pattern.permute.xlu2 %v6948_v62  ;;  %v5358_v62 = vunpack.c.l.bf16 %v5551_v55  ;;  %v4866_v35 = vld [vmem:[%s8285_s6 + $0x154] sm:$0xf]  ;;  %v4542_v7 = vld [vmem:[%s8285_s6 + $0x168] sm:$0xf0] }
 0x5f9   : > { %5691 = vset.pattern.permute.xlu1 %v6942_v16  ;;  %v4545_v11 = vor.u32 %v4866_v35, %v4542_v7  ;;  %v5553_v35 = vld [vmem:[%s8281_s2 + $0x158] sm:$0xff]   ;;  %v5560_v7 = vld [vmem:[%s8281_s2 + $0x190] sm:$0xff]  }
 0x5fa   : > { %v3525_v0 = vrot.slane %v3524_v42, 4  ;;  %v3025_v6 = vpop.permute.xlu2 %3024 }
 0x5fb   : > { %v3380_v37 = vmul.f32 %v5358_v62, %v3025_v6  ;;  %824 = vmatpush.bf16.msra.mxu1 %v4545_v11  ;;  %v4848_v6 = vld [vmem:[%s8285_s6 + $0xc4] sm:$0xf] }
 0x5fc   : > { %v3526_v5 = vadd.f32 %v3525_v0, %v3524_v42 }
 0x5fe   : > { %v3527_v54 = vrot.slane %v3526_v5, 2 }
 0x600   : > { %v3528_v26 = vadd.f32 %v3527_v54, %v3526_v5  ;;  %3054 = vperm.xlu2 %5690, %v7058_v20   ;;  %v4518_v5 = vld [vmem:[%s8285_s6 + $0x138] sm:$0xf0] }
 0x601   : > { %3242 = vperm.xlu1 %5691, %v7046_v34  }
 0x602   : > { %v3529_v16 = vrot.slane %v3528_v26, 1 }
 0x603   : > { %v3019_v41 = vpop.permute.xlu1 %3018 }
 0x604   : > { %v3530_v61 = vadd.f32 %v3529_v16, %v3528_v26  ;;  %v3379_v22 = vmul.f32 %v5355_v12, %v3019_v41  ;;  %v4494_v26 = vld [vmem:[%s8285_s6 + $0x108] sm:$0xf0]  ;;  %v4470_v41 = vld [vmem:[%s8285_s6 + $0xd8] sm:$0xf0] }
 0x605   : > { %v5559_v12 = vld [vmem:[%s8281_s2 + $0x188] sm:$0xff]  }
 0x606   : > { %v7348_v13 = vsel %vm2247_vm10, %v3530_v61, %v7289_v3  ;;  %v3531_v63 = vadd.f32 %v3379_v22, %v3378_v18  ;;  %v5390_v62 = vunpack.c.l.bf16 %v5559_v12  ;;  %v5391_v56 = vunpack.c.h.bf16 %v5559_v12  ;;  %v4842_v61 = vld [vmem:[%s8285_s6 + $0x94] sm:$0xf]  ;;  %v4446_v22 = vld [vmem:[%s8285_s6 + $0xa8] sm:$0xf0] }
 0x607   : > { %v4473_v18 = vor.u32 %v4848_v6, %v4470_v41  ;;  %v4449_v10 = vor.u32 %v4842_v61, %v4446_v22 }
 0x608   : > { %3151 = vperm.xlu2 %5690, %v7031_v44   ;;  %v3532_v14 = vadd.f32 %v3531_v63, %v3380_v37  ;;  %v7408_v63 = vld [vmem:[%s8281_s2 + $0x1d0] sm:$0xff]  }
 0x609   : > { %5692 = vset.pattern.permute.xlu1 %v6951_v58 }
 0x60a   : > { %v3116_v47 = vpop.permute.xlu2 %3115 }
 0x60b   : > { %v3395_v25 = vmul.f32 %v5387_v36, %v3116_v47  ;;  %v5426_v47 = vunpack.c.l.bf16 %v7408_v63 }
 0x60d   : > { %v3552_v59 = vadd.f32 %v3395_v25, %v3394_v60  ;;  %v4836_v25 = vld [vmem:[%s8285_s6 + $0x64] sm:$0xf] }
 0x610   : > { %5694 = vset.pattern.permute.xlu2 %v6951_v58  ;;  %v5567_v58 = vld [vmem:[%s8281_s2 + $0x1c8] sm:$0xff]  }
 0x611   : > { %3060 = vperm.xlu1 %5692, %v7058_v20   ;;  %v5422_v33 = vunpack.c.l.bf16 %v5567_v58  ;;  %v5423_v42 = vunpack.c.h.bf16 %v5567_v58  ;;  %v4398_v58 = vld [vmem:[%s8285_s6 + $0x48] sm:$0xf0] }
 0x612   : > { %v3213_v8 = vpop.permute.xlu2 %3212 }
 0x613   : > { %v3031_v3 = vpop.permute.xlu1 %3030  ;;  %v3411_v28 = vmul.f32 %v5419_v52, %v3213_v8  ;;  %v3412_v53 = vmul.f32 %v5422_v33, %v7157_v23  ;;  %v4860_v23 = vld [vmem:[%s8285_s6 + $0x124] sm:$0xf]  ;;  %v5552_v52 = vld [vmem:[%s8281_s2 + $0x150] sm:$0xff]  }
 0x614   : > { %v3381_v45 = vmul.f32 %v5359_v19, %v3031_v3  ;;  %v4521_v54 = vor.u32 %v4860_v23, %v4518_v5  ;;  %v4422_v19 = vld [vmem:[%s8285_s6 + $0x78] sm:$0xf0]  ;;  %v5362_v33 = vunpack.c.l.bf16 %v5552_v52  ;;  %v5394_v5 = vunpack.c.l.bf16 %v5560_v7 }
 0x616   : > { %v7355_v49 = vadd.f32 %v3532_v14, %v3381_v45  ;;  %825 = vmatpush.bf16.msra.mxu1 %v4521_v54  ;;  %v4425_v45 = vor.u32 %v4836_v25, %v4422_v19  ;;  %v4532_v19 = vld [vmem:[%s8285_s6 + $0x130] sm:$0xf] }
 0x618   : > { %3157 = vperm.xlu2 %5694, %v7031_v44  }
 0x619   : > { %5695 = vset.pattern.permute.xlu1 %v6924_v24 }
 0x620   : > { %3254 = vperm.xlu2 %5694, %v7046_v34  }
 0x621   : > { %3066 = vperm.xlu1 %5695, %v7058_v20  }
 0x622   : > { %v3128_v32 = vpop.permute.xlu2 %3127 }
 0x623   : > { %v3207_v43 = vpop.permute.xlu1 %3206  ;;  %v3397_v36 = vmul.f32 %v5391_v56, %v3128_v32  ;;  %v4824_v32 = vld [vmem:[%s8285_s6 + $0x4] sm:$0xf]  ;;  %v5427_v56 = vunpack.c.h.bf16 %v7408_v63 }
 0x624   : > { %v3410_v27 = vmul.f32 %v5418_v57, %v3207_v43  ;;  %v4401_v57 = vor.u32 %v4830_v31, %v4398_v58  ;;  %v4374_v43 = vld [vmem:[%s8285_s6 + $0x18] sm:$0xf0]  ;;  %v4846_v31 = vld [vmem:[%s8285_s6 + $0xac] sm:$0xf0]  ;;  %v4508_v58 = vld [vmem:[%s8285_s6 + $0x100] sm:$0xf] }
 0x626   : > { %v3573_v9 = vadd.f32 %v3411_v28, %v3410_v27  ;;  %v5363_v28 = vunpack.c.h.bf16 %v5552_v52  ;;  %v4377_v27 = vor.u32 %v4824_v32, %v4374_v43  ;;  %v4840_v32 = vld [vmem:[%s8285_s6 + $0x7c] sm:$0xf0] }
 0x628   : > { %5697 = vset.pattern.permute.xlu2 %v6924_v24  ;;  %v3574_v0 = vadd.f32 %v3573_v9, %v3412_v53  ;;  %v4854_v24 = vld [vmem:[%s8285_s6 + $0xf4] sm:$0xf] }
 0x629   : > { %3163 = vperm.xlu1 %5695, %v7031_v44   ;;  %v4497_v16 = vor.u32 %v4854_v24, %v4494_v26 }
 0x62a   : > { %v3225_v17 = vpop.permute.xlu2 %3224 }
 0x62b   : > { %v3413_v55 = vmul.f32 %v5423_v42, %v3225_v17  ;;  %826 = vmatpush.bf16.msra.mxu1 %v4497_v16  ;;  %v3383_v42 = vmul.f32 %v5363_v28, %v7166_v1  ;;  %v8364_v17 = vld [vmem:[#allocation7_spill] sm:$0xff]  ;;  %v5367_v1 = vunpack.c.h.bf16 %v5553_v35 }
 0x62c   : > { %v4484_v28 = vld [vmem:[%s8285_s6 + $0xd0] sm:$0xf] }
 0x62d   : > { %v3575_v4 = vadd.f32 %v3574_v0, %v3413_v55  ;;  %v5366_v0 = vunpack.c.l.bf16 %v5553_v35  ;;  %v4404_v35 = vld [vmem:[%s8285_s6 + $0x38] sm:$0xf] }
 0x62f   : > { %827 = vmatpush.bf16.msra.mxu1 %v4473_v18 }
 0x630   : > { %3260 = vperm.xlu2 %5697, %v7046_v34  }
 0x631   : > { %5698 = vset.pattern.permute.xlu1 %v6961_v48 }
 0x633   : > { %v3122_v48 = vpop.permute.xlu1 %3121  ;;  %828 = vmatpush.bf16.msra.mxu1 %v4449_v10  ;;  %v4500_v10 = vld [vmem:[%s8285_s6 + $0xf8] sm:$0xf] }
 0x634   : > { %v3396_v37 = vmul.f32 %v5390_v62, %v3122_v48  ;;  %v4870_v48 = vld [vmem:[%s8285_s6 + $0x16c] sm:$0xf0] }
 0x636   : > { %v3553_v14 = vadd.f32 %v3552_v59, %v3396_v37  ;;  %v4524_v37 = vld [vmem:[%s8285_s6 + $0x128] sm:$0xf] }
 0x637   : > { %829 = vmatpush.bf16.msra.mxu1 %v4425_v45 }
 0x638   : > { %5699 = vset.pattern.permute.xlu2 %v6964_v40  ;;  %v3554_v60 = vadd.f32 %v3553_v14, %v3397_v36  ;;  %v4858_v36 = vld [vmem:[%s8285_s6 + $0x10c] sm:$0xf0]  ;;  %v4556_v14 = vld [vmem:[%s8285_s6 + $0x160] sm:$0xf] }
 0x639   : > { %3169 = vperm.xlu1 %5698, %v7031_v44  }
 0x63a   : > { %v3231_v3 = vpop.permute.xlu2 %3230 }
 0x63b   : > { %v3414_v8 = vmul.f32 %v5426_v47, %v3231_v3  ;;  %830 = vmatpush.bf16.msra.mxu1 %v4401_v57  ;;  %v4501_v47 = vor.u32 %v4858_v36, %v4500_v10  ;;  %v4865_v3 = vld [vmem:[%s8285_s6 + $0x144] sm:$0xf0]  ;;  %v4859_v57 = vld [vmem:[%s8285_s6 + $0x114] sm:$0xf0]  ;;  %v4550_v10 = vld [vmem:[%s8285_s6 + $0x170] sm:$0xf0] }
 0x63c   : > { %v4509_v43 = vor.u32 %v4859_v57, %v4508_v58  ;;  %v4868_v36 = vld [vmem:[%s8285_s6 + $0x164] sm:$0xf]  ;;  %v4862_v58 = vld [vmem:[%s8285_s6 + $0x134] sm:$0xf]  ;;  %v4534_v57 = vld [vmem:[%s8285_s6 + $0x148] sm:$0xf0] }
 0x63d   : > { %v3576_v59 = vadd.f32 %v3575_v4, %v3414_v8  ;;  %v4533_v8 = vor.u32 %v4865_v3, %v4532_v19  ;;  %v4900_v3 = vld [vmem:[%s8287_s8 + $0xe4] sm:$0xf] }
 0x63f   : > { %831 = vmatpush.bf16.msra.mxu1 %v4377_v27  ;;  %v4853_v27 = vld [vmem:[%s8285_s6 + $0xe4] sm:$0xf0] }
 0x640   : > { %3078 = vperm.xlu2 %5699, %v7058_v20  }
 0x641   : > { %3266 = vperm.xlu1 %5698, %v7046_v34  }
 0x642   : > { %832 = vmatmul.bf16.vlgmr.msra.gmra.mxu1 %v8364_v17 }
 0x643   : > { %v3037_v53 = vpop.permute.xlu1 %3036 }
 0x644   : > { %v3382_v9 = vmul.f32 %v5362_v33, %v3037_v53  ;;  %v4428_v33 = vld [vmem:[%s8285_s6 + $0x68] sm:$0xf] }
 0x645   : > { %v4429_v53 = vor.u32 %v4840_v32, %v4428_v33  ;;  %v4629_v33 = vld [vmem:[%s8287_s8 + $0x80] sm:$0xf]  ;;  %v4890_v32 = vld [vmem:[%s8287_s8 + $0x8c] sm:$0xf0] }
 0x646   : > { %v3534_v11 = vadd.f32 %v7355_v49, %v3382_v9  ;;  %v4485_v9 = vor.u32 %v4853_v27, %v4484_v28  ;;  %v4537_v28 = vor.u32 %v4862_v58, %v4534_v57  ;;  %v4630_v27 = vor.u32 %v4890_v32, %v4629_v33  ;;  %v4615_v58 = vld [vmem:[%s8287_s8 + $0x70] sm:$0xf0]  ;;  %v4837_v57 = vld [vmem:[%s8285_s6 + $0x6c] sm:$0xf]  ;;  %v4430_v33 = vld [vmem:[%s8285_s6 + $0x80] sm:$0xf0] }
 0x647   : > { %v4838_v32 = vld [vmem:[%s8285_s6 + $0x74] sm:$0xf] }
 0x648   : > { %5701 = vset.pattern.permute.xlu2 %v6974_v38  ;;  %v3535_v23 = vadd.f32 %v3534_v11, %v3383_v42  ;;  %v5395_v38 = vunpack.c.h.bf16 %v5560_v7  ;;  %v4834_v7 = vld [vmem:[%s8285_s6 + $0x4c] sm:$0xf0]  ;;  %v4460_v42 = vld [vmem:[%s8285_s6 + $0xa0] sm:$0xf]  ;;  %v4847_v11 = vld [vmem:[%s8285_s6 + $0xb4] sm:$0xf0] }
 0x649   : > { %5702 = vset.pattern.permute.xlu1 %v6964_v40 }
 0x64a   : > { %v3049_v54 = vpop.permute.xlu2 %3048 }
 0x64b   : > { %v3384_v55 = vmul.f32 %v5366_v0, %v3049_v54  ;;  %v3134_v4 = vpop.permute.xlu1 %3133  ;;  %v4405_v0 = vor.u32 %v4834_v7, %v4404_v35  ;;  %v4380_v54 = vld [vmem:[%s8285_s6 + $0x8] sm:$0xf]  ;;  %v4855_v35 = vld [vmem:[%s8285_s6 + $0xfc] sm:$0xf] }
 0x64c   : > { %v3398_v24 = vmul.f32 %v5394_v5, %v3134_v4  ;;  %v4461_v5 = vor.u32 %v4847_v11, %v4460_v42  ;;  %v4436_v4 = vld [vmem:[%s8285_s6 + $0x70] sm:$0xf]  ;;  %v4502_v11 = vld [vmem:[%s8285_s6 + $0x110] sm:$0xf0] }
 0x64d   : > { %v3536_v26 = vadd.f32 %v3535_v23, %v3384_v55  ;;  %v4828_v55 = vld [vmem:[%s8285_s6 + $0x1c] sm:$0xf0] }
 0x64e   : > { %v3555_v12 = vadd.f32 %v3554_v60, %v3398_v24  ;;  %v4871_v60 = vld [vmem:[%s8285_s6 + $0x174] sm:$0xf0] }
 0x64f   : > { %v4557_v25 = vor.u32 %v4871_v60, %v4556_v14  ;;  %v4645_v60 = vld [vmem:[%s8287_s8 + $0xa0] sm:$0xf] }
 0x650   : > { %3084 = vperm.xlu2 %5701, %v7058_v20  }
 0x651   : > { %3272 = vperm.xlu1 %5702, %v7046_v34   ;;  %863 = vmatpush.bf16.msrb.mxu0 %v4557_v25 }
 0x655   : > { %864 = vmatpush.bf16.msrb.mxu0 %v4533_v8 }
 0x658   : > { %3181 = vperm.xlu2 %5701, %v7031_v44  }
 0x659   : > { %5703 = vset.pattern.permute.xlu1 %v6971_v46  ;;  %865 = vmatpush.bf16.msrb.mxu0 %v4509_v43 }
 0x65a   : > { %v3055_v49 = vpop.permute.xlu2 %3054 }
 0x65b   : > { %v3385_v16 = vmul.f32 %v5367_v1, %v3055_v49  ;;  %v3140_v62 = vpop.permute.xlu1 %3139  ;;  %v4902_v1 = vld [vmem:[%s8287_s8 + $0xec] sm:$0xf0] }
 0x65c   : > { %v3399_v40 = vmul.f32 %v5395_v38, %v3140_v62  ;;  %v4381_v38 = vor.u32 %v4828_v55, %v4380_v54  ;;  %v4412_v62 = vld [vmem:[%s8285_s6 + $0x40] sm:$0xf]  ;;  %v4505_v54 = vor.u32 %v4855_v35, %v4502_v11  ;;  %v4880_v11 = vld [vmem:[%s8287_s8 + $0x44] sm:$0xf] }
 0x65d   : > { %v7451_v6 = vadd.f32 %v3536_v26, %v3385_v16  ;;  %866 = vmatpush.bf16.msrb.mxu0 %v4485_v9  ;;  %v4841_v26 = vld [vmem:[%s8285_s6 + $0x84] sm:$0xf0]  ;;  %v4663_v9 = vld [vmem:[%s8287_s8 + $0xd0] sm:$0xf0] }
 0x65e   : > { %v7453_v41 = vadd.f32 %v3555_v12, %v3399_v40  ;;  %v4677_v12 = vld [vmem:[%s8287_s8 + $0xe0] sm:$0xf]  ;;  %v4437_v49 = vor.u32 %v4841_v26, %v4436_v4  ;;  %v4835_v40 = vld [vmem:[%s8285_s6 + $0x54] sm:$0xf0]  ;;  %v4886_v26 = vld [vmem:[%s8287_s8 + $0x6c] sm:$0xf0] }
 0x65f   : > { %v4678_v16 = vor.u32 %v4902_v1, %v4677_v12  ;;  %v4613_v4 = vld [vmem:[%s8287_s8 + $0x60] sm:$0xf]  ;;  %v4892_v12 = vld [vmem:[%s8287_s8 + $0xa4] sm:$0xf] }
 0x660   : > { %5705 = vset.pattern.permute.xlu2 %v6971_v46  ;;  %v4548_v46 = vld [vmem:[%s8285_s6 + $0x158] sm:$0xf]  ;;  %v4614_v1 = vor.u32 %v4886_v26, %v4613_v4  ;;  %v4831_v26 = vld [vmem:[%s8285_s6 + $0x3c] sm:$0xf] }
 0x661   : > { %3090 = vperm.xlu1 %5703, %v7058_v20   ;;  %v4549_v63 = vor.u32 %v4870_v48, %v4548_v46  ;;  %867 = vmatpush.bf16.msrb.mxu0 %v4461_v5  ;;  %v4898_v46 = vld [vmem:[%s8287_s8 + $0xcc] sm:$0xf0]  ;;  %v4510_v5 = vld [vmem:[%s8285_s6 + $0x118] sm:$0xf0]  ;;  %v4903_v4 = vld [vmem:[%s8287_s8 + $0xf4] sm:$0xf0] }
 0x662   : > { %v4388_v48 = vld [vmem:[%s8285_s6 + $0x10] sm:$0xf] }
 0x663   : > { %v3237_v18 = vpop.permute.xlu1 %3236  ;;  %837 = vmatpush.bf16.msra.mxu2 %v4549_v63 }
 0x664   : > { %v3415_v61 = vmul.f32 %v5427_v56, %v3237_v18  ;;  %v4661_v56 = vld [vmem:[%s8287_s8 + $0xc0] sm:$0xf] }
 0x665   : > { %868 = vmatpush.bf16.msrb.mxu0 %v4437_v49 }
 0x666   : > { %v7458_v22 = vadd.f32 %v3576_v59, %v3415_v61  ;;  %v7507_v59 = vpop.permute.xlu2 %3151  ;;  %v4413_v61 = vor.u32 %v4835_v40, %v4412_v62  ;;  %v4478_v62 = vld [vmem:[%s8285_s6 + $0xe0] sm:$0xf0]  ;;  %v4850_v40 = vld [vmem:[%s8285_s6 + $0xd4] sm:$0xf] }
 0x668   : > { %3187 = vperm.xlu2 %5705, %v7031_v44  }
 0x669   : > { %5706 = vset.pattern.permute.xlu1 %v6936_v15  ;;  %869 = vmatpush.bf16.msrb.mxu0 %v4413_v61  ;;  %v4486_v61 = vld [vmem:[%s8285_s6 + $0xe8] sm:$0xf0] }
 0x670   : > { %3284 = vperm.xlu2 %5705, %v7046_v34  }
 0x671   : > { %3096 = vperm.xlu1 %5706, %v7058_v20   ;;  %v4864_v20 = vld [vmem:[%s8285_s6 + $0x13c] sm:$0xf0] }
 0x672   : > { %v7545_v23 = vpop.permute.xlu2 %3157 }
 0x673   : > { %v7556_v24 = vpop.permute.xlu1 %3242 }
 0x678   : > { %5707 = vset.pattern.permute.xlu2 %v6936_v15  ;;  %v4525_v15 = vor.u32 %v4864_v20, %v4524_v37  ;;  %v4829_v37 = vld [vmem:[%s8285_s6 + $0x24] sm:$0xf0]  ;;  %v4662_v20 = vor.u32 %v4898_v46, %v4661_v56  ;;  %v4597_v46 = vld [vmem:[%s8287_s8 + $0x40] sm:$0xf] }
 0x679   : > { %3193 = vperm.xlu1 %5706, %v7031_v44  }
 0x67a   : > { %838 = vmatpush.bf16.msra.mxu2 %v4525_v15  ;;  %v7587_v63 = vpop.permute.xlu2 %3254  ;;  %v4867_v15 = vld [vmem:[%s8285_s6 + $0x15c] sm:$0xf] }
 0x67b   : > { %v4553_v14 = vor.u32 %v4867_v15, %v4550_v10  ;;  %v4888_v10 = vld [vmem:[%s8287_s8 + $0x84] sm:$0xf] }
 0x67d   : > { %850 = vmatpush.bf16.msra.mxu3 %v4553_v14  ;;  %v4843_v14 = vld [vmem:[%s8285_s6 + $0x9c] sm:$0xf] }
 0x67e   : > { %839 = vmatpush.bf16.msra.mxu2 %v4501_v47  ;;  %v4558_v47 = vld [vmem:[%s8285_s6 + $0x178] sm:$0xf0] }
 0x67f   : > { %v4561_v25 = vor.u32 %v4868_v36, %v4558_v47  ;;  %v4631_v36 = vld [vmem:[%s8287_s8 + $0x90] sm:$0xf0] }
 0x680   : > { %3290 = vperm.xlu2 %5707, %v7046_v34  }
 0x681   : > { %5708 = vset.pattern.permute.xlu1 %v6981_v2  ;;  %876 = vmatpush.bf16.msrb.mxu1 %v4561_v25  ;;  %v4462_v25 = vld [vmem:[%s8285_s6 + $0xb8] sm:$0xf0] }
 0x683   : > { %v7576_v18 = vpop.permute.xlu1 %3060 }
 0x685   : > { %877 = vmatpush.bf16.msrb.mxu1 %v4537_v28  ;;  %v4433_v28 = vor.u32 %v4837_v57, %v4430_v33  ;;  %v4825_v57 = vld [vmem:[%s8285_s6 + $0xc] sm:$0xf]  ;;  %v4382_v33 = vld [vmem:[%s8285_s6 + $0x20] sm:$0xf0] }
 0x688   : > { %5709 = vset.pattern.permute.xlu2 %v6981_v2  ;;  %v4476_v2 = vld [vmem:[%s8285_s6 + $0xc8] sm:$0xf] }
 0x689   : > { %3199 = vperm.xlu1 %5708, %v7031_v44   ;;  %v4852_v44 = vld [vmem:[%s8285_s6 + $0xdc] sm:$0xf0] }
 0x68a   : > { %v4477_v45 = vor.u32 %v4852_v44, %v4476_v2  ;;  %v4894_v2 = vld [vmem:[%s8287_s8 + $0xac] sm:$0xf0]  ;;  %v4389_v44 = vor.u32 %v4829_v37, %v4388_v48  ;;  %v7643_v7 = vpop.permute.xlu2 %3260 }
 0x68b   : > { %v4646_v19 = vor.u32 %v4894_v2, %v4645_v60  ;;  %v4882_v48 = vld [vmem:[%s8287_s8 + $0x4c] sm:$0xf0]  ;;  %v4634_v60 = vor.u32 %v4888_v10, %v4631_v36  ;;  %v4454_v2 = vld [vmem:[%s8285_s6 + $0xb0] sm:$0xf0] }
 0x68c   : > { %840 = vmatpush.bf16.msra.mxu2 %v4477_v45  ;;  %v4679_v45 = vld [vmem:[%s8287_s8 + $0xf0] sm:$0xf0]  ;;  %870 = vmatpush.bf16.msrb.mxu0 %v4389_v44  ;;  %v4598_v15 = vor.u32 %v4882_v48, %v4597_v46  ;;  %v4844_v44 = vld [vmem:[%s8285_s6 + $0xa4] sm:$0xf]  ;;  %v4669_v46 = vld [vmem:[%s8287_s8 + $0xc8] sm:$0xf] }
 0x68d   : > { %v4682_v8 = vor.u32 %v4900_v3, %v4679_v45  ;;  %v4465_v3 = vor.u32 %v4844_v44, %v4462_v25  ;;  %v4581_v45 = vld [vmem:[%s8287_s8 + $0x20] sm:$0xf]  ;;  %v7787_v25 = vld [vmem:[%s8281_s2 + $0x198] sm:$0xff]  }
 0x68f   : > { %871 = vmatmul.bf16.vlgmr.msrb.gmra.mxu0 %v8364_v17 }
 0x690   : > { %3296 = vperm.xlu2 %5709, %v7046_v34   ;;  %v4452_v34 = vld [vmem:[%s8285_s6 + $0x98] sm:$0xf]  ;;  %4024 = vmatpush.bf16.msra.mxu0 %v4682_v8  ;;  %v4878_v8 = vld [vmem:[%s8287_s8 + $0x2c] sm:$0xf0] }
 0x691   : > { %v4453_v52 = vor.u32 %v4846_v31, %v4452_v34  ;;  %v4861_v34 = vld [vmem:[%s8285_s6 + $0x12c] sm:$0xf]  ;;  %v4526_v31 = vld [vmem:[%s8285_s6 + $0x140] sm:$0xf0] }
 0x693   : > { %841 = vmatpush.bf16.msra.mxu2 %v4453_v52  ;;  %v4529_v52 = vor.u32 %v4861_v34, %v4526_v31  ;;  %v7632_v43 = vpop.permute.xlu1 %3066  ;;  %v4884_v34 = vld [vmem:[%s8287_s8 + $0x64] sm:$0xf]  ;;  %v4582_v31 = vor.u32 %v4878_v8, %v4581_v45  ;;  %v7794_v45 = vld [vmem:[%s8281_s2 + $0x1d8] sm:$0xff]   ;;  %v5555_v8 = vld [vmem:[%s8281_s2 + $0x168] sm:$0xff]  }
 0x695   : > { %851 = vmatpush.bf16.msra.mxu3 %v4529_v52  ;;  %v4618_v52 = vor.u32 %v4884_v34, %v4615_v58  ;;  %v7805_v58 = vld [vmem:[%s8286_s7] sm:$0x3f] }
 0x697   : > { %842 = vmatpush.bf16.msra.mxu2 %v4429_v53  ;;  %v4896_v53 = vld [vmem:[%s8287_s8 + $0xc4] sm:$0xf] }
 0x698   : > { %v4666_v42 = vor.u32 %v4896_v53, %v4663_v9  ;;  %v4565_v53 = vld [vmem:[%s8287_s8] sm:$0xf]  ;;  %v4874_v9 = vld [vmem:[%s8287_s8 + $0xc] sm:$0xf0] }
 0x699   : > { %852 = vmatpush.bf16.msra.mxu3 %v4505_v54 }
 0x69a   : > { %4025 = vmatpush.bf16.msra.mxu0 %v4666_v42  ;;  %v7685_v37 = vpop.permute.xlu2 %3078  ;;  %v4566_v42 = vor.u32 %v4874_v9, %v4565_v53  ;;  %v4385_v53 = vor.u32 %v4825_v57, %v4382_v33  ;;  %v4390_v9 = vld [vmem:[%s8285_s6 + $0x28] sm:$0xf0]  ;;  %v4637_v33 = vld [vmem:[%s8287_s8 + $0x88] sm:$0xf] }
 0x69b   : > { %843 = vmatpush.bf16.msra.mxu2 %v4405_v0  ;;  %v4856_v0 = vld [vmem:[%s8285_s6 + $0x104] sm:$0xf]  ;;  %v7696_v47 = vpop.permute.xlu1 %3163 }
 0x69c   : > { %v4513_v55 = vor.u32 %v4856_v0, %v4510_v5  ;;  %v4599_v0 = vld [vmem:[%s8287_s8 + $0x50] sm:$0xf0]  ;;  %v4685_v5 = vld [vmem:[%s8287_s8 + $0xe8] sm:$0xf] }
 0x69e   : > { %878 = vmatpush.bf16.msrb.mxu1 %v4513_v55  ;;  %v4602_v55 = vor.u32 %v4880_v11, %v4599_v0  ;;  %v7836_v11 = vld [vmem:[%s8281_s2 + $0x1e0] sm:$0xff]  }
 0x69f   : > { %844 = vmatpush.bf16.msra.mxu2 %v4381_v38  ;;  %v4647_v38 = vld [vmem:[%s8287_s8 + $0xb0] sm:$0xf0] }
 0x6a0   : > { %v4650_v49 = vor.u32 %v4892_v12, %v4647_v38  ;;  %v4406_v12 = vld [vmem:[%s8285_s6 + $0x50] sm:$0xf0]  ;;  %v4686_v38 = vor.u32 %v4903_v4, %v4685_v5  ;;  %v4805_v4 = vld [vmem:[%s8287_s8 + $0x1e0] sm:$0xf] }
 0x6a2   : > { %845 = vmatmul.bf16.vlgmr.msra.gmra.mxu2 %v8364_v17  ;;  %4026 = vmatpush.bf16.msra.mxu0 %v4650_v49  ;;  %v4409_v49 = vor.u32 %v4831_v26, %v4406_v12  ;;  %v4934_v26 = vld [vmem:[%s8287_s8 + $0x1ec] sm:$0xf0]  ;;  %v4932_v12 = vld [vmem:[%s8287_s8 + $0x1e4] sm:$0xf] }
 0x6a3   : > { %3998 = vmatpush.bf16.msrb.mxu2 %v4678_v16  ;;  %v4849_v16 = vld [vmem:[%s8285_s6 + $0xcc] sm:$0xf] }
 0x6a4   : > { %v4481_v56 = vor.u32 %v4849_v16, %v4478_v62  ;;  %v4832_v16 = vld [vmem:[%s8285_s6 + $0x44] sm:$0xf]  ;;  %v4414_v62 = vld [vmem:[%s8285_s6 + $0x58] sm:$0xf0] }
 0x6a6   : > { %853 = vmatpush.bf16.msra.mxu3 %v4481_v56  ;;  %4027 = vmatpush.bf16.msra.mxu0 %v4634_v60  ;;  %v4417_v56 = vor.u32 %v4832_v16, %v4414_v62  ;;  %v5554_v60 = vld [vmem:[%s8281_s2 + $0x160] sm:$0xff]   ;;  %v5375_v16 = vunpack.c.h.bf16 %v5555_v8  ;;  %v4807_v62 = vld [vmem:[%s8287_s8 + $0x1f0] sm:$0xf0] }
 0x6a7   : > { %3999 = vmatpush.bf16.msrb.mxu2 %v4662_v20  ;;  %v4489_v20 = vor.u32 %v4850_v40, %v4486_v61  ;;  %v4876_v40 = vld [vmem:[%s8287_s8 + $0x24] sm:$0xf]  ;;  %v4583_v61 = vld [vmem:[%s8287_s8 + $0x30] sm:$0xf0]  ;;  %v5370_v44 = vunpack.c.l.bf16 %v5554_v60 }
 0x6a8   : > { %v4586_v48 = vor.u32 %v4876_v40, %v4583_v61  ;;  %v4653_v40 = vld [vmem:[%s8287_s8 + $0xa8] sm:$0xf] }
 0x6a9   : > { %879 = vmatpush.bf16.msrb.mxu1 %v4489_v20  ;;  %v4899_v20 = vld [vmem:[%s8287_s8 + $0xd4] sm:$0xf0]  ;;  %v3386_v34 = vmul.f32 %v5370_v44, %v7576_v18  ;;  %v4826_v18 = vld [vmem:[%s8285_s6 + $0x14] sm:$0xf] }
 0x6aa   : > { %4028 = vmatpush.bf16.msra.mxu0 %v4618_v52  ;;  %v7746_v54 = vpop.permute.xlu2 %3084  ;;  %v560_v52 = vperm.slane %v7805_v58, 1  ;;  %v4393_v5 = vor.u32 %v4826_v18, %v4390_v9  ;;  %v4891_v18 = vld [vmem:[%s8287_s8 + $0x94] sm:$0xf0]  ;;  %v3389_v9 = vmul.f32 %v5375_v16, %v7685_v37 }
 0x6ab   : > { %4000 = vmatpush.bf16.msrb.mxu2 %v4646_v19  ;;  %v4457_v19 = vor.u32 %v4843_v14, %v4454_v2 }
 0x6ad   : > { %854 = vmatpush.bf16.msra.mxu3 %v4457_v19  ;;  %880 = vmatpush.bf16.msrb.mxu1 %v4465_v3  ;;  %v5371_v19 = vunpack.c.h.bf16 %v5554_v60 }
 0x6ae   : > { %4029 = vmatpush.bf16.msra.mxu0 %v4602_v55 }
 0x6af   : > { %4001 = vmatpush.bf16.msrb.mxu2 %v4630_v27  ;;  %v4438_v27 = vld [vmem:[%s8285_s6 + $0x88] sm:$0xf0]  ;;  %v3387_v0 = vmul.f32 %v5371_v19, %v7632_v43  ;;  %v4806_v43 = vor.u32 %v4934_v26, %v4805_v4 }
 0x6b0   : > { %v4441_v35 = vor.u32 %v4838_v32, %v4438_v27  ;;  %v5398_v32 = vunpack.c.l.bf16 %v7787_v25  ;;  %v7822_v27 = vld [vmem:[%s8281_s2 + $0x170] sm:$0xff]  }
 0x6b1   : > { %855 = vmatpush.bf16.msra.mxu3 %v4433_v28  ;;  %v5430_v28 = vunpack.c.l.bf16 %v7794_v45 }
 0x6b2   : > { %881 = vmatpush.bf16.msrb.mxu1 %v4441_v35  ;;  %4030 = vmatpush.bf16.msra.mxu0 %v4586_v48  ;;  %v7777_v36 = vpop.permute.xlu2 %3181  ;;  %v4872_v35 = vld [vmem:[%s8287_s8 + $0x4] sm:$0xf]  ;;  %v4901_v48 = vld [vmem:[%s8287_s8 + $0xec] sm:$0xf]  ;;  %v7868_v60 = vmul.f32 %v5398_v32, %v7179_v39 }
 0x6b3   : > { %4002 = vmatpush.bf16.msrb.mxu2 %v4614_v1  ;;  %v7757_v1 = vpop.permute.xlu1 %3169  ;;  %v3416_v44 = vmul.f32 %v5430_v28, %v7556_v24  ;;  %v4928_v39 = vld [vmem:[%s8287_s8 + $0x1c4] sm:$0xf]  ;;  %v4897_v32 = vld [vmem:[%s8287_s8 + $0xcc] sm:$0xf] }
 0x6b5   : > { %856 = vmatpush.bf16.msra.mxu3 %v4409_v49  ;;  %v3538_v49 = vadd.f32 %v7451_v6, %v3386_v34 }
 0x6b6   : > { %882 = vmatpush.bf16.msrb.mxu1 %v4417_v56  ;;  %v4895_v56 = vld [vmem:[%s8287_s8 + $0xb4] sm:$0xf0] }
 0x6b7   : > { %4003 = vmatpush.bf16.msrb.mxu2 %v4598_v15  ;;  %v4670_v15 = vor.u32 %v4899_v20, %v4669_v46  ;;  %v4810_v46 = vor.u32 %v4932_v12, %v4807_v62  ;;  %v4654_v6 = vor.u32 %v4895_v56, %v4653_v40  ;;  %v4687_v20 = vld [vmem:[%s8287_s8 + $0xf8] sm:$0xf0]  ;;  %v3539_v34 = vadd.f32 %v3538_v49, %v3387_v0  ;;  %v4926_v49 = vld [vmem:[%s8287_s8 + $0x1ac] sm:$0xf0]  ;;  %v4924_v56 = vld [vmem:[%s8287_s8 + $0x1a4] sm:$0xf] }
 0x6b8   : > { %v4690_v19 = vor.u32 %v4901_v48, %v4687_v20  ;;  %v4638_v0 = vor.u32 %v4891_v18, %v4637_v33  ;;  %v5435_v62 = vunpack.c.h.bf16 %v7836_v11  ;;  %v4893_v48 = vld [vmem:[%s8287_s8 + $0xac] sm:$0xf]  ;;  %v4655_v20 = vld [vmem:[%s8287_s8 + $0xb8] sm:$0xf0]  ;;  %v4605_v33 = vld [vmem:[%s8287_s8 + $0x48] sm:$0xf] }
 0x6b9   : > { %857 = vmatpush.bf16.msra.mxu3 %v4385_v53  ;;  %v5434_v53 = vunpack.c.l.bf16 %v7836_v11  ;;  %v4883_v18 = vld [vmem:[%s8287_s8 + $0x54] sm:$0xf0] }
 0x6ba   : > { %883 = vmatpush.bf16.msrb.mxu1 %v4393_v5  ;;  %v4671_v5 = vld [vmem:[%s8287_s8 + $0xd8] sm:$0xf0] }
 0x6bb   : > { %4004 = vmatpush.bf16.msrb.mxu2 %v4582_v31  ;;  %v7779_v14 = vpop.permute.xlu1 %3266  ;;  %v4674_v26 = vor.u32 %v4897_v32, %v4671_v5  ;;  %v3419_v32 = vmul.f32 %v5435_v62, %v7643_v7  ;;  %v4741_v7 = vld [vmem:[%s8287_s8 + $0x160] sm:$0xf] }
 0x6bc   : > { %858 = vmatmul.bf16.vlgmr.msra.gmra.mxu3 %v8364_v17 }
 0x6bd   : > { %4011 = vmatpush.bf16.msrb.mxu3 %v4806_v43  ;;  %884 = vmatmul.bf16.vlgmr.msrb.gmra.mxu1 %v8364_v17  ;;  %v3578_v43 = vadd.f32 %v7458_v22, %v3416_v44  ;;  %v4775_v17 = vld [vmem:[%s8287_s8 + $0x1b0] sm:$0xf0]  ;;  %v4658_v44 = vor.u32 %v4893_v48, %v4655_v20 }
 0x6be   : > { %4037 = vmatpush.bf16.msra.mxu1 %v4810_v46  ;;  %v4778_v11 = vor.u32 %v4924_v56, %v4775_v17  ;;  %v4589_v56 = vld [vmem:[%s8287_s8 + $0x28] sm:$0xf]  ;;  %v4879_v17 = vld [vmem:[%s8287_s8 + $0x34] sm:$0xf0] }
 0x6bf   : > { %4005 = vmatpush.bf16.msrb.mxu2 %v4566_v42  ;;  %v833_v10 = vpop.f32.mrf.mxu1  ;;  %v4567_v42 = vld [vmem:[%s8287_s8 + $0x10] sm:$0xf0] }
 0x6c0   : > { %v4570_v55 = vor.u32 %v4872_v35, %v4567_v42  ;;  %v834_v61 = vadd.f32 %v833_v10, %v560_v52  ;;  %v5431_v10 = vunpack.c.h.bf16 %v7794_v45  ;;  %v4791_v45 = vld [vmem:[%s8287_s8 + $0x1d0] sm:$0xf0]  ;;  %v5378_v52 = vunpack.c.l.bf16 %v7822_v27  ;;  %v7902_v35 = vld [vmem:[%s8281_s2 + $0x1e8] sm:$0xff]  }
 0x6c1   : > { %v4794_v57 = vor.u32 %v4928_v39, %v4791_v45  ;;  %v4920_v39 = vld [vmem:[%s8287_s8 + $0x184] sm:$0xf]  ;;  %v5399_v45 = vunpack.c.h.bf16 %v7787_v25 }
 0x6c2   : > { %v7789_v3 = vpop.permute.xlu2 %3187  ;;  %4031 = vmatpush.bf16.msra.mxu0 %v4570_v55  ;;  %v5379_v55 = vunpack.c.h.bf16 %v7822_v27  ;;  %v7916_v4 = vmul.f32 -1.442695, %v834_v61  ;;  %v3417_v16 = vmul.f32 %v5431_v10, %v7196_v21  ;;  %v7931_v27 = vld [vmem:[%s8281_s2 + $0x1f0] sm:$0xff]   ;;  %v4621_v21 = vld [vmem:[%s8287_s8 + $0x68] sm:$0xf]  ;;  %v3390_v22 = vmul.f32 %v5378_v52, %v7746_v54  ;;  %v7982_v25 = vld [vmem:[%s8281_s2 + $0x1a0] sm:$0xff]  }
 0x6c3   : > { %4050 = vmatpush.bf16.msra.mxu2 %v4686_v38  ;;  %v7800_v31 = vpop.permute.xlu1 %3272  ;;  %v5374_v38 = vunpack.c.l.bf16 %v5555_v8  ;;  %v4930_v8 = vld [vmem:[%s8287_s8 + $0x1cc] sm:$0xf0]  ;;  %4038 = vmatpush.bf16.msra.mxu1 %v4794_v57  ;;  %v5438_v10 = vunpack.c.l.bf16 %v7902_v35  ;;  %v4759_v57 = vld [vmem:[%s8287_s8 + $0x190] sm:$0xf0]  ;;  %v3401_v48 = vmul.f32 %v5399_v45, %v7507_v59  ;;  %v5443_v45 = vunpack.c.h.bf16 %v7931_v27 }
 0x6c4   : > { %5715 = vpow2.f32 %v7916_v4  ;;  %v8032_v4 = vld [vmem:[%s8281_s2 + $0x1f8] sm:$0xff]   ;;  %v4914_v59 = vld [vmem:[%s8287_s8 + $0x14c] sm:$0xf0] }
 0x6c5   : > { %v3388_v28 = vmul.f32 %v5374_v38, %v7204_v29  ;;  %v3611_v29 = vld [vmem:[%s483_s28] sm:$0xff] }
 0x6c6   : > { %4076 = vmatpush.bf16.msrb.mxu0 %v4690_v19  ;;  %v7918_v12 = vpack.c.bf16 %v3611_v29, %v3611_v29  ;;  %v4773_v38 = vld [vmem:[%s8287_s8 + $0x1a0] sm:$0xf]  ;;  %v4762_v29 = vor.u32 %v4920_v39, %v4759_v57  ;;  %v5403_v39 = vunpack.c.h.bf16 %v7982_v25  ;;  %v4875_v57 = vld [vmem:[%s8287_s8 + $0x14] sm:$0xf0] }
 0x6c7   : > { %4051 = vmatpush.bf16.msra.mxu2 %v4670_v15  ;;  %v835_v2 = vpop.f32.mrf.mxu1  ;;  %v4789_v15 = vld [vmem:[%s8287_s8 + $0x1c0] sm:$0xf]  ;;  %v4774_v40 = vor.u32 %v4926_v49, %v4773_v38  ;;  %v3540_v46 = vadd.f32 %v3539_v34, %v3388_v28  ;;  %v5439_v28 = vunpack.c.h.bf16 %v7902_v35  ;;  %4039 = vmatpush.bf16.msra.mxu1 %v4778_v11  ;;  %v4918_v35 = vld [vmem:[%s8287_s8 + $0x16c] sm:$0xf0]  ;;  %v4623_v11 = vld [vmem:[%s8287_s8 + $0x78] sm:$0xf0] }
 0x6c8   : > { %v7874_v2 = vld [vmem:[%s8281_s2 + $0x178] sm:$0xff]   ;;  %v4790_v24 = vor.u32 %v4930_v8, %v4789_v15  ;;  %v3418_v15 = vmul.f32 %v5434_v53, %v7587_v63  ;;  %4006 = vmatmul.bf16.vlgmr.msrb.gmra.mxu2 %v7918_v12  ;;  %v4757_v19 = vld [vmem:[%s8287_s8 + $0x180] sm:$0xf]  ;;  %v4922_v8 = vld [vmem:[%s8287_s8 + $0x18c] sm:$0xf0]  ;;  %v3103_v63 = vpop.permute.xlu0 %3102  ;;  %4032 = vmatmul.bf16.vlgmr.msra.gmra.mxu0 %v7918_v12 }
 0x6c9   : > { %v5383_v61 = vunpack.c.h.bf16 %v7874_v2  ;;  %v3541_v34 = vadd.f32 %v3540_v46, %v3389_v9  ;;  %v4758_v53 = vor.u32 %v4922_v8, %v4757_v19  ;;  %v4889_v9 = vld [vmem:[%s8287_s8 + $0x8c] sm:$0xf]  ;;  %v4590_v19 = vor.u32 %v4879_v17, %v4589_v56  ;;  %v4725_v8 = vld [vmem:[%s8287_s8 + $0x140] sm:$0xf]  ;;  %v5564_v56 = vld [vmem:[%s8281_s2 + $0x1b0] sm:$0xff]  }
 0x6ca   : > { %v7913_v37 = vpop.permute.xlu2 %3284  ;;  %4012 = vmatpush.bf16.msrb.mxu3 %v4790_v24  ;;  %4077 = vmatpush.bf16.msrb.mxu0 %v4674_v26  ;;  %v5382_v24 = vunpack.c.l.bf16 %v7874_v2  ;;  %v3579_v2 = vadd.f32 %v3578_v43, %v3417_v16  ;;  %v4916_v26 = vld [vmem:[%s8287_s8 + $0x164] sm:$0xf]  ;;  %v3420_v16 = vmul.f32 %v5438_v10, %v7779_v14  ;;  %v4742_v10 = vor.u32 %v4918_v35, %v4741_v7 }
 0x6cb   : > { %4052 = vmatpush.bf16.msra.mxu2 %v4654_v6  ;;  %v4887_v6 = vld [vmem:[%s8287_s8 + $0x74] sm:$0xf0]  ;;  %v3542_v5 = vadd.f32 %v3541_v34, %v3390_v22  ;;  %v3393_v38 = vmul.f32 %v5383_v61, %v3103_v63  ;;  %v4885_v22 = vld [vmem:[%s8287_s8 + $0x6c] sm:$0xf]  ;;  %4040 = vmatpush.bf16.msra.mxu1 %v4762_v29  ;;  %v3423_v7 = vmul.f32 %v5443_v45, %v7913_v37  ;;  %v5447_v35 = vunpack.c.h.bf16 %v8032_v4  ;;  %v4591_v37 = vld [vmem:[%s8287_s8 + $0x38] sm:$0xf0] }
 0x6cc   : > { %v4622_v54 = vor.u32 %v4887_v6, %v4621_v21  ;;  %v3580_v49 = vadd.f32 %v3579_v2, %v3418_v15  ;;  %v5402_v21 = vunpack.c.l.bf16 %v7982_v25  ;;  %v8025_v6 = vld [vmem:[%s8281_s2 + $0x1a8] sm:$0xff]   ;;  %v3421_v15 = vmul.f32 %v5439_v28, %v7800_v31  ;;  %v4912_v31 = vld [vmem:[%s8287_s8 + $0x144] sm:$0xf]  ;;  %v4815_v45 = vld [vmem:[%s8287_s8 + $0x1f8] sm:$0xf0] }
 0x6cd   : > { %v4626_v34 = vor.u32 %v4885_v22, %v4623_v11  ;;  %v4881_v2 = vld [vmem:[%s8287_s8 + $0x4c] sm:$0xf]  ;;  %v4906_v22 = vld [vmem:[%s8287_s8 + $0x10c] sm:$0xf0]  ;;  %v5407_v11 = vunpack.c.h.bf16 %v8025_v6 }
 0x6ce   : > { %4013 = vmatpush.bf16.msrb.mxu3 %v4774_v40  ;;  %4078 = vmatpush.bf16.msrb.mxu0 %v4658_v44  ;;  %v4743_v40 = vld [vmem:[%s8287_s8 + $0x170] sm:$0xf0]  ;;  %v3581_v20 = vadd.f32 %v3580_v49, %v3419_v32  ;;  %v4607_v32 = vld [vmem:[%s8287_s8 + $0x58] sm:$0xf0] }
 0x6cf   : > { %4053 = vmatpush.bf16.msra.mxu2 %v4638_v0  ;;  %v5442_v0 = vunpack.c.l.bf16 %v7931_v27  ;;  %v4746_v44 = vor.u32 %v4916_v26, %v4743_v40  ;;  %v5406_v27 = vunpack.c.l.bf16 %v8025_v6  ;;  %v4610_v26 = vor.u32 %v4881_v2, %v4607_v32  ;;  %v4711_v49 = vld [vmem:[%s8287_s8 + $0x130] sm:$0xf0]  ;;  %v4873_v6 = vld [vmem:[%s8287_s8 + $0xc] sm:$0xf] }
 0x6d0   : > { %v3582_v63 = vadd.f32 %v3581_v20, %v3420_v16  ;;  %v3405_v2 = vmul.f32 %v5407_v11, %v7214_v50  ;;  %v4929_v50 = vld [vmem:[%s8287_s8 + $0x1cc] sm:$0xf] }
 0x6d1   : > { %v3422_v28 = vmul.f32 %v5442_v0, %v7326_v51  ;;  %4041 = vmatpush.bf16.msra.mxu1 %v4746_v44  ;;  %v4910_v51 = vld [vmem:[%s8287_s8 + $0x12c] sm:$0xf0]  ;;  %v3403_v0 = vmul.f32 %v5403_v39, %v7696_v47  ;;  %v4877_v47 = vld [vmem:[%s8287_s8 + $0x2c] sm:$0xf]  ;;  %v4575_v39 = vld [vmem:[%s8287_s8 + $0x18] sm:$0xf0] }
 0x6d2   : > { %4014 = vmatpush.bf16.msrb.mxu3 %v4758_v53  ;;  %v3583_v53 = vadd.f32 %v3582_v63, %v3421_v15  ;;  %v4695_v15 = vld [vmem:[%s8287_s8 + $0x110] sm:$0xf0]  ;;  %v4594_v44 = vor.u32 %v4877_v47, %v4591_v37  ;;  %v4933_v63 = vld [vmem:[%s8287_s8 + $0x1ec] sm:$0xf] }
 0x6d3   : > { %v3091_v42 = vpop.permute.xlu1 %3090  ;;  %4054 = vmatpush.bf16.msra.mxu2 %v4622_v54 }
 0x6d4   : > { %v3391_v52 = vmul.f32 %v5379_v55, %v3091_v42  ;;  %v4639_v42 = vld [vmem:[%s8287_s8 + $0x98] sm:$0xf0]  ;;  %v4606_v55 = vor.u32 %v4883_v18, %v4605_v33  ;;  %v3557_v33 = vadd.f32 %v7453_v41, %v7868_v60  ;;  %v3402_v18 = vmul.f32 %v5402_v21, %v7545_v23  ;;  %v5716_v60 = vpop.eup %5715 }
 0x6d5   : > { %v4642_v62 = vor.u32 %v4889_v9, %v4639_v42  ;;  %v5446_v9 = vunpack.c.l.bf16 %v8032_v4  ;;  %v4726_v41 = vor.u32 %v4914_v59, %v4725_v8  ;;  %v3584_v17 = vadd.f32 %v3583_v53, %v3422_v28  ;;  %v4935_v8 = vld [vmem:[%s8287_s8 + $0x1f4] sm:$0xf0] }
 0x6d6   : > { %v3543_v61 = vadd.f32 %v3542_v5, %v3391_v52  ;;  %v4727_v52 = vld [vmem:[%s8287_s8 + $0x150] sm:$0xf0]  ;;  %4015 = vmatpush.bf16.msrb.mxu3 %v4742_v10  ;;  %v3558_v23 = vadd.f32 %v3557_v33, %v3401_v48  ;;  %v5410_v59 = vunpack.c.l.bf16 %v5564_v56  ;;  %v5411_v33 = vunpack.c.h.bf16 %v5564_v56 }
 0x6d7   : > { %4055 = vmatpush.bf16.msra.mxu2 %v4606_v55  ;;  %4079 = vmatpush.bf16.msrb.mxu0 %v4642_v62  ;;  %v4730_v5 = vor.u32 %v4912_v31, %v4727_v52  ;;  %v4709_v55 = vld [vmem:[%s8287_s8 + $0x120] sm:$0xf]  ;;  %v3585_v10 = vadd.f32 %v3584_v17, %v3423_v7  ;;  %v4578_v53 = vor.u32 %v4873_v6, %v4575_v39 }
 0x6d8   : > { %v3559_v16 = vadd.f32 %v3558_v23, %v3402_v18  ;;  %v3406_v23 = vmul.f32 %v5410_v59, %v7777_v36 }
 0x6d9   : > { %4042 = vmatpush.bf16.msra.mxu1 %v4730_v5 }
 0x6da   : > { %v8013_v46 = vpop.permute.xlu2 %3290  ;;  %4016 = vmatpush.bf16.msrb.mxu3 %v4726_v41  ;;  %v3560_v4 = vadd.f32 %v3559_v16, %v3403_v0  ;;  %v4797_v41 = vld [vmem:[%s8287_s8 + $0x1c8] sm:$0xf] }
 0x6db   : > { %4056 = vmatpush.bf16.msra.mxu2 %v4590_v19  ;;  %4080 = vmatpush.bf16.msrb.mxu0 %v4626_v34  ;;  %v3424_v21 = vmul.f32 %v5446_v9, %v8013_v46  ;;  %v4904_v46 = vld [vmem:[%s8287_s8 + $0x104] sm:$0xf]  ;;  %v4813_v19 = vld [vmem:[%s8287_s8 + $0x1e8] sm:$0xf]  ;;  %v4818_v9 = vor.u32 %v4933_v63, %v4815_v45 }
 0x6dd   : > { %v3586_v52 = vadd.f32 %v3585_v10, %v3424_v21 }
 0x6df   : > { %4081 = vmatpush.bf16.msrb.mxu0 %v4610_v26 }
 0x6e3   : > { %v3097_v43 = vpop.permute.xlu1 %3096  ;;  %4082 = vmatpush.bf16.msrb.mxu0 %v4594_v44  ;;  %v4919_v44 = vld [vmem:[%s8287_s8 + $0x174] sm:$0xf0] }
 0x6e4   : > { %v3392_v14 = vmul.f32 %v5382_v24, %v3097_v43  ;;  %v4573_v24 = vld [vmem:[%s8287_s8 + $0x8] sm:$0xf]  ;;  %v3404_v43 = vmul.f32 %v5406_v27, %v7757_v1  ;;  %v4710_v1 = vor.u32 %v4910_v51, %v4709_v55  ;;  %v4698_v27 = vor.u32 %v4904_v46, %v4695_v15 }
 0x6e5   : > { %v4574_v29 = vor.u32 %v4875_v57, %v4573_v24  ;;  %v5565_v24 = vld [vmem:[%s8281_s2 + $0x1b8] sm:$0xff]   ;;  %v3407_v51 = vmul.f32 %v5411_v33, %v7789_v3 }
 0x6e6   : > { %v3544_v54 = vadd.f32 %v3543_v61, %v3392_v14  ;;  %v8092_v61 = vadd.f32 1.0, %v5716_v60  ;;  %v4693_v14 = vld [vmem:[%s8287_s8 + $0x100] sm:$0xf]  ;;  %v3561_v34 = vadd.f32 %v3560_v4, %v3404_v43  ;;  %4017 = vmatpush.bf16.msrb.mxu3 %v4710_v1  ;;  %v4931_v60 = vld [vmem:[%s8287_s8 + $0x1d4] sm:$0xf0]  ;;  %v5414_v5 = vunpack.c.l.bf16 %v5565_v24 }
 0x6e7   : > { %4057 = vmatpush.bf16.msra.mxu2 %v4574_v29  ;;  %v4694_v57 = vor.u32 %v4906_v22, %v4693_v14  ;;  %v4799_v29 = vld [vmem:[%s8287_s8 + $0x1d8] sm:$0xf0]  ;;  %v4798_v0 = vor.u32 %v4931_v60, %v4797_v41  ;;  %4083 = vmatpush.bf16.msrb.mxu0 %v4578_v53  ;;  %v4927_v3 = vld [vmem:[%s8287_s8 + $0x1b4] sm:$0xf0]  ;;  %v5415_v43 = vunpack.c.h.bf16 %v5565_v24  ;;  %v4765_v1 = vld [vmem:[%s8287_s8 + $0x188] sm:$0xf] }
 0x6e8   : > { %v3545_v25 = vadd.f32 %v3544_v54, %v3393_v38  ;;  %v4908_v38 = vld [vmem:[%s8287_s8 + $0x124] sm:$0xf]  ;;  %5717 = vrcp.f32 %v8092_v61  ;;  %v3562_v55 = vadd.f32 %v3561_v34, %v3405_v2  ;;  %v4802_v26 = vor.u32 %v4929_v50, %v4799_v29  ;;  %v4923_v14 = vld [vmem:[%s8287_s8 + $0x194] sm:$0xf0]  ;;  %v4733_v34 = vld [vmem:[%s8287_s8 + $0x148] sm:$0xf] }
 0x6e9   : > { %v4714_v20 = vor.u32 %v4908_v38, %v4711_v49  ;;  %v4781_v38 = vld [vmem:[%s8287_s8 + $0x1a8] sm:$0xf]  ;;  %v4766_v15 = vor.u32 %v4923_v14, %v4765_v1  ;;  %vm898_vm7 = vweird.f32 %v8092_v61  ;;  %v4735_v33 = vld [vmem:[%s8287_s8 + $0x158] sm:$0xf0]  ;;  %v902_v2 = vand.u32 2147483647, %v8092_v61 }
 0x6ea   : > { %v3546_v42 = vrot.slane %v3545_v25, 4  ;;  %v3297_v40 = vpop.permute.xlu2 %3296  ;;  %4058 = vmatmul.bf16.vlgmr.msra.gmra.mxu2 %v7918_v12  ;;  %4018 = vmatpush.bf16.msrb.mxu3 %v4694_v57  ;;  %v3563_v49 = vadd.f32 %v3562_v55, %v3406_v23  ;;  %v4782_v37 = vor.u32 %v4927_v3, %v4781_v38  ;;  %v4913_v57 = vld [vmem:[%s8287_s8 + $0x14c] sm:$0xf]  ;;  %v4717_v41 = vld [vmem:[%s8287_s8 + $0x128] sm:$0xf] }
 0x6eb   : > { %v3425_v54 = vmul.f32 %v5447_v35, %v3297_v40  ;;  %4043 = vmatpush.bf16.msra.mxu1 %v4714_v20  ;;  %v3194_v28 = vpop.permute.xlu1 %3193  ;;  %4084 = vmatmul.bf16.vlgmr.msrb.gmra.mxu0 %v7918_v12  ;;  %v4921_v12 = vld [vmem:[%s8287_s8 + $0x18c] sm:$0xf]  ;;  %v4911_v60 = vld [vmem:[%s8287_s8 + $0x134] sm:$0xf0]  ;;  %vm903_vm11 = vcmp.eq.f32.partialorder %v902_v2, 8.507059e+37 }
 0x6ec   : > { %v3547_v62 = vadd.f32 %v3546_v42, %v3545_v25  ;;  %v4814_v25 = vor.u32 %v4935_v8, %v4813_v19  ;;  %v3408_v16 = vmul.f32 %v5414_v5, %v3194_v28  ;;  %v3564_v40 = vadd.f32 %v3563_v49, %v3407_v51  ;;  %v4917_v19 = vld [vmem:[%s8287_s8 + $0x16c] sm:$0xf]  ;;  %v4751_v8 = vld [vmem:[%s8287_s8 + $0x178] sm:$0xf0]  ;;  %v4907_v38 = vld [vmem:[%s8287_s8 + $0x114] sm:$0xf0] }
 0x6ed   : > { %v3587_v32 = vadd.f32 %v3586_v52, %v3425_v54  ;;  %v4749_v54 = vld [vmem:[%s8287_s8 + $0x168] sm:$0xf]  ;;  %v4754_v45 = vor.u32 %v4917_v19, %v4751_v8  ;;  %v4915_v52 = vld [vmem:[%s8287_s8 + $0x154] sm:$0xf0]  ;;  %v4718_v55 = vor.u32 %v4911_v60, %v4717_v41  ;;  %v4703_v3 = vld [vmem:[%s8287_s8 + $0x118] sm:$0xf0] }
 0x6ee   : > { %v3548_v48 = vrot.slane %v3547_v62, 2  ;;  %4063 = vmatpush.bf16.msra.mxu3 %v4814_v25  ;;  %v8149_v7 = vpop.eup %5717  ;;  %v3565_v22 = vadd.f32 %v3564_v40, %v3408_v16  ;;  %v4750_v39 = vor.u32 %v4919_v44, %v4749_v54  ;;  %v561_v44 = vperm.slane %v7805_v58, 2 }
 0x6ef   : > { %4044 = vmatpush.bf16.msra.mxu1 %v4698_v27  ;;  %v3588_v35 = vrot.slane %v3587_v32, 4  ;;  %v894_v47 = vmul.f32 %v8149_v7, %v8092_v61 }
 0x6f0   : > { %v3549_v31 = vadd.f32 %v3548_v48, %v3547_v62  ;;  %v4783_v62 = vld [vmem:[%s8287_s8 + $0x1b8] sm:$0xf0] }
 0x6f1   : > { %v3589_v56 = vadd.f32 %v3588_v35, %v3587_v32  ;;  %v4767_v48 = vld [vmem:[%s8287_s8 + $0x198] sm:$0xf0]  ;;  %v895_v20 = vsub.f32 1.0, %v894_v47  ;;  %v4734_v32 = vor.u32 %v4915_v52, %v4733_v34  ;;  %v4701_v35 = vld [vmem:[%s8287_s8 + $0x108] sm:$0xf] }
 0x6f2   : > { %v3550_v18 = vrot.slane %v3549_v31, 1  ;;  %4064 = vmatpush.bf16.msra.mxu3 %v4798_v0  ;;  %v4770_v10 = vor.u32 %v4921_v12, %v4767_v48 }
 0x6f3   : > { %4089 = vmatpush.bf16.msrb.mxu1 %v4818_v9  ;;  %v3590_v4 = vrot.slane %v3589_v56, 2  ;;  %v4738_v9 = vor.u32 %v4913_v57, %v4735_v33 }
 0x6f4   : > { %v3551_v42 = vadd.f32 %v3550_v18, %v3549_v31  ;;  %v896_v31 = vmul.f32 %v8149_v7, %v895_v20  ;;  %v904_v18 = vand.u32 2147483648, %v8092_v61  ;;  %v4909_v61 = vld [vmem:[%s8287_s8 + $0x12c] sm:$0xf] }
 0x6f5   : > { %v3591_v63 = vadd.f32 %v3590_v4, %v3589_v56 }
 0x6f6   : > { %v8147_v36 = vsel %vm2249_vm8, %v3551_v42, %v7348_v13  ;;  %v4925_v13 = vld [vmem:[%s8287_s8 + $0x1ac] sm:$0xf]  ;;  %4065 = vmatpush.bf16.msra.mxu3 %v4782_v37  ;;  %vm899_vm8 = vweird.f32 %v8149_v7  ;;  %v897_v25 = vadd.f32 %v8149_v7, %v896_v31  ;;  %v4719_v42 = vld [vmem:[%s8287_s8 + $0x138] sm:$0xf0]  ;;  %v905_v5 = vor.u32 1.1754944e-38, %v904_v18 }
 0x6f7   : > { %4090 = vmatpush.bf16.msrb.mxu1 %v4802_v26  ;;  %v4786_v21 = vor.u32 %v4925_v13, %v4783_v62  ;;  %v3592_v28 = vrot.slane %v3591_v63, 1  ;;  %vm8208_vm10 = vmor %vm898_vm7, %vm899_vm8  ;;  %v4722_v0 = vor.u32 %v4909_v61, %v4719_v42  ;;  %v4702_v13 = vor.u32 %v4907_v38, %v4701_v35 }
 0x6f8   : > { %v901_v29 = vsel %vm8208_vm10, %v8149_v7, %v897_v25  ;;  %v4905_v7 = vld [vmem:[%s8287_s8 + $0x10c] sm:$0xf]  ;;  %v563_v25 = vperm.slane %v7805_v58, 4 }
 0x6f9   : > { %v3593_v51 = vadd.f32 %v3592_v28, %v3591_v63  ;;  %v906_v49 = vsel %vm903_vm11, %v905_v5, %v901_v29 }
 0x6fa   : > { %4066 = vmatpush.bf16.msra.mxu3 %v4766_v15 }
 0x6fb   : > { %v3200_v17 = vpop.permute.xlu1 %3199  ;;  %4091 = vmatpush.bf16.msrb.mxu1 %v4786_v21 }
 0x6fc   : > { %v3409_v11 = vmul.f32 %v5415_v43, %v3200_v17 }
 0x6fe   : > { %v3566_v46 = vadd.f32 %v3565_v22, %v3409_v11  ;;  %4067 = vmatpush.bf16.msra.mxu3 %v4750_v39 }
 0x6ff   : > { %4092 = vmatpush.bf16.msrb.mxu1 %v4770_v10  ;;  %v562_v10 = vperm.slane %v7805_v58, 3 }
 0x700   : > { %v3567_v6 = vrot.slane %v3566_v46, 4 }
 0x702   : > { %v3568_v59 = vadd.f32 %v3567_v6, %v3566_v46  ;;  %4068 = vmatpush.bf16.msra.mxu3 %v4734_v32 }
 0x703   : > { %4093 = vmatpush.bf16.msrb.mxu1 %v4754_v45  ;;  %v564_v45 = vperm.slane %v7805_v58, 5 }
 0x704   : > { %v3569_v24 = vrot.slane %v3568_v59, 2 }
 0x706   : > { %v3570_v27 = vadd.f32 %v3569_v24, %v3568_v59  ;;  %4069 = vmatpush.bf16.msra.mxu3 %v4718_v55 }
 0x707   : > { %4094 = vmatpush.bf16.msrb.mxu1 %v4738_v9 }
 0x708   : > { %v3571_v23 = vrot.slane %v3570_v27, 1 }
 0x70a   : > { %v3572_v50 = vadd.f32 %v3571_v23, %v3570_v27  ;;  %4070 = vmatpush.bf16.msra.mxu3 %v4702_v13 }
 0x70b   : > { %4095 = vmatpush.bf16.msrb.mxu1 %v4722_v0 }
 0x70c   : > { %v3607_v26 = vsel %vm2251_vm9, %v3572_v50, %v8147_v36  ;;  %v4706_v36 = vor.u32 %v4905_v7, %v4703_v3  ;;  %v872_v47 = vpop.f32.mrf.mxu0 }
 0x70d   : > { %v3608_v16 = vsel %vm2253_vm3, %v3593_v51, %v3607_v26  ;;  %v873_v41 = vadd.f32 %v872_v47, %v563_v25 }
 0x70e   : > { %v3610_v43 = vmul.f32 %v3608_v16, %v906_v49 }
 0x70f   : > { %4096 = vmatpush.bf16.msrb.mxu1 %v4706_v36 }
 0x710   : > { %v3613_v62 = vpack.c.bf16 %v3610_v43, %v3610_v43 }
 0x712   : > { %4019 = vmatmul.bf16.vlgmr.msrb.gmra.mxu3 %v3613_v62  ;;  %4045 = vmatmul.bf16.vlgmr.msra.gmra.mxu1 %v3613_v62 }
 0x714   : > { %v874_v56 = vpop.f32.mrf.mxu0 }
 0x715   : > { %v507_v56 = vld [vmem:[#allocation3] sm:$0xff] }
 0x722   : > { %4071 = vmatmul.bf16.vlgmr.msra.gmra.mxu3 %v3613_v62  ;;  %4097 = vmatmul.bf16.vlgmr.msrb.gmra.mxu1 %v3613_v62 }
 0x725   : > { %v846_v40 = vpop.f32.mrf.mxu2 }
 0x726   : > { %v847_v8 = vadd.f32 %v846_v40, %v561_v44 }
 0x72d   : > { %v848_v37 = vpop.f32.mrf.mxu2 }
 0x73a   : > { %v885_v17 = vpop.f32.mrf.mxu1 }
 0x73b   : > { %v886_v33 = vadd.f32 %v885_v17, %v564_v45  ;;  %v5737_v45 = vld [vmem:[#allocation2] sm:$0xff] }
 0x73f   : > { %v859_v1 = vpop.f32.mrf.mxu3 }
 0x740   : > { %v860_v54 = vadd.f32 %v859_v1, %v562_v10 }
 0x742   : > { %v887_v14 = vpop.f32.mrf.mxu1 }
 0x745   : > { %v4033_v21 = vpop.f32.mrf.mxu0 }
 0x746   : > { %v4034_v6 = vadd.f32 %v4033_v21, %v860_v54 }
 0x747   : > { %v861_v12 = vpop.f32.mrf.mxu3 }
 0x74b   : > { %v4007_v22 = vpop.f32.mrf.mxu2 }
 0x74c   : > { %v4008_v39 = vadd.f32 %v4007_v22, %v847_v8  ;;  %v4173_v22 = vstv %s8247_s26 }
 0x74d   : > { %v4035_v11 = vpop.f32.mrf.mxu0  ;;  %vm8257_vm3 = vcmp.lt.s32.totalorder %v6903_v30, %v4173_v22 }
 0x753   : > { %v4009_v48 = vpop.f32.mrf.mxu2 }
 0x768   : > { %v4085_v46 = vpop.f32.mrf.mxu0 }
 0x769   : > { %v4086_v2 = vadd.f32 %v4085_v46, %v886_v33 }
 0x76d   : > { %v4059_v20 = vpop.f32.mrf.mxu2 }
 0x76e   : > { %v4060_v5 = vadd.f32 %v4059_v20, %v873_v41 }
 0x770   : > { %v4087_v4 = vpop.f32.mrf.mxu0 }
 0x775   : > { %v4061_v15 = vpop.f32.mrf.mxu2 }
 0x78f   : > { %v4046_v19 = vpop.f32.mrf.mxu1 }
 0x790   : > { %v4047_v59 = vadd.f32 %v4046_v19, %v4034_v6 }
 0x792   : > { %v4820_v31 = vmul.f32 -1.442695, %v4047_v59 }
 0x794   : > { %5719 = vpow2.f32 %v4820_v31 }
 0x795   : > { %v4020_v63 = vpop.f32.mrf.mxu3 }
 0x796   : > { %v4021_v34 = vadd.f32 %v4020_v63, %v4008_v39 }
 0x797   : > { %v4048_v52 = vpop.f32.mrf.mxu1 }
 0x798   : > { %v4819_v24 = vmul.f32 -1.442695, %v4021_v34 }
 0x79a   : > { %v5720_v57 = vpop.eup %5719  ;;  %5721 = vpow2.f32 %v4819_v24 }
 0x79b   : > { %v4124_v18 = vadd.f32 1.0, %v5720_v57 }
 0x79d   : > { %5723 = vrcp.f32 %v4124_v18  ;;  %v4022_v27 = vpop.f32.mrf.mxu3  ;;  %v4136_v38 = vand.u32 2147483648, %v4124_v18  ;;  %vm4130_vm12 = vweird.f32 %v4124_v18  ;;  %v4134_v49 = vand.u32 2147483647, %v4124_v18 }
 0x79f   : > { %v4098_v32 = vpop.f32.mrf.mxu1  ;;  %v4137_v47 = vor.u32 1.1754944e-38, %v4136_v38  ;;  %vm4135_vm0 = vcmp.eq.f32.partialorder %v4134_v49, 8.507059e+37 }
 0x7a0   : > { %v5722_v28 = vpop.eup %5721  ;;  %v4099_v53 = vadd.f32 %v4098_v32, %v4086_v2 }
 0x7a1   : > { %v4105_v9 = vadd.f32 1.0, %v5722_v28 }
 0x7a2   : > { %v4821_v60 = vmul.f32 -1.442695, %v4099_v53 }
 0x7a3   : > { %v5724_v23 = vpop.eup %5723  ;;  %5725 = vrcp.f32 %v4105_v9  ;;  %v4117_v43 = vand.u32 2147483648, %v4105_v9  ;;  %v4115_v62 = vand.u32 2147483647, %v4105_v9  ;;  %vm4111_vm15 = vweird.f32 %v4105_v9 }
 0x7a4   : > { %v4126_v61 = vmul.f32 %v5724_v23, %v4124_v18  ;;  %5727 = vpow2.f32 %v4821_v60  ;;  %vm4131_vm9 = vweird.f32 %v5724_v23 }
 0x7a5   : > { %v4072_v42 = vpop.f32.mrf.mxu3  ;;  %vm8249_vm13 = vmor %vm4130_vm12, %vm4131_vm9  ;;  %v4118_v17 = vor.u32 1.1754944e-38, %v4117_v43  ;;  %vm4116_vm2 = vcmp.eq.f32.partialorder %v4115_v62, 8.507059e+37 }
 0x7a6   : > { %v4127_v50 = vsub.f32 1.0, %v4126_v61  ;;  %v4073_v51 = vadd.f32 %v4072_v42, %v4060_v5 }
 0x7a7   : > { %v4100_v29 = vpop.f32.mrf.mxu1 }
 0x7a8   : > { %v4128_v55 = vmul.f32 %v5724_v23, %v4127_v50  ;;  %5729 = vtanh.f32 %v4073_v51 }
 0x7a9   : > { %v5726_v0 = vpop.eup %5725 }
 0x7aa   : > { %v5728_v58 = vpop.eup %5727  ;;  %v4107_v35 = vmul.f32 %v5726_v0, %v4105_v9  ;;  %v4129_v26 = vadd.f32 %v5724_v23, %v4128_v55  ;;  %vm4112_vm14 = vweird.f32 %v5726_v0 }
 0x7ab   : > { %v4144_v7 = vadd.f32 1.0, %v5728_v58  ;;  %vm4113_vm1 = vmor %vm4111_vm15, %vm4112_vm14 }
 0x7ac   : > { %v4108_v3 = vsub.f32 1.0, %v4107_v35  ;;  %v4133_v40 = vsel %vm8249_vm13, %v5724_v23, %v4129_v26 }
 0x7ad   : > { %5731 = vrcp.f32 %v4144_v7  ;;  %v4074_v13 = vpop.f32.mrf.mxu3  ;;  %v4138_v21 = vsel %vm4135_vm0, %v4137_v47, %v4133_v40  ;;  %v4154_v54 = vand.u32 2147483647, %v4144_v7  ;;  %v4156_v44 = vand.u32 2147483648, %v4144_v7 }
 0x7ae   : > { %v4109_v36 = vmul.f32 %v5726_v0, %v4108_v3  ;;  %v5730_v1 = vpop.eup %5729  ;;  %v4160_v20 = vmul.f32 %v4138_v21, %v507_v56  ;;  %vm4150_vm5 = vweird.f32 %v4144_v7 }
 0x7af   : > { %v4157_v59 = vor.u32 1.1754944e-38, %v4156_v44  ;;  %vm4155_vm7 = vcmp.eq.f32.partialorder %v4154_v54, 8.507059e+37 }
 0x7b0   : > { %v4110_v37 = vadd.f32 %v5726_v0, %v4109_v36 }
 0x7b2   : > { %v4114_v14 = vsel %vm4113_vm1, %v5726_v0, %v4110_v37 }
 0x7b3   : > { %v5732_v11 = vpop.eup %5731  ;;  %v4119_v12 = vsel %vm4116_vm2, %v4118_v17, %v4114_v14 }
 0x7b4   : > { %v4146_v48 = vmul.f32 %v5732_v11, %v4144_v7  ;;  %v4161_v46 = vmul.f32 %v5730_v1, %v4119_v12  ;;  %vm4151_vm4 = vweird.f32 %v5732_v11 }
 0x7b5   : > { %vm4152_vm6 = vmor %vm4150_vm5, %vm4151_vm4 }
 0x7b6   : > { %v4147_v4 = vsub.f32 1.0, %v4146_v48  ;;  %v4162_v10 = vadd.f32 %v4161_v46, %v4160_v20 }
 0x7b8   : > { %v4148_v6 = vmul.f32 %v5732_v11, %v4147_v4  ;;  %5733 = vtanh.f32 %v4162_v10  ;;  %v4179_v19 = vsel %vm8257_vm3, %v4162_v10, %v507_v56 }
 0x7b9   : > { %4180 = vst [vmem:[#allocation3] sm:$0xff] %v4179_v19 }
 0x7ba   : > { %v4149_v8 = vadd.f32 %v5732_v11, %v4148_v6 }
 0x7bc   : > { %v4153_v30 = vsel %vm4152_vm6, %v5732_v11, %v4149_v8 }
 0x7bd   : > { %v4158_v31 = vsel %vm4155_vm7, %v4157_v59, %v4153_v30 }
 0x7be   : > { %v5734_v39 = vpop.eup %5733 }
 0x7bf   : > { %v4164_v63 = vmul.f32 %v5734_v39, %v4158_v31 }
 0x7c1   : > { %4165 = vst [vmem:[%s490_s12] sm:$0xff] %v4164_v63  ;;  %v4177_v34 = vsel %vm8257_vm3, %v4164_v63, %v5737_v45 }
 0x7c2   : > { %4178 = vst [vmem:[#allocation2] sm:$0xff] %v4177_v34 }
 0x7c3 PF: > { %s30_s23 = sadd.s32 1, %s5774_s23   ;;  %s8371_s21 = smov %s5770_s22 }
 0x7c4   : > { %p27_p6 = scmp.ge.s32.totalorder %s30_s23, 11   ;;  %s8372_s22 = smov %s8374_s0 }
 0x7c6   :  { %29 = sbr.rel (!%p27_p6) target bundleno = 8 (0x8), region = 114 }

</bundles_post_ra>
